<compile_context>
chip_gen: v5e
topology: v5e:2x2
jax: 0.10.0
libtpu: 0.0.40
codegen_flags: <defaults>
</compile_context>

<pallas_src>
import jax
import jax.numpy as jnp
from jax.experimental import pallas as pl
from jax.experimental.pallas import tpu as pltpu

B = 2             # batch
N = 128           # number of points (Conv1d length dim)
BN = B * N
Z_SIZE = 32       # config['z_size']
USE_BIAS = True   # config['model']['E']['use_bias']

CIN_PAD = 8       # 3 xyz channels + 1 constant-1 (bias) channel + 4 zero pad
OUT_LANES = 128   # fused lane-dense output: [ z | mu | std | zero pad ]

# Packed small-weight slab (bf16).  Row offsets are multiples of 16 so every slice
# starts on a bf16 (16,128) tile boundary.
W1_R, W1_K, W1_N = 0, CIN_PAD, 64
W2_R, W2_K, W2_N = 16, 64, 128
W3_R, W3_K, W3_N = 80, 128, 256
WSMALL_SHAPE = (208, 256)

# Packed big-weight slab (bf16, all 512 lanes wide): w4 | w5 | wfc stacked on rows.
W4_R, W4_K = 0, 256
W5_R, W5_K = 256, 512
WFC_R, WFC_K = 768, 512
WBIG_SHAPE = (1280, 512)

# Bias slab rows (f32).  b1 is folded into w1 via the constant-1 input channel.
B2_ROW, B3_ROW, B4_ROW, B5_ROW, BFC_ROW, BHEAD_ROW = 0, 1, 2, 3, 4, 5
BIAS_SHAPE = (8, 512)


def encoder_kernel(x_ref, wsmall, whead, bias, eps_ref, wbig_hbm,
                   out_ref, wbig, sem):
    """x/w_small/w_head/bias/eps are VMEM refs; wbig_hbm is a raw HBM ref.

    wbig  : (1280, 512) bf16 VMEM scratch receiving w4|w5|wfc.
    sem   : (3,) DMA semaphores (one per big-weight piece).
    out   : (B, 128) f32 lane-dense [z | mu | std | pad].
    """
    # ---- kick off the big-weight copies immediately so they overlap the small
    # early-layer matmuls instead of serializing ahead of all compute.
    cp_w4 = pltpu.make_async_copy(wbig_hbm.at[pl.ds(W4_R, W4_K)],
                                  wbig.at[pl.ds(W4_R, W4_K)], sem.at[0])
    cp_w5 = pltpu.make_async_copy(wbig_hbm.at[pl.ds(W5_R, W5_K)],
                                  wbig.at[pl.ds(W5_R, W5_K)], sem.at[1])
    cp_fc = pltpu.make_async_copy(wbig_hbm.at[pl.ds(WFC_R, WFC_K)],
                                  wbig.at[pl.ds(WFC_R, WFC_K)], sem.at[2])
    cp_w4.start()
    cp_w5.start()
    cp_fc.start()

    # ---- conv layers 1..3 (weights already VMEM-resident; layer-1 bias folded
    # into w1 via the constant-1 input channel, so no bias add here).
    h = x_ref[...]                                                    # (BN, 8) bf16
    a1 = jnp.dot(h, wsmall[W1_R:W1_R + W1_K, 0:W1_N],
                 preferred_element_type=jnp.float32)
    h1 = jnp.maximum(a1, 0.0).astype(jnp.bfloat16)                    # (BN, 64)
    a2 = jnp.dot(h1, wsmall[W2_R:W2_R + W2_K, 0:W2_N],
                 preferred_element_type=jnp.float32) + bias[B2_ROW:B2_ROW + 1, 0:W2_N]
    h2 = jnp.maximum(a2, 0.0).astype(jnp.bfloat16)                    # (BN, 128)
    a3 = jnp.dot(h2, wsmall[W3_R:W3_R + W3_K, 0:W3_N],
                 preferred_element_type=jnp.float32) + bias[B3_ROW:B3_ROW + 1, 0:W3_N]
    h3 = jnp.maximum(a3, 0.0).astype(jnp.bfloat16)                    # (BN, 256)

    # ---- conv layers 4..5 + global max, one batch (N rows) at a time: bounds the
    # f32 intermediate to (N, 512) and folds the length-dim max in as we go.
    cp_w4.wait()
    cp_w5.wait()
    b4 = bias[B4_ROW:B4_ROW + 1, :]
    b5 = bias[B5_ROW:B5_ROW + 1, :]
    feat_rows = []
    for b in range(B):
        h3b = h3[b * N:(b + 1) * N, :]                                # (N, 256) bf16
        a4 = jnp.dot(h3b, wbig[W4_R:W4_R + W4_K, :],
                     preferred_element_type=jnp.float32) + b4
        h4 = jnp.maximum(a4, 0.0).astype(jnp.bfloat16)                # (N, 512)
        a5 = jnp.dot(h4, wbig[W5_R:W5_R + W5_K, :],
                     preferred_element_type=jnp.float32) + b5         # (N, 512) f32
        feat_rows.append(jnp.max(a5, axis=0, keepdims=True))          # (1, 512)
    feat = jnp.concatenate(feat_rows, axis=0)                         # (B, 512) f32

    # ---- fc 512->512 + ReLU
    cp_fc.wait()
    hid = jnp.maximum(
        jnp.dot(feat.astype(jnp.bfloat16), wbig[WFC_R:WFC_R + WFC_K, :],
                preferred_element_type=jnp.float32) + bias[BFC_ROW:BFC_ROW + 1, :],
        0.0)                                                          # (B, 512) f32

    # ---- fused mu|logvar head + reparameterize
    head = jnp.dot(hid.astype(jnp.bfloat16), whead[...],
                   preferred_element_type=jnp.float32) \
           + bias[BHEAD_ROW:BHEAD_ROW + 1, 0:2 * Z_SIZE]              # (B, 2Z)
    mu = head[:, :Z_SIZE]
    std = jnp.exp(head[:, Z_SIZE:])          # torch.exp(logvar), as in the module
    z = eps_ref[...] * std + mu              # eps.mul(std).add_(mu)

    # Single lane-dense store: [ z | mu | std | zero pad ]  -> one writeback DMA.
    out_ref[...] = jnp.concatenate(
        [z, mu, std, jnp.zeros((B, OUT_LANES - 3 * Z_SIZE), jnp.float32)], axis=1)


def init_params(key):
    """Deterministic synthetic parameters packed into the kernel's slab layout."""
    keys = jax.random.split(key, 16)
    k = iter(keys)

    def nrm(shape, s):
        return s * jax.random.normal(next(k), shape, dtype=jnp.float32)

    def conv_bias(cout):
        v = nrm((cout,), 0.1)
        return v if USE_BIAS else jnp.zeros((cout,), jnp.float32)

    # PyTorch Conv1d weights are (out, in, 1); stored here as (in, out).
    w1 = nrm((3, 64), 0.1);     b1 = conv_bias(64)
    w2 = nrm((64, 128), 0.1);   b2 = conv_bias(128)
    w3 = nrm((128, 256), 0.1);  b3 = conv_bias(256)
    w4 = nrm((256, 512), 0.1);  b4 = conv_bias(512)
    w5 = nrm((512, 512), 0.1);  b5 = conv_bias(512)
    wfc = nrm((512, 512), 0.05);  bfc = nrm((512,), 0.05)
    wmu = nrm((512, Z_SIZE), 0.05);  bmu = nrm((Z_SIZE,), 0.05)
    wst = nrm((512, Z_SIZE), 0.05);  bst = nrm((Z_SIZE,), 0.05)

    # Layer-1 weight augmented with its bias as the row hit by the constant-1
    # input channel (channel index 3), then zero rows for the remaining pad.
    w1a = jnp.concatenate([w1, b1[None, :], jnp.zeros((CIN_PAD - 4, 64), jnp.float32)],
                          axis=0)                                     # (8, 64)

    w_small = jnp.zeros(WSMALL_SHAPE, jnp.float32)
    w_small = w_small.at[W1_R:W1_R + W1_K, 0:W1_N].set(w1a)
    w_small = w_small.at[W2_R:W2_R + W2_K, 0:W2_N].set(w2)
    w_small = w_small.at[W3_R:W3_R + W3_K, 0:W3_N].set(w3)

    w_big = jnp.concatenate([w4, w5, wfc], axis=0)                    # (1280, 512)
    w_head = jnp.concatenate([wmu, wst], axis=1)                      # (512, 2Z)

    bias = jnp.zeros(BIAS_SHAPE, jnp.float32)
    bias = bias.at[B2_ROW, 0:W2_N].set(b2)
    bias = bias.at[B3_ROW, 0:W3_N].set(b3)
    bias = bias.at[B4_ROW, :].set(b4)
    bias = bias.at[B5_ROW, :].set(b5)
    bias = bias.at[BFC_ROW, :].set(bfc)
    bias = bias.at[BHEAD_ROW, 0:2 * Z_SIZE].set(jnp.concatenate([bmu, bst]))

    return {
        'w_small': w_small.astype(jnp.bfloat16),
        'w_big': w_big.astype(jnp.bfloat16),
        'w_head': w_head.astype(jnp.bfloat16),
        'bias': bias,
    }


def prep_input(x_ncl):
    """NCL -> flattened channels-last (B*N, 8) bf16: [x, y, z, 1, 0, 0, 0, 0]."""
    x = jnp.transpose(x_ncl, (0, 2, 1)).astype(jnp.float32).reshape(BN, 3)
    ones = jnp.ones((BN, 1), jnp.float32)                 # constant-1 bias channel
    pad = jnp.zeros((BN, CIN_PAD - 4), jnp.float32)
    return jnp.concatenate([x, ones, pad], axis=1).astype(jnp.bfloat16)


def encoder_forward(x_ncl, params, eps):
    """Layout glue (transpose/flatten/pad, output unpack) around one Pallas call."""
    x = prep_input(x_ncl)
    vmem = lambda: pl.BlockSpec(memory_space=pltpu.MemorySpace.VMEM)
    out = pl.pallas_call(
        encoder_kernel,
        out_shape=jax.ShapeDtypeStruct((B, OUT_LANES), jnp.float32),
        in_specs=[vmem(), vmem(), vmem(), vmem(), vmem(),
                  pl.BlockSpec(memory_space=pl.ANY)],      # w_big stays in HBM
        out_specs=vmem(),
        scratch_shapes=[pltpu.VMEM(WBIG_SHAPE, jnp.bfloat16),
                        pltpu.SemaphoreType.DMA((3,))],
    )(x, params['w_small'], params['w_head'], params['bias'], eps, params['w_big'])
    z = out[:, 0:Z_SIZE]
    mu = out[:, Z_SIZE:2 * Z_SIZE]
    std = out[:, 2 * Z_SIZE:3 * Z_SIZE]
    return z, mu, std


def ref_forward(x_ncl, p, eps):
    """Pure-JAX reference mirroring the kernel math (same bf16/f32 handling)."""
    ws, wb, wh, bias = p['w_small'], p['w_big'], p['w_head'], p['bias']
    h = prep_input(x_ncl)
    a1 = jnp.dot(h, ws[W1_R:W1_R + W1_K, 0:W1_N], preferred_element_type=jnp.float32)
    h1 = jnp.maximum(a1, 0.0).astype(jnp.bfloat16)
    a2 = jnp.dot(h1, ws[W2_R:W2_R + W2_K, 0:W2_N],
                 preferred_element_type=jnp.float32) + bias[B2_ROW:B2_ROW + 1, 0:W2_N]
    h2 = jnp.maximum(a2, 0.0).astype(jnp.bfloat16)
    a3 = jnp.dot(h2, ws[W3_R:W3_R + W3_K, 0:W3_N],
                 preferred_element_type=jnp.float32) + bias[B3_ROW:B3_ROW + 1, 0:W3_N]
    h3 = jnp.maximum(a3, 0.0).astype(jnp.bfloat16)
    feats = []
    for b in range(B):
        h3b = h3[b * N:(b + 1) * N, :]
        a4 = jnp.dot(h3b, wb[W4_R:W4_R + W4_K, :],
                     preferred_element_type=jnp.float32) + bias[B4_ROW:B4_ROW + 1, :]
        h4 = jnp.maximum(a4, 0.0).astype(jnp.bfloat16)
        a5 = jnp.dot(h4, wb[W5_R:W5_R + W5_K, :],
                     preferred_element_type=jnp.float32) + bias[B5_ROW:B5_ROW + 1, :]
        feats.append(jnp.max(a5, axis=0, keepdims=True))
    feat = jnp.concatenate(feats, axis=0)
    hid = jnp.maximum(
        jnp.dot(feat.astype(jnp.bfloat16), wb[WFC_R:WFC_R + WFC_K, :],
                preferred_element_type=jnp.float32) + bias[BFC_ROW:BFC_ROW + 1, :], 0.0)
    head = jnp.dot(hid.astype(jnp.bfloat16), wh,
                   preferred_element_type=jnp.float32) \
           + bias[BHEAD_ROW:BHEAD_ROW + 1, 0:2 * Z_SIZE]
    mu = head[:, :Z_SIZE]
    std = jnp.exp(head[:, Z_SIZE:])
    return eps * std + mu, mu, std


if __name__ == "__main__":
    key = jax.random.PRNGKey(0)
    kx, kp, ke = jax.random.split(key, 3)

    x = jax.random.normal(kx, (B, 3, N), dtype=jnp.float32)   # PyTorch NCL input
    params = init_params(kp)
    # eps supplied deterministically instead of torch.randn_like inside the module.
    eps = jax.random.normal(ke, (B, Z_SIZE), dtype=jnp.float32)

    fwd = jax.jit(encoder_forward)
    z, mu, var = fwd(x, params, eps)
    jax.block_until_ready((z, mu, var))

    z_r, mu_r, var_r = ref_forward(x, params, eps)
    assert jnp.allclose(z, z_r, atol=1e-2, rtol=1e-2)
    assert jnp.allclose(mu, mu_r, atol=1e-2, rtol=1e-2)
    assert jnp.allclose(var, var_r, atol=1e-2, rtol=1e-2)

    print("KERNEL_OK")
</pallas_src>

<mosaic_0001>
module attributes {stable_mosaic.version = 11 : i64} {
  func.func @encoder_kernel(%arg0: memref<256x8xbf16, #tpu.memory_space<vmem>>, %arg1: memref<208x256xbf16, #tpu.memory_space<vmem>>, %arg2: memref<512x64xbf16, #tpu.memory_space<vmem>>, %arg3: memref<8x512xf32, #tpu.memory_space<vmem>>, %arg4: memref<2x32xf32, #tpu.memory_space<vmem>>, %arg5: memref<1280x512xbf16, #tpu.memory_space<any>>, %arg6: memref<2x128xf32, #tpu.memory_space<vmem>>, %arg7: memref<1280x512xbf16, #tpu.memory_space<vmem>>, %arg8: memref<3x!tpu.dma_semaphore, #tpu.memory_space<semaphore_mem>>) attributes {dimension_semantics = [], scalar_prefetch = 0 : i64, scratch_operands = 2 : i64, tpu.core_type = #tpu.core_type<tc>} {
    %c0_i32 = arith.constant 0 : i32
    %c0_i32_0 = arith.constant 0 : i32
    %c0_i32_1 = arith.constant 0 : i32
    %0 = tpu.memref_slice %arg5[%c0_i32_0, %c0_i32_1] : memref<1280x512xbf16, #tpu.memory_space<any>> -> memref<256x512xbf16, #tpu.memory_space<any>>
    %c0_i32_2 = arith.constant 0 : i32
    %c0_i32_3 = arith.constant 0 : i32
    %1 = tpu.memref_slice %arg7[%c0_i32_2, %c0_i32_3] : memref<1280x512xbf16, #tpu.memory_space<vmem>> -> memref<256x512xbf16, #tpu.memory_space<vmem>>
    %2 = tpu.memref_slice %arg8[%c0_i32] : memref<3x!tpu.dma_semaphore, #tpu.memory_space<semaphore_mem>> -> memref<1x!tpu.dma_semaphore, #tpu.memory_space<semaphore_mem>>
    %3 = tpu.memref_squeeze %2 : memref<1x!tpu.dma_semaphore, #tpu.memory_space<semaphore_mem>> -> memref<!tpu.dma_semaphore, #tpu.memory_space<semaphore_mem>>
    tpu.enqueue_dma source(%0 : memref<256x512xbf16, #tpu.memory_space<any>>) target(%1 : memref<256x512xbf16, #tpu.memory_space<vmem>>) target_semaphore(%3 : memref<!tpu.dma_semaphore, #tpu.memory_space<semaphore_mem>>)
    %c1_i32 = arith.constant 1 : i32
    %c256_i32 = arith.constant 256 : i32
    %c0_i32_4 = arith.constant 0 : i32
    %4 = tpu.memref_slice %arg5[%c256_i32, %c0_i32_4] : memref<1280x512xbf16, #tpu.memory_space<any>> -> memref<512x512xbf16, #tpu.memory_space<any>>
    %c256_i32_5 = arith.constant 256 : i32
    %c0_i32_6 = arith.constant 0 : i32
    %5 = tpu.memref_slice %arg7[%c256_i32_5, %c0_i32_6] : memref<1280x512xbf16, #tpu.memory_space<vmem>> -> memref<512x512xbf16, #tpu.memory_space<vmem>>
    %6 = tpu.memref_slice %arg8[%c1_i32] : memref<3x!tpu.dma_semaphore, #tpu.memory_space<semaphore_mem>> -> memref<1x!tpu.dma_semaphore, #tpu.memory_space<semaphore_mem>>
    %7 = tpu.memref_squeeze %6 : memref<1x!tpu.dma_semaphore, #tpu.memory_space<semaphore_mem>> -> memref<!tpu.dma_semaphore, #tpu.memory_space<semaphore_mem>>
    tpu.enqueue_dma source(%4 : memref<512x512xbf16, #tpu.memory_space<any>>) target(%5 : memref<512x512xbf16, #tpu.memory_space<vmem>>) target_semaphore(%7 : memref<!tpu.dma_semaphore, #tpu.memory_space<semaphore_mem>>)
    %c2_i32 = arith.constant 2 : i32
    %c768_i32 = arith.constant 768 : i32
    %c0_i32_7 = arith.constant 0 : i32
    %8 = tpu.memref_slice %arg5[%c768_i32, %c0_i32_7] : memref<1280x512xbf16, #tpu.memory_space<any>> -> memref<512x512xbf16, #tpu.memory_space<any>>
    %c768_i32_8 = arith.constant 768 : i32
    %c0_i32_9 = arith.constant 0 : i32
    %9 = tpu.memref_slice %arg7[%c768_i32_8, %c0_i32_9] : memref<1280x512xbf16, #tpu.memory_space<vmem>> -> memref<512x512xbf16, #tpu.memory_space<vmem>>
    %10 = tpu.memref_slice %arg8[%c2_i32] : memref<3x!tpu.dma_semaphore, #tpu.memory_space<semaphore_mem>> -> memref<1x!tpu.dma_semaphore, #tpu.memory_space<semaphore_mem>>
    %11 = tpu.memref_squeeze %10 : memref<1x!tpu.dma_semaphore, #tpu.memory_space<semaphore_mem>> -> memref<!tpu.dma_semaphore, #tpu.memory_space<semaphore_mem>>
    tpu.enqueue_dma source(%8 : memref<512x512xbf16, #tpu.memory_space<any>>) target(%9 : memref<512x512xbf16, #tpu.memory_space<vmem>>) target_semaphore(%11 : memref<!tpu.dma_semaphore, #tpu.memory_space<semaphore_mem>>)
    %c0 = arith.constant 0 : index
    %c0_10 = arith.constant 0 : index
    %12 = vector.load %arg0[%c0, %c0_10] : memref<256x8xbf16, #tpu.memory_space<vmem>>, vector<256x8xbf16>
    %c0_11 = arith.constant 0 : index
    %c0_12 = arith.constant 0 : index
    %13 = vector.load %arg1[%c0_11, %c0_12] : memref<208x256xbf16, #tpu.memory_space<vmem>>, vector<8x64xbf16>
    %cst = arith.constant dense<0.000000e+00> : vector<256x64xf32>
    %14 = tpu.matmul %12, %13, %cst {dimension_numbers = #tpu.dot_dimension_numbers<[1], [0], [0], [1], [0, 0, 1, 1], [], []>} : vector<256x8xbf16>, vector<8x64xbf16>, vector<256x64xf32> -> vector<256x64xf32>
    %cst_13 = arith.constant 0.000000e+00 : f32
    %15 = vector.broadcast %cst_13 : f32 to vector<256x64xf32>
    %16 = arith.maximumf %14, %15 : vector<256x64xf32>
    %17 = arith.truncf %16 : vector<256x64xf32> to vector<256x64xbf16>
    %c16 = arith.constant 16 : index
    %c0_14 = arith.constant 0 : index
    %18 = vector.load %arg1[%c16, %c0_14] : memref<208x256xbf16, #tpu.memory_space<vmem>>, vector<64x128xbf16>
    %cst_15 = arith.constant dense<0.000000e+00> : vector<256x128xf32>
    %19 = tpu.matmul %17, %18, %cst_15 {dimension_numbers = #tpu.dot_dimension_numbers<[1], [0], [0], [1], [0, 0, 1, 1], [], []>} : vector<256x64xbf16>, vector<64x128xbf16>, vector<256x128xf32> -> vector<256x128xf32>
    %c0_16 = arith.constant 0 : index
    %c0_17 = arith.constant 0 : index
    %20 = vector.load %arg3[%c0_16, %c0_17] : memref<8x512xf32, #tpu.memory_space<vmem>>, vector<1x128xf32>
    %21 = vector.broadcast %20 : vector<1x128xf32> to vector<256x128xf32>
    %22 = arith.addf %19, %21 : vector<256x128xf32>
    %cst_18 = arith.constant 0.000000e+00 : f32
    %23 = vector.broadcast %cst_18 : f32 to vector<256x128xf32>
    %24 = arith.maximumf %22, %23 : vector<256x128xf32>
    %25 = arith.truncf %24 : vector<256x128xf32> to vector<256x128xbf16>
    %c80 = arith.constant 80 : index
    %c0_19 = arith.constant 0 : index
    %26 = vector.load %arg1[%c80, %c0_19] : memref<208x256xbf16, #tpu.memory_space<vmem>>, vector<128x256xbf16>
    %cst_20 = arith.constant dense<0.000000e+00> : vector<256x256xf32>
    %27 = tpu.matmul %25, %26, %cst_20 {dimension_numbers = #tpu.dot_dimension_numbers<[1], [0], [0], [1], [0, 0, 1, 1], [], []>} : vector<256x128xbf16>, vector<128x256xbf16>, vector<256x256xf32> -> vector<256x256xf32>
    %c1 = arith.constant 1 : index
    %c0_21 = arith.constant 0 : index
    %28 = vector.load %arg3[%c1, %c0_21] : memref<8x512xf32, #tpu.memory_space<vmem>>, vector<1x256xf32>
    %29 = vector.broadcast %28 : vector<1x256xf32> to vector<256x256xf32>
    %30 = arith.addf %27, %29 : vector<256x256xf32>
    %cst_22 = arith.constant 0.000000e+00 : f32
    %31 = vector.broadcast %cst_22 : f32 to vector<256x256xf32>
    %32 = arith.maximumf %30, %31 : vector<256x256xf32>
    %33 = arith.truncf %32 : vector<256x256xf32> to vector<256x256xbf16>
    %c0_i32_23 = arith.constant 0 : i32
    %c0_i32_24 = arith.constant 0 : i32
    %c0_i32_25 = arith.constant 0 : i32
    %34 = tpu.memref_slice %arg5[%c0_i32_24, %c0_i32_25] : memref<1280x512xbf16, #tpu.memory_space<any>> -> memref<256x512xbf16, #tpu.memory_space<any>>
    %c0_i32_26 = arith.constant 0 : i32
    %c0_i32_27 = arith.constant 0 : i32
    %35 = tpu.memref_slice %arg7[%c0_i32_26, %c0_i32_27] : memref<1280x512xbf16, #tpu.memory_space<vmem>> -> memref<256x512xbf16, #tpu.memory_space<vmem>>
    %36 = tpu.memref_slice %arg8[%c0_i32_23] : memref<3x!tpu.dma_semaphore, #tpu.memory_space<semaphore_mem>> -> memref<1x!tpu.dma_semaphore, #tpu.memory_space<semaphore_mem>>
    %37 = tpu.memref_squeeze %36 : memref<1x!tpu.dma_semaphore, #tpu.memory_space<semaphore_mem>> -> memref<!tpu.dma_semaphore, #tpu.memory_space<semaphore_mem>>
    tpu.wait_dma2 semaphore(%37 : memref<!tpu.dma_semaphore, #tpu.memory_space<semaphore_mem>>) src(%34 : memref<256x512xbf16, #tpu.memory_space<any>>) dst(%35 : memref<256x512xbf16, #tpu.memory_space<vmem>>)
    %c1_i32_28 = arith.constant 1 : i32
    %c256_i32_29 = arith.constant 256 : i32
    %c0_i32_30 = arith.constant 0 : i32
    %38 = tpu.memref_slice %arg5[%c256_i32_29, %c0_i32_30] : memref<1280x512xbf16, #tpu.memory_space<any>> -> memref<512x512xbf16, #tpu.memory_space<any>>
    %c256_i32_31 = arith.constant 256 : i32
    %c0_i32_32 = arith.constant 0 : i32
    %39 = tpu.memref_slice %arg7[%c256_i32_31, %c0_i32_32] : memref<1280x512xbf16, #tpu.memory_space<vmem>> -> memref<512x512xbf16, #tpu.memory_space<vmem>>
    %40 = tpu.memref_slice %arg8[%c1_i32_28] : memref<3x!tpu.dma_semaphore, #tpu.memory_space<semaphore_mem>> -> memref<1x!tpu.dma_semaphore, #tpu.memory_space<semaphore_mem>>
    %41 = tpu.memref_squeeze %40 : memref<1x!tpu.dma_semaphore, #tpu.memory_space<semaphore_mem>> -> memref<!tpu.dma_semaphore, #tpu.memory_space<semaphore_mem>>
    tpu.wait_dma2 semaphore(%41 : memref<!tpu.dma_semaphore, #tpu.memory_space<semaphore_mem>>) src(%38 : memref<512x512xbf16, #tpu.memory_space<any>>) dst(%39 : memref<512x512xbf16, #tpu.memory_space<vmem>>)
    %c2 = arith.constant 2 : index
    %c0_33 = arith.constant 0 : index
    %42 = vector.load %arg3[%c2, %c0_33] : memref<8x512xf32, #tpu.memory_space<vmem>>, vector<1x512xf32>
    %c3 = arith.constant 3 : index
    %c0_34 = arith.constant 0 : index
    %43 = vector.load %arg3[%c3, %c0_34] : memref<8x512xf32, #tpu.memory_space<vmem>>, vector<1x512xf32>
    %44 = vector.extract_strided_slice %33 {offsets = [0, 0], sizes = [128, 256], strides = [1, 1]} : vector<256x256xbf16> to vector<128x256xbf16>
    %c0_35 = arith.constant 0 : index
    %c0_36 = arith.constant 0 : index
    %45 = vector.load %arg7[%c0_35, %c0_36] : memref<1280x512xbf16, #tpu.memory_space<vmem>>, vector<256x512xbf16>
    %cst_37 = arith.constant dense<0.000000e+00> : vector<128x512xf32>
    %46 = tpu.matmul %44, %45, %cst_37 {dimension_numbers = #tpu.dot_dimension_numbers<[1], [0], [0], [1], [0, 0, 1, 1], [], []>} : vector<128x256xbf16>, vector<256x512xbf16>, vector<128x512xf32> -> vector<128x512xf32>
    %47 = vector.broadcast %42 : vector<1x512xf32> to vector<128x512xf32>
    %48 = arith.addf %46, %47 : vector<128x512xf32>
    %cst_38 = arith.constant 0.000000e+00 : f32
    %49 = vector.broadcast %cst_38 : f32 to vector<128x512xf32>
    %50 = arith.maximumf %48, %49 : vector<128x512xf32>
    %51 = arith.truncf %50 : vector<128x512xf32> to vector<128x512xbf16>
    %c256 = arith.constant 256 : index
    %c0_39 = arith.constant 0 : index
    %52 = vector.load %arg7[%c256, %c0_39] : memref<1280x512xbf16, #tpu.memory_space<vmem>>, vector<512x512xbf16>
    %cst_40 = arith.constant dense<0.000000e+00> : vector<128x512xf32>
    %53 = tpu.matmul %51, %52, %cst_40 {dimension_numbers = #tpu.dot_dimension_numbers<[1], [0], [0], [1], [0, 0, 1, 1], [], []>} : vector<128x512xbf16>, vector<512x512xbf16>, vector<128x512xf32> -> vector<128x512xf32>
    %54 = vector.broadcast %43 : vector<1x512xf32> to vector<128x512xf32>
    %55 = arith.addf %53, %54 : vector<128x512xf32>
    %cst_41 = arith.constant dense<0xFF800000> : vector<512xf32>
    %56 = vector.multi_reduction <maximumf>, %55, %cst_41 [0] : vector<128x512xf32> to vector<512xf32>
    %57 = vector.shape_cast %56 : vector<512xf32> to vector<1x512xf32>
    %58 = vector.extract_strided_slice %33 {offsets = [128, 0], sizes = [128, 256], strides = [1, 1]} : vector<256x256xbf16> to vector<128x256xbf16>
    %c0_42 = arith.constant 0 : index
    %c0_43 = arith.constant 0 : index
    %59 = vector.load %arg7[%c0_42, %c0_43] : memref<1280x512xbf16, #tpu.memory_space<vmem>>, vector<256x512xbf16>
    %cst_44 = arith.constant dense<0.000000e+00> : vector<128x512xf32>
    %60 = tpu.matmul %58, %59, %cst_44 {dimension_numbers = #tpu.dot_dimension_numbers<[1], [0], [0], [1], [0, 0, 1, 1], [], []>} : vector<128x256xbf16>, vector<256x512xbf16>, vector<128x512xf32> -> vector<128x512xf32>
    %61 = vector.broadcast %42 : vector<1x512xf32> to vector<128x512xf32>
    %62 = arith.addf %60, %61 : vector<128x512xf32>
    %cst_45 = arith.constant 0.000000e+00 : f32
    %63 = vector.broadcast %cst_45 : f32 to vector<128x512xf32>
    %64 = arith.maximumf %62, %63 : vector<128x512xf32>
    %65 = arith.truncf %64 : vector<128x512xf32> to vector<128x512xbf16>
    %c256_46 = arith.constant 256 : index
    %c0_47 = arith.constant 0 : index
    %66 = vector.load %arg7[%c256_46, %c0_47] : memref<1280x512xbf16, #tpu.memory_space<vmem>>, vector<512x512xbf16>
    %cst_48 = arith.constant dense<0.000000e+00> : vector<128x512xf32>
    %67 = tpu.matmul %65, %66, %cst_48 {dimension_numbers = #tpu.dot_dimension_numbers<[1], [0], [0], [1], [0, 0, 1, 1], [], []>} : vector<128x512xbf16>, vector<512x512xbf16>, vector<128x512xf32> -> vector<128x512xf32>
    %68 = vector.broadcast %43 : vector<1x512xf32> to vector<128x512xf32>
    %69 = arith.addf %67, %68 : vector<128x512xf32>
    %cst_49 = arith.constant dense<0xFF800000> : vector<512xf32>
    %70 = vector.multi_reduction <maximumf>, %69, %cst_49 [0] : vector<128x512xf32> to vector<512xf32>
    %71 = vector.shape_cast %70 : vector<512xf32> to vector<1x512xf32>
    %72 = tpu.concatenate %57, %71 in 0 : vector<1x512xf32>, vector<1x512xf32> -> vector<2x512xf32>
    %c2_i32_50 = arith.constant 2 : i32
    %c768_i32_51 = arith.constant 768 : i32
    %c0_i32_52 = arith.constant 0 : i32
    %73 = tpu.memref_slice %arg5[%c768_i32_51, %c0_i32_52] : memref<1280x512xbf16, #tpu.memory_space<any>> -> memref<512x512xbf16, #tpu.memory_space<any>>
    %c768_i32_53 = arith.constant 768 : i32
    %c0_i32_54 = arith.constant 0 : i32
    %74 = tpu.memref_slice %arg7[%c768_i32_53, %c0_i32_54] : memref<1280x512xbf16, #tpu.memory_space<vmem>> -> memref<512x512xbf16, #tpu.memory_space<vmem>>
    %75 = tpu.memref_slice %arg8[%c2_i32_50] : memref<3x!tpu.dma_semaphore, #tpu.memory_space<semaphore_mem>> -> memref<1x!tpu.dma_semaphore, #tpu.memory_space<semaphore_mem>>
    %76 = tpu.memref_squeeze %75 : memref<1x!tpu.dma_semaphore, #tpu.memory_space<semaphore_mem>> -> memref<!tpu.dma_semaphore, #tpu.memory_space<semaphore_mem>>
    tpu.wait_dma2 semaphore(%76 : memref<!tpu.dma_semaphore, #tpu.memory_space<semaphore_mem>>) src(%73 : memref<512x512xbf16, #tpu.memory_space<any>>) dst(%74 : memref<512x512xbf16, #tpu.memory_space<vmem>>)
    %77 = arith.truncf %72 : vector<2x512xf32> to vector<2x512xbf16>
    %c768 = arith.constant 768 : index
    %c0_55 = arith.constant 0 : index
    %78 = vector.load %arg7[%c768, %c0_55] : memref<1280x512xbf16, #tpu.memory_space<vmem>>, vector<512x512xbf16>
    %cst_56 = arith.constant dense<0.000000e+00> : vector<2x512xf32>
    %79 = tpu.matmul %77, %78, %cst_56 {dimension_numbers = #tpu.dot_dimension_numbers<[1], [0], [0], [1], [0, 0, 1, 1], [], []>} : vector<2x512xbf16>, vector<512x512xbf16>, vector<2x512xf32> -> vector<2x512xf32>
    %c4 = arith.constant 4 : index
    %c0_57 = arith.constant 0 : index
    %80 = vector.load %arg3[%c4, %c0_57] : memref<8x512xf32, #tpu.memory_space<vmem>>, vector<1x512xf32>
    %81 = vector.broadcast %80 : vector<1x512xf32> to vector<2x512xf32>
    %82 = arith.addf %79, %81 : vector<2x512xf32>
    %cst_58 = arith.constant 0.000000e+00 : f32
    %83 = vector.broadcast %cst_58 : f32 to vector<2x512xf32>
    %84 = arith.maximumf %82, %83 : vector<2x512xf32>
    %85 = arith.truncf %84 : vector<2x512xf32> to vector<2x512xbf16>
    %c0_59 = arith.constant 0 : index
    %c0_60 = arith.constant 0 : index
    %86 = vector.load %arg2[%c0_59, %c0_60] : memref<512x64xbf16, #tpu.memory_space<vmem>>, vector<512x64xbf16>
    %cst_61 = arith.constant dense<0.000000e+00> : vector<2x64xf32>
    %87 = tpu.matmul %85, %86, %cst_61 {dimension_numbers = #tpu.dot_dimension_numbers<[1], [0], [0], [1], [0, 0, 1, 1], [], []>} : vector<2x512xbf16>, vector<512x64xbf16>, vector<2x64xf32> -> vector<2x64xf32>
    %c5 = arith.constant 5 : index
    %c0_62 = arith.constant 0 : index
    %88 = vector.load %arg3[%c5, %c0_62] : memref<8x512xf32, #tpu.memory_space<vmem>>, vector<1x64xf32>
    %89 = vector.broadcast %88 : vector<1x64xf32> to vector<2x64xf32>
    %90 = arith.addf %87, %89 : vector<2x64xf32>
    %91 = vector.extract_strided_slice %90 {offsets = [0, 0], sizes = [2, 32], strides = [1, 1]} : vector<2x64xf32> to vector<2x32xf32>
    %92 = vector.extract_strided_slice %90 {offsets = [0, 32], sizes = [2, 32], strides = [1, 1]} : vector<2x64xf32> to vector<2x32xf32>
    %93 = math.exp %92 : vector<2x32xf32>
    %c0_63 = arith.constant 0 : index
    %c0_64 = arith.constant 0 : index
    %94 = vector.load %arg4[%c0_63, %c0_64] : memref<2x32xf32, #tpu.memory_space<vmem>>, vector<2x32xf32>
    %95 = arith.mulf %94, %93 : vector<2x32xf32>
    %96 = arith.addf %95, %91 : vector<2x32xf32>
    %cst_65 = arith.constant 0.000000e+00 : f32
    %97 = vector.broadcast %cst_65 : f32 to vector<2x32xf32>
    %98 = tpu.concatenate %96, %91, %93, %97 in 1 : vector<2x32xf32>, vector<2x32xf32>, vector<2x32xf32>, vector<2x32xf32> -> vector<2x128xf32>
    %c0_66 = arith.constant 0 : index
    %c0_67 = arith.constant 0 : index
    %99 = vector.load %arg6[%c0_66, %c0_67] : memref<2x128xf32, #tpu.memory_space<vmem>>, vector<2x128xf32>
    tpu.vector_store %arg6[%c0_66, %c0_67], %98 {strides = array<i32>} : memref<2x128xf32, #tpu.memory_space<vmem>>, vector<2x128xf32>,
    return
  }
}

</mosaic_0001>

<bundles_post_ra>
// kernel: encoder_forward.1
= control target key start
LH: loop header
LB: loop body
LE: loop exit
PB: predicated region body
PF: predicated region fallthrough
CT: control target
= control target key end

     0   :  { %11 = vsyncpa [#allocation5], 0  ;;  %s10773_s0 = inlined_call_operand.vmem [shape: bf16[256,8], index: 0, kind: input, shape index: {}]   ;;  %s10774_s1 = inlined_call_operand.hbm [shape: bf16[208,256], index: 1, kind: input, shape index: {}]   ;;  %s10775_s2 = inlined_call_operand.vmem [shape: bf16[512,64], index: 2, kind: input, shape index: {}]   ;;  %s10776_s3 = inlined_call_operand.hbm [shape: f32[8,512], index: 3, kind: input, shape index: {}]   ;;  %s10777_s4 = inlined_call_operand.hbm [shape: f32[2,32], index: 4, kind: input, shape index: {}]   ;;  %s10778_s5 = inlined_call_operand.hbm [shape: bf16[1280,512], index: 5, kind: input, shape index: {}]   ;;  %s10779_s6 = inlined_call_operand.vmem [shape: f32[2,128], index: 6, kind: output, shape index: {}]  }
   0x1   :  { %12 = vsyncpa [#allocation7], 0  ;;  %s35_s23 = sshll.u32 %s10776_s3, 4  ;;  %s8568_s24 = smov [#allocation6]   ;;  %s36_s23 = int_to_ptr.hbm [resolvable:$true] %s35_s23 }
   0x2   :  { %s37_s25 = sshll.u32 %s8568_s24, 4  ;;  %s19_s28 = sshll.u32 %s10774_s1, 4  ;;  %s38_s25 = int_to_ptr.vmem [resolvable:$true] %s37_s25  ;;  %s20_s28 = int_to_ptr.hbm [resolvable:$true] %s19_s28 }
   0x3   :  { %40 = dma.hbm_to_vmem [thread:$0]  %s36_s23, 512, %s38_s25, [#allocation7]  }
   0x4   :  { %s8569_s29 = smov [#allocation4]   ;;  %s8570_s7 = smov 128  }
   0x5   :  { %s21_s30 = sshll.u32 %s8569_s29, 4  ;;  %s8571_s8 = smov 8   ;;  %s22_s30 = int_to_ptr.vmem [resolvable:$true] %s21_s30 }
   0x6   :  { %27 = dma.hbm_to_vmem [thread:$0]  %s20_s28, 3328, %s22_s30, [#allocation5], %s8570_s7, %s8570_s7, %s8571_s8  }
   0x7   :  { %s46_s3 = sshll.u32 %s10777_s4, 4  ;;  %s8572_s11 = smov [#allocation8]   ;;  %s47_s3 = int_to_ptr.hbm [resolvable:$true] %s46_s3 }
   0x8   :  { %s48_s12 = sshll.u32 %s8572_s11, 4  ;;  %s49_s12 = int_to_ptr.vmem [resolvable:$true] %s48_s12 }
   0x9   :  { %51 = dma.hbm_to_vmem [thread:$0]  %s47_s3, 32, %s49_s12, [#allocation7]  }
   0xa   :  { %8558 = dma.done.wait [#allocation5], 3328  }
   0xb   :  { %8559 = vsyncadd [#allocation5], 4294963968 }
   0xc   :  { %8560 = dma.done.wait [#allocation7], 544  }
   0xd   :  { %8561 = vsyncadd [#allocation7], 4294966752  ;;  %vm272_vm0 = vcmask 1043456   ;;  %v142_v0 = vld [vmem:[#allocation4] sm:$0xf]  ;;  %vm223_vm1 = vcmask 64512  }
   0xe   :  { %v274_v1 = vsel %vm272_vm0, %v142_v0, 0  ;;  %v8013_v2 = vld [vmem:[%s10773_s0] sm:$0xff]  ;;  %v8014_v3 = vld [vmem:[%s10773_s0 + $0x8] sm:$0xff]  ;;  %v8015_v4 = vld [vmem:[%s10773_s0 + $0x10] sm:$0xff]  ;;  %vm446_vm2 = vcmask 523264   ;;  %s72_s17 = sshll.u32 %s10778_s5, 4  ;;  %s73_s17 = int_to_ptr.hbm [resolvable:$true] %s72_s17 }
   0xf   :  { %283 = vmatpush.bf16.msra.mxu0 %v274_v1  ;;  %v8016_v5 = vld [vmem:[%s10773_s0 + $0x18] sm:$0xff]  ;;  %v8017_v6 = vld [vmem:[%s10773_s0 + $0x20] sm:$0xff]  ;;  %v8018_v7 = vld [vmem:[%s10773_s0 + $0x28] sm:$0xff]  ;;  %s8573_s18 = smov [#allocation2]   ;;  %s78_s22 = scalar_lea.hbm %s10778_s5, 512 }
  0x10   :  { %v6520_v8 = vld [vmem:[#allocation4 + $0x40] sm:$0xf]  ;;  %v8032_v9 = vld [vmem:[#allocation4 + $0x44] sm:$0xf0]  ;;  %v8019_v11 = vld [vmem:[%s10773_s0 + $0x30] sm:$0xff]  ;;  %s74_s19 = sshll.u32 %s8573_s18, 4  ;;  %s75_s19 = int_to_ptr.vmem [resolvable:$true] %s74_s19 }
  0x11   :  { %v6521_v10 = vor.u32 %v8032_v9, %v6520_v8  ;;  %v6516_v12 = vld [vmem:[#allocation4 + $0x30] sm:$0xf]  ;;  %v8031_v13 = vld [vmem:[#allocation4 + $0x34] sm:$0xf0]  ;;  %v6512_v15 = vld [vmem:[#allocation4 + $0x20] sm:$0xf] }
  0x12   :  { %6490 = vmatmul.msk.bf16.vlgmr.msra.gmra.mxu0 %vm223_vm1, %v8013_v2  ;;  %v6517_v14 = vor.u32 %v8031_v13, %v6516_v12  ;;  %v8030_v16 = vld [vmem:[#allocation4 + $0x24] sm:$0xf0]  ;;  %v6508_v18 = vld [vmem:[#allocation4 + $0x10] sm:$0xf]  ;;  %v8029_v19 = vld [vmem:[#allocation4 + $0x14] sm:$0xf0] }
  0x13   :  { %499 = vmatpush.bf16.msra.mxu1 %v6521_v10  ;;  %v6513_v17 = vor.u32 %v8030_v16, %v6512_v15  ;;  %v6509_v20 = vor.u32 %v8029_v19, %v6508_v18  ;;  %v8020_v21 = vld [vmem:[%s10773_s0 + $0x38] sm:$0xff]  ;;  %v8021_v22 = vld [vmem:[%s10773_s0 + $0x40] sm:$0xff]  ;;  %v8022_v28 = vld [vmem:[%s10773_s0 + $0x48] sm:$0xff]  ;;  %77 = dma.hbm_to_vmem [thread:$0]  %s73_s17, 8192, %s75_s19, [#allocation3] }
  0x14   :  { %v8023_v34 = vld [vmem:[%s10773_s0 + $0x50] sm:$0xff]  ;;  %v8024_v40 = vld [vmem:[%s10773_s0 + $0x58] sm:$0xff]  ;;  %v8025_v46 = vld [vmem:[%s10773_s0 + $0x60] sm:$0xff]  ;;  %s88_s23 = sshll.u32 %s78_s22, 4  ;;  %s8574_s24 = smov [#allocation2 + $0x200]   ;;  %s89_s23 = int_to_ptr.hbm [resolvable:$true] %s88_s23 }
  0x15   :  { %v8026_v52 = vld [vmem:[%s10773_s0 + $0x68] sm:$0xff]  ;;  %v6596_v54 = vld [vmem:[#allocation4 + $0xc0] sm:$0xf]  ;;  %v8047_v56 = vld [vmem:[#allocation4 + $0xc4] sm:$0xf]  ;;  %s90_s25 = sshll.u32 %s8574_s24, 4  ;;  %s91_s25 = int_to_ptr.vmem [resolvable:$true] %s90_s25 }
  0x16   :  { %v8048_v55 = vld [vmem:[#allocation4 + $0xc4] sm:$0xf0]  ;;  %v6598_v59 = vld [vmem:[#allocation4 + $0xc8] sm:$0xf0]  ;;  %v6588_v0 = vld [vmem:[#allocation4 + $0xb0] sm:$0xf] }
  0x17   :  { %500 = vmatpush.bf16.msra.mxu1 %v6517_v14  ;;  %v6597_v58 = vor.u32 %v8048_v55, %v6596_v54  ;;  %v6601_v62 = vor.u32 %v8047_v56, %v6598_v59  ;;  %v8046_v1 = vld [vmem:[#allocation4 + $0xb4] sm:$0xf0]  ;;  %v8045_v2 = vld [vmem:[#allocation4 + $0xb4] sm:$0xf]  ;;  %v8044_v8 = vld [vmem:[#allocation4 + $0xa4] sm:$0xf0] }
  0x18   :  { %v8043_v9 = vld [vmem:[#allocation4 + $0xa4] sm:$0xf]  ;;  %v6582_v12 = vld [vmem:[#allocation4 + $0xa8] sm:$0xf0]  ;;  %v6572_v14 = vld [vmem:[#allocation4 + $0x90] sm:$0xf] }
  0x19   :  { %735 = vmatpush.bf16.msra.mxu2 %v6597_v58  ;;  %824 = vmatpush.bf16.msra.mxu3 %v6601_v62  ;;  %v6585_v13 = vor.u32 %v8043_v9, %v6582_v12  ;;  %v8042_v15 = vld [vmem:[#allocation4 + $0x94] sm:$0xf0]  ;;  %v6574_v18 = vld [vmem:[#allocation4 + $0x98] sm:$0xf0]  ;;  %93 = dma.hbm_to_vmem [thread:$0]  %s89_s23, 16384, %s91_s25, [#allocation3 + $0x1] }
  0x1a   :  { %v6573_v16 = vor.u32 %v8042_v15, %v6572_v14  ;;  %s94_s28 = scalar_lea.hbm %s10778_s5, 1536  ;;  %s8575_s30 = smov [#allocation2 + $0x600]  }
  0x1b   :  { %501 = vmatpush.bf16.msra.mxu1 %v6513_v17  ;;  %v8041_v17 = vld [vmem:[#allocation4 + $0x94] sm:$0xf]  ;;  %s104_s29 = sshll.u32 %s94_s28, 4  ;;  %s106_s7 = sshll.u32 %s8575_s30, 4  ;;  %s105_s29 = int_to_ptr.hbm [resolvable:$true] %s104_s29  ;;  %s107_s7 = int_to_ptr.vmem [resolvable:$true] %s106_s7 }
  0x1c   :  { %v6577_v19 = vor.u32 %v8041_v17, %v6574_v18  ;;  %109 = dma.hbm_to_vmem [thread:$0]  %s105_s29, 16384, %s107_s7, [#allocation3 + $0x2] }
  0x1f   :  { %502 = vmatpush.bf16.msra.mxu1 %v6509_v20  ;;  %v6564_v20 = vld [vmem:[#allocation4 + $0x80] sm:$0xf] }
  0x22   :  { %6491 = vmatmul.msk.bf16.gmra.mxu0 %vm223_vm1, %v8014_v3  ;;  %v6589_v3 = vor.u32 %v8046_v1, %v6588_v0 }
  0x24   :  { %736 = vmatpush.bf16.msra.mxu2 %v6589_v3 }
  0x32   :  { %6492 = vmatmul.msk.bf16.gmra.mxu0 %vm223_vm1, %v8015_v4  ;;  %v6590_v4 = vld [vmem:[#allocation4 + $0xb8] sm:$0xf0] }
  0x42   :  { %6493 = vmatmul.msk.bf16.gmra.mxu0 %vm223_vm1, %v8016_v5  ;;  %v6593_v5 = vor.u32 %v8045_v2, %v6590_v4 }
  0x44   :  { %825 = vmatpush.bf16.msra.mxu3 %v6593_v5 }
  0x48   :  { %826 = vmatpush.bf16.msra.mxu3 %v6585_v13 }
  0x4c   :  { %827 = vmatpush.bf16.msra.mxu3 %v6577_v19 }
  0x52   :  { %6494 = vmatmul.msk.bf16.gmra.mxu0 %vm223_vm1, %v8017_v6  ;;  %v8027_v6 = vld [vmem:[%s10773_s0 + $0x70] sm:$0xff] }
  0x62   :  { %6495 = vmatmul.msk.bf16.gmra.mxu0 %vm223_vm1, %v8018_v7  ;;  %v6580_v7 = vld [vmem:[#allocation4 + $0xa0] sm:$0xf] }
  0x72   :  { %6496 = vmatmul.msk.bf16.gmra.mxu0 %vm223_vm1, %v8019_v11  ;;  %v6581_v11 = vor.u32 %v8044_v8, %v6580_v7 }
  0x74   :  { %737 = vmatpush.bf16.msra.mxu2 %v6581_v11 }
  0x78   :  { %738 = vmatpush.bf16.msra.mxu2 %v6573_v16 }
  0x82   :  { %6497 = vmatmul.msk.bf16.gmra.mxu0 %vm223_vm1, %v8020_v21  ;;  %v8040_v21 = vld [vmem:[#allocation4 + $0x84] sm:$0xf0] }
  0x8f   :  { %v285_v23 = vpop.f32.mrf.mxu0 }
  0x90   :  { %v365_v25 = vmax.f32 %v285_v23, 0.0 }
  0x92   :  { %6498 = vmatmul.msk.bf16.gmra.mxu0 %vm223_vm1, %v8021_v22  ;;  %v8039_v22 = vld [vmem:[#allocation4 + $0x84] sm:$0xf] }
  0x97   :  { %v287_v24 = vpop.f32.mrf.mxu0 }
  0x98   :  { %v366_v26 = vmax.f32 %v287_v24, 0.0  ;;  %v6565_v24 = vor.u32 %v8040_v21, %v6564_v20 }
  0x9a   :  { %v397_v27 = vpack.c.bf16 %v366_v26, %v365_v25  ;;  %v6566_v25 = vld [vmem:[#allocation4 + $0x88] sm:$0xf0]  ;;  %739 = vmatpush.bf16.msra.mxu2 %v6565_v24 }
  0x9c   :  { %6522 = vmatmul.msk.bf16.vlgmr.msra.gmra.mxu1 %vm446_vm2, %v397_v27 }
  0x9f   :  { %v290_v29 = vpop.f32.mrf.mxu0 }
  0xa0   :  { %v367_v31 = vmax.f32 %v290_v29, 0.0 }
  0xa2   :  { %6499 = vmatmul.msk.bf16.gmra.mxu0 %vm223_vm1, %v8022_v28  ;;  %v6569_v28 = vor.u32 %v8039_v22, %v6566_v25 }
  0xa4   :  { %828 = vmatpush.bf16.msra.mxu3 %v6569_v28 }
  0xa7   :  { %v292_v30 = vpop.f32.mrf.mxu0 }
  0xa8   :  { %v368_v32 = vmax.f32 %v292_v30, 0.0  ;;  %v6556_v30 = vld [vmem:[#allocation4 + $0x70] sm:$0xf] }
  0xaa   :  { %v398_v33 = vpack.c.bf16 %v368_v32, %v367_v31  ;;  %v8038_v31 = vld [vmem:[#allocation4 + $0x74] sm:$0xf0]  ;;  %v8037_v32 = vld [vmem:[#allocation4 + $0x74] sm:$0xf] }
  0xac   :  { %6523 = vmatmul.msk.bf16.gmra.mxu1 %vm446_vm2, %v398_v33  ;;  %v6557_v33 = vor.u32 %v8038_v31, %v6556_v30 }
  0xae   :  { %740 = vmatpush.bf16.msra.mxu2 %v6557_v33 }
  0xaf   :  { %v295_v35 = vpop.f32.mrf.mxu0 }
  0xb0   :  { %v369_v37 = vmax.f32 %v295_v35, 0.0 }
  0xb2   :  { %6500 = vmatmul.msk.bf16.gmra.mxu0 %vm223_vm1, %v8023_v34  ;;  %v6558_v34 = vld [vmem:[#allocation4 + $0x78] sm:$0xf0] }
  0xb3   :  { %v6561_v35 = vor.u32 %v8037_v32, %v6558_v34 }
  0xb5   :  { %829 = vmatpush.bf16.msra.mxu3 %v6561_v35 }
  0xb7   :  { %v297_v36 = vpop.f32.mrf.mxu0 }
  0xb8   :  { %v370_v38 = vmax.f32 %v297_v36, 0.0  ;;  %v8028_v36 = vld [vmem:[%s10773_s0 + $0x78] sm:$0xff] }
  0xba   :  { %v399_v39 = vpack.c.bf16 %v370_v38, %v369_v37  ;;  %v6548_v37 = vld [vmem:[#allocation4 + $0x60] sm:$0xf]  ;;  %v8036_v38 = vld [vmem:[#allocation4 + $0x64] sm:$0xf0] }
  0xbc   :  { %6524 = vmatmul.msk.bf16.gmra.mxu1 %vm446_vm2, %v399_v39  ;;  %v8035_v39 = vld [vmem:[#allocation4 + $0x64] sm:$0xf] }
  0xbf   :  { %v300_v41 = vpop.f32.mrf.mxu0 }
  0xc0   :  { %v371_v43 = vmax.f32 %v300_v41, 0.0  ;;  %v6549_v41 = vor.u32 %v8036_v38, %v6548_v37 }
  0xc2   :  { %6501 = vmatmul.msk.bf16.gmra.mxu0 %vm223_vm1, %v8024_v40  ;;  %741 = vmatpush.bf16.msra.mxu2 %v6549_v41 }
  0xc7   :  { %v302_v42 = vpop.f32.mrf.mxu0 }
  0xc8   :  { %v372_v44 = vmax.f32 %v302_v42, 0.0  ;;  %v6550_v42 = vld [vmem:[#allocation4 + $0x68] sm:$0xf0] }
  0xca   :  { %v400_v45 = vpack.c.bf16 %v372_v44, %v371_v43  ;;  %v6553_v43 = vor.u32 %v8035_v39, %v6550_v42  ;;  %v6540_v44 = vld [vmem:[#allocation4 + $0x50] sm:$0xf] }
  0xcc   :  { %6525 = vmatmul.msk.bf16.gmra.mxu1 %vm446_vm2, %v400_v45  ;;  %830 = vmatpush.bf16.msra.mxu3 %v6553_v43  ;;  %v8034_v45 = vld [vmem:[#allocation4 + $0x54] sm:$0xf0] }
  0xcf   :  { %v305_v47 = vpop.f32.mrf.mxu0 }
  0xd0   :  { %v373_v49 = vmax.f32 %v305_v47, 0.0  ;;  %v6541_v47 = vor.u32 %v8034_v45, %v6540_v44 }
  0xd2   :  { %6502 = vmatmul.msk.bf16.gmra.mxu0 %vm223_vm1, %v8025_v46  ;;  %v8033_v46 = vld [vmem:[#allocation4 + $0x54] sm:$0xf]  ;;  %742 = vmatpush.bf16.msra.mxu2 %v6541_v47 }
  0xd7   :  { %v307_v48 = vpop.f32.mrf.mxu0 }
  0xd8   :  { %v374_v50 = vmax.f32 %v307_v48, 0.0  ;;  %v6542_v48 = vld [vmem:[#allocation4 + $0x58] sm:$0xf0] }
  0xda   :  { %v401_v51 = vpack.c.bf16 %v374_v50, %v373_v49  ;;  %v6545_v49 = vor.u32 %v8033_v46, %v6542_v48 }
  0xdc   :  { %6526 = vmatmul.msk.bf16.gmra.mxu1 %vm446_vm2, %v401_v51  ;;  %831 = vmatpush.bf16.msra.mxu3 %v6545_v49 }
  0xdf   :  { %v310_v53 = vpop.f32.mrf.mxu0 }
  0xe0   :  { %v375_v60 = vmax.f32 %v310_v53, 0.0 }
  0xe2   :  { %6503 = vmatmul.msk.bf16.gmra.mxu0 %vm223_vm1, %v8026_v52 }
  0xe7   :  { %v312_v57 = vpop.f32.mrf.mxu0 }
  0xe8   :  { %v376_v61 = vmax.f32 %v312_v57, 0.0 }
  0xea   :  { %v402_v63 = vpack.c.bf16 %v376_v61, %v375_v60  ;;  %v8695_v60 = vld [vmem:[#allocation6] ss:$0 sm:$0xff] }
  0xec   :  { %6527 = vmatmul.msk.bf16.gmra.mxu1 %vm446_vm2, %v402_v63 }
  0xef   :  { %v315_v10 = vpop.f32.mrf.mxu0 }
  0xf0   :  { %v377_v26 = vmax.f32 %v315_v10, 0.0 }
  0xf2   :  { %6504 = vmatmul.msk.bf16.gmra.mxu0 %vm223_vm1, %v8027_v6 }
  0xf7   :  { %v317_v23 = vpop.f32.mrf.mxu0 }
  0xf8   :  { %v378_v27 = vmax.f32 %v317_v23, 0.0 }
  0xfa   :  { %v403_v29 = vpack.c.bf16 %v378_v27, %v377_v26 }
  0xfc   :  { %6528 = vmatmul.msk.bf16.gmra.mxu1 %vm446_vm2, %v403_v29 }
  0xff   :  { %v320_v40 = vpop.f32.mrf.mxu0 }
 0x100   :  { %v379_v51 = vmax.f32 %v320_v40, 0.0 }
 0x102   :  { %6505 = vmatmul.msk.bf16.gmra.mxu0 %vm223_vm1, %v8028_v36 }
 0x107   :  { %v322_v50 = vpop.f32.mrf.mxu0 }
 0x108   :  { %v380_v52 = vmax.f32 %v322_v50, 0.0 }
 0x10a   :  { %v404_v53 = vpack.c.bf16 %v380_v52, %v379_v51 }
 0x10c   :  { %6529 = vmatmul.msk.bf16.gmra.mxu1 %vm446_vm2, %v404_v53 }
 0x10f   :  { %v325_v54 = vpop.f32.mrf.mxu0 }
 0x110   :  { %v381_v56 = vmax.f32 %v325_v54, 0.0 }
 0x117   :  { %v327_v55 = vpop.f32.mrf.mxu0 }
 0x118   :  { %v382_v57 = vmax.f32 %v327_v55, 0.0 }
 0x119   :  { %v504_v58 = vpop.f32.mrf.mxu1 }
 0x11a   :  { %v405_v59 = vpack.c.bf16 %v382_v57, %v381_v56  ;;  %v505_v62 = vadd.f32 %v504_v58, %v8695_v60 }
 0x11c   :  { %6530 = vmatmul.msk.bf16.gmra.mxu1 %vm446_vm2, %v405_v59  ;;  %v584_v1 = vmax.f32 %v505_v62, 0.0 }
 0x11f   :  { %v330_v61 = vpop.f32.mrf.mxu0 }
 0x120   :  { %v383_v5 = vmax.f32 %v330_v61, 0.0 }
 0x121   :  { %v506_v63 = vpop.f32.mrf.mxu1 }
 0x122   :  { %v507_v0 = vadd.f32 %v506_v63, %v8695_v60 }
 0x124   :  { %v585_v2 = vmax.f32 %v507_v0, 0.0 }
 0x126   :  { %v616_v3 = vpack.c.bf16 %v585_v2, %v584_v1 }
 0x127   :  { %v332_v4 = vpop.f32.mrf.mxu0 }
 0x128   :  { %v384_v6 = vmax.f32 %v332_v4, 0.0  ;;  %743 = vmatmul.bf16.vlgmr.msra.gmra.mxu2 %v616_v3  ;;  %832 = vmatmul.bf16.vlgmr.msra.gmra.mxu3 %v616_v3 }
 0x129   :  { %v509_v7 = vpop.f32.mrf.mxu1 }
 0x12a   :  { %v406_v8 = vpack.c.bf16 %v384_v6, %v383_v5  ;;  %v510_v10 = vadd.f32 %v509_v7, %v8695_v60 }
 0x12c   :  { %6531 = vmatmul.msk.bf16.gmra.mxu1 %vm446_vm2, %v406_v8  ;;  %v586_v13 = vmax.f32 %v510_v10, 0.0 }
 0x12f   :  { %v335_v9 = vpop.f32.mrf.mxu0 }
 0x130   :  { %v385_v17 = vmax.f32 %v335_v9, 0.0 }
 0x131   :  { %v511_v11 = vpop.f32.mrf.mxu1 }
 0x132   :  { %v512_v12 = vadd.f32 %v511_v11, %v8695_v60 }
 0x134   :  { %v587_v14 = vmax.f32 %v512_v12, 0.0 }
 0x136   :  { %v617_v15 = vpack.c.bf16 %v587_v14, %v586_v13 }
 0x137   :  { %v337_v16 = vpop.f32.mrf.mxu0 }
 0x138   :  { %v386_v18 = vmax.f32 %v337_v16, 0.0  ;;  %748 = vmatmul.bf16.gmra.mxu2 %v617_v15  ;;  %837 = vmatmul.bf16.gmra.mxu3 %v617_v15 }
 0x139   :  { %v514_v19 = vpop.f32.mrf.mxu1 }
 0x13a   :  { %v407_v20 = vpack.c.bf16 %v386_v18, %v385_v17  ;;  %v515_v22 = vadd.f32 %v514_v19, %v8695_v60 }
 0x13c   :  { %6532 = vmatmul.msk.bf16.gmra.mxu1 %vm446_vm2, %v407_v20  ;;  %v588_v25 = vmax.f32 %v515_v22, 0.0 }
 0x13f   :  { %v340_v21 = vpop.f32.mrf.mxu0 }
 0x140   :  { %v387_v29 = vmax.f32 %v340_v21, 0.0 }
 0x141   :  { %v516_v23 = vpop.f32.mrf.mxu1 }
 0x142   :  { %v517_v24 = vadd.f32 %v516_v23, %v8695_v60 }
 0x144   :  { %v589_v26 = vmax.f32 %v517_v24, 0.0 }
 0x146   :  { %v618_v27 = vpack.c.bf16 %v589_v26, %v588_v25 }
 0x147   :  { %v342_v28 = vpop.f32.mrf.mxu0 }
 0x148   :  { %v388_v30 = vmax.f32 %v342_v28, 0.0  ;;  %753 = vmatmul.bf16.gmra.mxu2 %v618_v27  ;;  %842 = vmatmul.bf16.gmra.mxu3 %v618_v27 }
 0x149   :  { %v519_v31 = vpop.f32.mrf.mxu1 }
 0x14a   :  { %v408_v32 = vpack.c.bf16 %v388_v30, %v387_v29  ;;  %v520_v34 = vadd.f32 %v519_v31, %v8695_v60  ;;  %v649_v30 = vld [vmem:[#allocation6 + $0x1] ss:$8 sm:$0x3] }
 0x14c   :  { %6533 = vmatmul.msk.bf16.gmra.mxu1 %vm446_vm2, %v408_v32  ;;  %v590_v37 = vmax.f32 %v520_v34, 0.0  ;;  %v8722_v32 = vperm.slane %v649_v30, 0 }
 0x14f   :  { %v345_v33 = vpop.f32.mrf.mxu0 }
 0x150   :  { %v389_v41 = vmax.f32 %v345_v33, 0.0  ;;  %v8724_v33 = vperm.slane %v649_v30, 1 }
 0x151   :  { %v521_v35 = vpop.f32.mrf.mxu1 }
 0x152   :  { %v522_v36 = vadd.f32 %v521_v35, %v8695_v60 }
 0x154   :  { %v591_v38 = vmax.f32 %v522_v36, 0.0 }
 0x156   :  { %v619_v39 = vpack.c.bf16 %v591_v38, %v590_v37 }
 0x157   :  { %v347_v40 = vpop.f32.mrf.mxu0 }
 0x158   :  { %v390_v42 = vmax.f32 %v347_v40, 0.0  ;;  %758 = vmatmul.bf16.gmra.mxu2 %v619_v39  ;;  %847 = vmatmul.bf16.gmra.mxu3 %v619_v39 }
 0x159   :  { %v524_v43 = vpop.f32.mrf.mxu1 }
 0x15a   :  { %v409_v44 = vpack.c.bf16 %v390_v42, %v389_v41  ;;  %v525_v46 = vadd.f32 %v524_v43, %v8695_v60 }
 0x15c   :  { %6534 = vmatmul.msk.bf16.gmra.mxu1 %vm446_vm2, %v409_v44  ;;  %v592_v49 = vmax.f32 %v525_v46, 0.0 }
 0x15f   :  { %v350_v45 = vpop.f32.mrf.mxu0 }
 0x160   :  { %v391_v53 = vmax.f32 %v350_v45, 0.0 }
 0x161   :  { %v526_v47 = vpop.f32.mrf.mxu1 }
 0x162   :  { %v527_v48 = vadd.f32 %v526_v47, %v8695_v60 }
 0x164   :  { %v593_v50 = vmax.f32 %v527_v48, 0.0 }
 0x166   :  { %v620_v51 = vpack.c.bf16 %v593_v50, %v592_v49 }
 0x167   :  { %v352_v52 = vpop.f32.mrf.mxu0 }
 0x168   :  { %v392_v54 = vmax.f32 %v352_v52, 0.0  ;;  %763 = vmatmul.bf16.gmra.mxu2 %v620_v51  ;;  %852 = vmatmul.bf16.gmra.mxu3 %v620_v51 }
 0x169   :  { %v529_v55 = vpop.f32.mrf.mxu1 }
 0x16a   :  { %v410_v56 = vpack.c.bf16 %v392_v54, %v391_v53  ;;  %v530_v58 = vadd.f32 %v529_v55, %v8695_v60 }
 0x16c   :  { %6535 = vmatmul.msk.bf16.gmra.mxu1 %vm446_vm2, %v410_v56  ;;  %v594_v62 = vmax.f32 %v530_v58, 0.0 }
 0x16f   :  { %v355_v57 = vpop.f32.mrf.mxu0 }
 0x170   :  { %v393_v2 = vmax.f32 %v355_v57, 0.0 }
 0x171   :  { %v531_v59 = vpop.f32.mrf.mxu1 }
 0x172   :  { %v532_v61 = vadd.f32 %v531_v59, %v8695_v60 }
 0x174   :  { %v595_v63 = vmax.f32 %v532_v61, 0.0 }
 0x176   :  { %v621_v0 = vpack.c.bf16 %v595_v63, %v594_v62 }
 0x177   :  { %v357_v1 = vpop.f32.mrf.mxu0 }
 0x178   :  { %v394_v3 = vmax.f32 %v357_v1, 0.0  ;;  %768 = vmatmul.bf16.gmra.mxu2 %v621_v0  ;;  %857 = vmatmul.bf16.gmra.mxu3 %v621_v0 }
 0x179   :  { %v534_v4 = vpop.f32.mrf.mxu1 }
 0x17a   :  { %v411_v5 = vpack.c.bf16 %v394_v3, %v393_v2  ;;  %v535_v7 = vadd.f32 %v534_v4, %v8695_v60 }
 0x17c   :  { %6536 = vmatmul.msk.bf16.gmra.mxu1 %vm446_vm2, %v411_v5  ;;  %v596_v10 = vmax.f32 %v535_v7, 0.0 }
 0x17f   :  { %v360_v6 = vpop.f32.mrf.mxu0 }
 0x180   :  { %v395_v14 = vmax.f32 %v360_v6, 0.0 }
 0x181   :  { %v536_v8 = vpop.f32.mrf.mxu1 }
 0x182   :  { %v537_v9 = vadd.f32 %v536_v8, %v8695_v60 }
 0x184   :  { %v597_v11 = vmax.f32 %v537_v9, 0.0 }
 0x186   :  { %v622_v12 = vpack.c.bf16 %v597_v11, %v596_v10 }
 0x187   :  { %v362_v13 = vpop.f32.mrf.mxu0 }
 0x188   :  { %v396_v15 = vmax.f32 %v362_v13, 0.0  ;;  %773 = vmatmul.bf16.gmra.mxu2 %v622_v12  ;;  %862 = vmatmul.bf16.gmra.mxu3 %v622_v12 }
 0x189   :  { %v539_v16 = vpop.f32.mrf.mxu1 }
 0x18a   :  { %v412_v17 = vpack.c.bf16 %v396_v15, %v395_v14  ;;  %v540_v18 = vadd.f32 %v539_v16, %v8695_v60 }
 0x18c   :  { %6537 = vmatmul.msk.bf16.gmra.mxu1 %vm446_vm2, %v412_v17  ;;  %v598_v21 = vmax.f32 %v540_v18, 0.0 }
 0x191   :  { %v541_v19 = vpop.f32.mrf.mxu1 }
 0x192   :  { %v542_v20 = vadd.f32 %v541_v19, %v8695_v60 }
 0x194   :  { %v599_v22 = vmax.f32 %v542_v20, 0.0 }
 0x196   :  { %v623_v23 = vpack.c.bf16 %v599_v22, %v598_v21 }
 0x198   :  { %778 = vmatmul.bf16.gmra.mxu2 %v623_v23  ;;  %867 = vmatmul.bf16.gmra.mxu3 %v623_v23 }
 0x199   :  { %v544_v24 = vpop.f32.mrf.mxu1 }
 0x19a   :  { %v545_v25 = vadd.f32 %v544_v24, %v8695_v60 }
 0x19c   :  { %v600_v28 = vmax.f32 %v545_v25, 0.0 }
 0x1a1   :  { %v546_v26 = vpop.f32.mrf.mxu1 }
 0x1a2   :  { %v547_v27 = vadd.f32 %v546_v26, %v8695_v60 }
 0x1a4   :  { %v601_v29 = vmax.f32 %v547_v27, 0.0 }
 0x1a6   :  { %v624_v31 = vpack.c.bf16 %v601_v29, %v600_v28 }
 0x1a8   :  { %783 = vmatmul.bf16.gmra.mxu2 %v624_v31  ;;  %872 = vmatmul.bf16.gmra.mxu3 %v624_v31 }
 0x1a9   :  { %v549_v34 = vpop.f32.mrf.mxu1 }
 0x1aa   :  { %v550_v41 = vadd.f32 %v549_v34, %v8695_v60 }
 0x1ab   :  { %v744_v35 = vpop.f32.mrf.mxu2  ;;  %v833_v36 = vpop.f32.mrf.mxu3 }
 0x1ac   :  { %v745_v37 = vadd.f32 %v744_v35, %v8722_v32  ;;  %v834_v38 = vadd.f32 %v833_v36, %v8724_v33  ;;  %v602_v47 = vmax.f32 %v550_v41, 0.0 }
 0x1ae   :  { %v913_v39 = vmax.f32 %v745_v37, 0.0  ;;  %v914_v40 = vmax.f32 %v834_v38, 0.0 }
 0x1b0   :  { %v8729_v42 = vpack.c.bf16 %v914_v40, %v913_v39 }
 0x1b1   :  { %v551_v43 = vpop.f32.mrf.mxu1 }
 0x1b2   :  { %v552_v44 = vadd.f32 %v551_v43, %v8695_v60 }
 0x1b3   :  { %v746_v45 = vpop.f32.mrf.mxu2  ;;  %v835_v46 = vpop.f32.mrf.mxu3 }
 0x1b4   :  { %v603_v48 = vmax.f32 %v552_v44, 0.0  ;;  %v747_v49 = vadd.f32 %v746_v45, %v8722_v32  ;;  %v836_v50 = vadd.f32 %v835_v46, %v8724_v33 }
 0x1b6   :  { %v915_v51 = vmax.f32 %v747_v49, 0.0  ;;  %v916_v52 = vmax.f32 %v836_v50, 0.0  ;;  %v625_v53 = vpack.c.bf16 %v603_v48, %v602_v47 }
 0x1b8   :  { %v8734_v54 = vpack.c.bf16 %v916_v52, %v915_v51  ;;  %788 = vmatmul.bf16.gmra.mxu2 %v625_v53  ;;  %877 = vmatmul.bf16.gmra.mxu3 %v625_v53 }
 0x1b9   :  { %v554_v55 = vpop.f32.mrf.mxu1 }
 0x1ba   :  { %v555_v63 = vadd.f32 %v554_v55, %v8695_v60 }
 0x1bb   :  { %v749_v56 = vpop.f32.mrf.mxu2  ;;  %v838_v57 = vpop.f32.mrf.mxu3 }
 0x1bc   :  { %v750_v58 = vadd.f32 %v749_v56, %v8722_v32  ;;  %v839_v59 = vadd.f32 %v838_v57, %v8724_v33  ;;  %v604_v5 = vmax.f32 %v555_v63, 0.0 }
 0x1be   :  { %v917_v61 = vmax.f32 %v750_v58, 0.0  ;;  %v918_v62 = vmax.f32 %v839_v59, 0.0 }
 0x1c0   :  { %v8739_v0 = vpack.c.bf16 %v918_v62, %v917_v61 }
 0x1c1   :  { %v556_v1 = vpop.f32.mrf.mxu1 }
 0x1c2   :  { %v557_v2 = vadd.f32 %v556_v1, %v8695_v60 }
 0x1c3   :  { %v751_v3 = vpop.f32.mrf.mxu2  ;;  %v840_v4 = vpop.f32.mrf.mxu3 }
 0x1c4   :  { %v605_v6 = vmax.f32 %v557_v2, 0.0  ;;  %v752_v7 = vadd.f32 %v751_v3, %v8722_v32  ;;  %v841_v8 = vadd.f32 %v840_v4, %v8724_v33 }
 0x1c6   :  { %v919_v9 = vmax.f32 %v752_v7, 0.0  ;;  %v920_v10 = vmax.f32 %v841_v8, 0.0  ;;  %v626_v11 = vpack.c.bf16 %v605_v6, %v604_v5 }
 0x1c8   :  { %v8744_v12 = vpack.c.bf16 %v920_v10, %v919_v9  ;;  %793 = vmatmul.bf16.gmra.mxu2 %v626_v11  ;;  %882 = vmatmul.bf16.gmra.mxu3 %v626_v11 }
 0x1c9   :  { %v559_v13 = vpop.f32.mrf.mxu1 }
 0x1ca   :  { %v560_v20 = vadd.f32 %v559_v13, %v8695_v60 }
 0x1cb   :  { %v754_v14 = vpop.f32.mrf.mxu2  ;;  %v843_v15 = vpop.f32.mrf.mxu3 }
 0x1cc   :  { %v755_v16 = vadd.f32 %v754_v14, %v8722_v32  ;;  %v844_v17 = vadd.f32 %v843_v15, %v8724_v33  ;;  %v606_v26 = vmax.f32 %v560_v20, 0.0 }
 0x1ce   :  { %v921_v18 = vmax.f32 %v755_v16, 0.0  ;;  %v922_v19 = vmax.f32 %v844_v17, 0.0 }
 0x1d0   :  { %v8749_v21 = vpack.c.bf16 %v922_v19, %v921_v18 }
 0x1d1   :  { %v561_v22 = vpop.f32.mrf.mxu1 }
 0x1d2   :  { %v562_v23 = vadd.f32 %v561_v22, %v8695_v60 }
 0x1d3   :  { %v756_v24 = vpop.f32.mrf.mxu2  ;;  %v845_v25 = vpop.f32.mrf.mxu3 }
 0x1d4   :  { %v607_v27 = vmax.f32 %v562_v23, 0.0  ;;  %v757_v28 = vadd.f32 %v756_v24, %v8722_v32  ;;  %v846_v29 = vadd.f32 %v845_v25, %v8724_v33 }
 0x1d6   :  { %v923_v30 = vmax.f32 %v757_v28, 0.0  ;;  %v924_v31 = vmax.f32 %v846_v29, 0.0  ;;  %v627_v34 = vpack.c.bf16 %v607_v27, %v606_v26 }
 0x1d8   :  { %v8754_v35 = vpack.c.bf16 %v924_v31, %v923_v30  ;;  %798 = vmatmul.bf16.gmra.mxu2 %v627_v34  ;;  %887 = vmatmul.bf16.gmra.mxu3 %v627_v34 }
 0x1d9   :  { %v564_v36 = vpop.f32.mrf.mxu1 }
 0x1da   :  { %v565_v44 = vadd.f32 %v564_v36, %v8695_v60 }
 0x1db   :  { %v759_v37 = vpop.f32.mrf.mxu2  ;;  %v848_v38 = vpop.f32.mrf.mxu3 }
 0x1dc   :  { %v760_v39 = vadd.f32 %v759_v37, %v8722_v32  ;;  %v849_v40 = vadd.f32 %v848_v38, %v8724_v33  ;;  %v608_v50 = vmax.f32 %v565_v44, 0.0 }
 0x1de   :  { %v925_v41 = vmax.f32 %v760_v39, 0.0  ;;  %v926_v43 = vmax.f32 %v849_v40, 0.0 }
 0x1e0   :  { %v8759_v45 = vpack.c.bf16 %v926_v43, %v925_v41 }
 0x1e1   :  { %v566_v46 = vpop.f32.mrf.mxu1 }
 0x1e2   :  { %v567_v47 = vadd.f32 %v566_v46, %v8695_v60 }
 0x1e3   :  { %v761_v48 = vpop.f32.mrf.mxu2  ;;  %v850_v49 = vpop.f32.mrf.mxu3 }
 0x1e4   :  { %v609_v51 = vmax.f32 %v567_v47, 0.0  ;;  %v762_v52 = vadd.f32 %v761_v48, %v8722_v32  ;;  %v851_v53 = vadd.f32 %v850_v49, %v8724_v33 }
 0x1e6   :  { %v628_v55 = vpack.c.bf16 %v609_v51, %v608_v50  ;;  %v927_v56 = vmax.f32 %v762_v52, 0.0  ;;  %v928_v57 = vmax.f32 %v851_v53, 0.0 }
 0x1e8   :  { %v8764_v58 = vpack.c.bf16 %v928_v57, %v927_v56  ;;  %803 = vmatmul.bf16.gmra.mxu2 %v628_v55  ;;  %892 = vmatmul.bf16.gmra.mxu3 %v628_v55 }
 0x1e9   :  { %v569_v59 = vpop.f32.mrf.mxu1 }
 0x1ea   :  { %v570_v4 = vadd.f32 %v569_v59, %v8695_v60 }
 0x1eb   :  { %v764_v61 = vpop.f32.mrf.mxu2  ;;  %v853_v62 = vpop.f32.mrf.mxu3 }
 0x1ec   :  { %v765_v63 = vadd.f32 %v764_v61, %v8722_v32  ;;  %v854_v1 = vadd.f32 %v853_v62, %v8724_v33  ;;  %v610_v10 = vmax.f32 %v570_v4, 0.0 }
 0x1ee   :  { %v929_v2 = vmax.f32 %v765_v63, 0.0  ;;  %v930_v3 = vmax.f32 %v854_v1, 0.0 }
 0x1f0   :  { %v8769_v5 = vpack.c.bf16 %v930_v3, %v929_v2 }
 0x1f1   :  { %v571_v6 = vpop.f32.mrf.mxu1 }
 0x1f2   :  { %v572_v7 = vadd.f32 %v571_v6, %v8695_v60 }
 0x1f3   :  { %v766_v8 = vpop.f32.mrf.mxu2  ;;  %v855_v9 = vpop.f32.mrf.mxu3 }
 0x1f4   :  { %v611_v11 = vmax.f32 %v572_v7, 0.0  ;;  %v767_v13 = vadd.f32 %v766_v8, %v8722_v32  ;;  %v856_v14 = vadd.f32 %v855_v9, %v8724_v33 }
 0x1f6   :  { %v629_v15 = vpack.c.bf16 %v611_v11, %v610_v10  ;;  %v931_v16 = vmax.f32 %v767_v13, 0.0  ;;  %v932_v17 = vmax.f32 %v856_v14, 0.0 }
 0x1f8   :  { %v8774_v18 = vpack.c.bf16 %v932_v17, %v931_v16  ;;  %808 = vmatmul.bf16.gmra.mxu2 %v629_v15  ;;  %897 = vmatmul.bf16.gmra.mxu3 %v629_v15 }
 0x1f9   :  { %v574_v19 = vpop.f32.mrf.mxu1 }
 0x1fa   :  { %v575_v27 = vadd.f32 %v574_v19, %v8695_v60 }
 0x1fb   :  { %v769_v20 = vpop.f32.mrf.mxu2  ;;  %v858_v22 = vpop.f32.mrf.mxu3 }
 0x1fc   :  { %v770_v23 = vadd.f32 %v769_v20, %v8722_v32  ;;  %v859_v24 = vadd.f32 %v858_v22, %v8724_v33  ;;  %v612_v36 = vmax.f32 %v575_v27, 0.0 }
 0x1fe   :  { %v933_v25 = vmax.f32 %v770_v23, 0.0  ;;  %v934_v26 = vmax.f32 %v859_v24, 0.0 }
 0x200   :  { %v8779_v28 = vpack.c.bf16 %v934_v26, %v933_v25 }
 0x201   :  { %v576_v29 = vpop.f32.mrf.mxu1 }
 0x202   :  { %v577_v30 = vadd.f32 %v576_v29, %v8695_v60 }
 0x203   :  { %v771_v31 = vpop.f32.mrf.mxu2  ;;  %v860_v34 = vpop.f32.mrf.mxu3 }
 0x204   :  { %v613_v37 = vmax.f32 %v577_v30, 0.0  ;;  %v772_v38 = vadd.f32 %v771_v31, %v8722_v32  ;;  %v861_v39 = vadd.f32 %v860_v34, %v8724_v33 }
 0x206   :  { %v630_v40 = vpack.c.bf16 %v613_v37, %v612_v36  ;;  %v935_v41 = vmax.f32 %v772_v38, 0.0  ;;  %v936_v43 = vmax.f32 %v861_v39, 0.0 }
 0x208   :  { %v8784_v44 = vpack.c.bf16 %v936_v43, %v935_v41  ;;  %813 = vmatmul.bf16.gmra.mxu2 %v630_v40  ;;  %902 = vmatmul.bf16.gmra.mxu3 %v630_v40 }
 0x209   :  { %v579_v46 = vpop.f32.mrf.mxu1 }
 0x20a   :  { %v580_v53 = vadd.f32 %v579_v46, %v8695_v60 }
 0x20b   :  { %v774_v47 = vpop.f32.mrf.mxu2  ;;  %v863_v48 = vpop.f32.mrf.mxu3 }
 0x20c   :  { %v775_v49 = vadd.f32 %v774_v47, %v8722_v32  ;;  %v864_v50 = vadd.f32 %v863_v48, %v8724_v33  ;;  %v614_v62 = vmax.f32 %v580_v53, 0.0 }
 0x20e   :  { %v937_v51 = vmax.f32 %v775_v49, 0.0  ;;  %v938_v52 = vmax.f32 %v864_v50, 0.0 }
 0x210   :  { %v8789_v55 = vpack.c.bf16 %v938_v52, %v937_v51 }
 0x211   :  { %v581_v56 = vpop.f32.mrf.mxu1 }
 0x212   :  { %v582_v57 = vadd.f32 %v581_v56, %v8695_v60 }
 0x213   :  { %v776_v59 = vpop.f32.mrf.mxu2  ;;  %v865_v61 = vpop.f32.mrf.mxu3 }
 0x214   :  { %v615_v63 = vmax.f32 %v582_v57, 0.0  ;;  %v777_v1 = vadd.f32 %v776_v59, %v8722_v32  ;;  %v866_v2 = vadd.f32 %v865_v61, %v8724_v33 }
 0x216   :  { %v631_v3 = vpack.c.bf16 %v615_v63, %v614_v62  ;;  %v939_v4 = vmax.f32 %v777_v1, 0.0  ;;  %v940_v6 = vmax.f32 %v866_v2, 0.0 }
 0x218   :  { %v8794_v7 = vpack.c.bf16 %v940_v6, %v939_v4  ;;  %818 = vmatmul.bf16.gmra.mxu2 %v631_v3  ;;  %907 = vmatmul.bf16.gmra.mxu3 %v631_v3 }
 0x21b   :  { %v779_v8 = vpop.f32.mrf.mxu2  ;;  %v868_v9 = vpop.f32.mrf.mxu3 }
 0x21c   :  { %v780_v10 = vadd.f32 %v779_v8, %v8722_v32  ;;  %v869_v60 = vadd.f32 %v868_v9, %v8724_v33 }
 0x21e   :  { %v941_v11 = vmax.f32 %v780_v10, 0.0  ;;  %v942_v13 = vmax.f32 %v869_v60, 0.0 }
 0x220   :  { %v8798_v14 = vpack.c.bf16 %v942_v13, %v941_v11 }
 0x223   :  { %v781_v15 = vpop.f32.mrf.mxu2  ;;  %v870_v16 = vpop.f32.mrf.mxu3 }
 0x224   :  { %v782_v17 = vadd.f32 %v781_v15, %v8722_v32  ;;  %v871_v19 = vadd.f32 %v870_v16, %v8724_v33 }
 0x226   :  { %v943_v20 = vmax.f32 %v782_v17, 0.0  ;;  %v944_v22 = vmax.f32 %v871_v19, 0.0 }
 0x228   :  { %v8808_v23 = vpack.c.bf16 %v944_v22, %v943_v20 }
 0x22b   :  { %v784_v24 = vpop.f32.mrf.mxu2  ;;  %v873_v25 = vpop.f32.mrf.mxu3 }
 0x22c   :  { %v785_v26 = vadd.f32 %v784_v24, %v8722_v32  ;;  %v874_v27 = vadd.f32 %v873_v25, %v8724_v33 }
 0x22e   :  { %v945_v29 = vmax.f32 %v785_v26, 0.0  ;;  %v946_v30 = vmax.f32 %v874_v27, 0.0 }
 0x230   :  { %v8815_v31 = vpack.c.bf16 %v946_v30, %v945_v29 }
 0x232   :  { %10985 = vst [vmem:[#allocation22_spill] sm:$0xff] %v8815_v31 }
 0x233   :  { %v786_v34 = vpop.f32.mrf.mxu2  ;;  %v875_v36 = vpop.f32.mrf.mxu3 }
 0x234   :  { %v787_v37 = vadd.f32 %v786_v34, %v8722_v32  ;;  %v876_v38 = vadd.f32 %v875_v36, %v8724_v33 }
 0x236   :  { %v947_v39 = vmax.f32 %v787_v37, 0.0  ;;  %v948_v40 = vmax.f32 %v876_v38, 0.0 }
 0x238   :  { %v8819_v41 = vpack.c.bf16 %v948_v40, %v947_v39 }
 0x23a   :  { %10986 = vst [vmem:[#allocation23_spill] sm:$0xff] %v8819_v41 }
 0x23b   :  { %v789_v43 = vpop.f32.mrf.mxu2  ;;  %v878_v46 = vpop.f32.mrf.mxu3 }
 0x23c   :  { %v790_v47 = vadd.f32 %v789_v43, %v8722_v32  ;;  %v879_v48 = vadd.f32 %v878_v46, %v8724_v33 }
 0x23e   :  { %v949_v49 = vmax.f32 %v790_v47, 0.0  ;;  %v950_v50 = vmax.f32 %v879_v48, 0.0 }
 0x240   :  { %v8823_v51 = vpack.c.bf16 %v950_v50, %v949_v49 }
 0x242   :  { %10987 = vst [vmem:[#allocation24_spill] sm:$0xff] %v8823_v51 }
 0x243   :  { %v791_v52 = vpop.f32.mrf.mxu2  ;;  %v880_v53 = vpop.f32.mrf.mxu3 }
 0x244   :  { %v792_v56 = vadd.f32 %v791_v52, %v8722_v32  ;;  %v881_v57 = vadd.f32 %v880_v53, %v8724_v33 }
 0x246   :  { %v951_v59 = vmax.f32 %v792_v56, 0.0  ;;  %v952_v61 = vmax.f32 %v881_v57, 0.0 }
 0x248   :  { %v8827_v62 = vpack.c.bf16 %v952_v61, %v951_v59 }
 0x24a   :  { %10988 = vst [vmem:[#allocation25_spill] sm:$0xff] %v8827_v62 }
 0x24b   :  { %v794_v63 = vpop.f32.mrf.mxu2  ;;  %v883_v1 = vpop.f32.mrf.mxu3 }
 0x24c   :  { %v795_v2 = vadd.f32 %v794_v63, %v8722_v32  ;;  %v884_v3 = vadd.f32 %v883_v1, %v8724_v33 }
 0x24e   :  { %v953_v4 = vmax.f32 %v795_v2, 0.0  ;;  %v954_v6 = vmax.f32 %v884_v3, 0.0 }
 0x250   :  { %v8831_v8 = vpack.c.bf16 %v954_v6, %v953_v4 }
 0x252   :  { %10989 = vst [vmem:[#allocation26_spill] sm:$0xff] %v8831_v8 }
 0x253   :  { %v796_v9 = vpop.f32.mrf.mxu2  ;;  %v885_v10 = vpop.f32.mrf.mxu3 }
 0x254   :  { %v797_v60 = vadd.f32 %v796_v9, %v8722_v32  ;;  %v886_v11 = vadd.f32 %v885_v10, %v8724_v33 }
 0x256   :  { %v955_v13 = vmax.f32 %v797_v60, 0.0  ;;  %v956_v15 = vmax.f32 %v886_v11, 0.0 }
 0x258   :  { %v8835_v16 = vpack.c.bf16 %v956_v15, %v955_v13 }
 0x25a   :  { %10990 = vst [vmem:[#allocation27_spill] sm:$0xff] %v8835_v16 }
 0x25b   :  { %v799_v17 = vpop.f32.mrf.mxu2  ;;  %v888_v19 = vpop.f32.mrf.mxu3 }
 0x25c   :  { %v800_v20 = vadd.f32 %v799_v17, %v8722_v32  ;;  %v889_v22 = vadd.f32 %v888_v19, %v8724_v33 }
 0x25e   :  { %v957_v24 = vmax.f32 %v800_v20, 0.0  ;;  %v958_v25 = vmax.f32 %v889_v22, 0.0 }
 0x260   :  { %v8839_v26 = vpack.c.bf16 %v958_v25, %v957_v24 }
 0x262   :  { %10991 = vst [vmem:[#allocation28_spill] sm:$0xff] %v8839_v26 }
 0x263   :  { %v801_v27 = vpop.f32.mrf.mxu2  ;;  %v890_v29 = vpop.f32.mrf.mxu3 }
 0x264   :  { %v802_v30 = vadd.f32 %v801_v27, %v8722_v32  ;;  %v891_v34 = vadd.f32 %v890_v29, %v8724_v33 }
 0x266   :  { %v959_v36 = vmax.f32 %v802_v30, 0.0  ;;  %v960_v37 = vmax.f32 %v891_v34, 0.0 }
 0x268   :  { %v8843_v38 = vpack.c.bf16 %v960_v37, %v959_v36 }
 0x26a   :  { %10992 = vst [vmem:[#allocation29_spill] sm:$0xff] %v8843_v38 }
 0x26b   :  { %v804_v39 = vpop.f32.mrf.mxu2  ;;  %v893_v40 = vpop.f32.mrf.mxu3 }
 0x26c   :  { %v805_v43 = vadd.f32 %v804_v39, %v8722_v32  ;;  %v894_v46 = vadd.f32 %v893_v40, %v8724_v33 }
 0x26e   :  { %v961_v47 = vmax.f32 %v805_v43, 0.0  ;;  %v962_v48 = vmax.f32 %v894_v46, 0.0 }
 0x270   :  { %v8847_v49 = vpack.c.bf16 %v962_v48, %v961_v47 }
 0x272   :  { %10993 = vst [vmem:[#allocation30_spill] sm:$0xff] %v8847_v49 }
 0x273   :  { %v806_v50 = vpop.f32.mrf.mxu2  ;;  %v895_v52 = vpop.f32.mrf.mxu3 }
 0x274   :  { %v807_v53 = vadd.f32 %v806_v50, %v8722_v32  ;;  %v896_v56 = vadd.f32 %v895_v52, %v8724_v33 }
 0x276   :  { %v963_v57 = vmax.f32 %v807_v53, 0.0  ;;  %v964_v59 = vmax.f32 %v896_v56, 0.0 }
 0x278   :  { %v8851_v61 = vpack.c.bf16 %v964_v59, %v963_v57 }
 0x27a   :  { %10994 = vst [vmem:[#allocation31_spill] sm:$0xff] %v8851_v61 }
 0x27b   :  { %v809_v63 = vpop.f32.mrf.mxu2  ;;  %v898_v1 = vpop.f32.mrf.mxu3 }
 0x27c   :  { %v810_v2 = vadd.f32 %v809_v63, %v8722_v32  ;;  %v899_v3 = vadd.f32 %v898_v1, %v8724_v33 }
 0x27e   :  { %v965_v4 = vmax.f32 %v810_v2, 0.0  ;;  %v966_v6 = vmax.f32 %v899_v3, 0.0 }
 0x280   :  { %v8855_v9 = vpack.c.bf16 %v966_v6, %v965_v4 }
 0x282   :  { %10995 = vst [vmem:[#allocation32_spill] sm:$0xff] %v8855_v9 }
 0x283   :  { %v811_v10 = vpop.f32.mrf.mxu2  ;;  %v900_v60 = vpop.f32.mrf.mxu3 }
 0x284   :  { %v812_v11 = vadd.f32 %v811_v10, %v8722_v32  ;;  %v901_v13 = vadd.f32 %v900_v60, %v8724_v33 }
 0x286   :  { %v967_v15 = vmax.f32 %v812_v11, 0.0  ;;  %v968_v17 = vmax.f32 %v901_v13, 0.0 }
 0x288   :  { %v8859_v19 = vpack.c.bf16 %v968_v17, %v967_v15 }
 0x28a   :  { %10996 = vst [vmem:[#allocation33_spill] sm:$0xff] %v8859_v19 }
 0x28b   :  { %v814_v20 = vpop.f32.mrf.mxu2  ;;  %v903_v22 = vpop.f32.mrf.mxu3 }
 0x28c   :  { %v815_v24 = vadd.f32 %v814_v20, %v8722_v32  ;;  %v904_v25 = vadd.f32 %v903_v22, %v8724_v33 }
 0x28e   :  { %v969_v27 = vmax.f32 %v815_v24, 0.0  ;;  %v970_v29 = vmax.f32 %v904_v25, 0.0 }
 0x290   :  { %v8863_v30 = vpack.c.bf16 %v970_v29, %v969_v27 }
 0x292   :  { %10997 = vst [vmem:[#allocation34_spill] sm:$0xff] %v8863_v30 }
 0x293   :  { %v816_v34 = vpop.f32.mrf.mxu2  ;;  %v905_v36 = vpop.f32.mrf.mxu3 }
 0x294   :  { %v817_v37 = vadd.f32 %v816_v34, %v8722_v32  ;;  %v906_v39 = vadd.f32 %v905_v36, %v8724_v33 }
 0x296   :  { %v971_v40 = vmax.f32 %v817_v37, 0.0  ;;  %v972_v43 = vmax.f32 %v906_v39, 0.0 }
 0x298   :  { %v8867_v46 = vpack.c.bf16 %v972_v43, %v971_v40 }
 0x29a   :  { %10998 = vst [vmem:[#allocation35_spill] sm:$0xff] %v8867_v46 }
 0x29b   :  { %v819_v47 = vpop.f32.mrf.mxu2  ;;  %v908_v48 = vpop.f32.mrf.mxu3 }
 0x29c   :  { %v820_v50 = vadd.f32 %v819_v47, %v8722_v32  ;;  %v909_v52 = vadd.f32 %v908_v48, %v8724_v33 }
 0x29e   :  { %v973_v53 = vmax.f32 %v820_v50, 0.0  ;;  %v974_v56 = vmax.f32 %v909_v52, 0.0 }
 0x2a0   :  { %v8871_v57 = vpack.c.bf16 %v974_v56, %v973_v53 }
 0x2a2   :  { %10999 = vst [vmem:[#allocation36_spill] sm:$0xff] %v8871_v57 }
 0x2a3   :  { %v821_v59 = vpop.f32.mrf.mxu2  ;;  %v910_v63 = vpop.f32.mrf.mxu3 }
 0x2a4   :  { %v822_v1 = vadd.f32 %v821_v59, %v8722_v32  ;;  %v911_v2 = vadd.f32 %v910_v63, %v8724_v33 }
 0x2a6   :  { %v975_v3 = vmax.f32 %v822_v1, 0.0  ;;  %v976_v4 = vmax.f32 %v911_v2, 0.0 }
 0x2a8   :  { %v8875_v6 = vpack.c.bf16 %v976_v4, %v975_v3 }
 0x2aa   :  { %11000 = vst [vmem:[#allocation37_spill] sm:$0xff] %v8875_v6 }
 0x2ab   :  { %8562 = dma.done.wait [#allocation3], 8192 }
 0x2ac   :  { %8563 = vsyncadd [#allocation3], 4294959104 }
 0x2ad   :  { %8564 = dma.done.wait [#allocation3 + $0x1], 16384 }
 0x2ae   :  { %8565 = vsyncadd [#allocation3 + $0x1], 4294950912  ;;  %v6716_v10 = vld [vmem:[#allocation2 + $0xe0] sm:$0xf]  ;;  %v8079_v60 = vld [vmem:[#allocation2 + $0xec] sm:$0xf0]  ;;  %v1110_v16 = vunpack.c.l.b16 %v8729_v42  ;;  %v1112_v8 = vunpack.c.l.b16 %v8734_v54 }
 0x2af   :  { %v6844_v11 = vld [vmem:[#allocation2 + $0x1e0] sm:$0xf]  ;;  %v8877_v13 = vor.u32 %v8079_v60, %v6716_v10  ;;  %v8111_v15 = vld [vmem:[#allocation2 + $0x1ec] sm:$0xf0]  ;;  %v8077_v17 = vld [vmem:[#allocation2 + $0xe4] sm:$0xf] }
 0x2b0   :  { %v6718_v20 = vld [vmem:[#allocation2 + $0xf0] sm:$0xf0]  ;;  %v8879_v22 = vor.u32 %v8111_v15, %v6844_v11  ;;  %v8109_v33 = vld [vmem:[#allocation2 + $0x1e4] sm:$0xf]  ;;  %v6700_v25 = vld [vmem:[#allocation2 + $0xc0] sm:$0xf] }
 0x2b1   :  { %v8881_v32 = vor.u32 %v8077_v17, %v6718_v20  ;;  %v6846_v24 = vld [vmem:[#allocation2 + $0x1f0] sm:$0xf0]  ;;  %1494 = vmatpush.bf16.msrb.mxu0 %v8877_v13  ;;  %v8075_v29 = vld [vmem:[#allocation2 + $0xcc] sm:$0xf0]  ;;  %v6828_v34 = vld [vmem:[#allocation2 + $0x1c0] sm:$0xf] }
 0x2b2   :  { %v8884_v27 = vor.u32 %v8109_v33, %v6846_v24  ;;  %v8107_v36 = vld [vmem:[#allocation2 + $0x1cc] sm:$0xf0]  ;;  %1543 = vmatpush.bf16.msrb.mxu1 %v8879_v22  ;;  %v8888_v37 = vor.u32 %v8075_v29, %v6700_v25  ;;  %v8073_v40 = vld [vmem:[#allocation2 + $0xc4] sm:$0xf]  ;;  %v6702_v43 = vld [vmem:[#allocation2 + $0xd0] sm:$0xf0] }
 0x2b3   :  { %1592 = vmatpush.bf16.msrb.mxu2 %v8881_v32  ;;  %v8890_v39 = vor.u32 %v8107_v36, %v6828_v34  ;;  %v8105_v47 = vld [vmem:[#allocation2 + $0x1c4] sm:$0xf]  ;;  %v8893_v48 = vor.u32 %v8073_v40, %v6702_v43  ;;  %v6830_v50 = vld [vmem:[#allocation2 + $0x1d0] sm:$0xf0]  ;;  %v6684_v52 = vld [vmem:[#allocation2 + $0xa0] sm:$0xf] }
 0x2b4   :  { %1641 = vmatpush.bf16.msrb.mxu3 %v8884_v27  ;;  %v8071_v53 = vld [vmem:[#allocation2 + $0xac] sm:$0xf0]  ;;  %v8895_v56 = vor.u32 %v8105_v47, %v6830_v50  ;;  %v6812_v59 = vld [vmem:[#allocation2 + $0x1a0] sm:$0xf]  ;;  %v8069_v1 = vld [vmem:[#allocation2 + $0xa4] sm:$0xf] }
 0x2b5   :  { %11001 = vst [vmem:[#allocation38_spill] sm:$0xff] %v8893_v48  ;;  %v8103_v63 = vld [vmem:[#allocation2 + $0x1ac] sm:$0xf0]  ;;  %1495 = vmatpush.bf16.msrb.mxu0 %v8888_v37  ;;  %v8898_v2 = vor.u32 %v8071_v53, %v6684_v52  ;;  %v6686_v3 = vld [vmem:[#allocation2 + $0xb0] sm:$0xf0]  ;;  %vm5063_vm3 = vcmask 1040384  }
 0x2b6   :  { %11002 = vst [vmem:[#allocation39_spill] sm:$0xff] %v8895_v56  ;;  %v8101_v4 = vld [vmem:[#allocation2 + $0x1a4] sm:$0xf]  ;;  %v6814_v10 = vld [vmem:[#allocation2 + $0x1b0] sm:$0xf0]  ;;  %1544 = vmatpush.bf16.msrb.mxu1 %v8890_v39  ;;  %v8902_v60 = vor.u32 %v8103_v63, %v6812_v59  ;;  %v8904_v11 = vor.u32 %v8069_v1, %v6686_v3 }
 0x2b7   :  { %1593 = vmatpush.bf16.msrb.mxu2 %v8893_v48  ;;  %v6668_v15 = vld [vmem:[#allocation2 + $0x80] sm:$0xf]  ;;  %v8067_v17 = vld [vmem:[#allocation2 + $0x8c] sm:$0xf0]  ;;  %v8907_v33 = vor.u32 %v8101_v4, %v6814_v10  ;;  %v8065_v25 = vld [vmem:[#allocation2 + $0x84] sm:$0xf] }
 0x2b8   :  { %11003 = vst [vmem:[#allocation40_spill] sm:$0xff] %v8904_v11  ;;  %v6796_v20 = vld [vmem:[#allocation2 + $0x180] sm:$0xf]  ;;  %1642 = vmatpush.bf16.msrb.mxu3 %v8895_v56  ;;  %v8099_v24 = vld [vmem:[#allocation2 + $0x18c] sm:$0xf0]  ;;  %v8910_v40 = vor.u32 %v8067_v17, %v6668_v15 }
 0x2b9   :  { %11004 = vst [vmem:[#allocation41_spill] sm:$0xff] %v8907_v33  ;;  %v6670_v29 = vld [vmem:[#allocation2 + $0x90] sm:$0xf0]  ;;  %v8097_v34 = vld [vmem:[#allocation2 + $0x184] sm:$0xf]  ;;  %1496 = vmatpush.bf16.msrb.mxu0 %v8898_v2  ;;  %v8914_v43 = vor.u32 %v8099_v24, %v6796_v20 }
 0x2ba   :  { %v6798_v36 = vld [vmem:[#allocation2 + $0x190] sm:$0xf0]  ;;  %11005 = vst [vmem:[#allocation42_spill] sm:$0xff] %v8910_v40  ;;  %1545 = vmatpush.bf16.msrb.mxu1 %v8902_v60  ;;  %v8916_v47 = vor.u32 %v8065_v25, %v6670_v29  ;;  %v6652_v50 = vld [vmem:[#allocation2 + $0x60] sm:$0xf] }
 0x2bb   :  { %1594 = vmatpush.bf16.msrb.mxu2 %v8904_v11  ;;  %11006 = vst [vmem:[#allocation43_spill] sm:$0xff] %v8914_v43  ;;  %v8063_v52 = vld [vmem:[#allocation2 + $0x6c] sm:$0xf0]  ;;  %v6780_v53 = vld [vmem:[#allocation2 + $0x160] sm:$0xf]  ;;  %v8919_v59 = vor.u32 %v8097_v34, %v6798_v36 }
 0x2bc   :  { %11007 = vst [vmem:[#allocation44_spill] sm:$0xff] %v8916_v47  ;;  %1643 = vmatpush.bf16.msrb.mxu3 %v8907_v33  ;;  %v8095_v63 = vld [vmem:[#allocation2 + $0x16c] sm:$0xf0]  ;;  %v8061_v1 = vld [vmem:[#allocation2 + $0x64] sm:$0xf]  ;;  %v8922_v15 = vor.u32 %v8063_v52, %v6652_v50 }
 0x2bd   :  { %11008 = vst [vmem:[#allocation45_spill] sm:$0xff] %v8919_v59  ;;  %v6654_v3 = vld [vmem:[#allocation2 + $0x70] sm:$0xf0]  ;;  %v8093_v4 = vld [vmem:[#allocation2 + $0x164] sm:$0xf]  ;;  %1497 = vmatpush.bf16.msrb.mxu0 %v8910_v40  ;;  %v8926_v17 = vor.u32 %v8095_v63, %v6780_v53 }
 0x2be   :  { %v6782_v10 = vld [vmem:[#allocation2 + $0x170] sm:$0xf0]  ;;  %11009 = vst [vmem:[#allocation46_spill] sm:$0xff] %v8922_v15  ;;  %1546 = vmatpush.bf16.msrb.mxu1 %v8914_v43  ;;  %v8928_v20 = vor.u32 %v8061_v1, %v6654_v3  ;;  %v6636_v24 = vld [vmem:[#allocation2 + $0x40] sm:$0xf] }
 0x2bf   :  { %1595 = vmatpush.bf16.msrb.mxu2 %v8916_v47  ;;  %11010 = vst [vmem:[#allocation47_spill] sm:$0xff] %v8926_v17  ;;  %v8059_v25 = vld [vmem:[#allocation2 + $0x4c] sm:$0xf0]  ;;  %v6764_v29 = vld [vmem:[#allocation2 + $0x140] sm:$0xf]  ;;  %v8931_v34 = vor.u32 %v8093_v4, %v6782_v10 }
 0x2c0   :  { %11011 = vst [vmem:[#allocation48_spill] sm:$0xff] %v8928_v20  ;;  %1644 = vmatpush.bf16.msrb.mxu3 %v8919_v59  ;;  %v8091_v36 = vld [vmem:[#allocation2 + $0x14c] sm:$0xf0]  ;;  %v8057_v6 = vld [vmem:[#allocation2 + $0x44] sm:$0xf]  ;;  %v8934_v46 = vor.u32 %v8059_v25, %v6636_v24 }
 0x2c1   :  { %11012 = vst [vmem:[#allocation49_spill] sm:$0xff] %v8931_v34  ;;  %v6638_v57 = vld [vmem:[#allocation2 + $0x50] sm:$0xf0]  ;;  %v8089_v50 = vld [vmem:[#allocation2 + $0x144] sm:$0xf]  ;;  %1498 = vmatpush.bf16.msrb.mxu0 %v8922_v15  ;;  %v8938_v53 = vor.u32 %v8091_v36, %v6764_v29 }
 0x2c2   :  { %v6766_v52 = vld [vmem:[#allocation2 + $0x150] sm:$0xf0]  ;;  %11013 = vst [vmem:[#allocation50_spill] sm:$0xff] %v8934_v46  ;;  %1547 = vmatpush.bf16.msrb.mxu1 %v8926_v17  ;;  %v8940_v63 = vor.u32 %v8057_v6, %v6638_v57  ;;  %v6620_v1 = vld [vmem:[#allocation2 + $0x20] sm:$0xf] }
 0x2c3   :  { %1596 = vmatpush.bf16.msrb.mxu2 %v8928_v20  ;;  %11014 = vst [vmem:[#allocation51_spill] sm:$0xff] %v8938_v53  ;;  %v8055_v3 = vld [vmem:[#allocation2 + $0x2c] sm:$0xf0]  ;;  %v6748_v4 = vld [vmem:[#allocation2 + $0x120] sm:$0xf]  ;;  %v8943_v10 = vor.u32 %v8089_v50, %v6766_v52 }
 0x2c4   :  { %11015 = vst [vmem:[#allocation52_spill] sm:$0xff] %v8940_v63  ;;  %1645 = vmatpush.bf16.msrb.mxu3 %v8931_v34  ;;  %v8087_v30 = vld [vmem:[#allocation2 + $0x12c] sm:$0xf0]  ;;  %v8053_v19 = vld [vmem:[#allocation2 + $0x24] sm:$0xf]  ;;  %v8946_v61 = vor.u32 %v8055_v3, %v6620_v1 }
 0x2c5   :  { %11016 = vst [vmem:[#allocation53_spill] sm:$0xff] %v8943_v10  ;;  %v6622_v9 = vld [vmem:[#allocation2 + $0x30] sm:$0xf0]  ;;  %v8085_v24 = vld [vmem:[#allocation2 + $0x124] sm:$0xf]  ;;  %1499 = vmatpush.bf16.msrb.mxu0 %v8934_v46  ;;  %v8950_v57 = vor.u32 %v8087_v30, %v6748_v4  ;;  %v1113_v4 = vunpack.c.h.b16 %v8734_v54  ;;  %v8975_v54 = vpack.c.b16 %v1112_v8, %v1110_v16 }
 0x2c6   :  { %v6750_v25 = vld [vmem:[#allocation2 + $0x130] sm:$0xf0]  ;;  %11017 = vst [vmem:[#allocation54_spill] sm:$0xff] %v8946_v61  ;;  %v6604_v29 = vld [vmem:[#allocation2] sm:$0xf]  ;;  %1548 = vmatpush.bf16.msrb.mxu1 %v8938_v53  ;;  %v8952_v6 = vor.u32 %v8053_v19, %v6622_v9  ;;  %v1111_v19 = vunpack.c.h.b16 %v8729_v42 }
 0x2c7   :  { %1597 = vmatpush.bf16.msrb.mxu2 %v8940_v63  ;;  %11018 = vst [vmem:[#allocation55_spill] sm:$0xff] %v8950_v57  ;;  %v8051_v36 = vld [vmem:[#allocation2 + $0xc] sm:$0xf0]  ;;  %v6732_v50 = vld [vmem:[#allocation2 + $0x100] sm:$0xf]  ;;  %v8955_v49 = vor.u32 %v8085_v24, %v6750_v25 }
 0x2c8   :  { %11019 = vst [vmem:[#allocation56_spill] sm:$0xff] %v8952_v6  ;;  %v8083_v52 = vld [vmem:[#allocation2 + $0x10c] sm:$0xf0]  ;;  %1646 = vmatpush.bf16.msrb.mxu3 %v8943_v10  ;;  %v8049_v38 = vld [vmem:[#allocation2 + $0x4] sm:$0xf]  ;;  %v8960_v9 = vor.u32 %v8051_v36, %v6604_v29 }
 0x2c9   :  { %11020 = vst [vmem:[#allocation57_spill] sm:$0xff] %v8955_v49  ;;  %v6606_v26 = vld [vmem:[#allocation2 + $0x10] sm:$0xf0]  ;;  %v8081_v1 = vld [vmem:[#allocation2 + $0x104] sm:$0xf]  ;;  %1500 = vmatpush.bf16.msrb.mxu0 %v8946_v61  ;;  %v8966_v51 = vor.u32 %v8083_v52, %v6732_v50 }
 0x2ca   :  { %v6734_v3 = vld [vmem:[#allocation2 + $0x110] sm:$0xf0]  ;;  %v8078_v62 = vld [vmem:[#allocation2 + $0xec] sm:$0xf]  ;;  %v6726_v30 = vld [vmem:[#allocation2 + $0xf8] sm:$0xf0]  ;;  %1549 = vmatpush.bf16.msrb.mxu1 %v8950_v57  ;;  %v8968_v41 = vor.u32 %v8049_v38, %v6606_v26  ;;  %v8980_v26 = vpack.c.b16 %v1113_v4, %v1111_v19 }
 0x2cb   :  { %11021 = vst [vmem:[#allocation58_spill] sm:$0xff] %v8960_v9  ;;  %v8110_v24 = vld [vmem:[#allocation2 + $0x1ec] sm:$0xf]  ;;  %v6854_v25 = vld [vmem:[#allocation2 + $0x1f8] sm:$0xf0]  ;;  %1598 = vmatpush.bf16.msrb.mxu2 %v8952_v6  ;;  %v8971_v31 = vor.u32 %v8081_v1, %v6734_v3  ;;  %v8973_v29 = vor.u32 %v8078_v62, %v6726_v30 }
 0x2cc   :  { %11022 = vst [vmem:[#allocation59_spill] sm:$0xff] %v8966_v51  ;;  %1647 = vmatpush.bf16.msrb.mxu3 %v8955_v49  ;;  %v6724_v36 = vld [vmem:[#allocation2 + $0xe8] sm:$0xf]  ;;  %v8080_v42 = vld [vmem:[#allocation2 + $0xf4] sm:$0xf0]  ;;  %v8977_v63 = vor.u32 %v8110_v24, %v6854_v25 }
 0x2cd   :  { %11023 = vst [vmem:[#allocation60_spill] sm:$0xff] %v8968_v41  ;;  %v6852_v10 = vld [vmem:[#allocation2 + $0x1e8] sm:$0xf]  ;;  %v8112_v57 = vld [vmem:[#allocation2 + $0x1f4] sm:$0xf0]  ;;  %1501 = vmatpush.bf16.msrb.mxu0 %v8960_v9  ;;  %v8984_v62 = vor.u32 %v8080_v42, %v6724_v36 }
 0x2ce   :  { %11024 = vst [vmem:[#allocation61_spill] sm:$0xff] %v8971_v31  ;;  %v8074_v61 = vld [vmem:[#allocation2 + $0xcc] sm:$0xf]  ;;  %v6710_v6 = vld [vmem:[#allocation2 + $0xd8] sm:$0xf0]  ;;  %1550 = vmatpush.bf16.msrb.mxu1 %v8966_v51  ;;  %v8988_v8 = vor.u32 %v8112_v57, %v6852_v10 }
 0x2cf   :  { %11025 = vst [vmem:[#allocation62_spill] sm:$0xff] %v8973_v29  ;;  %v8106_v38 = vld [vmem:[#allocation2 + $0x1cc] sm:$0xf]  ;;  %v6838_v50 = vld [vmem:[#allocation2 + $0x1d8] sm:$0xf0]  ;;  %1599 = vmatpush.bf16.msrb.mxu2 %v8968_v41  ;;  %v8990_v16 = vor.u32 %v8074_v61, %v6710_v6 }
 0x2d0   :  { %11026 = vst [vmem:[#allocation63_spill] sm:$0xff] %v8977_v63  ;;  %1648 = vmatpush.bf16.msrb.mxu3 %v8971_v31  ;;  %v6708_v52 = vld [vmem:[#allocation2 + $0xc8] sm:$0xf]  ;;  %v8076_v1 = vld [vmem:[#allocation2 + $0xd4] sm:$0xf0]  ;;  %1502 = vmatmul.bf16.vlgmr.msrb.gmra.mxu0 %v8975_v54  ;;  %v8994_v3 = vor.u32 %v8106_v38, %v6838_v50 }
 0x2d1   :  { %11027 = vst [vmem:[#allocation64_spill] sm:$0xff] %v8984_v62  ;;  %v6836_v30 = vld [vmem:[#allocation2 + $0x1c8] sm:$0xf]  ;;  %v8108_v19 = vld [vmem:[#allocation2 + $0x1d4] sm:$0xf0]  ;;  %1551 = vmatmul.bf16.vlgmr.msrb.gmra.mxu1 %v8980_v26  ;;  %1690 = vmatpush.bf16.msra.mxu0 %v8984_v62  ;;  %v9000_v61 = vor.u32 %v8076_v1, %v6708_v52 }
 0x2d2   :  { %11028 = vst [vmem:[#allocation65_spill] sm:$0xff] %v8988_v8  ;;  %1600 = vmatmul.bf16.vlgmr.msrb.gmra.mxu2 %v8975_v54  ;;  %v8070_v10 = vld [vmem:[#allocation2 + $0xac] sm:$0xf]  ;;  %v6694_v57 = vld [vmem:[#allocation2 + $0xb8] sm:$0xf0]  ;;  %1739 = vmatpush.bf16.msra.mxu1 %v8988_v8  ;;  %v9004_v4 = vor.u32 %v8108_v19, %v6836_v30  ;;  %v1114_v19 = vunpack.c.l.b16 %v8739_v0 }
 0x2d3   :  { %1788 = vmatpush.bf16.msra.mxu2 %v8973_v29  ;;  %11029 = vst [vmem:[#allocation66_spill] sm:$0xff] %v8990_v16  ;;  %1649 = vmatmul.bf16.vlgmr.msrb.gmra.mxu3 %v8980_v26  ;;  %v8102_v6 = vld [vmem:[#allocation2 + $0x1ac] sm:$0xf]  ;;  %v9006_v24 = vor.u32 %v8070_v10, %v6694_v57  ;;  %v6822_v25 = vld [vmem:[#allocation2 + $0x1b8] sm:$0xf0]  ;;  %v1116_v10 = vunpack.c.l.b16 %v8744_v12  ;;  %v1115_v57 = vunpack.c.h.b16 %v8739_v0 }
 0x2d4   :  { %1837 = vmatpush.bf16.msra.mxu3 %v8977_v63  ;;  %11030 = vst [vmem:[#allocation67_spill] sm:$0xff] %v8994_v3  ;;  %v6692_v36 = vld [vmem:[#allocation2 + $0xa8] sm:$0xf]  ;;  %v8072_v42 = vld [vmem:[#allocation2 + $0xb4] sm:$0xf0]  ;;  %v9009_v38 = vor.u32 %v8102_v6, %v6822_v25  ;;  %v1117_v6 = vunpack.c.h.b16 %v8744_v12 }
 0x2d5   :  { %11031 = vst [vmem:[#allocation68_spill] sm:$0xff] %v9000_v61  ;;  %v6820_v50 = vld [vmem:[#allocation2 + $0x1a8] sm:$0xf]  ;;  %v8104_v52 = vld [vmem:[#allocation2 + $0x1b4] sm:$0xf0]  ;;  %1691 = vmatpush.bf16.msra.mxu0 %v9000_v61  ;;  %v9012_v1 = vor.u32 %v8072_v42, %v6692_v36  ;;  %v9025_v25 = vpack.c.b16 %v1116_v10, %v1114_v19 }
 0x2d6   :  { %11032 = vst [vmem:[#allocation69_spill] sm:$0xff] %v9004_v4  ;;  %1740 = vmatpush.bf16.msra.mxu1 %v9004_v4  ;;  %v9016_v30 = vor.u32 %v8104_v52, %v6820_v50  ;;  %v9027_v36 = vpack.c.b16 %v1117_v6, %v1115_v57  ;;  %v8066_v42 = vld [vmem:[#allocation2 + $0x8c] sm:$0xf]  ;;  %v6678_v0 = vld [vmem:[#allocation2 + $0x98] sm:$0xf0] }
 0x2d7   :  { %1789 = vmatpush.bf16.msra.mxu2 %v8990_v16  ;;  %11033 = vst [vmem:[#allocation70_spill] sm:$0xff] %v9006_v24  ;;  %v8098_v50 = vld [vmem:[#allocation2 + $0x18c] sm:$0xf]  ;;  %v9033_v12 = vor.u32 %v8066_v42, %v6678_v0  ;;  %v6806_v52 = vld [vmem:[#allocation2 + $0x198] sm:$0xf0]  ;;  %v1118_v42 = vunpack.c.l.b16 %v8749_v21  ;;  %v1120_v0 = vunpack.c.l.b16 %v8754_v35 }
 0x2d8   :  { %1838 = vmatpush.bf16.msra.mxu3 %v8994_v3  ;;  %11034 = vst [vmem:[#allocation71_spill] sm:$0xff] %v9009_v38  ;;  %v8068_v3 = vld [vmem:[#allocation2 + $0x94] sm:$0xf0]  ;;  %v9035_v19 = vor.u32 %v8098_v50, %v6806_v52  ;;  %v6804_v57 = vld [vmem:[#allocation2 + $0x188] sm:$0xf]  ;;  %v1119_v50 = vunpack.c.h.b16 %v8749_v21 }
 0x2d9   :  { %11035 = vst [vmem:[#allocation72_spill] sm:$0xff] %v9012_v1  ;;  %1692 = vmatpush.bf16.msra.mxu0 %v9012_v1  ;;  %v8100_v6 = vld [vmem:[#allocation2 + $0x194] sm:$0xf0]  ;;  %v6790_v21 = vld [vmem:[#allocation2 + $0x178] sm:$0xf0] }
 0x2da   :  { %11036 = vst [vmem:[#allocation73_spill] sm:$0xff] %v9016_v30  ;;  %1741 = vmatpush.bf16.msra.mxu1 %v9016_v30  ;;  %v6660_v63 = vld [vmem:[#allocation2 + $0x68] sm:$0xf]  ;;  %v8235_v30 = vld [vmem:[#allocation2 + $0x5cc] sm:$0xf0] }
 0x2db   :  { %1790 = vmatpush.bf16.msra.mxu2 %v9006_v24  ;;  %11037 = vst [vmem:[#allocation74_spill] sm:$0xff] %v9033_v12  ;;  %v9040_v24 = vor.u32 %v8100_v6, %v6804_v57  ;;  %v8062_v57 = vld [vmem:[#allocation2 + $0x6c] sm:$0xf]  ;;  %v6662_v6 = vld [vmem:[#allocation2 + $0x78] sm:$0xf0] }
 0x2dc   :  { %1839 = vmatpush.bf16.msra.mxu3 %v9009_v38  ;;  %v6676_v38 = vld [vmem:[#allocation2 + $0x88] sm:$0xf]  ;;  %11038 = vst [vmem:[#allocation75_spill] sm:$0xff] %v9035_v19  ;;  %v7084_v61 = vld [vmem:[#allocation2 + $0x3c0] sm:$0xf] }
 0x2dd   :  { %v9037_v10 = vor.u32 %v8068_v3, %v6676_v38  ;;  %11040 = vst [vmem:[#allocation77_spill] sm:$0xff] %v9040_v24  ;;  %v1121_v3 = vunpack.c.h.b16 %v8754_v35  ;;  %v9049_v38 = vpack.c.b16 %v1120_v0, %v1118_v42  ;;  %v8064_v35 = vld [vmem:[#allocation2 + $0x74] sm:$0xf0]  ;;  %v8151_v8 = vld [vmem:[#allocation2 + $0x32c] sm:$0xf0] }
 0x2de   :  { %1742 = vmatpush.bf16.msra.mxu1 %v9040_v24  ;;  %v9061_v0 = vor.u32 %v8064_v35, %v6660_v63  ;;  %v1125_v63 = vunpack.c.h.b16 %v8764_v58  ;;  %v7342_v34 = vld [vmem:[#allocation2 + $0x5d0] sm:$0xf0]  ;;  %v8164_v56 = vld [vmem:[#allocation2 + $0x394] sm:$0xf0] }
 0x2df   :  { %11039 = vst [vmem:[#allocation76_spill] sm:$0xff] %v9037_v10  ;;  %1791 = vmatpush.bf16.msra.mxu2 %v9033_v12  ;;  %1693 = vmatpush.bf16.msra.mxu0 %v9037_v10  ;;  %v9051_v52 = vpack.c.b16 %v1121_v3, %v1119_v50  ;;  %v9057_v12 = vor.u32 %v8062_v57, %v6662_v6  ;;  %v6788_v50 = vld [vmem:[#allocation2 + $0x168] sm:$0xf]  ;;  %v8096_v3 = vld [vmem:[#allocation2 + $0x174] sm:$0xf0]  ;;  %v1122_v57 = vunpack.c.l.b16 %v8759_v45  ;;  %v1124_v6 = vunpack.c.l.b16 %v8764_v58 }
 0x2e0   :  { %1507 = vmatmul.bf16.gmra.mxu0 %v9025_v25  ;;  %1840 = vmatpush.bf16.msra.mxu3 %v9035_v19  ;;  %v8094_v19 = vld [vmem:[#allocation2 + $0x16c] sm:$0xf]  ;;  %11043 = vst [vmem:[#allocation80_spill] sm:$0xff] %v9061_v0  ;;  %v9064_v16 = vor.u32 %v8096_v3, %v6788_v50  ;;  %v6646_v3 = vld [vmem:[#allocation2 + $0x58] sm:$0xf0] }
 0x2e1   :  { %1556 = vmatmul.bf16.gmra.mxu1 %v9027_v36  ;;  %11041 = vst [vmem:[#allocation78_spill] sm:$0xff] %v9057_v12  ;;  %v9059_v42 = vor.u32 %v8094_v19, %v6790_v21  ;;  %v1123_v19 = vunpack.c.h.b16 %v8759_v45  ;;  %v9073_v21 = vpack.c.b16 %v1124_v6, %v1122_v57  ;;  %v8058_v50 = vld [vmem:[#allocation2 + $0x4c] sm:$0xf]  ;;  %v6774_v45 = vld [vmem:[#allocation2 + $0x158] sm:$0xf0] }
 0x2e2   :  { %1605 = vmatmul.bf16.gmra.mxu2 %v9025_v25  ;;  %11044 = vst [vmem:[#allocation81_spill] sm:$0xff] %v9064_v16  ;;  %1743 = vmatpush.bf16.msra.mxu1 %v9064_v16  ;;  %v6644_v16 = vld [vmem:[#allocation2 + $0x48] sm:$0xf]  ;;  %v8060_v58 = vld [vmem:[#allocation2 + $0x54] sm:$0xf0] }
 0x2e3   :  { %1654 = vmatmul.bf16.gmra.mxu3 %v9027_v36  ;;  %11042 = vst [vmem:[#allocation79_spill] sm:$0xff] %v9059_v42  ;;  %1792 = vmatpush.bf16.msra.mxu2 %v9057_v12  ;;  %v9075_v35 = vpack.c.b16 %v1125_v63, %v1123_v19  ;;  %v9081_v12 = vor.u32 %v8058_v50, %v6646_v3  ;;  %v6772_v19 = vld [vmem:[#allocation2 + $0x148] sm:$0xf]  ;;  %v8092_v63 = vld [vmem:[#allocation2 + $0x154] sm:$0xf0]  ;;  %v1126_v50 = vunpack.c.l.b16 %v8769_v5  ;;  %v1128_v3 = vunpack.c.l.b16 %v8774_v18 }
 0x2e4   :  { %1841 = vmatpush.bf16.msra.mxu3 %v9059_v42  ;;  %1694 = vmatpush.bf16.msra.mxu0 %v9061_v0  ;;  %v8090_v42 = vld [vmem:[#allocation2 + $0x14c] sm:$0xf]  ;;  %v9085_v6 = vor.u32 %v8060_v58, %v6644_v16  ;;  %v9088_v0 = vor.u32 %v8092_v63, %v6772_v19  ;;  %v1129_v16 = vunpack.c.h.b16 %v8774_v18  ;;  %v6630_v63 = vld [vmem:[#allocation2 + $0x38] sm:$0xf0]  ;;  %v8056_v18 = vld [vmem:[#allocation2 + $0x34] sm:$0xf0] }
 0x2e5   :  { %11045 = vst [vmem:[#allocation82_spill] sm:$0xff] %v9081_v12  ;;  %v9083_v57 = vor.u32 %v8090_v42, %v6774_v45  ;;  %v1127_v42 = vunpack.c.h.b16 %v8769_v5  ;;  %v9097_v45 = vpack.c.b16 %v1128_v3, %v1126_v50  ;;  %v8054_v19 = vld [vmem:[#allocation2 + $0x2c] sm:$0xf]  ;;  %v6758_v5 = vld [vmem:[#allocation2 + $0x138] sm:$0xf0] }
 0x2e6   :  { %11047 = vst [vmem:[#allocation84_spill] sm:$0xff] %v9085_v6  ;;  %1744 = vmatpush.bf16.msra.mxu1 %v9088_v0  ;;  %v7086_v59 = vld [vmem:[#allocation2 + $0x3d0] sm:$0xf0] }
 0x2e7   :  { %11046 = vst [vmem:[#allocation83_spill] sm:$0xff] %v9083_v57  ;;  %1793 = vmatpush.bf16.msra.mxu2 %v9081_v12  ;;  %v9099_v58 = vpack.c.b16 %v1129_v16, %v1127_v42  ;;  %v9105_v12 = vor.u32 %v8054_v19, %v6630_v63  ;;  %v6756_v42 = vld [vmem:[#allocation2 + $0x128] sm:$0xf]  ;;  %v8088_v16 = vld [vmem:[#allocation2 + $0x134] sm:$0xf0]  ;;  %v1130_v19 = vunpack.c.l.b16 %v8779_v28  ;;  %v1132_v63 = vunpack.c.l.b16 %v8784_v44 }
 0x2e8   :  { %11048 = vst [vmem:[#allocation85_spill] sm:$0xff] %v9088_v0  ;;  %1842 = vmatpush.bf16.msra.mxu3 %v9083_v57  ;;  %1695 = vmatpush.bf16.msra.mxu0 %v9085_v6  ;;  %v8086_v57 = vld [vmem:[#allocation2 + $0x12c] sm:$0xf]  ;;  %v6628_v0 = vld [vmem:[#allocation2 + $0x28] sm:$0xf]  ;;  %v9112_v6 = vor.u32 %v8088_v16, %v6756_v42 }
 0x2e9   :  { %11049 = vst [vmem:[#allocation86_spill] sm:$0xff] %v9105_v12  ;;  %v9107_v50 = vor.u32 %v8086_v57, %v6758_v5  ;;  %v9109_v3 = vor.u32 %v8056_v18, %v6628_v0  ;;  %v1131_v57 = vunpack.c.h.b16 %v8779_v28  ;;  %v1133_v0 = vunpack.c.h.b16 %v8784_v44  ;;  %v8050_v42 = vld [vmem:[#allocation2 + $0xc] sm:$0xf]  ;;  %v6614_v16 = vld [vmem:[#allocation2 + $0x18] sm:$0xf0] }
 0x2ea   :  { %11052 = vst [vmem:[#allocation89_spill] sm:$0xff] %v9112_v6  ;;  %1745 = vmatpush.bf16.msra.mxu1 %v9112_v6  ;;  %v9121_v5 = vpack.c.b16 %v1132_v63, %v1130_v19  ;;  %v6742_v28 = vld [vmem:[#allocation2 + $0x118] sm:$0xf0]  ;;  %v6612_v6 = vld [vmem:[#allocation2 + $0x8] sm:$0xf] }
 0x2eb   :  { %11050 = vst [vmem:[#allocation87_spill] sm:$0xff] %v9107_v50  ;;  %1794 = vmatpush.bf16.msra.mxu2 %v9105_v12  ;;  %v9123_v18 = vpack.c.b16 %v1133_v0, %v1131_v57  ;;  %v9129_v12 = vor.u32 %v8050_v42, %v6614_v16  ;;  %v8052_v44 = vld [vmem:[#allocation2 + $0x14] sm:$0xf0]  ;;  %v6740_v57 = vld [vmem:[#allocation2 + $0x108] sm:$0xf]  ;;  %v1134_v42 = vunpack.c.l.b16 %v8789_v55  ;;  %v1136_v16 = vunpack.c.l.b16 %v8794_v7 }
 0x2ec   :  { %11051 = vst [vmem:[#allocation88_spill] sm:$0xff] %v9109_v3  ;;  %1843 = vmatpush.bf16.msra.mxu3 %v9107_v50  ;;  %1696 = vmatpush.bf16.msra.mxu0 %v9109_v3  ;;  %v8082_v50 = vld [vmem:[#allocation2 + $0x10c] sm:$0xf]  ;;  %v9133_v63 = vor.u32 %v8052_v44, %v6612_v6  ;;  %v8084_v0 = vld [vmem:[#allocation2 + $0x114] sm:$0xf0]  ;;  %v1137_v6 = vunpack.c.h.b16 %v8794_v7  ;;  %v1141_v7 = vunpack.c.h.b16 %v8808_v23 }
 0x2ed   :  { %11053 = vst [vmem:[#allocation90_spill] sm:$0xff] %v9129_v12  ;;  %v9131_v19 = vor.u32 %v8082_v50, %v6742_v28  ;;  %v9136_v3 = vor.u32 %v8084_v0, %v6740_v57  ;;  %v1135_v50 = vunpack.c.h.b16 %v8789_v55  ;;  %v9145_v28 = vpack.c.b16 %v1136_v16, %v1134_v42  ;;  %v7070_v17 = vld [vmem:[#allocation2 + $0x3b0] sm:$0xf0] }
 0x2ee   :  { %11055 = vst [vmem:[#allocation92_spill] sm:$0xff] %v9133_v63  ;;  %v1138_v57 = vunpack.c.l.b16 %v8798_v14  ;;  %v1140_v0 = vunpack.c.l.b16 %v8808_v23  ;;  %v1139_v55 = vunpack.c.h.b16 %v8798_v14  ;;  %v9168_v14 = vld [vmem:[#allocation6 + $0x2] ss:$8 sm:$0xf]  ;;  %v7054_v33 = vld [vmem:[#allocation2 + $0x390] sm:$0xf0] }
 0x2ef   :  { %11054 = vst [vmem:[#allocation91_spill] sm:$0xff] %v9131_v19  ;;  %1795 = vmatpush.bf16.msra.mxu2 %v9129_v12  ;;  %1746 = vmatpush.bf16.msra.mxu1 %v9136_v3  ;;  %v9147_v44 = vpack.c.b16 %v1137_v6, %v1135_v50  ;;  %v7228_v50 = vld [vmem:[#allocation2 + $0x4e0] sm:$0xf]  ;;  %v8207_v6 = vld [vmem:[#allocation2 + $0x4ec] sm:$0xf0] }
 0x2f0   :  { %1512 = vmatmul.bf16.gmra.mxu0 %v9049_v38  ;;  %11056 = vst [vmem:[#allocation93_spill] sm:$0xff] %v9136_v3  ;;  %1844 = vmatpush.bf16.msra.mxu3 %v9131_v19  ;;  %v9157_v42 = vpack.c.b16 %v1140_v0, %v1138_v57  ;;  %v9159_v16 = vpack.c.b16 %v1141_v7, %v1139_v55  ;;  %v7356_v23 = vld [vmem:[#allocation2 + $0x5e0] sm:$0xf]  ;;  %v8239_v57 = vld [vmem:[#allocation2 + $0x5ec] sm:$0xf0]  ;;  %v9171_v0 = vperm.slane %v9168_v14, 0 }
 0x2f1   :  { %1561 = vmatmul.bf16.gmra.mxu1 %v9051_v52  ;;  %1697 = vmatpush.bf16.msra.mxu0 %v9133_v63  ;;  %v9165_v19 = vor.u32 %v8207_v6, %v7228_v50  ;;  %v9173_v55 = vor.u32 %v8239_v57, %v7356_v23  ;;  %v6972_v7 = vld [vmem:[#allocation2 + $0x2e0] sm:$0xf]  ;;  %v8143_v12 = vld [vmem:[#allocation2 + $0x2ec] sm:$0xf0] }
 0x2f2   :  { %1610 = vmatmul.bf16.gmra.mxu2 %v9049_v38  ;;  %11058 = vst [vmem:[#allocation95_spill] sm:$0xff] %v9171_v0  ;;  %v7100_v3 = vld [vmem:[#allocation2 + $0x3e0] sm:$0xf]  ;;  %v9176_v29 = vor.u32 %v8143_v12, %v6972_v7  ;;  %v8175_v50 = vld [vmem:[#allocation2 + $0x3ec] sm:$0xf0]  ;;  %v9187_v12 = vperm.slane %v9168_v14, 1 }
 0x2f3   :  { %1659 = vmatmul.bf16.gmra.mxu3 %v9051_v52  ;;  %11057 = vst [vmem:[#allocation94_spill] sm:$0xff] %v9165_v19  ;;  %2857 = vmatpush.bf16.msrb.mxu2 %v9165_v19  ;;  %v9179_v24 = vor.u32 %v8175_v50, %v7100_v3  ;;  %v8203_v23 = vld [vmem:[#allocation2 + $0x4cc] sm:$0xf0] }
 0x2f4   :  { %11059 = vst [vmem:[#allocation96_spill] sm:$0xff] %v9173_v55  ;;  %2906 = vmatpush.bf16.msrb.mxu3 %v9173_v55 }
 0x2f5   :  { %11060 = vst [vmem:[#allocation97_spill] sm:$0xff] %v9176_v29  ;;  %2759 = vmatpush.bf16.msrb.mxu0 %v9176_v29  ;;  %2808 = vmatpush.bf16.msrb.mxu1 %v9179_v24  ;;  %v7340_v29 = vld [vmem:[#allocation2 + $0x5c0] sm:$0xf] }
 0x2f6   :  { %11061 = vst [vmem:[#allocation98_spill] sm:$0xff] %v9179_v24  ;;  %v9195_v4 = vor.u32 %v8235_v30, %v7340_v29 }
 0x2f7   :  { %11062 = vst [vmem:[#allocation99_spill] sm:$0xff] %v9187_v12 }
 0x2f8   :  { %11064 = vst [vmem:[#allocation101_spill] sm:$0xff] %v9195_v4  ;;  %2907 = vmatpush.bf16.msrb.mxu3 %v9195_v4 }
 0x300   :  { %1517 = vmatmul.bf16.gmra.mxu0 %v9073_v21 }
 0x301   :  { %1566 = vmatmul.bf16.gmra.mxu1 %v9075_v35 }
 0x302   :  { %1615 = vmatmul.bf16.gmra.mxu2 %v9073_v21 }
 0x303   :  { %1664 = vmatmul.bf16.gmra.mxu3 %v9075_v35 }
 0x310   :  { %1522 = vmatmul.bf16.gmra.mxu0 %v9097_v45 }
 0x311   :  { %1571 = vmatmul.bf16.gmra.mxu1 %v9099_v58 }
 0x312   :  { %1620 = vmatmul.bf16.gmra.mxu2 %v9097_v45 }
 0x313   :  { %1669 = vmatmul.bf16.gmra.mxu3 %v9099_v58 }
 0x320   :  { %1527 = vmatmul.bf16.gmra.mxu0 %v9121_v5 }
 0x321   :  { %1576 = vmatmul.bf16.gmra.mxu1 %v9123_v18 }
 0x322   :  { %1625 = vmatmul.bf16.gmra.mxu2 %v9121_v5 }
 0x323   :  { %1674 = vmatmul.bf16.gmra.mxu3 %v9123_v18 }
 0x330   :  { %1532 = vmatmul.bf16.gmra.mxu0 %v9145_v28 }
 0x331   :  { %1581 = vmatmul.bf16.gmra.mxu1 %v9147_v44 }
 0x332   :  { %1630 = vmatmul.bf16.gmra.mxu2 %v9145_v28 }
 0x333   :  { %1679 = vmatmul.bf16.gmra.mxu3 %v9147_v44 }
 0x340   :  { %1537 = vmatmul.bf16.gmra.mxu0 %v9157_v42 }
 0x341   :  { %1586 = vmatmul.bf16.gmra.mxu1 %v9159_v16 }
 0x342   :  { %1635 = vmatmul.bf16.gmra.mxu2 %v9157_v42 }
 0x343   :  { %1684 = vmatmul.bf16.gmra.mxu3 %v9159_v16 }
 0x34d   :  { %v1503_v63 = vpop.f32.mrf.mxu0 }
 0x34e   :  { %v1504_v6 = vadd.f32 %v1503_v63, %v9171_v0  ;;  %v1552_v19 = vpop.f32.mrf.mxu1  ;;  %v7212_v63 = vld [vmem:[#allocation2 + $0x4c0] sm:$0xf] }
 0x34f   :  { %v9190_v57 = vor.u32 %v8203_v23, %v7212_v63  ;;  %v6956_v23 = vld [vmem:[#allocation2 + $0x2c0] sm:$0xf] }
 0x350   :  { %v1553_v10 = vadd.f32 %v1552_v19, %v1504_v6  ;;  %1698 = vmatmul.bf16.vlgmr.msra.gmra.mxu0 %v8975_v54 }
 0x351   :  { %1747 = vmatmul.bf16.vlgmr.msra.gmra.mxu1 %v8980_v26  ;;  %11063 = vst [vmem:[#allocation100_spill] sm:$0xff] %v9190_v57  ;;  %2858 = vmatpush.bf16.msrb.mxu2 %v9190_v57 }
 0x352   :  { %1796 = vmatmul.bf16.vlgmr.msra.gmra.mxu2 %v8975_v54  ;;  %v1886_v1 = vmax.f32 %v1553_v10, 0.0 }
 0x353   :  { %1845 = vmatmul.bf16.vlgmr.msra.gmra.mxu3 %v8980_v26 }
 0x355   :  { %v1601_v3 = vpop.f32.mrf.mxu2  ;;  %v1505_v50 = vpop.f32.mrf.mxu0 }
 0x356   :  { %v1602_v19 = vadd.f32 %v1601_v3, %v9187_v12  ;;  %v1650_v7 = vpop.f32.mrf.mxu3  ;;  %v1506_v6 = vadd.f32 %v1505_v50, %v9171_v0  ;;  %v1554_v55 = vpop.f32.mrf.mxu1  ;;  %v8139_v3 = vld [vmem:[#allocation2 + $0x2cc] sm:$0xf0] }
 0x358   :  { %v1651_v54 = vadd.f32 %v1650_v7, %v1602_v19  ;;  %v1555_v24 = vadd.f32 %v1554_v55, %v1506_v6  ;;  %v9201_v19 = vor.u32 %v8139_v3, %v6956_v23  ;;  %v8171_v55 = vld [vmem:[#allocation2 + $0x3cc] sm:$0xf0] }
 0x359   :  { %v9204_v29 = vor.u32 %v8171_v55, %v7084_v61  ;;  %v7196_v61 = vld [vmem:[#allocation2 + $0x4a0] sm:$0xf] }
 0x35a   :  { %v1890_v26 = vmax.f32 %v1555_v24, 0.0  ;;  %11065 = vst [vmem:[#allocation102_spill] sm:$0xff] %v9201_v19  ;;  %2760 = vmatpush.bf16.msrb.mxu0 %v9201_v19  ;;  %v1887_v7 = vmax.f32 %v1651_v54, 0.0 }
 0x35b   :  { %11066 = vst [vmem:[#allocation103_spill] sm:$0xff] %v9204_v29  ;;  %2809 = vmatpush.bf16.msrb.mxu1 %v9204_v29  ;;  %v7068_v29 = vld [vmem:[#allocation2 + $0x3a0] sm:$0xf] }
 0x35c   :  { %v9197_v31 = vpack.c.bf16 %v1890_v26, %v1886_v1  ;;  %v8199_v26 = vld [vmem:[#allocation2 + $0x4ac] sm:$0xf0] }
 0x35d   :  { %v1603_v63 = vpop.f32.mrf.mxu2  ;;  %v1508_v57 = vpop.f32.mrf.mxu0 }
 0x35e   :  { %v1604_v50 = vadd.f32 %v1603_v63, %v9187_v12  ;;  %v1652_v41 = vpop.f32.mrf.mxu3  ;;  %v1509_v10 = vadd.f32 %v1508_v57, %v9171_v0  ;;  %v1557_v24 = vpop.f32.mrf.mxu1  ;;  %v9214_v63 = vor.u32 %v8199_v26, %v7196_v61  ;;  %v6940_v26 = vld [vmem:[#allocation2 + $0x2a0] sm:$0xf] }
 0x360   :  { %v1653_v1 = vadd.f32 %v1652_v41, %v1604_v50  ;;  %v1558_v30 = vadd.f32 %v1557_v24, %v1509_v10  ;;  %1703 = vmatmul.bf16.gmra.mxu0 %v9025_v25  ;;  %11067 = vst [vmem:[#allocation104_spill] sm:$0xff] %v9214_v63  ;;  %2859 = vmatpush.bf16.msrb.mxu2 %v9214_v63  ;;  %v7324_v24 = vld [vmem:[#allocation2 + $0x5a0] sm:$0xf] }
 0x361   :  { %1752 = vmatmul.bf16.gmra.mxu1 %v9027_v36 }
 0x362   :  { %v1891_v6 = vmax.f32 %v1653_v1, 0.0  ;;  %1801 = vmatmul.bf16.gmra.mxu2 %v9025_v25  ;;  %v1894_v1 = vmax.f32 %v1558_v30, 0.0 }
 0x363   :  { %1850 = vmatmul.bf16.gmra.mxu3 %v9027_v36  ;;  %v8231_v36 = vld [vmem:[#allocation2 + $0x5ac] sm:$0xf0] }
 0x364   :  { %v9212_v57 = vpack.c.bf16 %v1891_v6, %v1887_v7  ;;  %v9219_v6 = vor.u32 %v8231_v36, %v7324_v24 }
 0x365   :  { %v1606_v41 = vpop.f32.mrf.mxu2  ;;  %v1510_v50 = vpop.f32.mrf.mxu0 }
 0x366   :  { %v1607_v23 = vadd.f32 %v1606_v41, %v9187_v12  ;;  %v1655_v3 = vpop.f32.mrf.mxu3  ;;  %v1511_v54 = vadd.f32 %v1510_v50, %v9171_v0  ;;  %v1559_v55 = vpop.f32.mrf.mxu1  ;;  %11068 = vst [vmem:[#allocation105_spill] sm:$0xff] %v9219_v6  ;;  %2908 = vmatpush.bf16.msrb.mxu3 %v9219_v6  ;;  %v8135_v41 = vld [vmem:[#allocation2 + $0x2ac] sm:$0xf0] }
 0x368   :  { %v1656_v10 = vadd.f32 %v1655_v3, %v1607_v23  ;;  %v1560_v25 = vadd.f32 %v1559_v55, %v1511_v54  ;;  %v9225_v23 = vor.u32 %v8135_v41, %v6940_v26  ;;  %v8167_v3 = vld [vmem:[#allocation2 + $0x3ac] sm:$0xf0] }
 0x369   :  { %v9228_v55 = vor.u32 %v8167_v3, %v7068_v29  ;;  %v7180_v29 = vld [vmem:[#allocation2 + $0x480] sm:$0xf] }
 0x36a   :  { %v1898_v7 = vmax.f32 %v1560_v25, 0.0  ;;  %11069 = vst [vmem:[#allocation106_spill] sm:$0xff] %v9225_v23  ;;  %2761 = vmatpush.bf16.msrb.mxu0 %v9225_v23  ;;  %v1895_v36 = vmax.f32 %v1656_v10, 0.0 }
 0x36b   :  { %11070 = vst [vmem:[#allocation107_spill] sm:$0xff] %v9228_v55  ;;  %2810 = vmatpush.bf16.msrb.mxu1 %v9228_v55  ;;  %v7052_v55 = vld [vmem:[#allocation2 + $0x380] sm:$0xf] }
 0x36c   :  { %v9221_v4 = vpack.c.bf16 %v1898_v7, %v1894_v1  ;;  %v8195_v7 = vld [vmem:[#allocation2 + $0x48c] sm:$0xf0] }
 0x36d   :  { %v1608_v61 = vpop.f32.mrf.mxu2  ;;  %v1513_v63 = vpop.f32.mrf.mxu0 }
 0x36e   :  { %v1609_v50 = vadd.f32 %v1608_v61, %v9187_v12  ;;  %v1657_v19 = vpop.f32.mrf.mxu3  ;;  %v1514_v30 = vadd.f32 %v1513_v63, %v9171_v0  ;;  %v1562_v54 = vpop.f32.mrf.mxu1  ;;  %v9238_v61 = vor.u32 %v8195_v7, %v7180_v29  ;;  %v6924_v7 = vld [vmem:[#allocation2 + $0x280] sm:$0xf] }
 0x370   :  { %v1658_v25 = vadd.f32 %v1657_v19, %v1609_v50  ;;  %v1563_v24 = vadd.f32 %v1562_v54, %v1514_v30  ;;  %1708 = vmatmul.bf16.gmra.mxu0 %v9049_v38  ;;  %11071 = vst [vmem:[#allocation108_spill] sm:$0xff] %v9238_v61  ;;  %2860 = vmatpush.bf16.msrb.mxu2 %v9238_v61  ;;  %v7308_v54 = vld [vmem:[#allocation2 + $0x580] sm:$0xf] }
 0x371   :  { %1757 = vmatmul.bf16.gmra.mxu1 %v9051_v52 }
 0x372   :  { %v1899_v1 = vmax.f32 %v1658_v25, 0.0  ;;  %1806 = vmatmul.bf16.gmra.mxu2 %v9049_v38  ;;  %v1902_v25 = vmax.f32 %v1563_v24, 0.0 }
 0x373   :  { %1855 = vmatmul.bf16.gmra.mxu3 %v9051_v52  ;;  %v8227_v52 = vld [vmem:[#allocation2 + $0x58c] sm:$0xf0] }
 0x374   :  { %v9236_v63 = vpack.c.bf16 %v1899_v1, %v1895_v36  ;;  %v9243_v1 = vor.u32 %v8227_v52, %v7308_v54 }
 0x375   :  { %v1611_v19 = vpop.f32.mrf.mxu2  ;;  %v1515_v50 = vpop.f32.mrf.mxu0 }
 0x376   :  { %v1612_v26 = vadd.f32 %v1611_v19, %v9187_v12  ;;  %v1660_v41 = vpop.f32.mrf.mxu3  ;;  %v1516_v10 = vadd.f32 %v1515_v50, %v9171_v0  ;;  %v1564_v3 = vpop.f32.mrf.mxu1  ;;  %11072 = vst [vmem:[#allocation109_spill] sm:$0xff] %v9243_v1  ;;  %2909 = vmatpush.bf16.msrb.mxu3 %v9243_v1  ;;  %v8131_v19 = vld [vmem:[#allocation2 + $0x28c] sm:$0xf0] }
 0x378   :  { %v1661_v30 = vadd.f32 %v1660_v41, %v1612_v26  ;;  %v1565_v38 = vadd.f32 %v1564_v3, %v1516_v10  ;;  %v9249_v26 = vor.u32 %v8131_v19, %v6924_v7  ;;  %v8163_v41 = vld [vmem:[#allocation2 + $0x38c] sm:$0xf0] }
 0x379   :  { %v9252_v3 = vor.u32 %v8163_v41, %v7052_v55  ;;  %v7164_v55 = vld [vmem:[#allocation2 + $0x460] sm:$0xf] }
 0x37a   :  { %v1906_v36 = vmax.f32 %v1565_v38, 0.0  ;;  %11073 = vst [vmem:[#allocation110_spill] sm:$0xff] %v9249_v26  ;;  %2762 = vmatpush.bf16.msrb.mxu0 %v9249_v26  ;;  %v1903_v52 = vmax.f32 %v1661_v30, 0.0 }
 0x37b   :  { %11074 = vst [vmem:[#allocation111_spill] sm:$0xff] %v9252_v3  ;;  %2811 = vmatpush.bf16.msrb.mxu1 %v9252_v3  ;;  %v7036_v3 = vld [vmem:[#allocation2 + $0x360] sm:$0xf] }
 0x37c   :  { %v9245_v6 = vpack.c.bf16 %v1906_v36, %v1902_v25  ;;  %v8191_v36 = vld [vmem:[#allocation2 + $0x46c] sm:$0xf0] }
 0x37d   :  { %v1613_v29 = vpop.f32.mrf.mxu2  ;;  %v1518_v61 = vpop.f32.mrf.mxu0 }
 0x37e   :  { %v1614_v50 = vadd.f32 %v1613_v29, %v9187_v12  ;;  %v1662_v23 = vpop.f32.mrf.mxu3  ;;  %v1519_v24 = vadd.f32 %v1518_v61, %v9171_v0  ;;  %v1567_v10 = vpop.f32.mrf.mxu1  ;;  %v9262_v29 = vor.u32 %v8191_v36, %v7164_v55  ;;  %v6908_v36 = vld [vmem:[#allocation2 + $0x260] sm:$0xf] }
 0x380   :  { %v1663_v38 = vadd.f32 %v1662_v23, %v1614_v50  ;;  %v1568_v54 = vadd.f32 %v1567_v10, %v1519_v24  ;;  %1713 = vmatmul.bf16.gmra.mxu0 %v9073_v21  ;;  %11075 = vst [vmem:[#allocation112_spill] sm:$0xff] %v9262_v29  ;;  %2861 = vmatpush.bf16.msrb.mxu2 %v9262_v29  ;;  %v7292_v10 = vld [vmem:[#allocation2 + $0x560] sm:$0xf] }
 0x381   :  { %1762 = vmatmul.bf16.gmra.mxu1 %v9075_v35 }
 0x382   :  { %v1907_v25 = vmax.f32 %v1663_v38, 0.0  ;;  %1811 = vmatmul.bf16.gmra.mxu2 %v9073_v21  ;;  %v1910_v38 = vmax.f32 %v1568_v54, 0.0 }
 0x383   :  { %1860 = vmatmul.bf16.gmra.mxu3 %v9075_v35  ;;  %v8223_v35 = vld [vmem:[#allocation2 + $0x56c] sm:$0xf0] }
 0x384   :  { %v9260_v61 = vpack.c.bf16 %v1907_v25, %v1903_v52  ;;  %v9267_v25 = vor.u32 %v8223_v35, %v7292_v10 }
 0x385   :  { %v1616_v23 = vpop.f32.mrf.mxu2  ;;  %v1520_v50 = vpop.f32.mrf.mxu0 }
 0x386   :  { %v1617_v7 = vadd.f32 %v1616_v23, %v9187_v12  ;;  %v1665_v19 = vpop.f32.mrf.mxu3  ;;  %v1521_v30 = vadd.f32 %v1520_v50, %v9171_v0  ;;  %v1569_v41 = vpop.f32.mrf.mxu1  ;;  %11076 = vst [vmem:[#allocation113_spill] sm:$0xff] %v9267_v25  ;;  %2910 = vmatpush.bf16.msrb.mxu3 %v9267_v25  ;;  %v8127_v23 = vld [vmem:[#allocation2 + $0x26c] sm:$0xf0]  ;;  %v7020_v25 = vld [vmem:[#allocation2 + $0x340] sm:$0xf] }
 0x388   :  { %v1666_v24 = vadd.f32 %v1665_v19, %v1617_v7  ;;  %v1570_v21 = vadd.f32 %v1569_v41, %v1521_v30  ;;  %v9273_v7 = vor.u32 %v8127_v23, %v6908_v36  ;;  %v8159_v19 = vld [vmem:[#allocation2 + $0x36c] sm:$0xf0] }
 0x389   :  { %v9276_v41 = vor.u32 %v8159_v19, %v7036_v3  ;;  %v7148_v3 = vld [vmem:[#allocation2 + $0x440] sm:$0xf] }
 0x38a   :  { %v1914_v52 = vmax.f32 %v1570_v21, 0.0  ;;  %11077 = vst [vmem:[#allocation114_spill] sm:$0xff] %v9273_v7  ;;  %2763 = vmatpush.bf16.msrb.mxu0 %v9273_v7  ;;  %v1911_v35 = vmax.f32 %v1666_v24, 0.0 }
 0x38b   :  { %11078 = vst [vmem:[#allocation115_spill] sm:$0xff] %v9276_v41  ;;  %2812 = vmatpush.bf16.msrb.mxu1 %v9276_v41 }
 0x38c   :  { %v9269_v1 = vpack.c.bf16 %v1914_v52, %v1910_v38  ;;  %v8187_v52 = vld [vmem:[#allocation2 + $0x44c] sm:$0xf0] }
 0x38d   :  { %v1618_v55 = vpop.f32.mrf.mxu2  ;;  %v1523_v29 = vpop.f32.mrf.mxu0 }
 0x38e   :  { %v1619_v50 = vadd.f32 %v1618_v55, %v9187_v12  ;;  %v1667_v26 = vpop.f32.mrf.mxu3  ;;  %v1524_v54 = vadd.f32 %v1523_v29, %v9171_v0  ;;  %v1572_v30 = vpop.f32.mrf.mxu1  ;;  %v9286_v55 = vor.u32 %v8187_v52, %v7148_v3 }
 0x390   :  { %v1668_v21 = vadd.f32 %v1667_v26, %v1619_v50  ;;  %v1573_v10 = vadd.f32 %v1572_v30, %v1524_v54  ;;  %1718 = vmatmul.bf16.gmra.mxu0 %v9097_v45  ;;  %11079 = vst [vmem:[#allocation116_spill] sm:$0xff] %v9286_v55  ;;  %2862 = vmatpush.bf16.msrb.mxu2 %v9286_v55  ;;  %v8219_v30 = vld [vmem:[#allocation2 + $0x54c] sm:$0xf0] }
 0x391   :  { %1767 = vmatmul.bf16.gmra.mxu1 %v9099_v58  ;;  %v8119_v55 = vld [vmem:[#allocation2 + $0x22c] sm:$0xf0] }
 0x392   :  { %v1915_v38 = vmax.f32 %v1668_v21, 0.0  ;;  %1816 = vmatmul.bf16.gmra.mxu2 %v9097_v45  ;;  %v1918_v21 = vmax.f32 %v1573_v10, 0.0 }
 0x393   :  { %1865 = vmatmul.bf16.gmra.mxu3 %v9099_v58  ;;  %v7276_v58 = vld [vmem:[#allocation2 + $0x540] sm:$0xf] }
 0x394   :  { %v9284_v29 = vpack.c.bf16 %v1915_v38, %v1911_v35  ;;  %v9293_v38 = vor.u32 %v8219_v30, %v7276_v58  ;;  %v7132_v30 = vld [vmem:[#allocation2 + $0x420] sm:$0xf] }
 0x395   :  { %v1621_v26 = vpop.f32.mrf.mxu2  ;;  %v1525_v50 = vpop.f32.mrf.mxu0 }
 0x396   :  { %v1622_v36 = vadd.f32 %v1621_v26, %v9187_v12  ;;  %v1670_v23 = vpop.f32.mrf.mxu3  ;;  %v1526_v24 = vadd.f32 %v1525_v50, %v9171_v0  ;;  %v1574_v19 = vpop.f32.mrf.mxu1  ;;  %11080 = vst [vmem:[#allocation117_spill] sm:$0xff] %v9293_v38  ;;  %2911 = vmatpush.bf16.msrb.mxu3 %v9293_v38  ;;  %v6892_v26 = vld [vmem:[#allocation2 + $0x240] sm:$0xf]  ;;  %v8123_v50 = vld [vmem:[#allocation2 + $0x24c] sm:$0xf0] }
 0x398   :  { %v9291_v54 = vadd.f32 %v1670_v23, %v1622_v36  ;;  %v1575_v45 = vadd.f32 %v1574_v19, %v1526_v24  ;;  %v9302_v23 = vor.u32 %v8123_v50, %v6892_v26  ;;  %v8155_v24 = vld [vmem:[#allocation2 + $0x34c] sm:$0xf0] }
 0x39a   :  { %v1922_v35 = vmax.f32 %v1575_v45, 0.0  ;;  %11081 = vst [vmem:[#allocation118_spill] sm:$0xff] %v9302_v23  ;;  %v9305_v45 = vor.u32 %v8155_v24, %v7020_v25  ;;  %2764 = vmatpush.bf16.msrb.mxu0 %v9302_v23  ;;  %v8215_v23 = vld [vmem:[#allocation2 + $0x52c] sm:$0xf0] }
 0x39c   :  { %v9295_v3 = vpack.c.bf16 %v1922_v35, %v1918_v21  ;;  %11082 = vst [vmem:[#allocation119_spill] sm:$0xff] %v9305_v45  ;;  %2813 = vmatpush.bf16.msrb.mxu1 %v9305_v45  ;;  %v8183_v21 = vld [vmem:[#allocation2 + $0x42c] sm:$0xf0]  ;;  %v7260_v45 = vld [vmem:[#allocation2 + $0x520] sm:$0xf] }
 0x39d   :  { %v9297_v52 = vpop.f32.mrf.mxu2  ;;  %v1528_v36 = vpop.f32.mrf.mxu0  ;;  %v9313_v26 = vor.u32 %v8183_v21, %v7132_v30 }
 0x39e   :  { %v9300_v41 = vpop.f32.mrf.mxu3  ;;  %v1529_v10 = vadd.f32 %v1528_v36, %v9171_v0  ;;  %v1577_v19 = vpop.f32.mrf.mxu1 }
 0x39f   :  { %11083 = vst [vmem:[#allocation120_spill] sm:$0xff] %v9313_v26  ;;  %2863 = vmatpush.bf16.msrb.mxu2 %v9313_v26 }
 0x3a0   :  { %v1578_v58 = vadd.f32 %v1577_v19, %v1529_v10  ;;  %1723 = vmatmul.bf16.gmra.mxu0 %v9121_v5 }
 0x3a1   :  { %1772 = vmatmul.bf16.gmra.mxu1 %v9123_v18 }
 0x3a2   :  { %1821 = vmatmul.bf16.gmra.mxu2 %v9121_v5  ;;  %v6876_v5 = vld [vmem:[#allocation2 + $0x220] sm:$0xf]  ;;  %v1926_v30 = vmax.f32 %v1578_v58, 0.0 }
 0x3a3   :  { %1870 = vmatmul.bf16.gmra.mxu3 %v9123_v18  ;;  %v7004_v18 = vld [vmem:[#allocation2 + $0x320] sm:$0xf]  ;;  %v9320_v7 = vor.u32 %v8119_v55, %v6876_v5 }
 0x3a5   :  { %v1626_v35 = vpop.f32.mrf.mxu2  ;;  %v1530_v36 = vpop.f32.mrf.mxu0  ;;  %11084 = vst [vmem:[#allocation121_spill] sm:$0xff] %v9320_v7  ;;  %2765 = vmatpush.bf16.msrb.mxu0 %v9320_v7 }
 0x3a6   :  { %v1627_v25 = vadd.f32 %v1626_v35, %v9187_v12  ;;  %v1675_v50 = vpop.f32.mrf.mxu3  ;;  %v1531_v24 = vadd.f32 %v1530_v36, %v9171_v0  ;;  %v1579_v10 = vpop.f32.mrf.mxu1  ;;  %v9322_v35 = vor.u32 %v8215_v23, %v7260_v45  ;;  %v9325_v36 = vor.u32 %v8151_v8, %v7004_v18  ;;  %v8147_v23 = vld [vmem:[#allocation2 + $0x30c] sm:$0xf0] }
 0x3a8   :  { %v9318_v19 = vadd.f32 %v1675_v50, %v1627_v25  ;;  %v1580_v38 = vadd.f32 %v1579_v10, %v1531_v24  ;;  %11085 = vst [vmem:[#allocation122_spill] sm:$0xff] %v9322_v35  ;;  %2912 = vmatpush.bf16.msrb.mxu3 %v9322_v35  ;;  %v6860_v50 = vld [vmem:[#allocation2 + $0x200] sm:$0xf]  ;;  %v8115_v24 = vld [vmem:[#allocation2 + $0x20c] sm:$0xf0]  ;;  %2814 = vmatpush.bf16.msrb.mxu1 %v9325_v36 }
 0x3a9   :  { %11086 = vst [vmem:[#allocation123_spill] sm:$0xff] %v9325_v36  ;;  %v6988_v10 = vld [vmem:[#allocation2 + $0x300] sm:$0xf] }
 0x3aa   :  { %v1930_v21 = vmax.f32 %v1580_v38, 0.0  ;;  %v9335_v38 = vor.u32 %v8115_v24, %v6860_v50  ;;  %v9338_v5 = vor.u32 %v8147_v23, %v6988_v10 }
 0x3ac   :  { %v9327_v26 = vpack.c.bf16 %v1930_v21, %v1926_v30  ;;  %11087 = vst [vmem:[#allocation124_spill] sm:$0xff] %v9335_v38  ;;  %2766 = vmatpush.bf16.msrb.mxu0 %v9335_v38  ;;  %2815 = vmatpush.bf16.msrb.mxu1 %v9338_v5  ;;  %v7116_v30 = vld [vmem:[#allocation2 + $0x400] sm:$0xf]  ;;  %v8179_v21 = vld [vmem:[#allocation2 + $0x40c] sm:$0xf0] }
 0x3ad   :  { %v9329_v25 = vpop.f32.mrf.mxu2  ;;  %v1533_v58 = vpop.f32.mrf.mxu0  ;;  %11088 = vst [vmem:[#allocation125_spill] sm:$0xff] %v9338_v5  ;;  %v9346_v24 = vor.u32 %v8179_v21, %v7116_v30  ;;  %v8211_v38 = vld [vmem:[#allocation2 + $0x50c] sm:$0xf0] }
 0x3ae   :  { %v9332_v55 = vpop.f32.mrf.mxu3  ;;  %v1534_v8 = vadd.f32 %v1533_v58, %v9171_v0  ;;  %v1582_v45 = vpop.f32.mrf.mxu1 }
 0x3af   :  { %11089 = vst [vmem:[#allocation126_spill] sm:$0xff] %v9346_v24  ;;  %2864 = vmatpush.bf16.msrb.mxu2 %v9346_v24 }
 0x3b0   :  { %v1583_v18 = vadd.f32 %v1582_v45, %v1534_v8  ;;  %1728 = vmatmul.bf16.gmra.mxu0 %v9145_v28 }
 0x3b1   :  { %1777 = vmatmul.bf16.gmra.mxu1 %v9147_v44 }
 0x3b2   :  { %1826 = vmatmul.bf16.gmra.mxu2 %v9145_v28  ;;  %v1934_v5 = vmax.f32 %v1583_v18, 0.0 }
 0x3b3   :  { %1875 = vmatmul.bf16.gmra.mxu3 %v9147_v44  ;;  %v7244_v44 = vld [vmem:[#allocation2 + $0x500] sm:$0xf] }
 0x3b4   :  { %v9353_v7 = vor.u32 %v8211_v38, %v7244_v44  ;;  %v7230_v38 = vld [vmem:[#allocation2 + $0x4f0] sm:$0xf0] }
 0x3b5   :  { %v1631_v50 = vpop.f32.mrf.mxu2  ;;  %v1535_v23 = vpop.f32.mrf.mxu0 }
 0x3b6   :  { %v1632_v10 = vadd.f32 %v1631_v50, %v9187_v12  ;;  %v1680_v58 = vpop.f32.mrf.mxu3  ;;  %v1536_v8 = vadd.f32 %v1535_v23, %v9171_v0  ;;  %v1584_v45 = vpop.f32.mrf.mxu1  ;;  %11090 = vst [vmem:[#allocation127_spill] sm:$0xff] %v9353_v7  ;;  %2913 = vmatpush.bf16.msrb.mxu3 %v9353_v7  ;;  %v7358_v7 = vld [vmem:[#allocation2 + $0x5f0] sm:$0xf0] }
 0x3b8   :  { %v9351_v35 = vadd.f32 %v1680_v58, %v1632_v10  ;;  %v1585_v28 = vadd.f32 %v1584_v45, %v1536_v8 }
 0x3ba   :  { %v1938_v36 = vmax.f32 %v1585_v28, 0.0 }
 0x3bc   :  { %v9355_v30 = vpack.c.bf16 %v1938_v36, %v1934_v5  ;;  %v8205_v36 = vld [vmem:[#allocation2 + $0x4e4] sm:$0xf] }
 0x3bd   :  { %v9357_v21 = vpop.f32.mrf.mxu2  ;;  %v1538_v23 = vpop.f32.mrf.mxu0  ;;  %v9367_v18 = vor.u32 %v8205_v36, %v7230_v38 }
 0x3be   :  { %v9360_v50 = vpop.f32.mrf.mxu3  ;;  %v1539_v24 = vadd.f32 %v1538_v23, %v9171_v0  ;;  %v1587_v10 = vpop.f32.mrf.mxu1 }
 0x3bf   :  { %11091 = vst [vmem:[#allocation128_spill] sm:$0xff] %v9367_v18  ;;  %3053 = vmatpush.bf16.msra.mxu2 %v9367_v18 }
 0x3c0   :  { %v1588_v58 = vadd.f32 %v1587_v10, %v1539_v24  ;;  %1733 = vmatmul.bf16.gmra.mxu0 %v9157_v42 }
 0x3c1   :  { %1782 = vmatmul.bf16.gmra.mxu1 %v9159_v16 }
 0x3c2   :  { %1831 = vmatmul.bf16.gmra.mxu2 %v9157_v42  ;;  %v8237_v42 = vld [vmem:[#allocation2 + $0x5e4] sm:$0xf] }
 0x3c3   :  { %1880 = vmatmul.bf16.gmra.mxu3 %v9159_v16  ;;  %v1942_v16 = vmax.f32 %v1588_v58, 0.0  ;;  %v9374_v62 = vor.u32 %v8237_v42, %v7358_v7  ;;  %v9386_v58 = vperm.slane %v9168_v14, 2  ;;  %v7214_v42 = vld [vmem:[#allocation2 + $0x4d0] sm:$0xf0] }
 0x3c5   :  { %v1636_v5 = vpop.f32.mrf.mxu2  ;;  %v1540_v28 = vpop.f32.mrf.mxu0  ;;  %11092 = vst [vmem:[#allocation129_spill] sm:$0xff] %v9374_v62  ;;  %3102 = vmatpush.bf16.msra.mxu3 %v9374_v62 }
 0x3c6   :  { %v1637_v8 = vadd.f32 %v1636_v5, %v9187_v12  ;;  %v1685_v45 = vpop.f32.mrf.mxu3  ;;  %v1541_v44 = vadd.f32 %v1540_v28, %v9171_v0  ;;  %v1589_v24 = vpop.f32.mrf.mxu1  ;;  %v8141_v5 = vld [vmem:[#allocation2 + $0x2e4] sm:$0xf]  ;;  %v6974_v28 = vld [vmem:[#allocation2 + $0x2f0] sm:$0xf0]  ;;  %11094 = vst [vmem:[#allocation131_spill] sm:$0xff] %v9386_v58 }
 0x3c7   :  { %v8173_v0 = vld [vmem:[#allocation2 + $0x3e4] sm:$0xf] }
 0x3c8   :  { %v9372_v23 = vadd.f32 %v1685_v45, %v1637_v8  ;;  %v1590_v10 = vadd.f32 %v1589_v24, %v1541_v44  ;;  %v9383_v45 = vor.u32 %v8141_v5, %v6974_v28  ;;  %v7102_v44 = vld [vmem:[#allocation2 + $0x3f0] sm:$0xf0]  ;;  %v9398_v28 = vperm.slane %v9168_v14, 3 }
 0x3c9   :  { %v9388_v24 = vor.u32 %v8173_v0, %v7102_v44 }
 0x3ca   :  { %v1946_v49 = vmax.f32 %v1590_v10, 0.0  ;;  %11093 = vst [vmem:[#allocation130_spill] sm:$0xff] %v9383_v45  ;;  %2955 = vmatpush.bf16.msra.mxu0 %v9383_v45  ;;  %v8201_v10 = vld [vmem:[#allocation2 + $0x4c4] sm:$0xf] }
 0x3cb   :  { %11095 = vst [vmem:[#allocation132_spill] sm:$0xff] %v9388_v24  ;;  %3004 = vmatpush.bf16.msra.mxu1 %v9388_v24  ;;  %v9395_v5 = vor.u32 %v8201_v10, %v7214_v42 }
 0x3cc   :  { %v9376_v36 = vpack.c.bf16 %v1946_v49, %v1942_v16  ;;  %11097 = vst [vmem:[#allocation134_spill] sm:$0xff] %v9398_v28 }
 0x3cd   :  { %v9378_v38 = vpop.f32.mrf.mxu2  ;;  %v1699_v8 = vpop.f32.mrf.mxu0  ;;  %11096 = vst [vmem:[#allocation133_spill] sm:$0xff] %v9395_v5  ;;  %3054 = vmatpush.bf16.msra.mxu2 %v9395_v5 }
 0x3ce   :  { %v9381_v51 = vpop.f32.mrf.mxu3  ;;  %v1748_v7 = vpop.f32.mrf.mxu1  ;;  %v1700_v49 = vadd.f32 %v1699_v8, %v9386_v58  ;;  %v8233_v8 = vld [vmem:[#allocation2 + $0x5c4] sm:$0xf] }
 0x3cf   :  { %v9403_v10 = vor.u32 %v8233_v8, %v7342_v34  ;;  %v8197_v8 = vld [vmem:[#allocation2 + $0x4a4] sm:$0xf] }
 0x3d0   :  { %2767 = vmatmul.bf16.vlgmr.msrb.gmra.mxu0 %v9197_v31  ;;  %v1749_v62 = vadd.f32 %v1748_v7, %v1700_v49  ;;  %v8137_v7 = vld [vmem:[#allocation2 + $0x2c4] sm:$0xf]  ;;  %v6958_v49 = vld [vmem:[#allocation2 + $0x2d0] sm:$0xf0] }
 0x3d1   :  { %2816 = vmatmul.bf16.vlgmr.msrb.gmra.mxu1 %v9212_v57  ;;  %11098 = vst [vmem:[#allocation135_spill] sm:$0xff] %v9403_v10  ;;  %3103 = vmatpush.bf16.msra.mxu3 %v9403_v10 }
 0x3d2   :  { %v1888_v53 = vmax.f32 %v1749_v62, 0.0 }
 0x3d5   :  { %v1797_v16 = vpop.f32.mrf.mxu2  ;;  %v1701_v44 = vpop.f32.mrf.mxu0 }
 0x3d6   :  { %v1846_v0 = vpop.f32.mrf.mxu3  ;;  %v1702_v18 = vadd.f32 %v1701_v44, %v9386_v58  ;;  %v1750_v45 = vpop.f32.mrf.mxu1  ;;  %v1798_v9 = vadd.f32 %v1797_v16, %v9398_v28  ;;  %v8169_v44 = vld [vmem:[#allocation2 + $0x3c4] sm:$0xf]  ;;  %v9409_v16 = vor.u32 %v8137_v7, %v6958_v49 }
 0x3d7   :  { %v9412_v34 = vor.u32 %v8169_v44, %v7086_v59 }
 0x3d8   :  { %v1751_v24 = vadd.f32 %v1750_v45, %v1702_v18  ;;  %v1847_v46 = vadd.f32 %v1846_v0, %v1798_v9  ;;  %11099 = vst [vmem:[#allocation136_spill] sm:$0xff] %v9409_v16  ;;  %2956 = vmatpush.bf16.msra.mxu0 %v9409_v16 }
 0x3d9   :  { %11100 = vst [vmem:[#allocation137_spill] sm:$0xff] %v9412_v34  ;;  %3005 = vmatpush.bf16.msra.mxu1 %v9412_v34 }
 0x3da   :  { %v1892_v20 = vmax.f32 %v1751_v24, 0.0 }
 0x3dc   :  { %v9405_v42 = vpack.c.bf16 %v1892_v20, %v1888_v53  ;;  %v1889_v53 = vmax.f32 %v1847_v46, 0.0 }
 0x3dd   :  { %v1799_v14 = vpop.f32.mrf.mxu2  ;;  %v1704_v45 = vpop.f32.mrf.mxu0 }
 0x3de   :  { %v1800_v5 = vadd.f32 %v1799_v14, %v9398_v28  ;;  %v1848_v18 = vpop.f32.mrf.mxu3  ;;  %v1753_v62 = vpop.f32.mrf.mxu1  ;;  %2865 = vmatmul.bf16.vlgmr.msrb.gmra.mxu2 %v9405_v42  ;;  %v1705_v24 = vadd.f32 %v1704_v45, %v9386_v58  ;;  %v7198_v14 = vld [vmem:[#allocation2 + $0x4b0] sm:$0xf0] }
 0x3df   :  { %v9421_v59 = vor.u32 %v8197_v8, %v7198_v14 }
 0x3e0   :  { %v1849_v20 = vadd.f32 %v1848_v18, %v1800_v5  ;;  %2772 = vmatmul.bf16.gmra.mxu0 %v9221_v4  ;;  %v1754_v44 = vadd.f32 %v1753_v62, %v1705_v24  ;;  %v8133_v62 = vld [vmem:[#allocation2 + $0x2a4] sm:$0xf]  ;;  %v6942_v24 = vld [vmem:[#allocation2 + $0x2b0] sm:$0xf0] }
 0x3e1   :  { %2821 = vmatmul.bf16.gmra.mxu1 %v9236_v63  ;;  %11101 = vst [vmem:[#allocation138_spill] sm:$0xff] %v9421_v59  ;;  %3055 = vmatpush.bf16.msra.mxu2 %v9421_v59 }
 0x3e2   :  { %v1893_v9 = vmax.f32 %v1849_v20, 0.0  ;;  %v1896_v10 = vmax.f32 %v1754_v44, 0.0 }
 0x3e4   :  { %v9419_v0 = vpack.c.bf16 %v1893_v9, %v1889_v53  ;;  %v8229_v53 = vld [vmem:[#allocation2 + $0x5a4] sm:$0xf]  ;;  %v7326_v9 = vld [vmem:[#allocation2 + $0x5b0] sm:$0xf0] }
 0x3e5   :  { %v1802_v7 = vpop.f32.mrf.mxu2  ;;  %v1706_v49 = vpop.f32.mrf.mxu0  ;;  %v9427_v16 = vor.u32 %v8229_v53, %v7326_v9  ;;  %v8193_v9 = vld [vmem:[#allocation2 + $0x484] sm:$0xf] }
 0x3e6   :  { %v1851_v5 = vpop.f32.mrf.mxu3  ;;  %2914 = vmatmul.bf16.vlgmr.msrb.gmra.mxu3 %v9419_v0  ;;  %v1707_v18 = vadd.f32 %v1706_v49, %v9386_v58  ;;  %v1755_v46 = vpop.f32.mrf.mxu1  ;;  %v1803_v45 = vadd.f32 %v1802_v7, %v9398_v28  ;;  %v8165_v49 = vld [vmem:[#allocation2 + $0x3a4] sm:$0xf]  ;;  %v9433_v7 = vor.u32 %v8133_v62, %v6942_v24 }
 0x3e7   :  { %11102 = vst [vmem:[#allocation139_spill] sm:$0xff] %v9427_v16  ;;  %3104 = vmatpush.bf16.msra.mxu3 %v9427_v16 }
 0x3e8   :  { %v1756_v20 = vadd.f32 %v1755_v46, %v1707_v18  ;;  %v1852_v47 = vadd.f32 %v1851_v5, %v1803_v45  ;;  %11103 = vst [vmem:[#allocation140_spill] sm:$0xff] %v9433_v7  ;;  %2957 = vmatpush.bf16.msra.mxu0 %v9433_v7 }
 0x3ea   :  { %v1900_v34 = vmax.f32 %v1756_v20, 0.0  ;;  %v9436_v20 = vor.u32 %v8165_v49, %v7070_v17 }
 0x3ec   :  { %v9429_v8 = vpack.c.bf16 %v1900_v34, %v1896_v10  ;;  %11104 = vst [vmem:[#allocation141_spill] sm:$0xff] %v9436_v20  ;;  %3006 = vmatpush.bf16.msra.mxu1 %v9436_v20  ;;  %v1897_v34 = vmax.f32 %v1852_v47, 0.0 }
 0x3ed   :  { %v1804_v14 = vpop.f32.mrf.mxu2  ;;  %v1709_v46 = vpop.f32.mrf.mxu0 }
 0x3ee   :  { %v1805_v59 = vadd.f32 %v1804_v14, %v9398_v28  ;;  %v1853_v18 = vpop.f32.mrf.mxu3  ;;  %v1758_v44 = vpop.f32.mrf.mxu1  ;;  %2870 = vmatmul.bf16.gmra.mxu2 %v9429_v8  ;;  %v1710_v45 = vadd.f32 %v1709_v46, %v9386_v58  ;;  %v7182_v14 = vld [vmem:[#allocation2 + $0x490] sm:$0xf0] }
 0x3ef   :  { %v9445_v17 = vor.u32 %v8193_v9, %v7182_v14 }
 0x3f0   :  { %v1854_v10 = vadd.f32 %v1853_v18, %v1805_v59  ;;  %2777 = vmatmul.bf16.gmra.mxu0 %v9245_v6  ;;  %v1759_v49 = vadd.f32 %v1758_v44, %v1710_v45  ;;  %v8129_v44 = vld [vmem:[#allocation2 + $0x284] sm:$0xf]  ;;  %v6926_v45 = vld [vmem:[#allocation2 + $0x290] sm:$0xf0] }
 0x3f1   :  { %2826 = vmatmul.bf16.gmra.mxu1 %v9260_v61  ;;  %11105 = vst [vmem:[#allocation142_spill] sm:$0xff] %v9445_v17  ;;  %3056 = vmatpush.bf16.msra.mxu2 %v9445_v17 }
 0x3f2   :  { %v1901_v5 = vmax.f32 %v1854_v10, 0.0  ;;  %v1904_v16 = vmax.f32 %v1759_v49, 0.0 }
 0x3f4   :  { %v9443_v53 = vpack.c.bf16 %v1901_v5, %v1897_v34  ;;  %v8225_v34 = vld [vmem:[#allocation2 + $0x584] sm:$0xf]  ;;  %v7310_v5 = vld [vmem:[#allocation2 + $0x590] sm:$0xf0] }
 0x3f5   :  { %v1807_v62 = vpop.f32.mrf.mxu2  ;;  %v1711_v24 = vpop.f32.mrf.mxu0  ;;  %v9451_v7 = vor.u32 %v8225_v34, %v7310_v5  ;;  %v1624_v34 = vadd.f32 %v9297_v52, %v9187_v12 }
 0x3f6   :  { %v1856_v59 = vpop.f32.mrf.mxu3  ;;  %2919 = vmatmul.bf16.gmra.mxu3 %v9443_v53  ;;  %v1712_v18 = vadd.f32 %v1711_v24, %v9386_v58  ;;  %v1760_v47 = vpop.f32.mrf.mxu1  ;;  %v1808_v46 = vadd.f32 %v1807_v62, %v9398_v28  ;;  %v8161_v24 = vld [vmem:[#allocation2 + $0x384] sm:$0xf]  ;;  %v9457_v62 = vor.u32 %v8129_v44, %v6926_v45 }
 0x3f7   :  { %11106 = vst [vmem:[#allocation143_spill] sm:$0xff] %v9451_v7  ;;  %3105 = vmatpush.bf16.msra.mxu3 %v9451_v7  ;;  %v7294_v7 = vld [vmem:[#allocation2 + $0x570] sm:$0xf0] }
 0x3f8   :  { %v1761_v10 = vadd.f32 %v1760_v47, %v1712_v18  ;;  %v1857_v15 = vadd.f32 %v1856_v59, %v1808_v46  ;;  %11107 = vst [vmem:[#allocation144_spill] sm:$0xff] %v9457_v62  ;;  %2958 = vmatpush.bf16.msra.mxu0 %v9457_v62 }
 0x3fa   :  { %v1908_v20 = vmax.f32 %v1761_v10, 0.0  ;;  %v9460_v10 = vor.u32 %v8161_v24, %v7054_v33  ;;  %v8189_v33 = vld [vmem:[#allocation2 + $0x464] sm:$0xf] }
 0x3fc   :  { %v9453_v9 = vpack.c.bf16 %v1908_v20, %v1904_v16  ;;  %11108 = vst [vmem:[#allocation145_spill] sm:$0xff] %v9460_v10  ;;  %3007 = vmatpush.bf16.msra.mxu1 %v9460_v10  ;;  %v1905_v20 = vmax.f32 %v1857_v15, 0.0 }
 0x3fd   :  { %v1809_v14 = vpop.f32.mrf.mxu2  ;;  %v1714_v47 = vpop.f32.mrf.mxu0 }
 0x3fe   :  { %v1810_v17 = vadd.f32 %v1809_v14, %v9398_v28  ;;  %v1858_v18 = vpop.f32.mrf.mxu3  ;;  %v1763_v49 = vpop.f32.mrf.mxu1  ;;  %2875 = vmatmul.bf16.gmra.mxu2 %v9453_v9  ;;  %v1715_v46 = vadd.f32 %v1714_v47, %v9386_v58  ;;  %v7166_v14 = vld [vmem:[#allocation2 + $0x470] sm:$0xf0]  ;;  %v1673_v47 = vadd.f32 %v9300_v41, %v1624_v34  ;;  %v1919_v41 = vmax.f32 %v9291_v54, 0.0 }
 0x3ff   :  { %v9471_v44 = vor.u32 %v8189_v33, %v7166_v14 }
 0x400   :  { %v1859_v16 = vadd.f32 %v1858_v18, %v1810_v17  ;;  %2782 = vmatmul.bf16.gmra.mxu0 %v9269_v1  ;;  %v1764_v15 = vadd.f32 %v1763_v49, %v1715_v46  ;;  %v1923_v62 = vmax.f32 %v1673_v47, 0.0  ;;  %v8125_v46 = vld [vmem:[#allocation2 + $0x264] sm:$0xf] }
 0x401   :  { %2831 = vmatmul.bf16.gmra.mxu1 %v9284_v29  ;;  %11109 = vst [vmem:[#allocation146_spill] sm:$0xff] %v9471_v44  ;;  %3057 = vmatpush.bf16.msra.mxu2 %v9471_v44  ;;  %v8157_v44 = vld [vmem:[#allocation2 + $0x364] sm:$0xf] }
 0x402   :  { %v1909_v59 = vmax.f32 %v1859_v16, 0.0  ;;  %v1912_v10 = vmax.f32 %v1764_v15, 0.0  ;;  %v9490_v47 = vpack.c.bf16 %v1923_v62, %v1919_v41  ;;  %v8185_v62 = vld [vmem:[#allocation2 + $0x444] sm:$0xf] }
 0x404   :  { %v9469_v5 = vpack.c.bf16 %v1909_v59, %v1905_v20  ;;  %v8221_v59 = vld [vmem:[#allocation2 + $0x564] sm:$0xf] }
 0x405   :  { %v1812_v17 = vpop.f32.mrf.mxu2  ;;  %v1716_v24 = vpop.f32.mrf.mxu0  ;;  %v9478_v14 = vor.u32 %v8221_v59, %v7294_v7  ;;  %v7038_v7 = vld [vmem:[#allocation2 + $0x370] sm:$0xf0] }
 0x406   :  { %v1861_v45 = vpop.f32.mrf.mxu3  ;;  %2924 = vmatmul.bf16.gmra.mxu3 %v9469_v5  ;;  %v1717_v18 = vadd.f32 %v1716_v24, %v9386_v58  ;;  %v1765_v16 = vpop.f32.mrf.mxu1  ;;  %v1813_v20 = vadd.f32 %v1812_v17, %v9398_v28  ;;  %v6910_v24 = vld [vmem:[#allocation2 + $0x270] sm:$0xf0] }
 0x407   :  { %11110 = vst [vmem:[#allocation147_spill] sm:$0xff] %v9478_v14  ;;  %3106 = vmatpush.bf16.msra.mxu3 %v9478_v14  ;;  %v9485_v15 = vor.u32 %v8125_v46, %v6910_v24 }
 0x408   :  { %v1766_v52 = vadd.f32 %v1765_v16, %v1717_v18  ;;  %v1862_v34 = vadd.f32 %v1861_v45, %v1813_v20 }
 0x409   :  { %11111 = vst [vmem:[#allocation148_spill] sm:$0xff] %v9485_v15  ;;  %2959 = vmatpush.bf16.msra.mxu0 %v9485_v15 }
 0x40a   :  { %v1916_v33 = vmax.f32 %v1766_v52, 0.0  ;;  %v1913_v54 = vmax.f32 %v1862_v34, 0.0 }
 0x40c   :  { %v9480_v11 = vpack.c.bf16 %v1916_v33, %v1912_v10  ;;  %v9488_v10 = vor.u32 %v8157_v44, %v7038_v7  ;;  %v1629_v33 = vadd.f32 %v9329_v25, %v9187_v12 }
 0x40d   :  { %v1814_v49 = vpop.f32.mrf.mxu2  ;;  %v1719_v16 = vpop.f32.mrf.mxu0 }
 0x40e   :  { %v1815_v17 = vadd.f32 %v1814_v49, %v9398_v28  ;;  %v1863_v18 = vpop.f32.mrf.mxu3  ;;  %v1768_v52 = vpop.f32.mrf.mxu1  ;;  %2880 = vmatmul.bf16.gmra.mxu2 %v9480_v11  ;;  %11112 = vst [vmem:[#allocation149_spill] sm:$0xff] %v9488_v10  ;;  %3008 = vmatpush.bf16.msra.mxu1 %v9488_v10  ;;  %v1720_v20 = vadd.f32 %v1719_v16, %v9386_v58  ;;  %v7150_v49 = vld [vmem:[#allocation2 + $0x450] sm:$0xf0] }
 0x40f   :  { %v9501_v24 = vor.u32 %v8185_v62, %v7150_v49  ;;  %v1678_v16 = vadd.f32 %v9332_v55, %v1629_v33  ;;  %v1927_v55 = vmax.f32 %v9318_v19, 0.0 }
 0x410   :  { %v1864_v59 = vadd.f32 %v1863_v18, %v1815_v17  ;;  %2787 = vmatmul.bf16.gmra.mxu0 %v9295_v3  ;;  %v1769_v34 = vadd.f32 %v1768_v52, %v1720_v20  ;;  %v8121_v20 = vld [vmem:[#allocation2 + $0x244] sm:$0xf] }
 0x411   :  { %2836 = vmatmul.bf16.gmra.mxu1 %v9490_v47  ;;  %11113 = vst [vmem:[#allocation150_spill] sm:$0xff] %v9501_v24  ;;  %3058 = vmatpush.bf16.msra.mxu2 %v9501_v24  ;;  %v1931_v10 = vmax.f32 %v1678_v16, 0.0  ;;  %v8153_v24 = vld [vmem:[#allocation2 + $0x344] sm:$0xf] }
 0x412   :  { %v1917_v45 = vmax.f32 %v1864_v59, 0.0  ;;  %v1920_v14 = vmax.f32 %v1769_v34, 0.0 }
 0x413   :  { %v9520_v16 = vpack.c.bf16 %v1931_v10, %v1927_v55  ;;  %v8181_v10 = vld [vmem:[#allocation2 + $0x424] sm:$0xf] }
 0x414   :  { %v9499_v44 = vpack.c.bf16 %v1917_v45, %v1913_v54  ;;  %v8217_v54 = vld [vmem:[#allocation2 + $0x544] sm:$0xf]  ;;  %v7278_v45 = vld [vmem:[#allocation2 + $0x550] sm:$0xf0] }
 0x415   :  { %v1817_v46 = vpop.f32.mrf.mxu2  ;;  %v1721_v17 = vpop.f32.mrf.mxu0  ;;  %v9508_v49 = vor.u32 %v8217_v54, %v7278_v45 }
 0x416   :  { %v1866_v41 = vpop.f32.mrf.mxu3  ;;  %2929 = vmatmul.bf16.gmra.mxu3 %v9499_v44  ;;  %v1722_v18 = vadd.f32 %v1721_v17, %v9386_v58  ;;  %v1770_v7 = vpop.f32.mrf.mxu1  ;;  %v1818_v59 = vadd.f32 %v1817_v46, %v9398_v28  ;;  %v6894_v17 = vld [vmem:[#allocation2 + $0x250] sm:$0xf0] }
 0x417   :  { %11114 = vst [vmem:[#allocation151_spill] sm:$0xff] %v9508_v49  ;;  %3107 = vmatpush.bf16.msra.mxu3 %v9508_v49  ;;  %v9515_v34 = vor.u32 %v8121_v20, %v6894_v17 }
 0x418   :  { %v1771_v25 = vadd.f32 %v1770_v7, %v1722_v18  ;;  %v1867_v33 = vadd.f32 %v1866_v41, %v1818_v59 }
 0x419   :  { %11115 = vst [vmem:[#allocation152_spill] sm:$0xff] %v9515_v34  ;;  %2960 = vmatpush.bf16.msra.mxu0 %v9515_v34 }
 0x41a   :  { %v1924_v62 = vmax.f32 %v1771_v25, 0.0  ;;  %v7022_v25 = vld [vmem:[#allocation2 + $0x350] sm:$0xf0]  ;;  %v1921_v19 = vmax.f32 %v1867_v33, 0.0 }
 0x41c   :  { %v9510_v15 = vpack.c.bf16 %v1924_v62, %v1920_v14  ;;  %v9518_v14 = vor.u32 %v8153_v24, %v7022_v25  ;;  %v1634_v62 = vadd.f32 %v9357_v21, %v9187_v12 }
 0x41d   :  { %v1819_v52 = vpop.f32.mrf.mxu2  ;;  %v1724_v7 = vpop.f32.mrf.mxu0 }
 0x41e   :  { %v1820_v46 = vadd.f32 %v1819_v52, %v9398_v28  ;;  %v1868_v18 = vpop.f32.mrf.mxu3  ;;  %v1773_v54 = vpop.f32.mrf.mxu1  ;;  %2885 = vmatmul.bf16.gmra.mxu2 %v9510_v15  ;;  %11116 = vst [vmem:[#allocation153_spill] sm:$0xff] %v9518_v14  ;;  %3009 = vmatpush.bf16.msra.mxu1 %v9518_v14  ;;  %v1725_v59 = vadd.f32 %v1724_v7, %v9386_v58  ;;  %v7134_v52 = vld [vmem:[#allocation2 + $0x430] sm:$0xf0] }
 0x41f   :  { %v9531_v17 = vor.u32 %v8181_v10, %v7134_v52  ;;  %v1683_v7 = vadd.f32 %v9360_v50, %v1634_v62  ;;  %v8213_v10 = vld [vmem:[#allocation2 + $0x524] sm:$0xf]  ;;  %v7262_v52 = vld [vmem:[#allocation2 + $0x530] sm:$0xf0] }
 0x420   :  { %v1869_v45 = vadd.f32 %v1868_v18, %v1820_v46  ;;  %2792 = vmatmul.bf16.gmra.mxu0 %v9327_v26  ;;  %v1774_v33 = vadd.f32 %v1773_v54, %v1725_v59  ;;  %v9540_v54 = vor.u32 %v8213_v10, %v7262_v52  ;;  %v7006_v59 = vld [vmem:[#allocation2 + $0x330] sm:$0xf0] }
 0x421   :  { %2841 = vmatmul.bf16.gmra.mxu1 %v9520_v16  ;;  %11117 = vst [vmem:[#allocation154_spill] sm:$0xff] %v9531_v17  ;;  %3059 = vmatpush.bf16.msra.mxu2 %v9531_v17 }
 0x422   :  { %v1925_v41 = vmax.f32 %v1869_v45, 0.0  ;;  %v8117_v45 = vld [vmem:[#allocation2 + $0x224] sm:$0xf]  ;;  %v1928_v34 = vmax.f32 %v1774_v33, 0.0  ;;  %11119 = vst [vmem:[#allocation156_spill] sm:$0xff] %v9540_v54  ;;  %3108 = vmatpush.bf16.msra.mxu3 %v9540_v54 }
 0x424   :  { %v9529_v24 = vpack.c.bf16 %v1925_v41, %v1921_v19  ;;  %v6878_v19 = vld [vmem:[#allocation2 + $0x230] sm:$0xf0]  ;;  %v8149_v41 = vld [vmem:[#allocation2 + $0x324] sm:$0xf] }
 0x425   :  { %v1822_v20 = vpop.f32.mrf.mxu2  ;;  %v1726_v46 = vpop.f32.mrf.mxu0  ;;  %v9538_v14 = vor.u32 %v8117_v45, %v6878_v19  ;;  %v9543_v17 = vor.u32 %v8149_v41, %v7006_v59  ;;  %v1935_v45 = vmax.f32 %v9351_v35, 0.0  ;;  %v6990_v41 = vld [vmem:[#allocation2 + $0x310] sm:$0xf0] }
 0x426   :  { %v1871_v55 = vpop.f32.mrf.mxu3  ;;  %2934 = vmatmul.bf16.gmra.mxu3 %v9529_v24  ;;  %v1727_v18 = vadd.f32 %v1726_v46, %v9386_v58  ;;  %v1775_v25 = vpop.f32.mrf.mxu1  ;;  %v1823_v49 = vadd.f32 %v1822_v20, %v9398_v28  ;;  %v1939_v46 = vmax.f32 %v1683_v7, 0.0  ;;  %v8113_v20 = vld [vmem:[#allocation2 + $0x204] sm:$0xf] }
 0x427   :  { %11118 = vst [vmem:[#allocation155_spill] sm:$0xff] %v9538_v14  ;;  %2961 = vmatpush.bf16.msra.mxu0 %v9538_v14  ;;  %3010 = vmatpush.bf16.msra.mxu1 %v9543_v17 }
 0x428   :  { %v1776_v21 = vadd.f32 %v1775_v25, %v1727_v18  ;;  %11120 = vst [vmem:[#allocation157_spill] sm:$0xff] %v9543_v17  ;;  %v6862_v18 = vld [vmem:[#allocation2 + $0x210] sm:$0xf0]  ;;  %v8145_v25 = vld [vmem:[#allocation2 + $0x304] sm:$0xf]  ;;  %v1872_v33 = vadd.f32 %v1871_v55, %v1823_v49  ;;  %v9556_v52 = vpack.c.bf16 %v1939_v46, %v1935_v45 }
 0x429   :  { %v9551_v7 = vor.u32 %v8113_v20, %v6862_v18  ;;  %v8177_v46 = vld [vmem:[#allocation2 + $0x404] sm:$0xf]  ;;  %v7118_v18 = vld [vmem:[#allocation2 + $0x410] sm:$0xf0] }
 0x42a   :  { %v1932_v43 = vmax.f32 %v1776_v21, 0.0  ;;  %v1929_v35 = vmax.f32 %v1872_v33, 0.0  ;;  %v9567_v45 = vor.u32 %v8177_v46, %v7118_v18 }
 0x42b   :  { %11121 = vst [vmem:[#allocation158_spill] sm:$0xff] %v9551_v7  ;;  %2962 = vmatpush.bf16.msra.mxu0 %v9551_v7 }
 0x42c   :  { %v9545_v50 = vpack.c.bf16 %v1932_v43, %v1928_v34  ;;  %v9554_v34 = vor.u32 %v8145_v25, %v6990_v41  ;;  %11123 = vst [vmem:[#allocation160_spill] sm:$0xff] %v9567_v45  ;;  %v7246_v41 = vld [vmem:[#allocation2 + $0x510] sm:$0xf0]  ;;  %3060 = vmatpush.bf16.msra.mxu2 %v9567_v45 }
 0x42d   :  { %v1824_v62 = vpop.f32.mrf.mxu2  ;;  %v1729_v10 = vpop.f32.mrf.mxu0 }
 0x42e   :  { %v1825_v21 = vadd.f32 %v1824_v62, %v9398_v28  ;;  %v1873_v19 = vpop.f32.mrf.mxu3  ;;  %v1778_v43 = vpop.f32.mrf.mxu1  ;;  %2890 = vmatmul.bf16.gmra.mxu2 %v9545_v50  ;;  %11122 = vst [vmem:[#allocation159_spill] sm:$0xff] %v9554_v34  ;;  %v1730_v55 = vadd.f32 %v1729_v10, %v9386_v58  ;;  %3011 = vmatpush.bf16.msra.mxu1 %v9554_v34 }
 0x42f   :  { %v1639_v62 = vadd.f32 %v9378_v38, %v9187_v12  ;;  %v7076_v12 = vld [vmem:[#allocation2 + $0x3a8] sm:$0xf] }
 0x430   :  { %v1874_v59 = vadd.f32 %v1873_v19, %v1825_v21  ;;  %2797 = vmatmul.bf16.gmra.mxu0 %v9355_v30  ;;  %v8209_v19 = vld [vmem:[#allocation2 + $0x504] sm:$0xf] }
 0x431   :  { %2846 = vmatmul.bf16.gmra.mxu1 %v9556_v52  ;;  %v9572_v38 = vor.u32 %v8209_v19, %v7246_v41 }
 0x432   :  { %v1933_v49 = vmax.f32 %v1874_v59, 0.0  ;;  %v1779_v59 = vadd.f32 %v1778_v43, %v1730_v55  ;;  %v1943_v55 = vmax.f32 %v9372_v23, 0.0  ;;  %v7236_v23 = vld [vmem:[#allocation2 + $0x4e8] sm:$0xf] }
 0x433   :  { %11124 = vst [vmem:[#allocation161_spill] sm:$0xff] %v9572_v38  ;;  %3109 = vmatpush.bf16.msra.mxu3 %v9572_v38 }
 0x434   :  { %v9565_v20 = vpack.c.bf16 %v1933_v49, %v1929_v35  ;;  %v1688_v35 = vadd.f32 %v9381_v51, %v1639_v62  ;;  %v1936_v18 = vmax.f32 %v1779_v59, 0.0 }
 0x435   :  { %v1827_v25 = vpop.f32.mrf.mxu2  ;;  %v1731_v33 = vpop.f32.mrf.mxu0 }
 0x436   :  { %v1876_v21 = vpop.f32.mrf.mxu3  ;;  %2939 = vmatmul.bf16.gmra.mxu3 %v9565_v20  ;;  %v1732_v10 = vadd.f32 %v1731_v33, %v9386_v58  ;;  %v1780_v54 = vpop.f32.mrf.mxu1  ;;  %v1828_v46 = vadd.f32 %v1827_v25, %v9398_v28  ;;  %v1947_v7 = vmax.f32 %v1688_v35, 0.0 }
 0x438   :  { %v1781_v49 = vadd.f32 %v1780_v54, %v1732_v10  ;;  %v1877_v33 = vadd.f32 %v1876_v21, %v1828_v46  ;;  %v9582_v51 = vpack.c.bf16 %v1947_v7, %v1943_v55  ;;  %v8208_v21 = vld [vmem:[#allocation2 + $0x4f4] sm:$0xf0] }
 0x439   :  { %v9589_v10 = vor.u32 %v8208_v21, %v7236_v23  ;;  %v8240_v46 = vld [vmem:[#allocation2 + $0x5f4] sm:$0xf0]  ;;  %v7108_v21 = vld [vmem:[#allocation2 + $0x3e8] sm:$0xf] }
 0x43a   :  { %v1940_v34 = vmax.f32 %v1781_v49, 0.0  ;;  %v1937_v62 = vmax.f32 %v1877_v33, 0.0 }
 0x43b   :  { %11125 = vst [vmem:[#allocation162_spill] sm:$0xff] %v9589_v10  ;;  %3249 = vmatpush.bf16.msrb.mxu2 %v9589_v10  ;;  %v8176_v10 = vld [vmem:[#allocation2 + $0x3f4] sm:$0xf0] }
 0x43c   :  { %v9577_v17 = vpack.c.bf16 %v1940_v34, %v1936_v18 }
 0x43d   :  { %v1829_v43 = vpop.f32.mrf.mxu2  ;;  %v1734_v41 = vpop.f32.mrf.mxu0 }
 0x43e   :  { %v1830_v45 = vadd.f32 %v1829_v43, %v9398_v28  ;;  %v1878_v19 = vpop.f32.mrf.mxu3  ;;  %v1783_v14 = vpop.f32.mrf.mxu1  ;;  %2895 = vmatmul.bf16.gmra.mxu2 %v9577_v17  ;;  %v1735_v34 = vadd.f32 %v1734_v41, %v9386_v58 }
 0x440   :  { %v1879_v54 = vadd.f32 %v1878_v19, %v1830_v45  ;;  %2802 = vmatmul.bf16.gmra.mxu0 %v9376_v36  ;;  %v7364_v45 = vld [vmem:[#allocation2 + $0x5e8] sm:$0xf]  ;;  %v1784_v18 = vadd.f32 %v1783_v14, %v1735_v34 }
 0x441   :  { %2851 = vmatmul.bf16.gmra.mxu1 %v9582_v51  ;;  %v9594_v33 = vor.u32 %v8240_v46, %v7364_v45  ;;  %v9596_v19 = vld [vmem:[#allocation6 + $0x3] ss:$8 sm:$0xf] }
 0x442   :  { %v1941_v25 = vmax.f32 %v1879_v54, 0.0  ;;  %v6980_v54 = vld [vmem:[#allocation2 + $0x2e8] sm:$0xf]  ;;  %v1944_v38 = vmax.f32 %v1784_v18, 0.0  ;;  %v9603_v34 = vperm.slane %v9596_v19, 0 }
 0x443   :  { %11126 = vst [vmem:[#allocation163_spill] sm:$0xff] %v9594_v33  ;;  %3298 = vmatpush.bf16.msrb.mxu3 %v9594_v33  ;;  %v7348_v33 = vld [vmem:[#allocation2 + $0x5c8] sm:$0xf] }
 0x444   :  { %v9587_v59 = vpack.c.bf16 %v1941_v25, %v1937_v62  ;;  %v8144_v62 = vld [vmem:[#allocation2 + $0x2f4] sm:$0xf0]  ;;  %11128 = vst [vmem:[#allocation165_spill] sm:$0xff] %v9603_v34 }
 0x445   :  { %v1832_v35 = vpop.f32.mrf.mxu2  ;;  %v1736_v7 = vpop.f32.mrf.mxu0  ;;  %v9600_v23 = vor.u32 %v8144_v62, %v6980_v54 }
 0x446   :  { %v1881_v49 = vpop.f32.mrf.mxu3  ;;  %2944 = vmatmul.bf16.gmra.mxu3 %v9587_v59  ;;  %v1737_v43 = vadd.f32 %v1736_v7, %v9386_v58  ;;  %v1785_v55 = vpop.f32.mrf.mxu1  ;;  %v1833_v25 = vadd.f32 %v1832_v35, %v9398_v28  ;;  %v9605_v7 = vor.u32 %v8176_v10, %v7108_v21 }
 0x447   :  { %11127 = vst [vmem:[#allocation164_spill] sm:$0xff] %v9600_v23  ;;  %3151 = vmatpush.bf16.msrb.mxu0 %v9600_v23 }
 0x448   :  { %v1786_v41 = vadd.f32 %v1785_v55, %v1737_v43  ;;  %11129 = vst [vmem:[#allocation166_spill] sm:$0xff] %v9605_v7  ;;  %3200 = vmatpush.bf16.msrb.mxu1 %v9605_v7  ;;  %v1882_v43 = vadd.f32 %v1881_v49, %v1833_v25  ;;  %v7220_v49 = vld [vmem:[#allocation2 + $0x4c8] sm:$0xf]  ;;  %v8204_v25 = vld [vmem:[#allocation2 + $0x4d4] sm:$0xf0] }
 0x44a   :  { %v1948_v14 = vmax.f32 %v1786_v41, 0.0  ;;  %v1945_v21 = vmax.f32 %v1882_v43, 0.0 }
 0x44c   :  { %v9608_v45 = vpack.c.bf16 %v1948_v14, %v1944_v38 }
 0x44d   :  { %v1834_v46 = vpop.f32.mrf.mxu2  ;;  %v2768_v55 = vpop.f32.mrf.mxu0 }
 0x44e   :  { %v1835_v35 = vadd.f32 %v1834_v46, %v9398_v28  ;;  %v1883_v54 = vpop.f32.mrf.mxu3  ;;  %v2769_v18 = vadd.f32 %v2768_v55, %v9603_v34  ;;  %v2817_v41 = vpop.f32.mrf.mxu1  ;;  %2900 = vmatmul.bf16.gmra.mxu2 %v9608_v45  ;;  %v9618_v46 = vor.u32 %v8204_v25, %v7220_v49  ;;  %v8236_v28 = vld [vmem:[#allocation2 + $0x5d4] sm:$0xf0] }
 0x44f   :  { %v9623_v43 = vor.u32 %v8236_v28, %v7348_v33  ;;  %v8172_v49 = vld [vmem:[#allocation2 + $0x3d4] sm:$0xf0] }
 0x450   :  { %v1884_v62 = vadd.f32 %v1883_v54, %v1835_v35  ;;  %v2818_v10 = vadd.f32 %v2817_v41, %v2769_v18  ;;  %2963 = vmatmul.bf16.vlgmr.msra.gmra.mxu0 %v9197_v31  ;;  %11130 = vst [vmem:[#allocation167_spill] sm:$0xff] %v9618_v46  ;;  %3250 = vmatpush.bf16.msrb.mxu2 %v9618_v46  ;;  %v6964_v41 = vld [vmem:[#allocation2 + $0x2c8] sm:$0xf] }
 0x451   :  { %3012 = vmatmul.bf16.vlgmr.msra.gmra.mxu1 %v9212_v57  ;;  %11131 = vst [vmem:[#allocation168_spill] sm:$0xff] %v9623_v43  ;;  %3299 = vmatpush.bf16.msrb.mxu3 %v9623_v43 }
 0x452   :  { %v1949_v38 = vmax.f32 %v1884_v62, 0.0  ;;  %v8140_v62 = vld [vmem:[#allocation2 + $0x2d4] sm:$0xf0] }
 0x454   :  { %v9616_v14 = vpack.c.bf16 %v1949_v38, %v1945_v21  ;;  %v9626_v21 = vor.u32 %v8140_v62, %v6964_v41  ;;  %v7092_v38 = vld [vmem:[#allocation2 + $0x3c8] sm:$0xf]  ;;  %v8200_v41 = vld [vmem:[#allocation2 + $0x4b4] sm:$0xf0] }
 0x455   :  { %v2770_v55 = vpop.f32.mrf.mxu0  ;;  %v9629_v25 = vor.u32 %v8172_v49, %v7092_v38  ;;  %v8232_v49 = vld [vmem:[#allocation2 + $0x5b4] sm:$0xf0] }
 0x456   :  { %2949 = vmatmul.bf16.gmra.mxu3 %v9616_v14  ;;  %v2771_v35 = vadd.f32 %v2770_v55, %v9603_v34  ;;  %v2819_v54 = vpop.f32.mrf.mxu1  ;;  %11132 = vst [vmem:[#allocation169_spill] sm:$0xff] %v9626_v21  ;;  %3152 = vmatpush.bf16.msrb.mxu0 %v9626_v21 }
 0x457   :  { %11133 = vst [vmem:[#allocation170_spill] sm:$0xff] %v9629_v25  ;;  %3201 = vmatpush.bf16.msrb.mxu1 %v9629_v25 }
 0x458   :  { %v2820_v18 = vadd.f32 %v2819_v54, %v2771_v35  ;;  %v7204_v54 = vld [vmem:[#allocation2 + $0x4a8] sm:$0xf] }
 0x459   :  { %v9636_v62 = vor.u32 %v8200_v41, %v7204_v54 }
 0x45b   :  { %11134 = vst [vmem:[#allocation171_spill] sm:$0xff] %v9636_v62  ;;  %3251 = vmatpush.bf16.msrb.mxu2 %v9636_v62 }
 0x45d   :  { %v2773_v7 = vpop.f32.mrf.mxu0 }
 0x45e   :  { %v2774_v55 = vadd.f32 %v2773_v7, %v9603_v34  ;;  %v2822_v23 = vpop.f32.mrf.mxu1  ;;  %3061 = vmatmul.bf16.vlgmr.msra.gmra.mxu2 %v9405_v42  ;;  %v7332_v7 = vld [vmem:[#allocation2 + $0x5a8] sm:$0xf] }
 0x460   :  { %v2823_v28 = vadd.f32 %v2822_v23, %v2774_v55  ;;  %2968 = vmatmul.bf16.gmra.mxu0 %v9221_v4  ;;  %v9641_v23 = vor.u32 %v8232_v49, %v7332_v7 }
 0x461   :  { %3017 = vmatmul.bf16.gmra.mxu1 %v9236_v63  ;;  %v2866_v33 = vpop.f32.mrf.mxu2 }
 0x462   :  { %v2867_v35 = vadd.f32 %v2866_v33, %v2818_v10  ;;  %11135 = vst [vmem:[#allocation172_spill] sm:$0xff] %v9641_v23  ;;  %3300 = vmatpush.bf16.msrb.mxu3 %v9641_v23  ;;  %v6948_v10 = vld [vmem:[#allocation2 + $0x2a8] sm:$0xf]  ;;  %v8136_v33 = vld [vmem:[#allocation2 + $0x2b4] sm:$0xf0] }
 0x463   :  { %v9644_v21 = vor.u32 %v8136_v33, %v6948_v10  ;;  %v8196_v33 = vld [vmem:[#allocation2 + $0x494] sm:$0xf0] }
 0x464   :  { %v8228_v23 = vld [vmem:[#allocation2 + $0x594] sm:$0xf0] }
 0x465   :  { %v2775_v38 = vpop.f32.mrf.mxu0  ;;  %11136 = vst [vmem:[#allocation173_spill] sm:$0xff] %v9644_v21  ;;  %3153 = vmatpush.bf16.msrb.mxu0 %v9644_v21 }
 0x466   :  { %3110 = vmatmul.bf16.vlgmr.msra.gmra.mxu3 %v9419_v0  ;;  %v2776_v43 = vadd.f32 %v2775_v38, %v9603_v34  ;;  %v2824_v46 = vpop.f32.mrf.mxu1  ;;  %v8168_v38 = vld [vmem:[#allocation2 + $0x3b4] sm:$0xf0] }
 0x467   :  { %v9647_v40 = vor.u32 %v8168_v38, %v7076_v12  ;;  %v7188_v12 = vld [vmem:[#allocation2 + $0x488] sm:$0xf] }
 0x468   :  { %v2825_v55 = vadd.f32 %v2824_v46, %v2776_v43  ;;  %v7316_v38 = vld [vmem:[#allocation2 + $0x588] sm:$0xf] }
 0x469   :  { %v2915_v25 = vpop.f32.mrf.mxu3  ;;  %v2868_v41 = vpop.f32.mrf.mxu2  ;;  %11137 = vst [vmem:[#allocation174_spill] sm:$0xff] %v9647_v40  ;;  %3202 = vmatpush.bf16.msrb.mxu1 %v9647_v40 }
 0x46a   :  { %v2916_v54 = vadd.f32 %v2915_v25, %v2867_v35  ;;  %v2869_v58 = vadd.f32 %v2868_v41, %v2820_v18  ;;  %v9654_v41 = vor.u32 %v8196_v33, %v7188_v12 }
 0x46c   :  { %11138 = vst [vmem:[#allocation175_spill] sm:$0xff] %v9654_v41  ;;  %3252 = vmatpush.bf16.msrb.mxu2 %v9654_v41 }
 0x46d   :  { %v2778_v62 = vpop.f32.mrf.mxu0 }
 0x46e   :  { %v2779_v7 = vadd.f32 %v2778_v62, %v9603_v34  ;;  %v2827_v46 = vpop.f32.mrf.mxu1  ;;  %3066 = vmatmul.bf16.gmra.mxu2 %v9429_v8 }
 0x470   :  { %v2828_v43 = vadd.f32 %v2827_v46, %v2779_v7  ;;  %2973 = vmatmul.bf16.gmra.mxu0 %v9245_v6 }
 0x471   :  { %v2917_v25 = vpop.f32.mrf.mxu3  ;;  %3022 = vmatmul.bf16.gmra.mxu1 %v9260_v61  ;;  %v2871_v18 = vpop.f32.mrf.mxu2 }
 0x472   :  { %v2918_v35 = vadd.f32 %v2917_v25, %v2869_v58  ;;  %v2872_v49 = vadd.f32 %v2871_v18, %v2823_v28  ;;  %v9659_v58 = vor.u32 %v8228_v23, %v7316_v38  ;;  %v6932_v28 = vld [vmem:[#allocation2 + $0x288] sm:$0xf] }
 0x474   :  { %v3543_v10 = vmax.f32 %v2916_v54, %v2918_v35  ;;  %11139 = vst [vmem:[#allocation176_spill] sm:$0xff] %v9659_v58  ;;  %3301 = vmatpush.bf16.msrb.mxu3 %v9659_v58  ;;  %v8132_v54 = vld [vmem:[#allocation2 + $0x294] sm:$0xf0] }
 0x475   :  { %v2780_v62 = vpop.f32.mrf.mxu0  ;;  %v9662_v12 = vor.u32 %v8132_v54, %v6932_v28  ;;  %v8192_v54 = vld [vmem:[#allocation2 + $0x474] sm:$0xf0] }
 0x476   :  { %3115 = vmatmul.bf16.gmra.mxu3 %v9443_v53  ;;  %v2781_v7 = vadd.f32 %v2780_v62, %v9603_v34  ;;  %v2829_v46 = vpop.f32.mrf.mxu1  ;;  %v7060_v62 = vld [vmem:[#allocation2 + $0x388] sm:$0xf] }
 0x477   :  { %11140 = vst [vmem:[#allocation177_spill] sm:$0xff] %v9662_v12  ;;  %3154 = vmatpush.bf16.msrb.mxu0 %v9662_v12  ;;  %v9665_v48 = vor.u32 %v8164_v56, %v7060_v62  ;;  %v7172_v56 = vld [vmem:[#allocation2 + $0x468] sm:$0xf] }
 0x478   :  { %v2830_v25 = vadd.f32 %v2829_v46, %v2781_v7  ;;  %v7300_v62 = vld [vmem:[#allocation2 + $0x568] sm:$0xf] }
 0x479   :  { %v2920_v40 = vpop.f32.mrf.mxu3  ;;  %v2873_v18 = vpop.f32.mrf.mxu2  ;;  %11141 = vst [vmem:[#allocation178_spill] sm:$0xff] %v9665_v48  ;;  %3203 = vmatpush.bf16.msrb.mxu1 %v9665_v48  ;;  %v8160_v48 = vld [vmem:[#allocation2 + $0x374] sm:$0xf0] }
 0x47a   :  { %v2921_v35 = vadd.f32 %v2920_v40, %v2872_v49  ;;  %v2874_v33 = vadd.f32 %v2873_v18, %v2825_v55 }
 0x47c   :  { %v3544_v21 = vmax.f32 %v3543_v10, %v2921_v35  ;;  %v9672_v35 = vor.u32 %v8192_v54, %v7172_v56 }
 0x47d   :  { %v2783_v23 = vpop.f32.mrf.mxu0 }
 0x47e   :  { %v2784_v38 = vadd.f32 %v2783_v23, %v9603_v34  ;;  %v2832_v7 = vpop.f32.mrf.mxu1  ;;  %3071 = vmatmul.bf16.gmra.mxu2 %v9453_v9  ;;  %11142 = vst [vmem:[#allocation179_spill] sm:$0xff] %v9672_v35  ;;  %v8224_v23 = vld [vmem:[#allocation2 + $0x574] sm:$0xf0] }
 0x47f   :  { %3253 = vmatpush.bf16.msrb.mxu2 %v9672_v35 }
 0x480   :  { %v2833_v40 = vadd.f32 %v2832_v7, %v2784_v38  ;;  %2978 = vmatmul.bf16.gmra.mxu0 %v9269_v1 }
 0x481   :  { %v2922_v49 = vpop.f32.mrf.mxu3  ;;  %3027 = vmatmul.bf16.gmra.mxu1 %v9284_v29  ;;  %v2876_v10 = vpop.f32.mrf.mxu2 }
 0x482   :  { %v2923_v55 = vadd.f32 %v2922_v49, %v2874_v33  ;;  %v2877_v46 = vadd.f32 %v2876_v10, %v2828_v43  ;;  %v9677_v33 = vor.u32 %v8224_v23, %v7300_v62  ;;  %v8128_v43 = vld [vmem:[#allocation2 + $0x274] sm:$0xf0] }
 0x484   :  { %v3545_v28 = vmax.f32 %v3544_v21, %v2923_v55  ;;  %11143 = vst [vmem:[#allocation180_spill] sm:$0xff] %v9677_v33  ;;  %3302 = vmatpush.bf16.msrb.mxu3 %v9677_v33  ;;  %v6916_v21 = vld [vmem:[#allocation2 + $0x268] sm:$0xf] }
 0x485   :  { %v2785_v18 = vpop.f32.mrf.mxu0  ;;  %v9680_v56 = vor.u32 %v8128_v43, %v6916_v21  ;;  %v8188_v43 = vld [vmem:[#allocation2 + $0x454] sm:$0xf0] }
 0x486   :  { %3120 = vmatmul.bf16.gmra.mxu3 %v9469_v5  ;;  %v2786_v38 = vadd.f32 %v2785_v18, %v9603_v34  ;;  %v2834_v7 = vpop.f32.mrf.mxu1  ;;  %v7044_v18 = vld [vmem:[#allocation2 + $0x368] sm:$0xf] }
 0x487   :  { %11144 = vst [vmem:[#allocation181_spill] sm:$0xff] %v9680_v56  ;;  %3155 = vmatpush.bf16.msrb.mxu0 %v9680_v56  ;;  %v9683_v12 = vor.u32 %v8160_v48, %v7044_v18  ;;  %v7156_v48 = vld [vmem:[#allocation2 + $0x448] sm:$0xf] }
 0x488   :  { %v2835_v49 = vadd.f32 %v2834_v7, %v2786_v38  ;;  %v7284_v18 = vld [vmem:[#allocation2 + $0x548] sm:$0xf] }
 0x489   :  { %v2925_v58 = vpop.f32.mrf.mxu3  ;;  %v2878_v10 = vpop.f32.mrf.mxu2  ;;  %11145 = vst [vmem:[#allocation182_spill] sm:$0xff] %v9683_v12  ;;  %3204 = vmatpush.bf16.msrb.mxu1 %v9683_v12  ;;  %v8156_v12 = vld [vmem:[#allocation2 + $0x354] sm:$0xf0] }
 0x48a   :  { %v2926_v55 = vadd.f32 %v2925_v58, %v2877_v46  ;;  %v2879_v54 = vadd.f32 %v2878_v10, %v2830_v25 }
 0x48c   :  { %v3546_v41 = vmax.f32 %v3545_v28, %v2926_v55  ;;  %v9690_v55 = vor.u32 %v8188_v43, %v7156_v48 }
 0x48d   :  { %v2788_v62 = vpop.f32.mrf.mxu0 }
 0x48e   :  { %v2789_v23 = vadd.f32 %v2788_v62, %v9603_v34  ;;  %v2837_v38 = vpop.f32.mrf.mxu1  ;;  %3076 = vmatmul.bf16.gmra.mxu2 %v9480_v11  ;;  %11146 = vst [vmem:[#allocation183_spill] sm:$0xff] %v9690_v55  ;;  %v8220_v62 = vld [vmem:[#allocation2 + $0x554] sm:$0xf0] }
 0x48f   :  { %3254 = vmatpush.bf16.msrb.mxu2 %v9690_v55  ;;  %v8152_v55 = vld [vmem:[#allocation2 + $0x334] sm:$0xf0] }
 0x490   :  { %v2838_v58 = vadd.f32 %v2837_v38, %v2789_v23  ;;  %2983 = vmatmul.bf16.gmra.mxu0 %v9295_v3 }
 0x491   :  { %v2927_v46 = vpop.f32.mrf.mxu3  ;;  %3032 = vmatmul.bf16.gmra.mxu1 %v9490_v47  ;;  %v2881_v28 = vpop.f32.mrf.mxu2 }
 0x492   :  { %v2928_v25 = vadd.f32 %v2927_v46, %v2879_v54  ;;  %v2882_v7 = vadd.f32 %v2881_v28, %v2833_v40  ;;  %v9695_v54 = vor.u32 %v8220_v62, %v7284_v18  ;;  %v8124_v40 = vld [vmem:[#allocation2 + $0x254] sm:$0xf0] }
 0x494   :  { %v3547_v21 = vmax.f32 %v3546_v41, %v2928_v25  ;;  %11147 = vst [vmem:[#allocation184_spill] sm:$0xff] %v9695_v54  ;;  %3303 = vmatpush.bf16.msrb.mxu3 %v9695_v54  ;;  %v6900_v41 = vld [vmem:[#allocation2 + $0x248] sm:$0xf] }
 0x495   :  { %v2790_v10 = vpop.f32.mrf.mxu0  ;;  %v9698_v48 = vor.u32 %v8124_v40, %v6900_v41  ;;  %v8184_v40 = vld [vmem:[#allocation2 + $0x434] sm:$0xf0] }
 0x496   :  { %3125 = vmatmul.bf16.gmra.mxu3 %v9499_v44  ;;  %v2791_v23 = vadd.f32 %v2790_v10, %v9603_v34  ;;  %v2839_v38 = vpop.f32.mrf.mxu1  ;;  %v7028_v10 = vld [vmem:[#allocation2 + $0x348] sm:$0xf] }
 0x497   :  { %11148 = vst [vmem:[#allocation185_spill] sm:$0xff] %v9698_v48  ;;  %3156 = vmatpush.bf16.msrb.mxu0 %v9698_v48  ;;  %v9701_v56 = vor.u32 %v8156_v12, %v7028_v10  ;;  %v7140_v12 = vld [vmem:[#allocation2 + $0x428] sm:$0xf] }
 0x498   :  { %v2840_v46 = vadd.f32 %v2839_v38, %v2791_v23  ;;  %v7268_v10 = vld [vmem:[#allocation2 + $0x528] sm:$0xf] }
 0x499   :  { %v2930_v33 = vpop.f32.mrf.mxu3  ;;  %v2883_v28 = vpop.f32.mrf.mxu2  ;;  %11149 = vst [vmem:[#allocation186_spill] sm:$0xff] %v9701_v56  ;;  %3205 = vmatpush.bf16.msrb.mxu1 %v9701_v56 }
 0x49a   :  { %v2931_v25 = vadd.f32 %v2930_v33, %v2882_v7  ;;  %v2884_v43 = vadd.f32 %v2883_v28, %v2835_v49 }
 0x49c   :  { %v3548_v35 = vmax.f32 %v3547_v21, %v2931_v25  ;;  %v9708_v25 = vor.u32 %v8184_v40, %v7140_v12 }
 0x49d   :  { %v2793_v18 = vpop.f32.mrf.mxu0 }
 0x49e   :  { %v2794_v62 = vadd.f32 %v2793_v18, %v9603_v34  ;;  %v2842_v23 = vpop.f32.mrf.mxu1  ;;  %3081 = vmatmul.bf16.gmra.mxu2 %v9510_v15  ;;  %11150 = vst [vmem:[#allocation187_spill] sm:$0xff] %v9708_v25  ;;  %v8216_v18 = vld [vmem:[#allocation2 + $0x534] sm:$0xf0] }
 0x49f   :  { %3255 = vmatpush.bf16.msrb.mxu2 %v9708_v25  ;;  %v8148_v25 = vld [vmem:[#allocation2 + $0x314] sm:$0xf0] }
 0x4a0   :  { %v2843_v33 = vadd.f32 %v2842_v23, %v2794_v62  ;;  %2988 = vmatmul.bf16.gmra.mxu0 %v9327_v26 }
 0x4a1   :  { %v2932_v7 = vpop.f32.mrf.mxu3  ;;  %3037 = vmatmul.bf16.gmra.mxu1 %v9520_v16  ;;  %v2886_v21 = vpop.f32.mrf.mxu2 }
 0x4a2   :  { %v2933_v49 = vadd.f32 %v2932_v7, %v2884_v43  ;;  %v2887_v38 = vadd.f32 %v2886_v21, %v2838_v58  ;;  %v9713_v43 = vor.u32 %v8216_v18, %v7268_v10  ;;  %v8120_v58 = vld [vmem:[#allocation2 + $0x234] sm:$0xf0]  ;;  %v6868_v10 = vld [vmem:[#allocation2 + $0x208] sm:$0xf] }
 0x4a3   :  { %v8116_v18 = vld [vmem:[#allocation2 + $0x214] sm:$0xf0] }
 0x4a4   :  { %v3549_v41 = vmax.f32 %v3548_v35, %v2933_v49  ;;  %11151 = vst [vmem:[#allocation188_spill] sm:$0xff] %v9713_v43  ;;  %3304 = vmatpush.bf16.msrb.mxu3 %v9713_v43  ;;  %v6884_v35 = vld [vmem:[#allocation2 + $0x228] sm:$0xf]  ;;  %v9722_v43 = vor.u32 %v8116_v18, %v6868_v10  ;;  %v8180_v10 = vld [vmem:[#allocation2 + $0x414] sm:$0xf0] }
 0x4a5   :  { %v2795_v28 = vpop.f32.mrf.mxu0  ;;  %v7012_v49 = vld [vmem:[#allocation2 + $0x328] sm:$0xf]  ;;  %v9716_v40 = vor.u32 %v8120_v58, %v6884_v35 }
 0x4a6   :  { %3130 = vmatmul.bf16.gmra.mxu3 %v9529_v24  ;;  %v2796_v62 = vadd.f32 %v2795_v28, %v9603_v34  ;;  %v2844_v23 = vpop.f32.mrf.mxu1  ;;  %v9718_v48 = vor.u32 %v8152_v55, %v7012_v49  ;;  %11153 = vst [vmem:[#allocation190_spill] sm:$0xff] %v9722_v43 }
 0x4a7   :  { %3157 = vmatpush.bf16.msrb.mxu0 %v9716_v40 }
 0x4a8   :  { %v2845_v7 = vadd.f32 %v2844_v23, %v2796_v62  ;;  %11152 = vst [vmem:[#allocation189_spill] sm:$0xff] %v9718_v48  ;;  %3206 = vmatpush.bf16.msrb.mxu1 %v9718_v48  ;;  %v6996_v62 = vld [vmem:[#allocation2 + $0x308] sm:$0xf] }
 0x4a9   :  { %v2935_v54 = vpop.f32.mrf.mxu3  ;;  %v2888_v12 = vpop.f32.mrf.mxu2 }
 0x4aa   :  { %v2936_v21 = vadd.f32 %v2935_v54, %v2887_v38  ;;  %v2889_v56 = vadd.f32 %v2888_v12, %v2840_v46  ;;  %v9726_v46 = vor.u32 %v8148_v25, %v6996_v62  ;;  %v7124_v12 = vld [vmem:[#allocation2 + $0x408] sm:$0xf] }
 0x4ab   :  { %3158 = vmatpush.bf16.msrb.mxu0 %v9722_v43  ;;  %v9732_v18 = vor.u32 %v8180_v10, %v7124_v12  ;;  %v7252_v62 = vld [vmem:[#allocation2 + $0x508] sm:$0xf] }
 0x4ac   :  { %v3550_v28 = vmax.f32 %v3549_v41, %v2936_v21  ;;  %11154 = vst [vmem:[#allocation191_spill] sm:$0xff] %v9726_v46  ;;  %3207 = vmatpush.bf16.msrb.mxu1 %v9726_v46 }
 0x4ad   :  { %v2798_v23 = vpop.f32.mrf.mxu0  ;;  %11155 = vst [vmem:[#allocation192_spill] sm:$0xff] %v9732_v18  ;;  %3256 = vmatpush.bf16.msrb.mxu2 %v9732_v18 }
 0x4ae   :  { %v2799_v54 = vadd.f32 %v2798_v23, %v9603_v34  ;;  %v2847_v38 = vpop.f32.mrf.mxu1  ;;  %3086 = vmatmul.bf16.gmra.mxu2 %v9545_v50  ;;  %v8212_v23 = vld [vmem:[#allocation2 + $0x514] sm:$0xf0] }
 0x4b0   :  { %v2848_v55 = vadd.f32 %v2847_v38, %v2799_v54  ;;  %2993 = vmatmul.bf16.gmra.mxu0 %v9355_v30 }
 0x4b1   :  { %v2937_v41 = vpop.f32.mrf.mxu3  ;;  %3042 = vmatmul.bf16.gmra.mxu1 %v9556_v52  ;;  %v2891_v58 = vpop.f32.mrf.mxu2 }
 0x4b2   :  { %v2938_v35 = vadd.f32 %v2937_v41, %v2889_v56  ;;  %v2892_v49 = vadd.f32 %v2891_v58, %v2843_v33  ;;  %v9737_v56 = vor.u32 %v8212_v23, %v7252_v62 }
 0x4b4   :  { %v3551_v21 = vmax.f32 %v3550_v28, %v2938_v35  ;;  %11156 = vst [vmem:[#allocation193_spill] sm:$0xff] %v9737_v56  ;;  %3305 = vmatpush.bf16.msrb.mxu3 %v9737_v56 }
 0x4b5   :  { %v2800_v25 = vpop.f32.mrf.mxu0 }
 0x4b6   :  { %3135 = vmatmul.bf16.gmra.mxu3 %v9565_v20  ;;  %v2801_v54 = vadd.f32 %v2800_v25, %v9603_v34  ;;  %v2849_v38 = vpop.f32.mrf.mxu1 }
 0x4b8   :  { %v2850_v41 = vadd.f32 %v2849_v38, %v2801_v54 }
 0x4b9   :  { %v2940_v46 = vpop.f32.mrf.mxu3  ;;  %v2893_v28 = vpop.f32.mrf.mxu2 }
 0x4ba   :  { %v2941_v33 = vadd.f32 %v2940_v46, %v2892_v49  ;;  %v2894_v35 = vadd.f32 %v2893_v28, %v2845_v7 }
 0x4bc   :  { %v3552_v58 = vmax.f32 %v3551_v21, %v2941_v33 }
 0x4bd   :  { %v2803_v12 = vpop.f32.mrf.mxu0 }
 0x4be   :  { %v2804_v10 = vadd.f32 %v2803_v12, %v9603_v34  ;;  %v2852_v43 = vpop.f32.mrf.mxu1  ;;  %3091 = vmatmul.bf16.gmra.mxu2 %v9577_v17 }
 0x4c0   :  { %v2853_v25 = vadd.f32 %v2852_v43, %v2804_v10  ;;  %2998 = vmatmul.bf16.gmra.mxu0 %v9376_v36  ;;  %v9747_v10 = vperm.slane %v9596_v19, 1  ;;  %v6982_v19 = vld [vmem:[#allocation2 + $0x2f8] sm:$0xf0] }
 0x4c1   :  { %v2942_v48 = vpop.f32.mrf.mxu3  ;;  %3047 = vmatmul.bf16.gmra.mxu1 %v9582_v51  ;;  %v2896_v23 = vpop.f32.mrf.mxu2 }
 0x4c2   :  { %v2943_v62 = vadd.f32 %v2942_v48, %v2894_v35  ;;  %v2897_v54 = vadd.f32 %v2896_v23, %v2848_v55  ;;  %v8238_v23 = vld [vmem:[#allocation2 + $0x5ec] sm:$0xf] }
 0x4c4   :  { %v3553_v38 = vmax.f32 %v3552_v58, %v2943_v62  ;;  %v8206_v58 = vld [vmem:[#allocation2 + $0x4ec] sm:$0xf]  ;;  %v7238_v62 = vld [vmem:[#allocation2 + $0x4f8] sm:$0xf0] }
 0x4c5   :  { %v2805_v7 = vpop.f32.mrf.mxu0 }
 0x4c6   :  { %3140 = vmatmul.bf16.gmra.mxu3 %v9587_v59  ;;  %v2806_v46 = vadd.f32 %v2805_v7, %v9603_v34  ;;  %v2854_v49 = vpop.f32.mrf.mxu1 }
 0x4c8   :  { %v2855_v21 = vadd.f32 %v2854_v49, %v2806_v46  ;;  %v8142_v46 = vld [vmem:[#allocation2 + $0x2ec] sm:$0xf] }
 0x4c9   :  { %v2945_v33 = vpop.f32.mrf.mxu3  ;;  %v2898_v12 = vpop.f32.mrf.mxu2 }
 0x4ca   :  { %v2946_v28 = vadd.f32 %v2945_v33, %v2897_v54  ;;  %v2899_v43 = vadd.f32 %v2898_v12, %v2850_v41  ;;  %v9752_v54 = vor.u32 %v8206_v58, %v7238_v62  ;;  %v7366_v41 = vld [vmem:[#allocation2 + $0x5f8] sm:$0xf0]  ;;  %v8174_v12 = vld [vmem:[#allocation2 + $0x3ec] sm:$0xf] }
 0x4cb   :  { %v9755_v33 = vor.u32 %v8238_v23, %v7366_v41  ;;  %v8234_v23 = vld [vmem:[#allocation2 + $0x5cc] sm:$0xf] }
 0x4cc   :  { %v3554_v48 = vmax.f32 %v3553_v38, %v2946_v28  ;;  %11157 = vst [vmem:[#allocation194_spill] sm:$0xff] %v9752_v54  ;;  %v9757_v28 = vor.u32 %v8142_v46, %v6982_v19  ;;  %3445 = vmatpush.bf16.msra.mxu2 %v9752_v54 }
 0x4cd   :  { %v2964_v35 = vpop.f32.mrf.mxu0  ;;  %11158 = vst [vmem:[#allocation195_spill] sm:$0xff] %v9755_v33  ;;  %3494 = vmatpush.bf16.msra.mxu3 %v9755_v33 }
 0x4ce   :  { %v2965_v56 = vadd.f32 %v2964_v35, %v9747_v10  ;;  %v3013_v55 = vpop.f32.mrf.mxu1  ;;  %3096 = vmatmul.bf16.gmra.mxu2 %v9608_v45  ;;  %11159 = vst [vmem:[#allocation196_spill] sm:$0xff] %v9757_v28  ;;  %v7110_v35 = vld [vmem:[#allocation2 + $0x3f8] sm:$0xf0]  ;;  %3347 = vmatpush.bf16.msra.mxu0 %v9757_v28 }
 0x4d0   :  { %v3014_v7 = vadd.f32 %v3013_v55, %v2965_v56  ;;  %3159 = vmatmul.bf16.vlgmr.msrb.gmra.mxu0 %v9197_v31  ;;  %v9760_v56 = vor.u32 %v8174_v12, %v7110_v35  ;;  %v6966_v12 = vld [vmem:[#allocation2 + $0x2d8] sm:$0xf0] }
 0x4d1   :  { %v2947_v34 = vpop.f32.mrf.mxu3  ;;  %3208 = vmatmul.bf16.vlgmr.msrb.gmra.mxu1 %v9212_v57  ;;  %v2901_v38 = vpop.f32.mrf.mxu2 }
 0x4d2   :  { %v2948_v49 = vadd.f32 %v2947_v34, %v2899_v43  ;;  %v2902_v18 = vadd.f32 %v2901_v38, %v2853_v25  ;;  %11160 = vst [vmem:[#allocation197_spill] sm:$0xff] %v9760_v56  ;;  %v8202_v34 = vld [vmem:[#allocation2 + $0x4cc] sm:$0xf]  ;;  %v7222_v43 = vld [vmem:[#allocation2 + $0x4d8] sm:$0xf0]  ;;  %3396 = vmatpush.bf16.msra.mxu1 %v9760_v56 }
 0x4d3   :  { %v9765_v58 = vor.u32 %v8202_v34, %v7222_v43  ;;  %v7350_v25 = vld [vmem:[#allocation2 + $0x5d8] sm:$0xf0]  ;;  %v8138_v38 = vld [vmem:[#allocation2 + $0x2cc] sm:$0xf] }
 0x4d4   :  { %v3555_v55 = vmax.f32 %v3554_v48, %v2948_v49  ;;  %v9770_v48 = vor.u32 %v8234_v23, %v7350_v25  ;;  %v9773_v43 = vor.u32 %v8138_v38, %v6966_v12  ;;  %v7094_v56 = vld [vmem:[#allocation2 + $0x3d8] sm:$0xf0] }
 0x4d5   :  { %11161 = vst [vmem:[#allocation198_spill] sm:$0xff] %v9765_v58  ;;  %v2966_v62 = vpop.f32.mrf.mxu0  ;;  %3446 = vmatpush.bf16.msra.mxu2 %v9765_v58  ;;  %v7206_v12 = vld [vmem:[#allocation2 + $0x4b8] sm:$0xf0] }
 0x4d6   :  { %3145 = vmatmul.bf16.gmra.mxu3 %v9616_v14  ;;  %v2967_v41 = vadd.f32 %v2966_v62, %v9747_v10  ;;  %v3015_v46 = vpop.f32.mrf.mxu1  ;;  %11162 = vst [vmem:[#allocation199_spill] sm:$0xff] %v9770_v48  ;;  %3348 = vmatpush.bf16.msra.mxu0 %v9773_v43  ;;  %v8170_v62 = vld [vmem:[#allocation2 + $0x3cc] sm:$0xf] }
 0x4d7   :  { %3495 = vmatpush.bf16.msra.mxu3 %v9770_v48  ;;  %11163 = vst [vmem:[#allocation200_spill] sm:$0xff] %v9773_v43  ;;  %v9776_v28 = vor.u32 %v8170_v62, %v7094_v56  ;;  %v8198_v56 = vld [vmem:[#allocation2 + $0x4ac] sm:$0xf] }
 0x4d8   :  { %v3016_v19 = vadd.f32 %v3015_v46, %v2967_v41  ;;  %v8230_v62 = vld [vmem:[#allocation2 + $0x5ac] sm:$0xf] }
 0x4d9   :  { %v2950_v49 = vpop.f32.mrf.mxu3  ;;  %v2903_v34 = vpop.f32.mrf.mxu2  ;;  %11164 = vst [vmem:[#allocation201_spill] sm:$0xff] %v9776_v28  ;;  %3397 = vmatpush.bf16.msra.mxu1 %v9776_v28  ;;  %v8166_v48 = vld [vmem:[#allocation2 + $0x3ac] sm:$0xf]  ;;  %v7062_v28 = vld [vmem:[#allocation2 + $0x398] sm:$0xf0] }
 0x4da   :  { %v2951_v35 = vadd.f32 %v2950_v49, %v2902_v18  ;;  %v2904_v33 = vadd.f32 %v2903_v34, %v2855_v21 }
 0x4dc   :  { %v3556_v54 = vmax.f32 %v3555_v55, %v2951_v35  ;;  %v9785_v35 = vor.u32 %v8198_v56, %v7206_v12 }
 0x4dd   :  { %v2969_v23 = vpop.f32.mrf.mxu0 }
 0x4de   :  { %v2970_v25 = vadd.f32 %v2969_v23, %v9747_v10  ;;  %v3018_v41 = vpop.f32.mrf.mxu1  ;;  %3257 = vmatmul.bf16.vlgmr.msrb.gmra.mxu2 %v9405_v42  ;;  %11166 = vst [vmem:[#allocation203_spill] sm:$0xff] %v9785_v35  ;;  %v7334_v23 = vld [vmem:[#allocation2 + $0x5b8] sm:$0xf0] }
 0x4df   :  { %3447 = vmatpush.bf16.msra.mxu2 %v9785_v35 }
 0x4e0   :  { %v3019_v18 = vadd.f32 %v3018_v41, %v2970_v25  ;;  %3164 = vmatmul.bf16.gmra.mxu0 %v9221_v4 }
 0x4e1   :  { %v2952_v46 = vpop.f32.mrf.mxu3  ;;  %3213 = vmatmul.bf16.gmra.mxu1 %v9236_v63  ;;  %v3062_v55 = vpop.f32.mrf.mxu2 }
 0x4e2   :  { %v2953_v21 = vadd.f32 %v2952_v46, %v2904_v33  ;;  %v3063_v49 = vadd.f32 %v3062_v55, %v3014_v7  ;;  %v9790_v33 = vor.u32 %v8230_v62, %v7334_v23 }
 0x4e4   :  { %v9783_v38 = vmax.f32 %v3556_v54, %v2953_v21  ;;  %11167 = vst [vmem:[#allocation204_spill] sm:$0xff] %v9790_v33  ;;  %3496 = vmatpush.bf16.msra.mxu3 %v9790_v33  ;;  %v8134_v54 = vld [vmem:[#allocation2 + $0x2ac] sm:$0xf]  ;;  %v6950_v21 = vld [vmem:[#allocation2 + $0x2b8] sm:$0xf0] }
 0x4e5   :  { %v2971_v34 = vpop.f32.mrf.mxu0  ;;  %v9793_v12 = vor.u32 %v8134_v54, %v6950_v21  ;;  %v7190_v21 = vld [vmem:[#allocation2 + $0x498] sm:$0xf0] }
 0x4e6   :  { %11165 = vst [vmem:[#allocation202_spill] sm:$0xff] %v9783_v38  ;;  %3306 = vmatmul.bf16.vlgmr.msrb.gmra.mxu3 %v9419_v0  ;;  %v2972_v25 = vadd.f32 %v2971_v34, %v9747_v10  ;;  %v3020_v41 = vpop.f32.mrf.mxu1  ;;  %v7078_v34 = vld [vmem:[#allocation2 + $0x3b8] sm:$0xf0] }
 0x4e7   :  { %11168 = vst [vmem:[#allocation205_spill] sm:$0xff] %v9793_v12  ;;  %3349 = vmatpush.bf16.msra.mxu0 %v9793_v12  ;;  %v9796_v58 = vor.u32 %v8166_v48, %v7078_v34  ;;  %v8194_v48 = vld [vmem:[#allocation2 + $0x48c] sm:$0xf]  ;;  %v7318_v33 = vld [vmem:[#allocation2 + $0x598] sm:$0xf0] }
 0x4e8   :  { %v3021_v46 = vadd.f32 %v3020_v41, %v2972_v25  ;;  %v8226_v34 = vld [vmem:[#allocation2 + $0x58c] sm:$0xf] }
 0x4e9   :  { %v3111_v7 = vpop.f32.mrf.mxu3  ;;  %v3064_v56 = vpop.f32.mrf.mxu2  ;;  %11169 = vst [vmem:[#allocation206_spill] sm:$0xff] %v9796_v58  ;;  %3398 = vmatpush.bf16.msra.mxu1 %v9796_v58 }
 0x4ea   :  { %v3112_v55 = vadd.f32 %v3111_v7, %v3063_v49  ;;  %v3065_v38 = vadd.f32 %v3064_v56, %v3016_v19  ;;  %v9803_v56 = vor.u32 %v8194_v48, %v7190_v21 }
 0x4ec   :  { %11170 = vst [vmem:[#allocation207_spill] sm:$0xff] %v9803_v56  ;;  %3448 = vmatpush.bf16.msra.mxu2 %v9803_v56 }
 0x4ed   :  { %v2974_v35 = vpop.f32.mrf.mxu0 }
 0x4ee   :  { %v2975_v62 = vadd.f32 %v2974_v35, %v9747_v10  ;;  %v3023_v23 = vpop.f32.mrf.mxu1  ;;  %3262 = vmatmul.bf16.gmra.mxu2 %v9429_v8 }
 0x4f0   :  { %v3024_v25 = vadd.f32 %v3023_v23, %v2975_v62  ;;  %3169 = vmatmul.bf16.gmra.mxu0 %v9245_v6 }
 0x4f1   :  { %v3113_v49 = vpop.f32.mrf.mxu3  ;;  %3218 = vmatmul.bf16.gmra.mxu1 %v9260_v61  ;;  %v3067_v19 = vpop.f32.mrf.mxu2 }
 0x4f2   :  { %v3114_v41 = vadd.f32 %v3113_v49, %v3065_v38  ;;  %v3068_v7 = vadd.f32 %v3067_v19, %v3019_v18  ;;  %v9808_v38 = vor.u32 %v8226_v34, %v7318_v33  ;;  %v8130_v18 = vld [vmem:[#allocation2 + $0x28c] sm:$0xf] }
 0x4f4   :  { %v3564_v54 = vmax.f32 %v3112_v55, %v3114_v41  ;;  %11171 = vst [vmem:[#allocation208_spill] sm:$0xff] %v9808_v38  ;;  %3497 = vmatpush.bf16.msra.mxu3 %v9808_v38  ;;  %v6934_v55 = vld [vmem:[#allocation2 + $0x298] sm:$0xf0] }
 0x4f5   :  { %v2976_v35 = vpop.f32.mrf.mxu0  ;;  %v9811_v48 = vor.u32 %v8130_v18, %v6934_v55  ;;  %v7174_v55 = vld [vmem:[#allocation2 + $0x478] sm:$0xf0] }
 0x4f6   :  { %3311 = vmatmul.bf16.gmra.mxu3 %v9443_v53  ;;  %v2977_v62 = vadd.f32 %v2976_v35, %v9747_v10  ;;  %v3025_v23 = vpop.f32.mrf.mxu1  ;;  %v8162_v35 = vld [vmem:[#allocation2 + $0x38c] sm:$0xf] }
 0x4f7   :  { %11172 = vst [vmem:[#allocation209_spill] sm:$0xff] %v9811_v48  ;;  %3350 = vmatpush.bf16.msra.mxu0 %v9811_v48  ;;  %v9814_v43 = vor.u32 %v8162_v35, %v7062_v28  ;;  %v8190_v28 = vld [vmem:[#allocation2 + $0x46c] sm:$0xf] }
 0x4f8   :  { %v3026_v49 = vadd.f32 %v3025_v23, %v2977_v62  ;;  %v8222_v35 = vld [vmem:[#allocation2 + $0x56c] sm:$0xf] }
 0x4f9   :  { %v3116_v58 = vpop.f32.mrf.mxu3  ;;  %v3069_v19 = vpop.f32.mrf.mxu2  ;;  %11173 = vst [vmem:[#allocation210_spill] sm:$0xff] %v9814_v43  ;;  %3399 = vmatpush.bf16.msra.mxu1 %v9814_v43  ;;  %v7046_v43 = vld [vmem:[#allocation2 + $0x378] sm:$0xf0] }
 0x4fa   :  { %v3117_v41 = vadd.f32 %v3116_v58, %v3068_v7  ;;  %v3070_v21 = vadd.f32 %v3069_v19, %v3021_v46 }
 0x4fc   :  { %v3565_v12 = vmax.f32 %v3564_v54, %v3117_v41  ;;  %v9821_v41 = vor.u32 %v8190_v28, %v7174_v55 }
 0x4fd   :  { %v2979_v33 = vpop.f32.mrf.mxu0 }
 0x4fe   :  { %v2980_v34 = vadd.f32 %v2979_v33, %v9747_v10  ;;  %v3028_v62 = vpop.f32.mrf.mxu1  ;;  %3267 = vmatmul.bf16.gmra.mxu2 %v9453_v9  ;;  %11174 = vst [vmem:[#allocation211_spill] sm:$0xff] %v9821_v41  ;;  %v7302_v33 = vld [vmem:[#allocation2 + $0x578] sm:$0xf0] }
 0x4ff   :  { %3449 = vmatpush.bf16.msra.mxu2 %v9821_v41 }
 0x500   :  { %v3029_v58 = vadd.f32 %v3028_v62, %v2980_v34  ;;  %3174 = vmatmul.bf16.gmra.mxu0 %v9269_v1 }
 0x501   :  { %v3118_v7 = vpop.f32.mrf.mxu3  ;;  %3223 = vmatmul.bf16.gmra.mxu1 %v9284_v29  ;;  %v3072_v54 = vpop.f32.mrf.mxu2 }
 0x502   :  { %v3119_v46 = vadd.f32 %v3118_v7, %v3070_v21  ;;  %v3073_v23 = vadd.f32 %v3072_v54, %v3024_v25  ;;  %v9826_v21 = vor.u32 %v8222_v35, %v7302_v33  ;;  %v6918_v25 = vld [vmem:[#allocation2 + $0x278] sm:$0xf0] }
 0x504   :  { %v3566_v18 = vmax.f32 %v3565_v12, %v3119_v46  ;;  %11175 = vst [vmem:[#allocation212_spill] sm:$0xff] %v9826_v21  ;;  %3498 = vmatpush.bf16.msra.mxu3 %v9826_v21  ;;  %v8126_v12 = vld [vmem:[#allocation2 + $0x26c] sm:$0xf] }
 0x505   :  { %v2981_v19 = vpop.f32.mrf.mxu0  ;;  %v9829_v28 = vor.u32 %v8126_v12, %v6918_v25  ;;  %v7158_v25 = vld [vmem:[#allocation2 + $0x458] sm:$0xf0] }
 0x506   :  { %3316 = vmatmul.bf16.gmra.mxu3 %v9469_v5  ;;  %v2982_v34 = vadd.f32 %v2981_v19, %v9747_v10  ;;  %v3030_v62 = vpop.f32.mrf.mxu1  ;;  %v8158_v19 = vld [vmem:[#allocation2 + $0x36c] sm:$0xf] }
 0x507   :  { %11176 = vst [vmem:[#allocation213_spill] sm:$0xff] %v9829_v28  ;;  %3351 = vmatpush.bf16.msra.mxu0 %v9829_v28  ;;  %v9832_v48 = vor.u32 %v8158_v19, %v7046_v43  ;;  %v8186_v43 = vld [vmem:[#allocation2 + $0x44c] sm:$0xf] }
 0x508   :  { %v3031_v7 = vadd.f32 %v3030_v62, %v2982_v34  ;;  %v8218_v19 = vld [vmem:[#allocation2 + $0x54c] sm:$0xf] }
 0x509   :  { %v3121_v38 = vpop.f32.mrf.mxu3  ;;  %v3074_v54 = vpop.f32.mrf.mxu2  ;;  %11177 = vst [vmem:[#allocation214_spill] sm:$0xff] %v9832_v48  ;;  %3400 = vmatpush.bf16.msra.mxu1 %v9832_v48  ;;  %v7030_v48 = vld [vmem:[#allocation2 + $0x358] sm:$0xf0] }
 0x50a   :  { %v3122_v46 = vadd.f32 %v3121_v38, %v3073_v23  ;;  %v3075_v55 = vadd.f32 %v3074_v54, %v3026_v49 }
 0x50c   :  { %v3567_v56 = vmax.f32 %v3566_v18, %v3122_v46  ;;  %v9839_v46 = vor.u32 %v8186_v43, %v7158_v25 }
 0x50d   :  { %v2984_v35 = vpop.f32.mrf.mxu0 }
 0x50e   :  { %v2985_v33 = vadd.f32 %v2984_v35, %v9747_v10  ;;  %v3033_v34 = vpop.f32.mrf.mxu1  ;;  %3272 = vmatmul.bf16.gmra.mxu2 %v9480_v11  ;;  %11178 = vst [vmem:[#allocation215_spill] sm:$0xff] %v9839_v46  ;;  %v7286_v35 = vld [vmem:[#allocation2 + $0x558] sm:$0xf0] }
 0x50f   :  { %3450 = vmatpush.bf16.msra.mxu2 %v9839_v46  ;;  %v7014_v46 = vld [vmem:[#allocation2 + $0x338] sm:$0xf0] }
 0x510   :  { %v3034_v38 = vadd.f32 %v3033_v34, %v2985_v33  ;;  %3179 = vmatmul.bf16.gmra.mxu0 %v9295_v3 }
 0x511   :  { %v3123_v23 = vpop.f32.mrf.mxu3  ;;  %3228 = vmatmul.bf16.gmra.mxu1 %v9490_v47  ;;  %v3077_v18 = vpop.f32.mrf.mxu2 }
 0x512   :  { %v3124_v49 = vadd.f32 %v3123_v23, %v3075_v55  ;;  %v3078_v62 = vadd.f32 %v3077_v18, %v3029_v58  ;;  %v9844_v55 = vor.u32 %v8218_v19, %v7286_v35  ;;  %v6902_v58 = vld [vmem:[#allocation2 + $0x258] sm:$0xf0] }
 0x514   :  { %v3568_v12 = vmax.f32 %v3567_v56, %v3124_v49  ;;  %11179 = vst [vmem:[#allocation216_spill] sm:$0xff] %v9844_v55  ;;  %3499 = vmatpush.bf16.msra.mxu3 %v9844_v55  ;;  %v8122_v56 = vld [vmem:[#allocation2 + $0x24c] sm:$0xf] }
 0x515   :  { %v2986_v54 = vpop.f32.mrf.mxu0  ;;  %v9847_v43 = vor.u32 %v8122_v56, %v6902_v58  ;;  %v7142_v58 = vld [vmem:[#allocation2 + $0x438] sm:$0xf0] }
 0x516   :  { %3321 = vmatmul.bf16.gmra.mxu3 %v9499_v44  ;;  %v2987_v33 = vadd.f32 %v2986_v54, %v9747_v10  ;;  %v3035_v34 = vpop.f32.mrf.mxu1  ;;  %v8154_v54 = vld [vmem:[#allocation2 + $0x34c] sm:$0xf] }
 0x517   :  { %11180 = vst [vmem:[#allocation217_spill] sm:$0xff] %v9847_v43  ;;  %3352 = vmatpush.bf16.msra.mxu0 %v9847_v43  ;;  %v9850_v28 = vor.u32 %v8154_v54, %v7030_v48  ;;  %v8182_v48 = vld [vmem:[#allocation2 + $0x42c] sm:$0xf] }
 0x518   :  { %v3036_v23 = vadd.f32 %v3035_v34, %v2987_v33  ;;  %v8214_v54 = vld [vmem:[#allocation2 + $0x52c] sm:$0xf] }
 0x519   :  { %v3126_v21 = vpop.f32.mrf.mxu3  ;;  %v3079_v18 = vpop.f32.mrf.mxu2  ;;  %11181 = vst [vmem:[#allocation218_spill] sm:$0xff] %v9850_v28  ;;  %3401 = vmatpush.bf16.msra.mxu1 %v9850_v28 }
 0x51a   :  { %v3127_v49 = vadd.f32 %v3126_v21, %v3078_v62  ;;  %v3080_v25 = vadd.f32 %v3079_v18, %v3031_v7 }
 0x51c   :  { %v3569_v41 = vmax.f32 %v3568_v12, %v3127_v49  ;;  %v9857_v49 = vor.u32 %v8182_v48, %v7142_v58 }
 0x51d   :  { %v2989_v19 = vpop.f32.mrf.mxu0 }
 0x51e   :  { %v2990_v35 = vadd.f32 %v2989_v19, %v9747_v10  ;;  %v3038_v33 = vpop.f32.mrf.mxu1  ;;  %3277 = vmatmul.bf16.gmra.mxu2 %v9510_v15  ;;  %11182 = vst [vmem:[#allocation219_spill] sm:$0xff] %v9857_v49  ;;  %v7270_v19 = vld [vmem:[#allocation2 + $0x538] sm:$0xf0] }
 0x51f   :  { %3451 = vmatpush.bf16.msra.mxu2 %v9857_v49  ;;  %v6998_v49 = vld [vmem:[#allocation2 + $0x318] sm:$0xf0] }
 0x520   :  { %v3039_v21 = vadd.f32 %v3038_v33, %v2990_v35  ;;  %3184 = vmatmul.bf16.gmra.mxu0 %v9327_v26 }
 0x521   :  { %v3128_v62 = vpop.f32.mrf.mxu3  ;;  %3233 = vmatmul.bf16.gmra.mxu1 %v9520_v16  ;;  %v3082_v12 = vpop.f32.mrf.mxu2 }
 0x522   :  { %v3129_v7 = vadd.f32 %v3128_v62, %v3080_v25  ;;  %v3083_v34 = vadd.f32 %v3082_v12, %v3034_v38  ;;  %v9862_v25 = vor.u32 %v8214_v54, %v7270_v19  ;;  %v6886_v38 = vld [vmem:[#allocation2 + $0x238] sm:$0xf0]  ;;  %v8114_v54 = vld [vmem:[#allocation2 + $0x20c] sm:$0xf] }
 0x523   :  { %v6870_v19 = vld [vmem:[#allocation2 + $0x218] sm:$0xf0] }
 0x524   :  { %v3570_v56 = vmax.f32 %v3569_v41, %v3129_v7  ;;  %11183 = vst [vmem:[#allocation220_spill] sm:$0xff] %v9862_v25  ;;  %3500 = vmatpush.bf16.msra.mxu3 %v9862_v25  ;;  %v8118_v41 = vld [vmem:[#allocation2 + $0x22c] sm:$0xf]  ;;  %v9871_v25 = vor.u32 %v8114_v54, %v6870_v19 }
 0x525   :  { %v2991_v18 = vpop.f32.mrf.mxu0  ;;  %v8150_v7 = vld [vmem:[#allocation2 + $0x32c] sm:$0xf]  ;;  %v9865_v58 = vor.u32 %v8118_v41, %v6886_v38 }
 0x526   :  { %3326 = vmatmul.bf16.gmra.mxu3 %v9529_v24  ;;  %v2992_v35 = vadd.f32 %v2991_v18, %v9747_v10  ;;  %v3040_v33 = vpop.f32.mrf.mxu1  ;;  %v9867_v43 = vor.u32 %v8150_v7, %v7014_v46 }
 0x527   :  { %3353 = vmatpush.bf16.msra.mxu0 %v9865_v58 }
 0x528   :  { %v3041_v62 = vadd.f32 %v3040_v33, %v2992_v35  ;;  %3402 = vmatpush.bf16.msra.mxu1 %v9867_v43  ;;  %v8146_v35 = vld [vmem:[#allocation2 + $0x30c] sm:$0xf] }
 0x529   :  { %v3131_v55 = vpop.f32.mrf.mxu3  ;;  %v3084_v48 = vpop.f32.mrf.mxu2 }
 0x52a   :  { %v3132_v12 = vadd.f32 %v3131_v55, %v3083_v34  ;;  %v3085_v28 = vadd.f32 %v3084_v48, %v3036_v23  ;;  %v9875_v23 = vor.u32 %v8146_v35, %v6998_v49  ;;  %v8178_v49 = vld [vmem:[#allocation2 + $0x40c] sm:$0xf]  ;;  %v7126_v48 = vld [vmem:[#allocation2 + $0x418] sm:$0xf0] }
 0x52b   :  { %3354 = vmatpush.bf16.msra.mxu0 %v9871_v25  ;;  %v9883_v54 = vor.u32 %v8178_v49, %v7126_v48  ;;  %v8210_v35 = vld [vmem:[#allocation2 + $0x50c] sm:$0xf] }
 0x52c   :  { %v3571_v18 = vmax.f32 %v3570_v56, %v3132_v12  ;;  %3403 = vmatpush.bf16.msra.mxu1 %v9875_v23 }
 0x52d   :  { %v2994_v33 = vpop.f32.mrf.mxu0  ;;  %3452 = vmatpush.bf16.msra.mxu2 %v9883_v54 }
 0x52e   :  { %v2995_v55 = vadd.f32 %v2994_v33, %v9747_v10  ;;  %v3043_v34 = vpop.f32.mrf.mxu1  ;;  %3282 = vmatmul.bf16.gmra.mxu2 %v9545_v50  ;;  %v7254_v33 = vld [vmem:[#allocation2 + $0x518] sm:$0xf0] }
 0x52f   :  { %3707 = vmatpush.bf16.msrb.mxu0 %v8877_v13  ;;  %v9889_v13 = vor.u32 %v8210_v35, %v7254_v33  ;;  %v11190_v33 = vld [vmem:[#allocation46_spill] sm:$0xff] }
 0x530   :  { %v3044_v46 = vadd.f32 %v3043_v34, %v2995_v55  ;;  %3189 = vmatmul.bf16.gmra.mxu0 %v9355_v30  ;;  %3756 = vmatpush.bf16.msrb.mxu1 %v8879_v22 }
 0x531   :  { %v3133_v56 = vpop.f32.mrf.mxu3  ;;  %3238 = vmatmul.bf16.gmra.mxu1 %v9556_v52  ;;  %v3087_v38 = vpop.f32.mrf.mxu2  ;;  %3805 = vmatpush.bf16.msrb.mxu2 %v8881_v32  ;;  %v11186_v32 = vld [vmem:[#allocation42_spill] sm:$0xff] }
 0x532   :  { %v3134_v41 = vadd.f32 %v3133_v56, %v3085_v28  ;;  %v3088_v7 = vadd.f32 %v3087_v38, %v3039_v21  ;;  %3501 = vmatpush.bf16.msra.mxu3 %v9889_v13 }
 0x533   :  { %3708 = vmatpush.bf16.msrb.mxu0 %v8888_v37 }
 0x534   :  { %v3572_v12 = vmax.f32 %v3571_v18, %v3134_v41  ;;  %3757 = vmatpush.bf16.msrb.mxu1 %v8890_v39  ;;  %v11184_v41 = vld [vmem:[#allocation38_spill] sm:$0xff]  ;;  %v11185_v39 = vld [vmem:[#allocation39_spill] sm:$0xff] }
 0x535   :  { %v2996_v19 = vpop.f32.mrf.mxu0  ;;  %3806 = vmatpush.bf16.msrb.mxu2 %v11184_v41 }
 0x536   :  { %3331 = vmatmul.bf16.gmra.mxu3 %v9565_v20  ;;  %v2997_v28 = vadd.f32 %v2996_v19, %v9747_v10  ;;  %v3045_v55 = vpop.f32.mrf.mxu1  ;;  %v11189_v19 = vld [vmem:[#allocation41_spill] sm:$0xff] }
 0x537   :  { %3854 = vmatpush.bf16.msrb.mxu3 %v8884_v27  ;;  %3709 = vmatpush.bf16.msrb.mxu0 %v8898_v2  ;;  %v11188_v27 = vld [vmem:[#allocation40_spill] sm:$0xff] }
 0x538   :  { %v3046_v22 = vadd.f32 %v3045_v55, %v2997_v28  ;;  %3758 = vmatpush.bf16.msrb.mxu1 %v8902_v60  ;;  %v11191_v28 = vld [vmem:[#allocation47_spill] sm:$0xff] }
 0x539   :  { %v3136_v21 = vpop.f32.mrf.mxu3  ;;  %v3089_v34 = vpop.f32.mrf.mxu2  ;;  %3807 = vmatpush.bf16.msrb.mxu2 %v11188_v27  ;;  %v9916_v27 = vld [vmem:[#allocation6 + $0x3] ss:$8 sm:$0xf] }
 0x53a   :  { %v3137_v18 = vadd.f32 %v3136_v21, %v3088_v7  ;;  %v3090_v37 = vadd.f32 %v3089_v34, %v3041_v62  ;;  %v11187_v7 = vld [vmem:[#allocation43_spill] sm:$0xff]  ;;  %v11192_v21 = vld [vmem:[#allocation44_spill] sm:$0xff] }
 0x53b   :  { %3855 = vmatpush.bf16.msrb.mxu3 %v11185_v39  ;;  %3710 = vmatpush.bf16.msrb.mxu0 %v11186_v32  ;;  %v11195_v39 = vld [vmem:[#allocation48_spill] sm:$0xff] }
 0x53c   :  { %v3573_v56 = vmax.f32 %v3572_v12, %v3137_v18  ;;  %3759 = vmatpush.bf16.msrb.mxu1 %v11187_v7 }
 0x53d   :  { %v2999_v38 = vpop.f32.mrf.mxu0  ;;  %3808 = vmatpush.bf16.msrb.mxu2 %v11192_v21 }
 0x53e   :  { %v3000_v49 = vadd.f32 %v2999_v38, %v9747_v10  ;;  %v3048_v48 = vpop.f32.mrf.mxu1  ;;  %3287 = vmatmul.bf16.gmra.mxu2 %v9577_v17  ;;  %v11194_v38 = vld [vmem:[#allocation50_spill] sm:$0xff] }
 0x53f   :  { %3856 = vmatpush.bf16.msrb.mxu3 %v11189_v19  ;;  %3711 = vmatpush.bf16.msrb.mxu0 %v11190_v33  ;;  %v11199_v33 = vld [vmem:[#allocation52_spill] sm:$0xff] }
 0x540   :  { %v3049_v2 = vadd.f32 %v3048_v48, %v3000_v49  ;;  %3194 = vmatmul.bf16.gmra.mxu0 %v9376_v36  ;;  %3760 = vmatpush.bf16.msrb.mxu1 %v11191_v28  ;;  %v11200_v28 = vld [vmem:[#allocation55_spill] sm:$0xff] }
 0x541   :  { %v3138_v62 = vpop.f32.mrf.mxu3  ;;  %3243 = vmatmul.bf16.gmra.mxu1 %v9582_v51  ;;  %v3092_v12 = vpop.f32.mrf.mxu2  ;;  %3809 = vmatpush.bf16.msrb.mxu2 %v11195_v39 }
 0x542   :  { %v3139_v60 = vadd.f32 %v3138_v62, %v3090_v37  ;;  %v3093_v35 = vadd.f32 %v3092_v12, %v3044_v46  ;;  %v11193_v37 = vld [vmem:[#allocation45_spill] sm:$0xff]  ;;  %v11196_v46 = vld [vmem:[#allocation51_spill] sm:$0xff]  ;;  %v9919_v62 = vperm.slane %v9916_v27, 2  ;;  %v11198_v12 = vld [vmem:[#allocation54_spill] sm:$0xff] }
 0x543   :  { %3857 = vmatpush.bf16.msrb.mxu3 %v11193_v37  ;;  %3712 = vmatpush.bf16.msrb.mxu0 %v11194_v38 }
 0x544   :  { %v3574_v55 = vmax.f32 %v3573_v56, %v3139_v60  ;;  %3761 = vmatpush.bf16.msrb.mxu1 %v11196_v46  ;;  %v11197_v60 = vld [vmem:[#allocation49_spill] sm:$0xff] }
 0x545   :  { %v3001_v18 = vpop.f32.mrf.mxu0  ;;  %3810 = vmatpush.bf16.msrb.mxu2 %v11199_v33  ;;  %v11208_v33 = vld [vmem:[#allocation60_spill] sm:$0xff] }
 0x546   :  { %3336 = vmatmul.bf16.gmra.mxu3 %v9587_v59  ;;  %v3002_v34 = vadd.f32 %v3001_v18, %v9747_v10  ;;  %v3050_v41 = vpop.f32.mrf.mxu1 }
 0x547   :  { %3858 = vmatpush.bf16.msrb.mxu3 %v11197_v60  ;;  %3713 = vmatpush.bf16.msrb.mxu0 %v11198_v12  ;;  %v11207_v60 = vld [vmem:[#allocation65_spill] sm:$0xff] }
 0x548   :  { %v3051_v32 = vadd.f32 %v3050_v41, %v3002_v34  ;;  %3762 = vmatpush.bf16.msrb.mxu1 %v11200_v28  ;;  %v11202_v34 = vld [vmem:[#allocation56_spill] sm:$0xff]  ;;  %v11203_v41 = vld [vmem:[#allocation58_spill] sm:$0xff] }
 0x549   :  { %v3141_v49 = vpop.f32.mrf.mxu3  ;;  %v3094_v56 = vpop.f32.mrf.mxu2  ;;  %3811 = vmatpush.bf16.msrb.mxu2 %v11202_v34 }
 0x54a   :  { %v3142_v48 = vadd.f32 %v3141_v49, %v3093_v35  ;;  %v3095_v7 = vadd.f32 %v3094_v56, %v3046_v22  ;;  %v11201_v22 = vld [vmem:[#allocation53_spill] sm:$0xff]  ;;  %v11205_v49 = vld [vmem:[#allocation64_spill] sm:$0xff] }
 0x54b   :  { %3859 = vmatpush.bf16.msrb.mxu3 %v11201_v22  ;;  %3714 = vmatpush.bf16.msrb.mxu0 %v11203_v41  ;;  %v11206_v56 = vld [vmem:[#allocation57_spill] sm:$0xff]  ;;  %v11212_v41 = vld [vmem:[#allocation72_spill] sm:$0xff] }
 0x54c   :  { %v3575_v19 = vmax.f32 %v3574_v55, %v3142_v48  ;;  %v11204_v55 = vld [vmem:[#allocation59_spill] sm:$0xff] }
 0x54d   :  { %v3160_v21 = vpop.f32.mrf.mxu0  ;;  %3763 = vmatpush.bf16.msrb.mxu1 %v11204_v55  ;;  %3812 = vmatpush.bf16.msrb.mxu2 %v11208_v33  ;;  %v11216_v33 = vld [vmem:[#allocation62_spill] sm:$0xff] }
 0x54e   :  { %v3161_v18 = vadd.f32 %v3160_v21, %v9919_v62  ;;  %v3209_v35 = vpop.f32.mrf.mxu1  ;;  %3292 = vmatmul.bf16.gmra.mxu2 %v9608_v45 }
 0x54f   :  { %3860 = vmatpush.bf16.msrb.mxu3 %v11206_v56 }
 0x550   :  { %v3210_v37 = vadd.f32 %v3209_v35, %v3161_v18  ;;  %3355 = vmatmul.bf16.vlgmr.msra.gmra.mxu0 %v9197_v31  ;;  %v11209_v31 = vld [vmem:[#allocation68_spill] sm:$0xff]  ;;  %v11211_v18 = vld [vmem:[#allocation69_spill] sm:$0xff] }
 0x551   :  { %v3143_v38 = vpop.f32.mrf.mxu3  ;;  %3404 = vmatmul.bf16.vlgmr.msra.gmra.mxu1 %v9212_v57  ;;  %v3097_v46 = vpop.f32.mrf.mxu2  ;;  %3903 = vmatpush.bf16.msra.mxu0 %v11205_v49  ;;  %v11210_v57 = vld [vmem:[#allocation61_spill] sm:$0xff] }
 0x552   :  { %v3144_v39 = vadd.f32 %v3143_v38, %v3095_v7  ;;  %v3098_v48 = vadd.f32 %v3097_v46, %v3049_v2  ;;  %3952 = vmatpush.bf16.msra.mxu1 %v11207_v60  ;;  %v11213_v38 = vld [vmem:[#allocation73_spill] sm:$0xff]  ;;  %v11214_v46 = vld [vmem:[#allocation76_spill] sm:$0xff] }
 0x553   :  { %3861 = vmatpush.bf16.msrb.mxu3 %v11210_v57  ;;  %v11215_v60 = vld [vmem:[#allocation77_spill] sm:$0xff] }
 0x554   :  { %v3576_v12 = vmax.f32 %v3575_v19, %v3144_v39 }
 0x555   :  { %v3162_v28 = vpop.f32.mrf.mxu0  ;;  %3904 = vmatpush.bf16.msra.mxu0 %v11209_v31  ;;  %v11217_v31 = vld [vmem:[#allocation80_spill] sm:$0xff] }
 0x556   :  { %3341 = vmatmul.bf16.gmra.mxu3 %v9616_v14  ;;  %v3163_v7 = vadd.f32 %v3162_v28, %v9919_v62  ;;  %v3211_v21 = vpop.f32.mrf.mxu1  ;;  %3953 = vmatpush.bf16.msra.mxu1 %v11211_v18 }
 0x558   :  { %v3212_v2 = vadd.f32 %v3211_v21, %v3163_v7  ;;  %v11218_v21 = vld [vmem:[#allocation81_spill] sm:$0xff] }
 0x559   :  { %v3146_v35 = vpop.f32.mrf.mxu3  ;;  %v3099_v34 = vpop.f32.mrf.mxu2  ;;  %3905 = vmatpush.bf16.msra.mxu0 %v11212_v41  ;;  %v11223_v41 = vld [vmem:[#allocation70_spill] sm:$0xff] }
 0x55a   :  { %v3147_v22 = vadd.f32 %v3146_v35, %v3098_v48  ;;  %v3100_v19 = vadd.f32 %v3099_v34, %v3051_v32  ;;  %3954 = vmatpush.bf16.msra.mxu1 %v11213_v38  ;;  %v11220_v35 = vld [vmem:[#allocation84_spill] sm:$0xff]  ;;  %v11221_v34 = vld [vmem:[#allocation63_spill] sm:$0xff] }
 0x55c   :  { %v3577_v55 = vmax.f32 %v3576_v12, %v3147_v22 }
 0x55d   :  { %v3165_v39 = vpop.f32.mrf.mxu0  ;;  %3906 = vmatpush.bf16.msra.mxu0 %v11214_v46 }
 0x55e   :  { %v3166_v49 = vadd.f32 %v3165_v39, %v9919_v62  ;;  %v3214_v56 = vpop.f32.mrf.mxu1  ;;  %3453 = vmatmul.bf16.vlgmr.msra.gmra.mxu2 %v9405_v42  ;;  %3955 = vmatpush.bf16.msra.mxu1 %v11215_v60  ;;  %v11219_v42 = vld [vmem:[#allocation66_spill] sm:$0xff]  ;;  %v11224_v39 = vld [vmem:[#allocation88_spill] sm:$0xff] }
 0x55f   :  { %4001 = vmatpush.bf16.msra.mxu2 %v11216_v33  ;;  %v11228_v33 = vld [vmem:[#allocation92_spill] sm:$0xff] }
 0x560   :  { %v3215_v48 = vadd.f32 %v3214_v56, %v3166_v49  ;;  %3360 = vmatmul.bf16.gmra.mxu0 %v9221_v4  ;;  %v11226_v49 = vld [vmem:[#allocation89_spill] sm:$0xff]  ;;  %v11227_v56 = vld [vmem:[#allocation74_spill] sm:$0xff] }
 0x561   :  { %v3148_v28 = vpop.f32.mrf.mxu3  ;;  %3409 = vmatmul.bf16.gmra.mxu1 %v9236_v63  ;;  %v3258_v12 = vpop.f32.mrf.mxu2  ;;  %3907 = vmatpush.bf16.msra.mxu0 %v11217_v31  ;;  %v11222_v63 = vld [vmem:[#allocation85_spill] sm:$0xff]  ;;  %v11230_v31 = vld [vmem:[#allocation78_spill] sm:$0xff] }
 0x562   :  { %v3149_v32 = vadd.f32 %v3148_v28, %v3100_v19  ;;  %v3259_v7 = vadd.f32 %v3258_v12, %v3210_v37  ;;  %3956 = vmatpush.bf16.msra.mxu1 %v11218_v21  ;;  %v11229_v12 = vld [vmem:[#allocation71_spill] sm:$0xff] }
 0x563   :  { %4002 = vmatpush.bf16.msra.mxu2 %v11219_v42 }
 0x564   :  { %v9953_v57 = vmax.f32 %v3577_v55, %v3149_v32 }
 0x565   :  { %v3167_v18 = vpop.f32.mrf.mxu0  ;;  %3908 = vmatpush.bf16.msra.mxu0 %v11220_v35 }
 0x566   :  { %3502 = vmatmul.bf16.vlgmr.msra.gmra.mxu3 %v9419_v0  ;;  %v3168_v4 = vadd.f32 %v3167_v18, %v9919_v62  ;;  %v3216_v22 = vpop.f32.mrf.mxu1  ;;  %3957 = vmatpush.bf16.msra.mxu1 %v11222_v63  ;;  %v11225_v0 = vld [vmem:[#allocation67_spill] sm:$0xff] }
 0x567   :  { %4050 = vmatpush.bf16.msra.mxu3 %v11221_v34  ;;  %4003 = vmatpush.bf16.msra.mxu2 %v11223_v41  ;;  %v11233_v34 = vld [vmem:[#allocation82_spill] sm:$0xff] }
 0x568   :  { %v3217_v37 = vadd.f32 %v3216_v22, %v3168_v4  ;;  %v11232_v4 = vld [vmem:[#allocation75_spill] sm:$0xff] }
 0x569   :  { %v3307_v19 = vpop.f32.mrf.mxu3  ;;  %v3260_v55 = vpop.f32.mrf.mxu2  ;;  %3909 = vmatpush.bf16.msra.mxu0 %v11224_v39 }
 0x56a   :  { %v3308_v38 = vadd.f32 %v3307_v19, %v3259_v7  ;;  %v3261_v46 = vadd.f32 %v3260_v55, %v3212_v2  ;;  %3958 = vmatpush.bf16.msra.mxu1 %v11226_v49  ;;  %v11231_v7 = vld [vmem:[#allocation93_spill] sm:$0xff]  ;;  %v11234_v19 = vld [vmem:[#allocation79_spill] sm:$0xff]  ;;  %v11235_v55 = vld [vmem:[#allocation86_spill] sm:$0xff] }
 0x56b   :  { %4051 = vmatpush.bf16.msra.mxu3 %v11225_v0  ;;  %4004 = vmatpush.bf16.msra.mxu2 %v11227_v56  ;;  %v11236_v0 = vld [vmem:[#allocation83_spill] sm:$0xff]  ;;  %v11237_v49 = vld [vmem:[#allocation90_spill] sm:$0xff] }
 0x56d   :  { %v3170_v60 = vpop.f32.mrf.mxu0  ;;  %3910 = vmatpush.bf16.msra.mxu0 %v11228_v33  ;;  %v11238_v33 = vld [vmem:[#allocation87_spill] sm:$0xff] }
 0x56e   :  { %v3171_v28 = vadd.f32 %v3170_v60, %v9919_v62  ;;  %v3219_v32 = vpop.f32.mrf.mxu1  ;;  %3458 = vmatmul.bf16.gmra.mxu2 %v9429_v8  ;;  %3959 = vmatpush.bf16.msra.mxu1 %v11231_v7  ;;  %v11239_v7 = vld [vmem:[#allocation91_spill] sm:$0xff] }
 0x56f   :  { %4052 = vmatpush.bf16.msra.mxu3 %v11229_v12  ;;  %4005 = vmatpush.bf16.msra.mxu2 %v11230_v31 }
 0x570   :  { %v3220_v2 = vadd.f32 %v3219_v32, %v3171_v28  ;;  %3365 = vmatmul.bf16.gmra.mxu0 %v9245_v6 }
 0x571   :  { %v3309_v21 = vpop.f32.mrf.mxu3  ;;  %3414 = vmatmul.bf16.gmra.mxu1 %v9260_v61  ;;  %v3263_v18 = vpop.f32.mrf.mxu2 }
 0x572   :  { %v3310_v42 = vadd.f32 %v3309_v21, %v3261_v46  ;;  %v3264_v35 = vadd.f32 %v3263_v18, %v3215_v48 }
 0x573   :  { %4053 = vmatpush.bf16.msra.mxu3 %v11232_v4  ;;  %4006 = vmatpush.bf16.msra.mxu2 %v11233_v34 }
 0x574   :  { %v3585_v22 = vmax.f32 %v3308_v38, %v3310_v42 }
 0x575   :  { %v3172_v8 = vpop.f32.mrf.mxu0 }
 0x576   :  { %3507 = vmatmul.bf16.gmra.mxu3 %v9443_v53  ;;  %v3173_v63 = vadd.f32 %v3172_v8, %v9919_v62  ;;  %v3221_v41 = vpop.f32.mrf.mxu1 }
 0x577   :  { %4054 = vmatpush.bf16.msra.mxu3 %v11234_v19  ;;  %4007 = vmatpush.bf16.msra.mxu2 %v11235_v55 }
 0x578   :  { %v3222_v6 = vadd.f32 %v3221_v41, %v3173_v63 }
 0x579   :  { %v3312_v39 = vpop.f32.mrf.mxu3  ;;  %v3265_v46 = vpop.f32.mrf.mxu2 }
 0x57a   :  { %v3313_v61 = vadd.f32 %v3312_v39, %v3264_v35  ;;  %v3266_v48 = vadd.f32 %v3265_v46, %v3217_v37 }
 0x57b   :  { %4055 = vmatpush.bf16.msra.mxu3 %v11236_v0  ;;  %4008 = vmatpush.bf16.msra.mxu2 %v11237_v49 }
 0x57c   :  { %v3586_v38 = vmax.f32 %v3585_v22, %v3313_v61 }
 0x57d   :  { %v3175_v56 = vpop.f32.mrf.mxu0 }
 0x57e   :  { %v3176_v53 = vadd.f32 %v3175_v56, %v9919_v62  ;;  %v3224_v60 = vpop.f32.mrf.mxu1  ;;  %3463 = vmatmul.bf16.gmra.mxu2 %v9453_v9 }
 0x57f   :  { %4056 = vmatpush.bf16.msra.mxu3 %v11238_v33 }
 0x580   :  { %v3225_v28 = vadd.f32 %v3224_v60, %v3176_v53  ;;  %3370 = vmatmul.bf16.gmra.mxu0 %v9269_v1 }
 0x581   :  { %v3314_v32 = vpop.f32.mrf.mxu3  ;;  %3419 = vmatmul.bf16.gmra.mxu1 %v9284_v29  ;;  %v3268_v37 = vpop.f32.mrf.mxu2 }
 0x582   :  { %v3315_v12 = vadd.f32 %v3314_v32, %v3266_v48  ;;  %v3269_v31 = vadd.f32 %v3268_v37, %v3220_v2 }
 0x583   :  { %4057 = vmatpush.bf16.msra.mxu3 %v11239_v7 }
 0x584   :  { %v3587_v21 = vmax.f32 %v3586_v38, %v3315_v12 }
 0x585   :  { %v3177_v42 = vpop.f32.mrf.mxu0 }
 0x586   :  { %3512 = vmatmul.bf16.gmra.mxu3 %v9469_v5  ;;  %v3178_v18 = vadd.f32 %v3177_v42, %v9919_v62  ;;  %v3226_v9 = vpop.f32.mrf.mxu1 }
 0x588   :  { %v3227_v35 = vadd.f32 %v3226_v9, %v3178_v18 }
 0x589   :  { %v3317_v4 = vpop.f32.mrf.mxu3  ;;  %v3270_v34 = vpop.f32.mrf.mxu2 }
 0x58a   :  { %v3318_v22 = vadd.f32 %v3317_v4, %v3269_v31  ;;  %v3271_v8 = vadd.f32 %v3270_v34, %v3222_v6 }
 0x58c   :  { %v3588_v1 = vmax.f32 %v3587_v21, %v3318_v22 }
 0x58d   :  { %v3180_v63 = vpop.f32.mrf.mxu0 }
 0x58e   :  { %v3181_v29 = vadd.f32 %v3180_v63, %v9919_v62  ;;  %v3229_v41 = vpop.f32.mrf.mxu1  ;;  %3468 = vmatmul.bf16.gmra.mxu2 %v9480_v11 }
 0x590   :  { %v3230_v2 = vadd.f32 %v3229_v41, %v3181_v29  ;;  %3375 = vmatmul.bf16.gmra.mxu0 %v9295_v3 }
 0x591   :  { %v3319_v19 = vpop.f32.mrf.mxu3  ;;  %3424 = vmatmul.bf16.gmra.mxu1 %v9490_v47  ;;  %v3273_v55 = vpop.f32.mrf.mxu2 }
 0x592   :  { %v3320_v5 = vadd.f32 %v3319_v19, %v3271_v8  ;;  %v3274_v39 = vadd.f32 %v3273_v55, %v3225_v28 }
 0x594   :  { %v3589_v61 = vmax.f32 %v3588_v1, %v3320_v5 }
 0x595   :  { %v3182_v6 = vpop.f32.mrf.mxu0 }
 0x596   :  { %3517 = vmatmul.bf16.gmra.mxu3 %v9499_v44  ;;  %v3183_v46 = vadd.f32 %v3182_v6, %v9919_v62  ;;  %v3231_v48 = vpop.f32.mrf.mxu1 }
 0x598   :  { %v3232_v0 = vadd.f32 %v3231_v48, %v3183_v46 }
 0x599   :  { %v3322_v38 = vpop.f32.mrf.mxu3  ;;  %v3275_v11 = vpop.f32.mrf.mxu2 }
 0x59a   :  { %v3323_v49 = vadd.f32 %v3322_v38, %v3274_v39  ;;  %v3276_v56 = vadd.f32 %v3275_v11, %v3227_v35 }
 0x59c   :  { %v3590_v53 = vmax.f32 %v3589_v61, %v3323_v49 }
 0x59d   :  { %v3185_v60 = vpop.f32.mrf.mxu0 }
 0x59e   :  { %v3186_v3 = vadd.f32 %v3185_v60, %v9919_v62  ;;  %v3234_v33 = vpop.f32.mrf.mxu1  ;;  %3473 = vmatmul.bf16.gmra.mxu2 %v9510_v15 }
 0x5a0   :  { %v3235_v47 = vadd.f32 %v3234_v33, %v3186_v3  ;;  %3380 = vmatmul.bf16.gmra.mxu0 %v9327_v26 }
 0x5a1   :  { %v3324_v28 = vpop.f32.mrf.mxu3  ;;  %3429 = vmatmul.bf16.gmra.mxu1 %v9520_v16  ;;  %v3278_v32 = vpop.f32.mrf.mxu2 }
 0x5a2   :  { %v3325_v44 = vadd.f32 %v3324_v28, %v3276_v56  ;;  %v3279_v12 = vadd.f32 %v3278_v32, %v3230_v2  ;;  %v11241_v28 = vld [vmem:[#allocation23_spill] sm:$0xff] }
 0x5a4   :  { %v3591_v37 = vmax.f32 %v3590_v53, %v3325_v44  ;;  %v3645_v44 = vunpack.c.l.b16 %v11241_v28 }
 0x5a5   :  { %v3187_v31 = vpop.f32.mrf.mxu0 }
 0x5a6   :  { %3522 = vmatmul.bf16.gmra.mxu3 %v9529_v24  ;;  %v3188_v7 = vadd.f32 %v3187_v31, %v9919_v62  ;;  %v3236_v21 = vpop.f32.mrf.mxu1  ;;  %v10019_v31 = vperm.slane %v9916_v27, 3 }
 0x5a8   :  { %v3237_v42 = vadd.f32 %v3236_v21, %v3188_v7 }
 0x5a9   :  { %v3327_v18 = vpop.f32.mrf.mxu3  ;;  %v3280_v15 = vpop.f32.mrf.mxu2 }
 0x5aa   :  { %v3328_v9 = vadd.f32 %v3327_v18, %v3279_v12  ;;  %v3281_v35 = vadd.f32 %v3280_v15, %v3232_v0 }
 0x5ac   :  { %v3592_v4 = vmax.f32 %v3591_v37, %v3328_v9 }
 0x5ad   :  { %v3190_v22 = vpop.f32.mrf.mxu0 }
 0x5ae   :  { %v3191_v26 = vadd.f32 %v3190_v22, %v9919_v62  ;;  %v3239_v34 = vpop.f32.mrf.mxu1  ;;  %3478 = vmatmul.bf16.gmra.mxu2 %v9545_v50  ;;  %v11242_v22 = vld [vmem:[#allocation97_spill] sm:$0xff] }
 0x5b0   :  { %v3240_v16 = vadd.f32 %v3239_v34, %v3191_v26  ;;  %3385 = vmatmul.bf16.gmra.mxu0 %v9355_v30  ;;  %v11243_v34 = vld [vmem:[#allocation98_spill] sm:$0xff] }
 0x5b1   :  { %v3329_v8 = vpop.f32.mrf.mxu3  ;;  %3434 = vmatmul.bf16.gmra.mxu1 %v9556_v52  ;;  %v3283_v1 = vpop.f32.mrf.mxu2 }
 0x5b2   :  { %v3330_v24 = vadd.f32 %v3329_v8, %v3281_v35  ;;  %v3284_v63 = vadd.f32 %v3283_v1, %v3235_v47  ;;  %v11240_v47 = vld [vmem:[#allocation22_spill] sm:$0xff] }
 0x5b3   :  { %v3644_v12 = vunpack.c.h.b16 %v11240_v47 }
 0x5b4   :  { %v3593_v29 = vmax.f32 %v3592_v4, %v3330_v24  ;;  %v11244_v24 = vld [vmem:[#allocation102_spill] sm:$0xff] }
 0x5b5   :  { %v3192_v41 = vpop.f32.mrf.mxu0 }
 0x5b6   :  { %3527 = vmatmul.bf16.gmra.mxu3 %v9565_v20  ;;  %v3193_v2 = vadd.f32 %v3192_v41, %v9919_v62  ;;  %v3241_v19 = vpop.f32.mrf.mxu1 }
 0x5b8   :  { %v3242_v5 = vadd.f32 %v3241_v19, %v3193_v2  ;;  %v11246_v2 = vld [vmem:[#allocation24_spill] sm:$0xff] }
 0x5b9   :  { %v3332_v55 = vpop.f32.mrf.mxu3  ;;  %v3285_v50 = vpop.f32.mrf.mxu2  ;;  %v3647_v19 = vunpack.c.l.b16 %v11246_v2 }
 0x5ba   :  { %v3333_v39 = vadd.f32 %v3332_v55, %v3284_v63  ;;  %v3286_v61 = vadd.f32 %v3285_v50, %v3237_v42  ;;  %v11245_v63 = vld [vmem:[#allocation103_spill] sm:$0xff] }
 0x5bc   :  { %v3594_v6 = vmax.f32 %v3593_v29, %v3333_v39 }
 0x5bd   :  { %v3195_v46 = vpop.f32.mrf.mxu0 }
 0x5be   :  { %v3196_v30 = vadd.f32 %v3195_v46, %v9919_v62  ;;  %v3244_v48 = vpop.f32.mrf.mxu1  ;;  %3483 = vmatmul.bf16.gmra.mxu2 %v9577_v17  ;;  %v3643_v17 = vunpack.c.l.b16 %v11240_v47 }
 0x5c0   :  { %v3245_v52 = vadd.f32 %v3244_v48, %v3196_v30  ;;  %3390 = vmatmul.bf16.gmra.mxu0 %v9376_v36  ;;  %v10021_v7 = vpack.c.b16 %v3645_v44, %v3643_v17  ;;  %v11249_v30 = vld [vmem:[#allocation107_spill] sm:$0xff]  ;;  %v11253_v17 = vld [vmem:[#allocation114_spill] sm:$0xff] }
 0x5c1   :  { %v3334_v0 = vpop.f32.mrf.mxu3  ;;  %3439 = vmatmul.bf16.gmra.mxu1 %v9582_v51  ;;  %v3288_v38 = vpop.f32.mrf.mxu2  ;;  %v3646_v51 = vunpack.c.h.b16 %v11241_v28  ;;  %v11254_v44 = vld [vmem:[#allocation115_spill] sm:$0xff] }
 0x5c2   :  { %v3335_v20 = vadd.f32 %v3334_v0, %v3286_v61  ;;  %v3289_v49 = vadd.f32 %v3288_v38, %v3240_v16  ;;  %v3648_v61 = vunpack.c.h.b16 %v11246_v2  ;;  %v11250_v38 = vld [vmem:[#allocation110_spill] sm:$0xff]  ;;  %v11265_v2 = vld [vmem:[#allocation108_spill] sm:$0xff] }
 0x5c3   :  { %v10023_v42 = vpack.c.b16 %v3646_v51, %v3644_v12  ;;  %v11256_v51 = vld [vmem:[#allocation118_spill] sm:$0xff] }
 0x5c4   :  { %v3595_v11 = vmax.f32 %v3594_v6, %v3335_v20  ;;  %v11248_v6 = vld [vmem:[#allocation106_spill] sm:$0xff] }
 0x5c5   :  { %v3197_v56 = vpop.f32.mrf.mxu0 }
 0x5c6   :  { %3532 = vmatmul.bf16.gmra.mxu3 %v9587_v59  ;;  %v3198_v53 = vadd.f32 %v3197_v56, %v9919_v62  ;;  %v3246_v60 = vpop.f32.mrf.mxu1  ;;  %v11251_v56 = vld [vmem:[#allocation111_spill] sm:$0xff] }
 0x5c8   :  { %v3247_v3 = vadd.f32 %v3246_v60, %v3198_v53  ;;  %v11252_v53 = vld [vmem:[#allocation94_spill] sm:$0xff] }
 0x5c9   :  { %v3337_v33 = vpop.f32.mrf.mxu3  ;;  %v3290_v36 = vpop.f32.mrf.mxu2 }
 0x5ca   :  { %v3338_v32 = vadd.f32 %v3337_v33, %v3289_v49  ;;  %v3291_v37 = vadd.f32 %v3290_v36, %v3242_v5  ;;  %v11247_v5 = vld [vmem:[#allocation25_spill] sm:$0xff]  ;;  %v11255_v36 = vld [vmem:[#allocation100_spill] sm:$0xff] }
 0x5cb   :  { %v3649_v55 = vunpack.c.l.b16 %v11247_v5 }
 0x5cc   :  { %v3596_v59 = vmax.f32 %v3595_v11, %v3338_v32 }
 0x5cd   :  { %v3356_v21 = vpop.f32.mrf.mxu0 }
 0x5ce   :  { %v3357_v18 = vadd.f32 %v3356_v21, %v10019_v31  ;;  %v3405_v9 = vpop.f32.mrf.mxu1  ;;  %3488 = vmatmul.bf16.gmra.mxu2 %v9608_v45  ;;  %v11257_v21 = vld [vmem:[#allocation96_spill] sm:$0xff] }
 0x5d0   :  { %v3406_v15 = vadd.f32 %v3405_v9, %v3357_v18  ;;  %3715 = vmatmul.bf16.vlgmr.msrb.gmra.mxu0 %v10021_v7  ;;  %v11258_v18 = vld [vmem:[#allocation119_spill] sm:$0xff]  ;;  %v11259_v9 = vld [vmem:[#allocation104_spill] sm:$0xff] }
 0x5d1   :  { %v3339_v35 = vpop.f32.mrf.mxu3  ;;  %3764 = vmatmul.bf16.vlgmr.msrb.gmra.mxu1 %v10023_v42  ;;  %v3293_v27 = vpop.f32.mrf.mxu2  ;;  %4195 = vmatpush.bf16.msrb.mxu0 %v11242_v22  ;;  %v11261_v22 = vld [vmem:[#allocation27_spill] sm:$0xff] }
 0x5d2   :  { %v3340_v4 = vadd.f32 %v3339_v35, %v3291_v37  ;;  %v3294_v26 = vadd.f32 %v3293_v27, %v3245_v52  ;;  %4244 = vmatpush.bf16.msrb.mxu1 %v11243_v34  ;;  %v10041_v52 = vpack.c.b16 %v3649_v55, %v3647_v19 }
 0x5d4   :  { %v3597_v16 = vmax.f32 %v3596_v59, %v3340_v4  ;;  %v11260_v4 = vld [vmem:[#allocation26_spill] sm:$0xff] }
 0x5d5   :  { %v3358_v8 = vpop.f32.mrf.mxu0  ;;  %4196 = vmatpush.bf16.msrb.mxu0 %v11244_v24  ;;  %v3651_v27 = vunpack.c.l.b16 %v11260_v4  ;;  %v3654_v24 = vunpack.c.h.b16 %v11261_v22 }
 0x5d6   :  { %3537 = vmatmul.bf16.gmra.mxu3 %v9616_v14  ;;  %v3359_v45 = vadd.f32 %v3358_v8, %v10019_v31  ;;  %v3407_v1 = vpop.f32.mrf.mxu1  ;;  %4245 = vmatpush.bf16.msrb.mxu1 %v11245_v63  ;;  %v3650_v14 = vunpack.c.h.b16 %v11247_v5  ;;  %v3652_v8 = vunpack.c.h.b16 %v11260_v4  ;;  %v11263_v63 = vld [vmem:[#allocation101_spill] sm:$0xff] }
 0x5d8   :  { %v3408_v29 = vadd.f32 %v3407_v1, %v3359_v45  ;;  %v10043_v20 = vpack.c.b16 %v3650_v14, %v3648_v61  ;;  %v11262_v45 = vld [vmem:[#allocation121_spill] sm:$0xff]  ;;  %v10073_v55 = vpack.c.b16 %v3654_v24, %v3652_v8  ;;  %v11278_v24 = vld [vmem:[#allocation122_spill] sm:$0xff] }
 0x5d9   :  { %v3342_v41 = vpop.f32.mrf.mxu3  ;;  %v3295_v50 = vpop.f32.mrf.mxu2  ;;  %4197 = vmatpush.bf16.msrb.mxu0 %v11248_v6  ;;  %v11267_v14 = vld [vmem:[#allocation105_spill] sm:$0xff] }
 0x5da   :  { %v3343_v39 = vadd.f32 %v3342_v41, %v3294_v26  ;;  %v3296_v46 = vadd.f32 %v3295_v50, %v3247_v3  ;;  %4246 = vmatpush.bf16.msrb.mxu1 %v11249_v30  ;;  %v3653_v26 = vunpack.c.l.b16 %v11261_v22  ;;  %v11264_v41 = vld [vmem:[#allocation123_spill] sm:$0xff]  ;;  %v11269_v6 = vld [vmem:[#allocation125_spill] sm:$0xff] }
 0x5dc   :  { %v3598_v48 = vmax.f32 %v3597_v16, %v3343_v39  ;;  %v10071_v19 = vpack.c.b16 %v3653_v26, %v3651_v27  ;;  %v11266_v39 = vld [vmem:[#allocation124_spill] sm:$0xff]  ;;  %v11277_v27 = vld [vmem:[#allocation126_spill] sm:$0xff] }
 0x5dd   :  { %v3361_v0 = vpop.f32.mrf.mxu0  ;;  %4198 = vmatpush.bf16.msrb.mxu0 %v11250_v38 }
 0x5de   :  { %v3362_v49 = vadd.f32 %v3361_v0, %v10019_v31  ;;  %v3410_v11 = vpop.f32.mrf.mxu1  ;;  %3813 = vmatmul.bf16.vlgmr.msrb.gmra.mxu2 %v10021_v7  ;;  %4247 = vmatpush.bf16.msrb.mxu1 %v11251_v56  ;;  %v11271_v56 = vld [vmem:[#allocation116_spill] sm:$0xff] }
 0x5df   :  { %4293 = vmatpush.bf16.msrb.mxu2 %v11252_v53 }
 0x5e0   :  { %v3411_v60 = vadd.f32 %v3410_v11, %v3362_v49  ;;  %3720 = vmatmul.bf16.gmra.mxu0 %v10041_v52  ;;  %v11270_v49 = vld [vmem:[#allocation109_spill] sm:$0xff] }
 0x5e1   :  { %v3344_v3 = vpop.f32.mrf.mxu3  ;;  %3769 = vmatmul.bf16.gmra.mxu1 %v10043_v20  ;;  %v3454_v47 = vpop.f32.mrf.mxu2  ;;  %4199 = vmatpush.bf16.msrb.mxu0 %v11253_v17  ;;  %v11273_v17 = vld [vmem:[#allocation120_spill] sm:$0xff] }
 0x5e2   :  { %v3345_v33 = vadd.f32 %v3344_v3, %v3296_v46  ;;  %v3455_v28 = vadd.f32 %v3454_v47, %v3406_v15  ;;  %4248 = vmatpush.bf16.msrb.mxu1 %v11254_v44  ;;  %v11272_v47 = vld [vmem:[#allocation113_spill] sm:$0xff] }
 0x5e3   :  { %4294 = vmatpush.bf16.msrb.mxu2 %v11255_v36  ;;  %v11274_v36 = vld [vmem:[#allocation28_spill] sm:$0xff] }
 0x5e4   :  { %v10054_v32 = vmax.f32 %v3598_v48, %v3345_v33 }
 0x5e5   :  { %v3363_v12 = vpop.f32.mrf.mxu0  ;;  %4200 = vmatpush.bf16.msrb.mxu0 %v11256_v51 }
 0x5e6   :  { %3862 = vmatmul.bf16.vlgmr.msrb.gmra.mxu3 %v10023_v42  ;;  %v3364_v37 = vadd.f32 %v3363_v12, %v10019_v31  ;;  %v3412_v59 = vpop.f32.mrf.mxu1  ;;  %4249 = vmatpush.bf16.msrb.mxu1 %v11258_v18  ;;  %v3655_v12 = vunpack.c.l.b16 %v11274_v36 }
 0x5e7   :  { %4342 = vmatpush.bf16.msrb.mxu3 %v11257_v21  ;;  %4295 = vmatpush.bf16.msrb.mxu2 %v11259_v9  ;;  %v3656_v21 = vunpack.c.h.b16 %v11274_v36 }
 0x5e8   :  { %v3413_v15 = vadd.f32 %v3412_v59, %v3364_v37 }
 0x5e9   :  { %v3503_v35 = vpop.f32.mrf.mxu3  ;;  %v3456_v16 = vpop.f32.mrf.mxu2  ;;  %4201 = vmatpush.bf16.msrb.mxu0 %v11262_v45 }
 0x5ea   :  { %v3504_v34 = vadd.f32 %v3503_v35, %v3455_v28  ;;  %v3457_v1 = vadd.f32 %v3456_v16, %v3408_v29  ;;  %4250 = vmatpush.bf16.msrb.mxu1 %v11264_v41  ;;  %v11268_v29 = vld [vmem:[#allocation112_spill] sm:$0xff]  ;;  %v11276_v35 = vld [vmem:[#allocation117_spill] sm:$0xff] }
 0x5eb   :  { %4343 = vmatpush.bf16.msrb.mxu3 %v11263_v63  ;;  %4296 = vmatpush.bf16.msrb.mxu2 %v11265_v2  ;;  %v11279_v2 = vld [vmem:[#allocation127_spill] sm:$0xff] }
 0x5ed   :  { %v3366_v5 = vpop.f32.mrf.mxu0  ;;  %4202 = vmatpush.bf16.msrb.mxu0 %v11266_v39 }
 0x5ee   :  { %v3367_v50 = vadd.f32 %v3366_v5, %v10019_v31  ;;  %v3415_v61 = vpop.f32.mrf.mxu1  ;;  %3818 = vmatmul.bf16.gmra.mxu2 %v10041_v52  ;;  %4251 = vmatpush.bf16.msrb.mxu1 %v11269_v6  ;;  %v11280_v6 = vld [vmem:[#allocation30_spill] sm:$0xff] }
 0x5ef   :  { %4344 = vmatpush.bf16.msrb.mxu3 %v11267_v14  ;;  %4297 = vmatpush.bf16.msrb.mxu2 %v11268_v29 }
 0x5f0   :  { %v3416_v46 = vadd.f32 %v3415_v61, %v3367_v50  ;;  %3725 = vmatmul.bf16.gmra.mxu0 %v10071_v19 }
 0x5f1   :  { %v3505_v30 = vpop.f32.mrf.mxu3  ;;  %3774 = vmatmul.bf16.gmra.mxu1 %v10073_v55  ;;  %v3459_v0 = vpop.f32.mrf.mxu2 }
 0x5f2   :  { %v3506_v48 = vadd.f32 %v3505_v30, %v3457_v1  ;;  %v3460_v38 = vadd.f32 %v3459_v0, %v3411_v60  ;;  %v11275_v60 = vld [vmem:[#allocation29_spill] sm:$0xff]  ;;  %v3659_v30 = vunpack.c.l.b16 %v11280_v6 }
 0x5f3   :  { %4345 = vmatpush.bf16.msrb.mxu3 %v11270_v49  ;;  %4298 = vmatpush.bf16.msrb.mxu2 %v11271_v56  ;;  %v3657_v51 = vunpack.c.l.b16 %v11275_v60  ;;  %v3658_v18 = vunpack.c.h.b16 %v11275_v60 }
 0x5f4   :  { %v3606_v11 = vmax.f32 %v3504_v34, %v3506_v48  ;;  %v11281_v48 = vld [vmem:[#allocation31_spill] sm:$0xff] }
 0x5f5   :  { %v3368_v53 = vpop.f32.mrf.mxu0  ;;  %v10095_v22 = vpack.c.b16 %v3657_v51, %v3655_v12  ;;  %v10097_v34 = vpack.c.b16 %v3658_v18, %v3656_v21  ;;  %v3661_v0 = vunpack.c.l.b16 %v11281_v48 }
 0x5f6   :  { %3867 = vmatmul.bf16.gmra.mxu3 %v10043_v20  ;;  %v3369_v3 = vadd.f32 %v3368_v53, %v10019_v31  ;;  %v3417_v33 = vpop.f32.mrf.mxu1 }
 0x5f7   :  { %4346 = vmatpush.bf16.msrb.mxu3 %v11272_v47  ;;  %4299 = vmatpush.bf16.msrb.mxu2 %v11273_v17 }
 0x5f8   :  { %v3418_v28 = vadd.f32 %v3417_v33, %v3369_v3  ;;  %v10111_v3 = vpack.c.b16 %v3661_v0, %v3659_v30 }
 0x5f9   :  { %v3508_v44 = vpop.f32.mrf.mxu3  ;;  %v3461_v59 = vpop.f32.mrf.mxu2 }
 0x5fa   :  { %v3509_v37 = vadd.f32 %v3508_v44, %v3460_v38  ;;  %v3462_v9 = vadd.f32 %v3461_v59, %v3413_v15 }
 0x5fb   :  { %4347 = vmatpush.bf16.msrb.mxu3 %v11276_v35  ;;  %4300 = vmatpush.bf16.msrb.mxu2 %v11277_v27 }
 0x5fc   :  { %v3607_v4 = vmax.f32 %v3606_v11, %v3509_v37  ;;  %v3660_v11 = vunpack.c.h.b16 %v11280_v6 }
 0x5fd   :  { %v3371_v26 = vpop.f32.mrf.mxu0 }
 0x5fe   :  { %v3372_v16 = vadd.f32 %v3371_v26, %v10019_v31  ;;  %v3420_v8 = vpop.f32.mrf.mxu1  ;;  %3823 = vmatmul.bf16.gmra.mxu2 %v10071_v19  ;;  %v11283_v26 = vld [vmem:[#allocation33_spill] sm:$0xff] }
 0x5ff   :  { %4348 = vmatpush.bf16.msrb.mxu3 %v11278_v24 }
 0x600   :  { %v3421_v45 = vadd.f32 %v3420_v8, %v3372_v16  ;;  %3730 = vmatmul.bf16.gmra.mxu0 %v10095_v22  ;;  %v3665_v16 = vunpack.c.l.b16 %v11283_v26 }
 0x601   :  { %v3510_v1 = vpop.f32.mrf.mxu3  ;;  %3779 = vmatmul.bf16.gmra.mxu1 %v10097_v34  ;;  %v3464_v63 = vpop.f32.mrf.mxu2 }
 0x602   :  { %v3511_v15 = vadd.f32 %v3510_v1, %v3462_v9  ;;  %v3465_v41 = vadd.f32 %v3464_v63, %v3416_v46  ;;  %v3662_v46 = vunpack.c.h.b16 %v11281_v48 }
 0x603   :  { %4349 = vmatpush.bf16.msrb.mxu3 %v11279_v2 }
 0x604   :  { %v3608_v5 = vmax.f32 %v3607_v4, %v3511_v15  ;;  %v10113_v47 = vpack.c.b16 %v3662_v46, %v3660_v11  ;;  %v11282_v4 = vld [vmem:[#allocation32_spill] sm:$0xff]  ;;  %v3666_v15 = vunpack.c.h.b16 %v11283_v26 }
 0x605   :  { %v3373_v39 = vpop.f32.mrf.mxu0  ;;  %v3663_v27 = vunpack.c.l.b16 %v11282_v4  ;;  %v3664_v1 = vunpack.c.h.b16 %v11282_v4 }
 0x606   :  { %3872 = vmatmul.bf16.gmra.mxu3 %v10073_v55  ;;  %v3374_v50 = vadd.f32 %v3373_v39, %v10019_v31  ;;  %v3422_v61 = vpop.f32.mrf.mxu1 }
 0x608   :  { %v3423_v14 = vadd.f32 %v3422_v61, %v3374_v50 }
 0x609   :  { %v3513_v29 = vpop.f32.mrf.mxu3  ;;  %v3466_v49 = vpop.f32.mrf.mxu2 }
 0x60a   :  { %v3514_v38 = vadd.f32 %v3513_v29, %v3465_v41  ;;  %v3467_v56 = vadd.f32 %v3466_v49, %v3418_v28  ;;  %v10125_v41 = vpack.c.b16 %v3665_v16, %v3663_v27 }
 0x60c   :  { %v3609_v53 = vmax.f32 %v3608_v5, %v3514_v38  ;;  %v10127_v5 = vpack.c.b16 %v3666_v15, %v3664_v1 }
 0x60d   :  { %v3376_v33 = vpop.f32.mrf.mxu0 }
 0x60e   :  { %v3377_v17 = vadd.f32 %v3376_v33, %v10019_v31  ;;  %v3425_v44 = vpop.f32.mrf.mxu1  ;;  %3828 = vmatmul.bf16.gmra.mxu2 %v10095_v22  ;;  %v11285_v33 = vld [vmem:[#allocation35_spill] sm:$0xff] }
 0x610   :  { %v3426_v36 = vadd.f32 %v3425_v44, %v3377_v17  ;;  %3735 = vmatmul.bf16.gmra.mxu0 %v10111_v3  ;;  %v3669_v17 = vunpack.c.l.b16 %v11285_v33 }
 0x611   :  { %v3515_v12 = vpop.f32.mrf.mxu3  ;;  %3784 = vmatmul.bf16.gmra.mxu1 %v10113_v47  ;;  %v3469_v51 = vpop.f32.mrf.mxu2 }
 0x612   :  { %v3516_v60 = vadd.f32 %v3515_v12, %v3467_v56  ;;  %v3470_v28 = vadd.f32 %v3469_v51, %v3421_v45  ;;  %v11284_v56 = vld [vmem:[#allocation34_spill] sm:$0xff]  ;;  %v3670_v51 = vunpack.c.h.b16 %v11285_v33 }
 0x614   :  { %v3610_v37 = vmax.f32 %v3609_v53, %v3516_v60  ;;  %v3667_v53 = vunpack.c.l.b16 %v11284_v56  ;;  %v3668_v60 = vunpack.c.h.b16 %v11284_v56 }
 0x615   :  { %v3378_v59 = vpop.f32.mrf.mxu0 }
 0x616   :  { %3877 = vmatmul.bf16.gmra.mxu3 %v10097_v34  ;;  %v3379_v21 = vadd.f32 %v3378_v59, %v10019_v31  ;;  %v3427_v18 = vpop.f32.mrf.mxu1 }
 0x618   :  { %v3428_v9 = vadd.f32 %v3427_v18, %v3379_v21  ;;  %v10141_v21 = vpack.c.b16 %v3670_v51, %v3668_v60 }
 0x619   :  { %v3518_v35 = vpop.f32.mrf.mxu3  ;;  %v3471_v24 = vpop.f32.mrf.mxu2 }
 0x61a   :  { %v3519_v8 = vadd.f32 %v3518_v35, %v3470_v28  ;;  %v3472_v45 = vadd.f32 %v3471_v24, %v3423_v14 }
 0x61c   :  { %v3611_v63 = vmax.f32 %v3610_v37, %v3519_v8  ;;  %v10139_v37 = vpack.c.b16 %v3669_v17, %v3667_v53 }
 0x61d   :  { %v3381_v2 = vpop.f32.mrf.mxu0 }
 0x61e   :  { %v3382_v39 = vadd.f32 %v3381_v2, %v10019_v31  ;;  %v3430_v50 = vpop.f32.mrf.mxu1  ;;  %3833 = vmatmul.bf16.gmra.mxu2 %v10111_v3  ;;  %v11286_v2 = vld [vmem:[#allocation36_spill] sm:$0xff] }
 0x620   :  { %v3431_v61 = vadd.f32 %v3430_v50, %v3382_v39  ;;  %3740 = vmatmul.bf16.gmra.mxu0 %v10125_v41  ;;  %v3671_v39 = vunpack.c.l.b16 %v11286_v2  ;;  %v11287_v50 = vld [vmem:[#allocation37_spill] sm:$0xff] }
 0x621   :  { %v3520_v29 = vpop.f32.mrf.mxu3  ;;  %3789 = vmatmul.bf16.gmra.mxu1 %v10127_v5  ;;  %v3474_v30 = vpop.f32.mrf.mxu2 }
 0x622   :  { %v3521_v6 = vadd.f32 %v3520_v29, %v3472_v45  ;;  %v3475_v14 = vadd.f32 %v3474_v30, %v3426_v36  ;;  %v3673_v29 = vunpack.c.l.b16 %v11287_v50 }
 0x624   :  { %v3612_v48 = vmax.f32 %v3611_v63, %v3521_v6 }
 0x625   :  { %v3383_v0 = vpop.f32.mrf.mxu0 }
 0x626   :  { %3882 = vmatmul.bf16.gmra.mxu3 %v10113_v47  ;;  %v3384_v38 = vadd.f32 %v3383_v0, %v10019_v31  ;;  %v3432_v49 = vpop.f32.mrf.mxu1 }
 0x628   :  { %v3433_v11 = vadd.f32 %v3432_v49, %v3384_v38  ;;  %v10153_v38 = vpack.c.b16 %v3673_v29, %v3671_v39  ;;  %v11289_v39 = vld [vmem:[#allocation130_spill] sm:$0xff]  ;;  %v11290_v29 = vld [vmem:[#allocation132_spill] sm:$0xff] }
 0x629   :  { %v3523_v46 = vpop.f32.mrf.mxu3  ;;  %v3476_v12 = vpop.f32.mrf.mxu2 }
 0x62a   :  { %v3524_v44 = vadd.f32 %v3523_v46, %v3475_v14  ;;  %v3477_v36 = vadd.f32 %v3476_v12, %v3428_v9  ;;  %v3672_v14 = vunpack.c.h.b16 %v11286_v2 }
 0x62c   :  { %v3613_v28 = vmax.f32 %v3612_v48, %v3524_v44  ;;  %v3674_v48 = vunpack.c.h.b16 %v11287_v50 }
 0x62d   :  { %v3386_v59 = vpop.f32.mrf.mxu0 }
 0x62e   :  { %v3387_v18 = vadd.f32 %v3386_v59, %v10019_v31  ;;  %v3435_v35 = vpop.f32.mrf.mxu1  ;;  %3838 = vmatmul.bf16.gmra.mxu2 %v10125_v41  ;;  %v10155_v46 = vpack.c.b16 %v3674_v48, %v3672_v14 }
 0x630   :  { %v3436_v4 = vadd.f32 %v3435_v35, %v3387_v18  ;;  %3745 = vmatmul.bf16.gmra.mxu0 %v10139_v37 }
 0x631   :  { %v3525_v27 = vpop.f32.mrf.mxu3  ;;  %3794 = vmatmul.bf16.gmra.mxu1 %v10141_v21  ;;  %v3479_v16 = vpop.f32.mrf.mxu2 }
 0x632   :  { %v3526_v26 = vadd.f32 %v3525_v27, %v3477_v36  ;;  %v3480_v9 = vadd.f32 %v3479_v16, %v3431_v61 }
 0x634   :  { %v3614_v8 = vmax.f32 %v3613_v28, %v3526_v26 }
 0x635   :  { %v3388_v24 = vpop.f32.mrf.mxu0 }
 0x636   :  { %3887 = vmatmul.bf16.gmra.mxu3 %v10127_v5  ;;  %v3389_v1 = vadd.f32 %v3388_v24, %v10019_v31  ;;  %v3437_v15 = vpop.f32.mrf.mxu1 }
 0x638   :  { %v3438_v45 = vadd.f32 %v3437_v15, %v3389_v1 }
 0x639   :  { %v3528_v63 = vpop.f32.mrf.mxu3  ;;  %v3481_v30 = vpop.f32.mrf.mxu2 }
 0x63a   :  { %v3529_v6 = vadd.f32 %v3528_v63, %v3480_v9  ;;  %v3482_v61 = vadd.f32 %v3481_v30, %v3433_v11  ;;  %v11291_v30 = vld [vmem:[#allocation136_spill] sm:$0xff] }
 0x63c   :  { %v3615_v0 = vmax.f32 %v3614_v8, %v3529_v6  ;;  %v11288_v8 = vld [vmem:[#allocation95_spill] sm:$0xff] }
 0x63d   :  { %v3391_v49 = vpop.f32.mrf.mxu0 }
 0x63e   :  { %v3392_v56 = vadd.f32 %v3391_v49, %v10019_v31  ;;  %v3440_v53 = vpop.f32.mrf.mxu1  ;;  %3843 = vmatmul.bf16.gmra.mxu2 %v10139_v37 }
 0x640   :  { %v3441_v33 = vadd.f32 %v3440_v53, %v3392_v56  ;;  %3750 = vmatmul.bf16.gmra.mxu0 %v10153_v38 }
 0x641   :  { %v3530_v17 = vpop.f32.mrf.mxu3  ;;  %3799 = vmatmul.bf16.gmra.mxu1 %v10155_v46  ;;  %v3484_v12 = vpop.f32.mrf.mxu2 }
 0x642   :  { %v3531_v44 = vadd.f32 %v3530_v17, %v3482_v61  ;;  %v3485_v11 = vadd.f32 %v3484_v12, %v3436_v4  ;;  %v11292_v61 = vld [vmem:[#allocation137_spill] sm:$0xff] }
 0x644   :  { %v3616_v60 = vmax.f32 %v3615_v0, %v3531_v44  ;;  %v11293_v44 = vld [vmem:[#allocation140_spill] sm:$0xff] }
 0x645   :  { %v3393_v51 = vpop.f32.mrf.mxu0 }
 0x646   :  { %3892 = vmatmul.bf16.gmra.mxu3 %v10141_v21  ;;  %v3394_v36 = vadd.f32 %v3393_v51, %v10019_v31  ;;  %v3442_v28 = vpop.f32.mrf.mxu1 }
 0x648   :  { %v3443_v59 = vadd.f32 %v3442_v28, %v3394_v36  ;;  %v11295_v28 = vld [vmem:[#allocation144_spill] sm:$0xff] }
 0x649   :  { %v3533_v18 = vpop.f32.mrf.mxu3  ;;  %v3486_v27 = vpop.f32.mrf.mxu2 }
 0x64a   :  { %v3534_v35 = vadd.f32 %v3533_v18, %v3485_v11  ;;  %v3487_v26 = vadd.f32 %v3486_v27, %v3438_v45  ;;  %v11294_v11 = vld [vmem:[#allocation141_spill] sm:$0xff] }
 0x64b   :  { %v11296_v27 = vld [vmem:[#allocation145_spill] sm:$0xff] }
 0x64c   :  { %v3617_v16 = vmax.f32 %v3616_v60, %v3534_v35 }
 0x64d   :  { %v3716_v9 = vpop.f32.mrf.mxu0 }
 0x64e   :  { %v3717_v24 = vadd.f32 %v3716_v9, %v11288_v8  ;;  %v3765_v1 = vpop.f32.mrf.mxu1  ;;  %3848 = vmatmul.bf16.gmra.mxu2 %v10153_v38 }
 0x650   :  { %v3766_v4 = vadd.f32 %v3765_v1, %v3717_v24  ;;  %3911 = vmatmul.bf16.vlgmr.msra.gmra.mxu0 %v10021_v7  ;;  %v11298_v1 = vld [vmem:[#allocation148_spill] sm:$0xff] }
 0x651   :  { %v3535_v15 = vpop.f32.mrf.mxu3  ;;  %3960 = vmatmul.bf16.vlgmr.msra.gmra.mxu1 %v10023_v42  ;;  %v3489_v2 = vpop.f32.mrf.mxu2  ;;  %4391 = vmatpush.bf16.msra.mxu0 %v11289_v39 }
 0x652   :  { %v3536_v63 = vadd.f32 %v3535_v15, %v3487_v26  ;;  %v3490_v50 = vadd.f32 %v3489_v2, %v3441_v33  ;;  %4440 = vmatpush.bf16.msra.mxu1 %v11290_v29  ;;  %v4099_v0 = vmax.f32 %v3766_v4, 0.0  ;;  %v11297_v26 = vld [vmem:[#allocation128_spill] sm:$0xff]  ;;  %v11299_v4 = vld [vmem:[#allocation149_spill] sm:$0xff] }
 0x654   :  { %v3618_v45 = vmax.f32 %v3617_v16, %v3536_v63  ;;  %v11301_v63 = vld [vmem:[#allocation133_spill] sm:$0xff] }
 0x655   :  { %v3718_v6 = vpop.f32.mrf.mxu0  ;;  %4392 = vmatpush.bf16.msra.mxu0 %v11291_v30  ;;  %v11305_v30 = vld [vmem:[#allocation153_spill] sm:$0xff] }
 0x656   :  { %3897 = vmatmul.bf16.gmra.mxu3 %v10155_v46  ;;  %v3719_v14 = vadd.f32 %v3718_v6, %v11288_v8  ;;  %v3767_v48 = vpop.f32.mrf.mxu1  ;;  %4441 = vmatpush.bf16.msra.mxu1 %v11292_v61  ;;  %v11304_v6 = vld [vmem:[#allocation129_spill] sm:$0xff] }
 0x658   :  { %v3768_v49 = vadd.f32 %v3767_v48, %v3719_v14  ;;  %v11306_v14 = vld [vmem:[#allocation138_spill] sm:$0xff] }
 0x659   :  { %v3538_v56 = vpop.f32.mrf.mxu3  ;;  %v3491_v17 = vpop.f32.mrf.mxu2  ;;  %4393 = vmatpush.bf16.msra.mxu0 %v11293_v44  ;;  %v11309_v44 = vld [vmem:[#allocation157_spill] sm:$0xff] }
 0x65a   :  { %v3539_v53 = vadd.f32 %v3538_v56, %v3490_v50  ;;  %v4103_v33 = vmax.f32 %v3768_v49, 0.0  ;;  %v3492_v12 = vadd.f32 %v3491_v17, %v3443_v59  ;;  %4442 = vmatpush.bf16.msra.mxu1 %v11294_v11  ;;  %v11303_v50 = vld [vmem:[#allocation152_spill] sm:$0xff]  ;;  %v11308_v17 = vld [vmem:[#allocation135_spill] sm:$0xff] }
 0x65c   :  { %v3619_v60 = vmax.f32 %v3618_v45, %v3539_v53  ;;  %v10175_v51 = vpack.c.bf16 %v4103_v33, %v4099_v0  ;;  %v11307_v53 = vld [vmem:[#allocation155_spill] sm:$0xff]  ;;  %v11310_v33 = vld [vmem:[#allocation142_spill] sm:$0xff] }
 0x65d   :  { %v3721_v36 = vpop.f32.mrf.mxu0  ;;  %4394 = vmatpush.bf16.msra.mxu0 %v11295_v28 }
 0x65e   :  { %v3722_v18 = vadd.f32 %v3721_v36, %v11288_v8  ;;  %v3770_v35 = vpop.f32.mrf.mxu1  ;;  %4009 = vmatmul.bf16.vlgmr.msra.gmra.mxu2 %v10021_v7  ;;  %4443 = vmatpush.bf16.msra.mxu1 %v11296_v27  ;;  %v11302_v7 = vld [vmem:[#allocation99_spill] sm:$0xff]  ;;  %v11313_v27 = vld [vmem:[#allocation146_spill] sm:$0xff] }
 0x65f   :  { %4489 = vmatpush.bf16.msra.mxu2 %v11297_v26  ;;  %v11314_v26 = vld [vmem:[#allocation159_spill] sm:$0xff] }
 0x660   :  { %v3771_v16 = vadd.f32 %v3770_v35, %v3722_v18  ;;  %3916 = vmatmul.bf16.gmra.mxu0 %v10041_v52  ;;  %v11312_v18 = vld [vmem:[#allocation139_spill] sm:$0xff] }
 0x661   :  { %v3540_v9 = vpop.f32.mrf.mxu3  ;;  %3965 = vmatmul.bf16.gmra.mxu1 %v10043_v20  ;;  %v3814_v24 = vpop.f32.mrf.mxu2  ;;  %4395 = vmatpush.bf16.msra.mxu0 %v11298_v1  ;;  %v11315_v1 = vld [vmem:[#allocation143_spill] sm:$0xff] }
 0x662   :  { %v3541_v59 = vadd.f32 %v3540_v9, %v3492_v12  ;;  %4444 = vmatpush.bf16.msra.mxu1 %v11299_v4  ;;  %v3815_v2 = vadd.f32 %v3814_v24, %v11302_v7  ;;  %v4107_v48 = vmax.f32 %v3771_v16, 0.0 }
 0x663   :  { %4490 = vmatpush.bf16.msra.mxu2 %v11301_v63  ;;  %v11316_v63 = vld [vmem:[#allocation150_spill] sm:$0xff] }
 0x664   :  { %v10186_v15 = vmax.f32 %v3619_v60, %v3541_v59  ;;  %v11311_v60 = vld [vmem:[#allocation158_spill] sm:$0xff] }
 0x665   :  { %v3723_v39 = vpop.f32.mrf.mxu0  ;;  %4396 = vmatpush.bf16.msra.mxu0 %v11303_v50 }
 0x666   :  { %11300 = vst [vmem:[#allocation38_spill] sm:$0xff] %v10186_v15  ;;  %4058 = vmatmul.bf16.vlgmr.msra.gmra.mxu3 %v10023_v42  ;;  %v3724_v29 = vadd.f32 %v3723_v39, %v11288_v8  ;;  %v3772_v45 = vpop.f32.mrf.mxu1  ;;  %4445 = vmatpush.bf16.msra.mxu1 %v11305_v30  ;;  %v11318_v30 = vld [vmem:[#allocation154_spill] sm:$0xff] }
 0x667   :  { %4538 = vmatpush.bf16.msra.mxu3 %v11304_v6  ;;  %4491 = vmatpush.bf16.msra.mxu2 %v11306_v14  ;;  %v11317_v6 = vld [vmem:[#allocation147_spill] sm:$0xff] }
 0x668   :  { %v3773_v61 = vadd.f32 %v3772_v45, %v3724_v29 }
 0x669   :  { %v3863_v0 = vpop.f32.mrf.mxu3  ;;  %v3816_v56 = vpop.f32.mrf.mxu2  ;;  %4397 = vmatpush.bf16.msra.mxu0 %v11307_v53  ;;  %v11319_v53 = vld [vmem:[#allocation151_spill] sm:$0xff] }
 0x66a   :  { %v3864_v49 = vadd.f32 %v3863_v0, %v3815_v2  ;;  %v4111_v42 = vmax.f32 %v3773_v61, 0.0  ;;  %4446 = vmatpush.bf16.msra.mxu1 %v11309_v44  ;;  %v3817_v35 = vadd.f32 %v3816_v56, %v11302_v7 }
 0x66b   :  { %4539 = vmatpush.bf16.msra.mxu3 %v11308_v17  ;;  %4492 = vmatpush.bf16.msra.mxu2 %v11310_v33 }
 0x66c   :  { %v10200_v12 = vpack.c.bf16 %v4111_v42, %v4107_v48  ;;  %v4100_v4 = vmax.f32 %v3864_v49, 0.0  ;;  %v11320_v42 = vld [vmem:[#allocation160_spill] sm:$0xff] }
 0x66d   :  { %v3726_v11 = vpop.f32.mrf.mxu0  ;;  %4398 = vmatpush.bf16.msra.mxu0 %v11311_v60 }
 0x66e   :  { %v3727_v36 = vadd.f32 %v3726_v11, %v11288_v8  ;;  %v3775_v28 = vpop.f32.mrf.mxu1  ;;  %4014 = vmatmul.bf16.gmra.mxu2 %v10041_v52  ;;  %4447 = vmatpush.bf16.msra.mxu1 %v11314_v26  ;;  %v11321_v11 = vld [vmem:[#allocation156_spill] sm:$0xff] }
 0x66f   :  { %4540 = vmatpush.bf16.msra.mxu3 %v11312_v18  ;;  %4493 = vmatpush.bf16.msra.mxu2 %v11313_v27  ;;  %v11322_v27 = vld [vmem:[#allocation161_spill] sm:$0xff] }
 0x670   :  { %v3776_v16 = vadd.f32 %v3775_v28, %v3727_v36  ;;  %3921 = vmatmul.bf16.gmra.mxu0 %v10071_v19 }
 0x671   :  { %v3865_v9 = vpop.f32.mrf.mxu3  ;;  %3970 = vmatmul.bf16.gmra.mxu1 %v10073_v55  ;;  %v3819_v24 = vpop.f32.mrf.mxu2 }
 0x672   :  { %v3866_v59 = vadd.f32 %v3865_v9, %v3817_v35  ;;  %v3820_v39 = vadd.f32 %v3819_v24, %v11302_v7  ;;  %v4115_v14 = vmax.f32 %v3776_v16, 0.0 }
 0x673   :  { %4541 = vmatpush.bf16.msra.mxu3 %v11315_v1  ;;  %4494 = vmatpush.bf16.msra.mxu2 %v11316_v63 }
 0x674   :  { %v4104_v52 = vmax.f32 %v3866_v59, 0.0 }
 0x675   :  { %v3728_v50 = vpop.f32.mrf.mxu0 }
 0x676   :  { %v10213_v2 = vpack.c.bf16 %v4104_v52, %v4100_v4  ;;  %4063 = vmatmul.bf16.gmra.mxu3 %v10043_v20  ;;  %v3729_v29 = vadd.f32 %v3728_v50, %v11288_v8  ;;  %v3777_v45 = vpop.f32.mrf.mxu1 }
 0x677   :  { %4542 = vmatpush.bf16.msra.mxu3 %v11317_v6  ;;  %4495 = vmatpush.bf16.msra.mxu2 %v11318_v30 }
 0x678   :  { %v3778_v48 = vadd.f32 %v3777_v45, %v3729_v29 }
 0x679   :  { %v3868_v61 = vpop.f32.mrf.mxu3  ;;  %v3821_v49 = vpop.f32.mrf.mxu2 }
 0x67a   :  { %v3869_v0 = vadd.f32 %v3868_v61, %v3820_v39  ;;  %v4119_v56 = vmax.f32 %v3778_v48, 0.0  ;;  %v3822_v60 = vadd.f32 %v3821_v49, %v11302_v7 }
 0x67b   :  { %4543 = vmatpush.bf16.msra.mxu3 %v11319_v53  ;;  %4496 = vmatpush.bf16.msra.mxu2 %v11320_v42 }
 0x67c   :  { %v10222_v17 = vpack.c.bf16 %v4119_v56, %v4115_v14  ;;  %v4108_v26 = vmax.f32 %v3869_v0, 0.0 }
 0x67d   :  { %v3731_v20 = vpop.f32.mrf.mxu0 }
 0x67e   :  { %v3732_v44 = vadd.f32 %v3731_v20, %v11288_v8  ;;  %v3780_v33 = vpop.f32.mrf.mxu1  ;;  %4019 = vmatmul.bf16.gmra.mxu2 %v10071_v19 }
 0x67f   :  { %4544 = vmatpush.bf16.msra.mxu3 %v11321_v11 }
 0x680   :  { %v3781_v36 = vadd.f32 %v3780_v33, %v3732_v44  ;;  %3926 = vmatmul.bf16.gmra.mxu0 %v10095_v22 }
 0x681   :  { %v3870_v28 = vpop.f32.mrf.mxu3  ;;  %3975 = vmatmul.bf16.gmra.mxu1 %v10097_v34  ;;  %v3824_v35 = vpop.f32.mrf.mxu2 }
 0x682   :  { %v3871_v18 = vadd.f32 %v3870_v28, %v3822_v60  ;;  %v3825_v19 = vadd.f32 %v3824_v35, %v11302_v7  ;;  %v4123_v4 = vmax.f32 %v3781_v36, 0.0 }
 0x683   :  { %4545 = vmatpush.bf16.msra.mxu3 %v11322_v27 }
 0x684   :  { %v4112_v16 = vmax.f32 %v3871_v18, 0.0 }
 0x685   :  { %v3733_v59 = vpop.f32.mrf.mxu0 }
 0x686   :  { %v10231_v9 = vpack.c.bf16 %v4112_v16, %v4108_v26  ;;  %4068 = vmatmul.bf16.gmra.mxu3 %v10073_v55  ;;  %v3734_v24 = vadd.f32 %v3733_v59, %v11288_v8  ;;  %v3782_v1 = vpop.f32.mrf.mxu1 }
 0x688   :  { %v3783_v52 = vadd.f32 %v3782_v1, %v3734_v24 }
 0x689   :  { %v3873_v63 = vpop.f32.mrf.mxu3  ;;  %v3826_v50 = vpop.f32.mrf.mxu2 }
 0x68a   :  { %v3874_v39 = vadd.f32 %v3873_v63, %v3825_v19  ;;  %v4127_v29 = vmax.f32 %v3783_v52, 0.0  ;;  %v3827_v55 = vadd.f32 %v3826_v50, %v11302_v7 }
 0x68c   :  { %v10236_v45 = vpack.c.bf16 %v4127_v29, %v4123_v4  ;;  %v4116_v56 = vmax.f32 %v3874_v39, 0.0 }
 0x68d   :  { %v3736_v6 = vpop.f32.mrf.mxu0 }
 0x68e   :  { %v3737_v30 = vadd.f32 %v3736_v6, %v11288_v8  ;;  %v3785_v14 = vpop.f32.mrf.mxu1  ;;  %4024 = vmatmul.bf16.gmra.mxu2 %v10095_v22 }
 0x690   :  { %v3786_v48 = vadd.f32 %v3785_v14, %v3737_v30  ;;  %3931 = vmatmul.bf16.gmra.mxu0 %v10111_v3 }
 0x691   :  { %v3875_v61 = vpop.f32.mrf.mxu3  ;;  %3980 = vmatmul.bf16.gmra.mxu1 %v10113_v47  ;;  %v3829_v49 = vpop.f32.mrf.mxu2 }
 0x692   :  { %v3876_v0 = vadd.f32 %v3875_v61, %v3827_v55  ;;  %v3830_v20 = vadd.f32 %v3829_v49, %v11302_v7  ;;  %v4131_v11 = vmax.f32 %v3786_v48, 0.0 }
 0x694   :  { %v4120_v53 = vmax.f32 %v3876_v0, 0.0 }
 0x695   :  { %v3738_v44 = vpop.f32.mrf.mxu0 }
 0x696   :  { %v10243_v42 = vpack.c.bf16 %v4120_v53, %v4116_v56  ;;  %4073 = vmatmul.bf16.gmra.mxu3 %v10097_v34  ;;  %v3739_v22 = vadd.f32 %v3738_v44, %v11288_v8  ;;  %v3787_v33 = vpop.f32.mrf.mxu1 }
 0x698   :  { %v3788_v60 = vadd.f32 %v3787_v33, %v3739_v22 }
 0x699   :  { %v3878_v36 = vpop.f32.mrf.mxu3  ;;  %v3831_v18 = vpop.f32.mrf.mxu2 }
 0x69a   :  { %v3879_v28 = vadd.f32 %v3878_v36, %v3830_v20  ;;  %v4135_v35 = vmax.f32 %v3788_v60, 0.0  ;;  %v3832_v34 = vadd.f32 %v3831_v18, %v11302_v7 }
 0x69c   :  { %v10248_v27 = vpack.c.bf16 %v4135_v35, %v4131_v11  ;;  %v4124_v52 = vmax.f32 %v3879_v28, 0.0 }
 0x69d   :  { %v3741_v26 = vpop.f32.mrf.mxu0 }
 0x69e   :  { %v3742_v16 = vadd.f32 %v3741_v26, %v11288_v8  ;;  %v3790_v19 = vpop.f32.mrf.mxu1  ;;  %4029 = vmatmul.bf16.gmra.mxu2 %v10111_v3 }
 0x6a0   :  { %v3791_v59 = vadd.f32 %v3790_v19, %v3742_v16  ;;  %3936 = vmatmul.bf16.gmra.mxu0 %v10125_v41 }
 0x6a1   :  { %v3880_v24 = vpop.f32.mrf.mxu3  ;;  %3985 = vmatmul.bf16.gmra.mxu1 %v10127_v5  ;;  %v3834_v4 = vpop.f32.mrf.mxu2 }
 0x6a2   :  { %v3881_v1 = vadd.f32 %v3880_v24, %v3832_v34  ;;  %v3835_v50 = vadd.f32 %v3834_v4, %v11302_v7  ;;  %v4139_v30 = vmax.f32 %v3791_v59, 0.0 }
 0x6a4   :  { %v4128_v63 = vmax.f32 %v3881_v1, 0.0 }
 0x6a5   :  { %v3743_v29 = vpop.f32.mrf.mxu0 }
 0x6a6   :  { %v10255_v39 = vpack.c.bf16 %v4128_v63, %v4124_v52  ;;  %4078 = vmatmul.bf16.gmra.mxu3 %v10113_v47  ;;  %v3744_v3 = vadd.f32 %v3743_v29, %v11288_v8  ;;  %v3792_v6 = vpop.f32.mrf.mxu1 }
 0x6a8   :  { %v3793_v14 = vadd.f32 %v3792_v6, %v3744_v3 }
 0x6a9   :  { %v3883_v55 = vpop.f32.mrf.mxu3  ;;  %v3836_v61 = vpop.f32.mrf.mxu2 }
 0x6aa   :  { %v3884_v48 = vadd.f32 %v3883_v55, %v3835_v50  ;;  %v4143_v0 = vmax.f32 %v3793_v14, 0.0  ;;  %v3837_v47 = vadd.f32 %v3836_v61, %v11302_v7 }
 0x6ac   :  { %v10260_v49 = vpack.c.bf16 %v4143_v0, %v4139_v30  ;;  %v4132_v60 = vmax.f32 %v3884_v48, 0.0 }
 0x6ad   :  { %v3746_v56 = vpop.f32.mrf.mxu0 }
 0x6ae   :  { %v3747_v53 = vadd.f32 %v3746_v56, %v11288_v8  ;;  %v3795_v20 = vpop.f32.mrf.mxu1  ;;  %4034 = vmatmul.bf16.gmra.mxu2 %v10125_v41 }
 0x6b0   :  { %v3796_v44 = vadd.f32 %v3795_v20, %v3747_v53  ;;  %3941 = vmatmul.bf16.gmra.mxu0 %v10139_v37 }
 0x6b1   :  { %v3885_v22 = vpop.f32.mrf.mxu3  ;;  %3990 = vmatmul.bf16.gmra.mxu1 %v10141_v21  ;;  %v3839_v11 = vpop.f32.mrf.mxu2 }
 0x6b2   :  { %v3886_v33 = vadd.f32 %v3885_v22, %v3837_v47  ;;  %v3840_v18 = vadd.f32 %v3839_v11, %v11302_v7  ;;  %v4147_v16 = vmax.f32 %v3796_v44, 0.0 }
 0x6b4   :  { %v4136_v36 = vmax.f32 %v3886_v33, 0.0 }
 0x6b5   :  { %v3748_v35 = vpop.f32.mrf.mxu0 }
 0x6b6   :  { %v10267_v28 = vpack.c.bf16 %v4136_v36, %v4132_v60  ;;  %4083 = vmatmul.bf16.gmra.mxu3 %v10127_v5  ;;  %v3749_v41 = vadd.f32 %v3748_v35, %v11288_v8  ;;  %v3797_v26 = vpop.f32.mrf.mxu1  ;;  %v11323_v35 = vld [vmem:[#allocation131_spill] sm:$0xff] }
 0x6b8   :  { %v3798_v19 = vadd.f32 %v3797_v26, %v3749_v41 }
 0x6b9   :  { %v3888_v34 = vpop.f32.mrf.mxu3  ;;  %v3841_v24 = vpop.f32.mrf.mxu2 }
 0x6ba   :  { %v3889_v59 = vadd.f32 %v3888_v34, %v3840_v18  ;;  %v4151_v1 = vmax.f32 %v3798_v19, 0.0  ;;  %v3842_v5 = vadd.f32 %v3841_v24, %v11302_v7  ;;  %v11325_v19 = vld [vmem:[#allocation166_spill] sm:$0xff] }
 0x6bc   :  { %v10272_v4 = vpack.c.bf16 %v4151_v1, %v4147_v16  ;;  %v4140_v14 = vmax.f32 %v3889_v59, 0.0  ;;  %v11324_v16 = vld [vmem:[#allocation164_spill] sm:$0xff] }
 0x6bd   :  { %v3751_v52 = vpop.f32.mrf.mxu0 }
 0x6be   :  { %v3752_v63 = vadd.f32 %v3751_v52, %v11288_v8  ;;  %v3800_v50 = vpop.f32.mrf.mxu1  ;;  %4039 = vmatmul.bf16.gmra.mxu2 %v10139_v37 }
 0x6c0   :  { %v3801_v29 = vadd.f32 %v3800_v50, %v3752_v63  ;;  %3946 = vmatmul.bf16.gmra.mxu0 %v10153_v38  ;;  %v11326_v63 = vld [vmem:[#allocation169_spill] sm:$0xff] }
 0x6c1   :  { %v3890_v3 = vpop.f32.mrf.mxu3  ;;  %3995 = vmatmul.bf16.gmra.mxu1 %v10155_v46  ;;  %v3844_v30 = vpop.f32.mrf.mxu2 }
 0x6c2   :  { %v3891_v6 = vadd.f32 %v3890_v3, %v3842_v5  ;;  %v3845_v61 = vadd.f32 %v3844_v30, %v11302_v7  ;;  %v4155_v53 = vmax.f32 %v3801_v29, 0.0  ;;  %v11327_v29 = vld [vmem:[#allocation170_spill] sm:$0xff] }
 0x6c4   :  { %v4144_v55 = vmax.f32 %v3891_v6, 0.0 }
 0x6c5   :  { %v3753_v0 = vpop.f32.mrf.mxu0 }
 0x6c6   :  { %v10279_v48 = vpack.c.bf16 %v4144_v55, %v4140_v14  ;;  %4088 = vmatmul.bf16.gmra.mxu3 %v10141_v21  ;;  %v3754_v37 = vadd.f32 %v3753_v0, %v11288_v8  ;;  %v3802_v56 = vpop.f32.mrf.mxu1 }
 0x6c8   :  { %v3803_v20 = vadd.f32 %v3802_v56, %v3754_v37  ;;  %v11329_v37 = vld [vmem:[#allocation174_spill] sm:$0xff] }
 0x6c9   :  { %v3893_v47 = vpop.f32.mrf.mxu3  ;;  %v3846_v22 = vpop.f32.mrf.mxu2 }
 0x6ca   :  { %v3894_v44 = vadd.f32 %v3893_v47, %v3845_v61  ;;  %v4159_v33 = vmax.f32 %v3803_v20, 0.0  ;;  %v3847_v18 = vadd.f32 %v3846_v22, %v11302_v7  ;;  %v11328_v61 = vld [vmem:[#allocation173_spill] sm:$0xff]  ;;  %v11331_v47 = vld [vmem:[#allocation178_spill] sm:$0xff] }
 0x6cb   :  { %v11332_v22 = vld [vmem:[#allocation162_spill] sm:$0xff] }
 0x6cc   :  { %v10284_v11 = vpack.c.bf16 %v4159_v33, %v4155_v53  ;;  %v4148_v34 = vmax.f32 %v3894_v44, 0.0  ;;  %v11330_v53 = vld [vmem:[#allocation177_spill] sm:$0xff] }
 0x6cd   :  { %v3912_v60 = vpop.f32.mrf.mxu0 }
 0x6ce   :  { %v3961_v36 = vpop.f32.mrf.mxu1  ;;  %4044 = vmatmul.bf16.gmra.mxu2 %v10153_v38  ;;  %v3913_v21 = vadd.f32 %v3912_v60, %v11323_v35 }
 0x6d0   :  { %4203 = vmatmul.bf16.vlgmr.msrb.gmra.mxu0 %v10175_v51  ;;  %v3962_v24 = vadd.f32 %v3961_v36, %v3913_v21  ;;  %v11333_v21 = vld [vmem:[#allocation181_spill] sm:$0xff] }
 0x6d1   :  { %v3895_v41 = vpop.f32.mrf.mxu3  ;;  %4252 = vmatmul.bf16.vlgmr.msrb.gmra.mxu1 %v10213_v2  ;;  %v3849_v26 = vpop.f32.mrf.mxu2  ;;  %4587 = vmatpush.bf16.msrb.mxu0 %v11324_v16  ;;  %v11335_v16 = vld [vmem:[#allocation167_spill] sm:$0xff] }
 0x6d2   :  { %v3896_v8 = vadd.f32 %v3895_v41, %v3847_v18  ;;  %4636 = vmatpush.bf16.msrb.mxu1 %v11325_v19  ;;  %v3850_v38 = vadd.f32 %v3849_v26, %v11302_v7  ;;  %v4101_v3 = vmax.f32 %v3962_v24, 0.0  ;;  %v11334_v41 = vld [vmem:[#allocation182_spill] sm:$0xff] }
 0x6d4   :  { %v4152_v59 = vmax.f32 %v3896_v8, 0.0 }
 0x6d5   :  { %v3914_v52 = vpop.f32.mrf.mxu0  ;;  %4588 = vmatpush.bf16.msrb.mxu0 %v11326_v63  ;;  %v11338_v63 = vld [vmem:[#allocation171_spill] sm:$0xff] }
 0x6d6   :  { %v10293_v1 = vpack.c.bf16 %v4152_v59, %v4148_v34  ;;  %4093 = vmatmul.bf16.gmra.mxu3 %v10155_v46  ;;  %v3915_v50 = vadd.f32 %v3914_v52, %v11323_v35  ;;  %v3963_v5 = vpop.f32.mrf.mxu1  ;;  %4637 = vmatpush.bf16.msrb.mxu1 %v11327_v29  ;;  %v11336_v59 = vld [vmem:[#allocation185_spill] sm:$0xff]  ;;  %v11337_v52 = vld [vmem:[#allocation186_spill] sm:$0xff] }
 0x6d8   :  { %v3964_v6 = vadd.f32 %v3963_v5, %v3915_v50 }
 0x6d9   :  { %v3898_v30 = vpop.f32.mrf.mxu3  ;;  %v3851_v55 = vpop.f32.mrf.mxu2  ;;  %4589 = vmatpush.bf16.msrb.mxu0 %v11328_v61  ;;  %v11341_v61 = vld [vmem:[#allocation175_spill] sm:$0xff] }
 0x6da   :  { %v3899_v14 = vadd.f32 %v3898_v30, %v3850_v38  ;;  %v4105_v0 = vmax.f32 %v3964_v6, 0.0  ;;  %4638 = vmatpush.bf16.msrb.mxu1 %v11329_v37  ;;  %v3852_v44 = vadd.f32 %v3851_v55, %v11302_v7  ;;  %v11339_v30 = vld [vmem:[#allocation189_spill] sm:$0xff] }
 0x6dc   :  { %v10302_v56 = vpack.c.bf16 %v4105_v0, %v4101_v3  ;;  %v4156_v8 = vmax.f32 %v3899_v14, 0.0  ;;  %v11340_v14 = vld [vmem:[#allocation134_spill] sm:$0xff] }
 0x6dd   :  { %v3917_v46 = vpop.f32.mrf.mxu0  ;;  %4590 = vmatpush.bf16.msrb.mxu0 %v11330_v53 }
 0x6de   :  { %v3966_v20 = vpop.f32.mrf.mxu1  ;;  %4301 = vmatmul.bf16.vlgmr.msrb.gmra.mxu2 %v10302_v56  ;;  %4639 = vmatpush.bf16.msrb.mxu1 %v11331_v47  ;;  %v3918_v33 = vadd.f32 %v3917_v46, %v11323_v35  ;;  %v11342_v46 = vld [vmem:[#allocation190_spill] sm:$0xff] }
 0x6df   :  { %4685 = vmatpush.bf16.msrb.mxu2 %v11332_v22 }
 0x6e0   :  { %4208 = vmatmul.bf16.gmra.mxu0 %v10200_v12  ;;  %v3967_v7 = vadd.f32 %v3966_v20, %v3918_v33  ;;  %v11343_v20 = vld [vmem:[#allocation191_spill] sm:$0xff] }
 0x6e1   :  { %v3900_v60 = vpop.f32.mrf.mxu3  ;;  %4257 = vmatmul.bf16.gmra.mxu1 %v10231_v9  ;;  %v4010_v18 = vpop.f32.mrf.mxu2  ;;  %4591 = vmatpush.bf16.msrb.mxu0 %v11333_v21 }
 0x6e2   :  { %v3901_v36 = vadd.f32 %v3900_v60, %v3852_v44  ;;  %4640 = vmatpush.bf16.msrb.mxu1 %v11334_v41  ;;  %v4109_v50 = vmax.f32 %v3967_v7, 0.0  ;;  %v4011_v55 = vadd.f32 %v4010_v18, %v11340_v14  ;;  %v11344_v44 = vld [vmem:[#allocation179_spill] sm:$0xff] }
 0x6e3   :  { %4686 = vmatpush.bf16.msrb.mxu2 %v11335_v16  ;;  %v11345_v41 = vld [vmem:[#allocation183_spill] sm:$0xff] }
 0x6e4   :  { %v4160_v26 = vmax.f32 %v3901_v36, 0.0 }
 0x6e5   :  { %v3919_v34 = vpop.f32.mrf.mxu0  ;;  %4592 = vmatpush.bf16.msrb.mxu0 %v11336_v59  ;;  %v11346_v59 = vld [vmem:[#allocation187_spill] sm:$0xff] }
 0x6e6   :  { %v10315_v19 = vpack.c.bf16 %v4160_v26, %v4156_v8  ;;  %v3920_v24 = vadd.f32 %v3919_v34, %v11323_v35  ;;  %v3968_v38 = vpop.f32.mrf.mxu1  ;;  %4641 = vmatpush.bf16.msrb.mxu1 %v11337_v52 }
 0x6e7   :  { %4687 = vmatpush.bf16.msrb.mxu2 %v11338_v63  ;;  %v11347_v63 = vld [vmem:[#allocation163_spill] sm:$0xff] }
 0x6e8   :  { %v3969_v5 = vadd.f32 %v3968_v38, %v3920_v24 }
 0x6e9   :  { %v4059_v29 = vpop.f32.mrf.mxu3  ;;  %v4012_v3 = vpop.f32.mrf.mxu2  ;;  %4593 = vmatpush.bf16.msrb.mxu0 %v9716_v40 }
 0x6ea   :  { %v4113_v6 = vmax.f32 %v3969_v5, 0.0  ;;  %4642 = vmatpush.bf16.msrb.mxu1 %v11339_v30  ;;  %v4060_v47 = vadd.f32 %v4059_v29, %v4011_v55  ;;  %v4013_v40 = vadd.f32 %v4012_v3, %v11340_v14  ;;  %v11348_v3 = vld [vmem:[#allocation192_spill] sm:$0xff] }
 0x6eb   :  { %4688 = vmatpush.bf16.msrb.mxu2 %v11341_v61  ;;  %v11349_v30 = vld [vmem:[#allocation168_spill] sm:$0xff] }
 0x6ec   :  { %v10325_v0 = vpack.c.bf16 %v4113_v6, %v4109_v50  ;;  %v4102_v18 = vmax.f32 %v4060_v47, 0.0  ;;  %v11350_v47 = vld [vmem:[#allocation172_spill] sm:$0xff] }
 0x6ed   :  { %v3922_v37 = vpop.f32.mrf.mxu0  ;;  %4594 = vmatpush.bf16.msrb.mxu0 %v11342_v46 }
 0x6ee   :  { %v3971_v53 = vpop.f32.mrf.mxu1  ;;  %4306 = vmatmul.bf16.gmra.mxu2 %v10325_v0  ;;  %4643 = vmatpush.bf16.msrb.mxu1 %v11343_v20  ;;  %v3923_v22 = vadd.f32 %v3922_v37, %v11323_v35 }
 0x6ef   :  { %4689 = vmatpush.bf16.msrb.mxu2 %v11344_v44 }
 0x6f0   :  { %4213 = vmatmul.bf16.gmra.mxu0 %v10222_v17  ;;  %v3972_v8 = vadd.f32 %v3971_v53, %v3923_v22 }
 0x6f1   :  { %v4061_v33 = vpop.f32.mrf.mxu3  ;;  %4262 = vmatmul.bf16.gmra.mxu1 %v10243_v42  ;;  %v4015_v36 = vpop.f32.mrf.mxu2 }
 0x6f2   :  { %v4062_v60 = vadd.f32 %v4061_v33, %v4013_v40  ;;  %v4117_v24 = vmax.f32 %v3972_v8, 0.0  ;;  %v4016_v29 = vadd.f32 %v4015_v36, %v11340_v14  ;;  %v11351_v36 = vld [vmem:[#allocation176_spill] sm:$0xff] }
 0x6f3   :  { %4690 = vmatpush.bf16.msrb.mxu2 %v11345_v41 }
 0x6f4   :  { %v4106_v21 = vmax.f32 %v4062_v60, 0.0 }
 0x6f5   :  { %v3924_v16 = vpop.f32.mrf.mxu0 }
 0x6f6   :  { %v10336_v26 = vpack.c.bf16 %v4106_v21, %v4102_v18  ;;  %v3925_v7 = vadd.f32 %v3924_v16, %v11323_v35  ;;  %v3973_v34 = vpop.f32.mrf.mxu1 }
 0x6f7   :  { %4691 = vmatpush.bf16.msrb.mxu2 %v11346_v59  ;;  %v11352_v59 = vld [vmem:[#allocation180_spill] sm:$0xff] }
 0x6f8   :  { %4350 = vmatmul.bf16.vlgmr.msrb.gmra.mxu3 %v10336_v26  ;;  %v3974_v38 = vadd.f32 %v3973_v34, %v3925_v7 }
 0x6f9   :  { %v4064_v52 = vpop.f32.mrf.mxu3  ;;  %4734 = vmatpush.bf16.msrb.mxu3 %v11347_v63  ;;  %v4017_v50 = vpop.f32.mrf.mxu2 }
 0x6fa   :  { %v4121_v5 = vmax.f32 %v3974_v38, 0.0  ;;  %v4065_v37 = vadd.f32 %v4064_v52, %v4016_v29  ;;  %v4018_v46 = vadd.f32 %v4017_v50, %v11340_v14  ;;  %v11353_v50 = vld [vmem:[#allocation184_spill] sm:$0xff] }
 0x6fb   :  { %4692 = vmatpush.bf16.msrb.mxu2 %v11348_v3 }
 0x6fc   :  { %v10344_v6 = vpack.c.bf16 %v4121_v5, %v4117_v24  ;;  %v4110_v22 = vmax.f32 %v4065_v37, 0.0  ;;  %v11354_v37 = vld [vmem:[#allocation188_spill] sm:$0xff] }
 0x6fd   :  { %4735 = vmatpush.bf16.msrb.mxu3 %v11349_v30  ;;  %v3927_v55 = vpop.f32.mrf.mxu0 }
 0x6fe   :  { %v3976_v61 = vpop.f32.mrf.mxu1  ;;  %4311 = vmatmul.bf16.gmra.mxu2 %v10344_v6  ;;  %v3928_v53 = vadd.f32 %v3927_v55, %v11323_v35 }
 0x700   :  { %4218 = vmatmul.bf16.gmra.mxu0 %v10236_v45  ;;  %v3977_v60 = vadd.f32 %v3976_v61, %v3928_v53 }
 0x701   :  { %v4066_v20 = vpop.f32.mrf.mxu3  ;;  %4736 = vmatpush.bf16.msrb.mxu3 %v11350_v47  ;;  %4267 = vmatmul.bf16.gmra.mxu1 %v10255_v39  ;;  %v4020_v44 = vpop.f32.mrf.mxu2 }
 0x702   :  { %v4067_v40 = vadd.f32 %v4066_v20, %v4018_v46  ;;  %v4125_v16 = vmax.f32 %v3977_v60, 0.0  ;;  %v4021_v52 = vadd.f32 %v4020_v44, %v11340_v14  ;;  %v11355_v44 = vld [vmem:[#allocation193_spill] sm:$0xff] }
 0x704   :  { %v4114_v33 = vmax.f32 %v4067_v40, 0.0 }
 0x705   :  { %4737 = vmatpush.bf16.msrb.mxu3 %v11351_v36  ;;  %v3929_v21 = vpop.f32.mrf.mxu0 }
 0x706   :  { %v10354_v18 = vpack.c.bf16 %v4114_v33, %v4110_v22  ;;  %v3930_v41 = vadd.f32 %v3929_v21, %v11323_v35  ;;  %v3978_v8 = vpop.f32.mrf.mxu1 }
 0x708   :  { %4355 = vmatmul.bf16.gmra.mxu3 %v10354_v18  ;;  %v3979_v7 = vadd.f32 %v3978_v8, %v3930_v41 }
 0x709   :  { %v4069_v34 = vpop.f32.mrf.mxu3  ;;  %4738 = vmatpush.bf16.msrb.mxu3 %v11352_v59  ;;  %v4022_v24 = vpop.f32.mrf.mxu2 }
 0x70a   :  { %v4129_v38 = vmax.f32 %v3979_v7, 0.0  ;;  %v4070_v3 = vadd.f32 %v4069_v34, %v4021_v52  ;;  %v4023_v30 = vadd.f32 %v4022_v24, %v11340_v14 }
 0x70c   :  { %v10360_v63 = vpack.c.bf16 %v4129_v38, %v4125_v16  ;;  %v4118_v20 = vmax.f32 %v4070_v3, 0.0 }
 0x70d   :  { %4739 = vmatpush.bf16.msrb.mxu3 %v11353_v50  ;;  %v3932_v5 = vpop.f32.mrf.mxu0 }
 0x70e   :  { %v3981_v29 = vpop.f32.mrf.mxu1  ;;  %4316 = vmatmul.bf16.gmra.mxu2 %v10360_v63  ;;  %v3933_v55 = vadd.f32 %v3932_v5, %v11323_v35 }
 0x710   :  { %4223 = vmatmul.bf16.gmra.mxu0 %v10248_v27  ;;  %v3982_v40 = vadd.f32 %v3981_v29, %v3933_v55 }
 0x711   :  { %v4071_v61 = vpop.f32.mrf.mxu3  ;;  %4740 = vmatpush.bf16.msrb.mxu3 %v11354_v37  ;;  %4272 = vmatmul.bf16.gmra.mxu1 %v10267_v28  ;;  %v4025_v53 = vpop.f32.mrf.mxu2 }
 0x712   :  { %v4072_v46 = vadd.f32 %v4071_v61, %v4023_v30  ;;  %v4133_v21 = vmax.f32 %v3982_v40, 0.0  ;;  %v4026_v34 = vadd.f32 %v4025_v53, %v11340_v14 }
 0x714   :  { %v4122_v47 = vmax.f32 %v4072_v46, 0.0 }
 0x715   :  { %4741 = vmatpush.bf16.msrb.mxu3 %v11355_v44  ;;  %v3934_v33 = vpop.f32.mrf.mxu0 }
 0x716   :  { %v10370_v22 = vpack.c.bf16 %v4122_v47, %v4118_v20  ;;  %v3935_v60 = vadd.f32 %v3934_v33, %v11323_v35  ;;  %v3983_v36 = vpop.f32.mrf.mxu1 }
 0x718   :  { %4360 = vmatmul.bf16.gmra.mxu3 %v10370_v22  ;;  %v3984_v41 = vadd.f32 %v3983_v36, %v3935_v60 }
 0x719   :  { %v4074_v8 = vpop.f32.mrf.mxu3  ;;  %v4027_v16 = vpop.f32.mrf.mxu2 }
 0x71a   :  { %v4137_v7 = vmax.f32 %v3984_v41, 0.0  ;;  %v4075_v52 = vadd.f32 %v4074_v8, %v4026_v34  ;;  %v4028_v50 = vadd.f32 %v4027_v16, %v11340_v14 }
 0x71c   :  { %v10375_v59 = vpack.c.bf16 %v4137_v7, %v4133_v21  ;;  %v4126_v55 = vmax.f32 %v4075_v52, 0.0 }
 0x71d   :  { %v3937_v24 = vpop.f32.mrf.mxu0 }
 0x71e   :  { %v3986_v38 = vpop.f32.mrf.mxu1  ;;  %4321 = vmatmul.bf16.gmra.mxu2 %v10375_v59  ;;  %v3938_v5 = vadd.f32 %v3937_v24, %v11323_v35 }
 0x720   :  { %4228 = vmatmul.bf16.gmra.mxu0 %v10260_v49  ;;  %v3987_v37 = vadd.f32 %v3986_v38, %v3938_v5 }
 0x721   :  { %v4076_v29 = vpop.f32.mrf.mxu3  ;;  %4277 = vmatmul.bf16.gmra.mxu1 %v10279_v48  ;;  %v4030_v30 = vpop.f32.mrf.mxu2 }
 0x722   :  { %v4077_v3 = vadd.f32 %v4076_v29, %v4028_v50  ;;  %v4141_v40 = vmax.f32 %v3987_v37, 0.0  ;;  %v4031_v21 = vadd.f32 %v4030_v30, %v11340_v14 }
 0x724   :  { %v4130_v61 = vmax.f32 %v4077_v3, 0.0 }
 0x725   :  { %v3939_v53 = vpop.f32.mrf.mxu0 }
 0x726   :  { %v10382_v46 = vpack.c.bf16 %v4130_v61, %v4126_v55  ;;  %v3940_v20 = vadd.f32 %v3939_v53, %v11323_v35  ;;  %v3988_v47 = vpop.f32.mrf.mxu1 }
 0x728   :  { %4365 = vmatmul.bf16.gmra.mxu3 %v10382_v46  ;;  %v3989_v44 = vadd.f32 %v3988_v47, %v3940_v20 }
 0x729   :  { %v4079_v33 = vpop.f32.mrf.mxu3  ;;  %v4032_v60 = vpop.f32.mrf.mxu2 }
 0x72a   :  { %v4145_v36 = vmax.f32 %v3989_v44, 0.0  ;;  %v4080_v7 = vadd.f32 %v4079_v33, %v4031_v21  ;;  %v4033_v34 = vadd.f32 %v4032_v60, %v11340_v14 }
 0x72c   :  { %v10387_v41 = vpack.c.bf16 %v4145_v36, %v4141_v40  ;;  %v4134_v5 = vmax.f32 %v4080_v7, 0.0 }
 0x72d   :  { %v3942_v8 = vpop.f32.mrf.mxu0 }
 0x72e   :  { %v3991_v16 = vpop.f32.mrf.mxu1  ;;  %4326 = vmatmul.bf16.gmra.mxu2 %v10387_v41  ;;  %v3943_v24 = vadd.f32 %v3942_v8, %v11323_v35 }
 0x730   :  { %4233 = vmatmul.bf16.gmra.mxu0 %v10272_v4  ;;  %v3992_v3 = vadd.f32 %v3991_v16, %v3943_v24 }
 0x731   :  { %v4081_v38 = vpop.f32.mrf.mxu3  ;;  %4282 = vmatmul.bf16.gmra.mxu1 %v10293_v1  ;;  %v4035_v50 = vpop.f32.mrf.mxu2 }
 0x732   :  { %v4082_v52 = vadd.f32 %v4081_v38, %v4033_v34  ;;  %v4149_v53 = vmax.f32 %v3992_v3, 0.0  ;;  %v4036_v33 = vadd.f32 %v4035_v50, %v11340_v14 }
 0x734   :  { %v4138_v29 = vmax.f32 %v4082_v52, 0.0 }
 0x735   :  { %v3944_v55 = vpop.f32.mrf.mxu0 }
 0x736   :  { %v10394_v30 = vpack.c.bf16 %v4138_v29, %v4134_v5  ;;  %v3945_v61 = vadd.f32 %v3944_v55, %v11323_v35  ;;  %v3993_v37 = vpop.f32.mrf.mxu1 }
 0x738   :  { %4370 = vmatmul.bf16.gmra.mxu3 %v10394_v30  ;;  %v3994_v20 = vadd.f32 %v3993_v37, %v3945_v61 }
 0x739   :  { %v4084_v47 = vpop.f32.mrf.mxu3  ;;  %v4037_v40 = vpop.f32.mrf.mxu2 }
 0x73a   :  { %v4153_v44 = vmax.f32 %v3994_v20, 0.0  ;;  %v4085_v8 = vadd.f32 %v4084_v47, %v4036_v33  ;;  %v4038_v16 = vadd.f32 %v4037_v40, %v11340_v14 }
 0x73c   :  { %v10399_v60 = vpack.c.bf16 %v4153_v44, %v4149_v53  ;;  %v4142_v52 = vmax.f32 %v4085_v8, 0.0  ;;  %v11356_v8 = vld [vmem:[#allocation165_spill] sm:$0xff] }
 0x73d   :  { %v3947_v36 = vpop.f32.mrf.mxu0 }
 0x73e   :  { %v3996_v21 = vpop.f32.mrf.mxu1  ;;  %4331 = vmatmul.bf16.gmra.mxu2 %v10399_v60  ;;  %v3948_v7 = vadd.f32 %v3947_v36, %v11323_v35 }
 0x740   :  { %4238 = vmatmul.bf16.gmra.mxu0 %v10284_v11  ;;  %v3997_v5 = vadd.f32 %v3996_v21, %v3948_v7 }
 0x741   :  { %v4086_v34 = vpop.f32.mrf.mxu3  ;;  %4287 = vmatmul.bf16.gmra.mxu1 %v10315_v19  ;;  %v4040_v38 = vpop.f32.mrf.mxu2 }
 0x742   :  { %v4087_v24 = vadd.f32 %v4086_v34, %v4038_v16  ;;  %v4157_v37 = vmax.f32 %v3997_v5, 0.0  ;;  %v4041_v44 = vadd.f32 %v4040_v38, %v11340_v14  ;;  %v11357_v38 = vld [vmem:[#allocation196_spill] sm:$0xff]  ;;  %v11358_v5 = vld [vmem:[#allocation197_spill] sm:$0xff] }
 0x744   :  { %v4146_v50 = vmax.f32 %v4087_v24, 0.0 }
 0x745   :  { %v3949_v3 = vpop.f32.mrf.mxu0 }
 0x746   :  { %v10406_v29 = vpack.c.bf16 %v4146_v50, %v4142_v52  ;;  %v3950_v55 = vadd.f32 %v3949_v3, %v11323_v35  ;;  %v3998_v61 = vpop.f32.mrf.mxu1 }
 0x748   :  { %4375 = vmatmul.bf16.gmra.mxu3 %v10406_v29  ;;  %v3999_v53 = vadd.f32 %v3998_v61, %v3950_v55 }
 0x749   :  { %v4089_v20 = vpop.f32.mrf.mxu3  ;;  %v4042_v47 = vpop.f32.mrf.mxu2 }
 0x74a   :  { %v4161_v40 = vmax.f32 %v3999_v53, 0.0  ;;  %v4090_v7 = vadd.f32 %v4089_v20, %v4041_v44  ;;  %v4043_v35 = vadd.f32 %v4042_v47, %v11340_v14  ;;  %v11359_v53 = vld [vmem:[#allocation200_spill] sm:$0xff] }
 0x74c   :  { %v10411_v33 = vpack.c.bf16 %v4161_v40, %v4157_v37  ;;  %v4150_v3 = vmax.f32 %v4090_v7, 0.0  ;;  %v11360_v40 = vld [vmem:[#allocation201_spill] sm:$0xff] }
 0x74d   :  { %v4204_v36 = vpop.f32.mrf.mxu0 }
 0x74e   :  { %v4205_v21 = vadd.f32 %v4204_v36, %v11356_v8  ;;  %v4253_v16 = vpop.f32.mrf.mxu1  ;;  %4336 = vmatmul.bf16.gmra.mxu2 %v10411_v33 }
 0x750   :  { %v4254_v34 = vadd.f32 %v4253_v16, %v4205_v21  ;;  %4399 = vmatmul.bf16.vlgmr.msra.gmra.mxu0 %v10175_v51  ;;  %v11361_v16 = vld [vmem:[#allocation205_spill] sm:$0xff] }
 0x751   :  { %v4091_v24 = vpop.f32.mrf.mxu3  ;;  %4448 = vmatmul.bf16.vlgmr.msra.gmra.mxu1 %v10213_v2  ;;  %v4045_v50 = vpop.f32.mrf.mxu2  ;;  %4783 = vmatpush.bf16.msra.mxu0 %v11357_v38 }
 0x752   :  { %v4092_v52 = vadd.f32 %v4091_v24, %v4043_v35  ;;  %4832 = vmatpush.bf16.msra.mxu1 %v11358_v5  ;;  %v11362_v35 = vld [vmem:[#allocation206_spill] sm:$0xff]  ;;  %v4046_v7 = vadd.f32 %v4045_v50, %v11340_v14 }
 0x754   :  { %v4154_v55 = vmax.f32 %v4092_v52, 0.0  ;;  %v11363_v52 = vld [vmem:[#allocation209_spill] sm:$0xff] }
 0x755   :  { %v4206_v37 = vpop.f32.mrf.mxu0  ;;  %4784 = vmatpush.bf16.msra.mxu0 %v11359_v53  ;;  %v11365_v53 = vld [vmem:[#allocation194_spill] sm:$0xff] }
 0x756   :  { %v10420_v61 = vpack.c.bf16 %v4154_v55, %v4150_v3  ;;  %v4207_v20 = vadd.f32 %v4206_v37, %v11356_v8  ;;  %v4255_v47 = vpop.f32.mrf.mxu1  ;;  %4833 = vmatpush.bf16.msra.mxu1 %v11360_v40  ;;  %v11364_v3 = vld [vmem:[#allocation210_spill] sm:$0xff] }
 0x758   :  { %4380 = vmatmul.bf16.gmra.mxu3 %v10420_v61  ;;  %v4256_v44 = vadd.f32 %v4255_v47, %v4207_v20 }
 0x759   :  { %v4094_v36 = vpop.f32.mrf.mxu3  ;;  %v4047_v21 = vpop.f32.mrf.mxu2  ;;  %4785 = vmatpush.bf16.msra.mxu0 %v11361_v16  ;;  %v11366_v16 = vld [vmem:[#allocation213_spill] sm:$0xff] }
 0x75a   :  { %4834 = vmatpush.bf16.msra.mxu1 %v11362_v35  ;;  %v4095_v55 = vadd.f32 %v4094_v36, %v4046_v7  ;;  %v4048_v37 = vadd.f32 %v4047_v21, %v11340_v14  ;;  %v11368_v36 = vld [vmem:[#allocation198_spill] sm:$0xff]  ;;  %v11369_v7 = vld [vmem:[#allocation217_spill] sm:$0xff] }
 0x75d   :  { %v4209_v24 = vpop.f32.mrf.mxu0  ;;  %4786 = vmatpush.bf16.msra.mxu0 %v11363_v52  ;;  %v4158_v52 = vmax.f32 %v4095_v55, 0.0 }
 0x75e   :  { %v4210_v38 = vadd.f32 %v4209_v24, %v11356_v8  ;;  %v4258_v5 = vpop.f32.mrf.mxu1  ;;  %4497 = vmatmul.bf16.vlgmr.msra.gmra.mxu2 %v10302_v56  ;;  %4835 = vmatpush.bf16.msra.mxu1 %v11364_v3  ;;  %v11367_v24 = vld [vmem:[#allocation214_spill] sm:$0xff] }
 0x75f   :  { %4881 = vmatpush.bf16.msra.mxu2 %v11365_v53  ;;  %v11371_v53 = vld [vmem:[#allocation203_spill] sm:$0xff] }
 0x760   :  { %v4259_v20 = vadd.f32 %v4258_v5, %v4210_v38  ;;  %4404 = vmatmul.bf16.gmra.mxu0 %v10200_v12 }
 0x761   :  { %v4096_v47 = vpop.f32.mrf.mxu3  ;;  %4453 = vmatmul.bf16.gmra.mxu1 %v10231_v9  ;;  %v4302_v40 = vpop.f32.mrf.mxu2  ;;  %4787 = vmatpush.bf16.msra.mxu0 %v11366_v16 }
 0x762   :  { %v4097_v50 = vadd.f32 %v4096_v47, %v4048_v37  ;;  %v4303_v35 = vadd.f32 %v4302_v40, %v4254_v34  ;;  %4836 = vmatpush.bf16.msra.mxu1 %v11367_v24  ;;  %v11370_v37 = vld [vmem:[#allocation218_spill] sm:$0xff] }
 0x763   :  { %4882 = vmatpush.bf16.msra.mxu2 %v11368_v36 }
 0x764   :  { %v4162_v3 = vmax.f32 %v4097_v50, 0.0  ;;  %v11372_v50 = vld [vmem:[#allocation207_spill] sm:$0xff] }
 0x765   :  { %v4211_v21 = vpop.f32.mrf.mxu0  ;;  %4788 = vmatpush.bf16.msra.mxu0 %v11369_v7  ;;  %v11375_v7 = vld [vmem:[#allocation219_spill] sm:$0xff] }
 0x766   :  { %v10440_v14 = vpack.c.bf16 %v4162_v3, %v4158_v52  ;;  %v4212_v38 = vadd.f32 %v4211_v21, %v11356_v8  ;;  %v4260_v5 = vpop.f32.mrf.mxu1  ;;  %4837 = vmatpush.bf16.msra.mxu1 %v11370_v37  ;;  %v11373_v52 = vld [vmem:[#allocation211_spill] sm:$0xff] }
 0x767   :  { %4883 = vmatpush.bf16.msra.mxu2 %v11371_v53 }
 0x768   :  { %4385 = vmatmul.bf16.gmra.mxu3 %v10440_v14  ;;  %v4261_v34 = vadd.f32 %v4260_v5, %v4212_v38  ;;  %v11376_v38 = vld [vmem:[#allocation195_spill] sm:$0xff] }
 0x769   :  { %v4304_v47 = vpop.f32.mrf.mxu2  ;;  %4789 = vmatpush.bf16.msra.mxu0 %v9865_v58 }
 0x76a   :  { %v4305_v55 = vadd.f32 %v4304_v47, %v4256_v44  ;;  %4838 = vmatpush.bf16.msra.mxu1 %v9867_v43  ;;  %v11374_v44 = vld [vmem:[#allocation215_spill] sm:$0xff] }
 0x76b   :  { %4884 = vmatpush.bf16.msra.mxu2 %v11372_v50 }
 0x76d   :  { %v4214_v40 = vpop.f32.mrf.mxu0  ;;  %4790 = vmatpush.bf16.msra.mxu0 %v9871_v25 }
 0x76e   :  { %v4215_v16 = vadd.f32 %v4214_v40, %v11356_v8  ;;  %v4263_v24 = vpop.f32.mrf.mxu1  ;;  %4502 = vmatmul.bf16.gmra.mxu2 %v10325_v0  ;;  %4839 = vmatpush.bf16.msra.mxu1 %v9875_v23 }
 0x76f   :  { %4885 = vmatpush.bf16.msra.mxu2 %v11373_v52  ;;  %v11378_v52 = vld [vmem:[#allocation204_spill] sm:$0xff] }
 0x770   :  { %v4264_v3 = vadd.f32 %v4263_v24, %v4215_v16  ;;  %4409 = vmatmul.bf16.gmra.mxu0 %v10222_v17 }
 0x771   :  { %4458 = vmatmul.bf16.gmra.mxu1 %v10243_v42  ;;  %v4307_v43 = vpop.f32.mrf.mxu2 }
 0x772   :  { %v4308_v58 = vadd.f32 %v4307_v43, %v4259_v20  ;;  %v11377_v20 = vld [vmem:[#allocation199_spill] sm:$0xff] }
 0x773   :  { %4886 = vmatpush.bf16.msra.mxu2 %v11374_v44 }
 0x775   :  { %v4216_v36 = vpop.f32.mrf.mxu0 }
 0x776   :  { %v4217_v25 = vadd.f32 %v4216_v36, %v11356_v8  ;;  %v4265_v21 = vpop.f32.mrf.mxu1 }
 0x777   :  { %4887 = vmatpush.bf16.msra.mxu2 %v11375_v7 }
 0x778   :  { %4546 = vmatmul.bf16.vlgmr.msra.gmra.mxu3 %v10336_v26  ;;  %v4266_v23 = vadd.f32 %v4265_v21, %v4217_v25 }
 0x779   :  { %4930 = vmatpush.bf16.msra.mxu3 %v11376_v38  ;;  %v4309_v5 = vpop.f32.mrf.mxu2 }
 0x77a   :  { %v4310_v37 = vadd.f32 %v4309_v5, %v4261_v34  ;;  %v11380_v5 = vld [vmem:[#allocation212_spill] sm:$0xff] }
 0x77b   :  { %v4351_v53 = vpop.f32.mrf.mxu3  ;;  %4888 = vmatpush.bf16.msra.mxu2 %v9883_v54  ;;  %v11379_v54 = vld [vmem:[#allocation208_spill] sm:$0xff] }
 0x77c   :  { %v4352_v47 = vadd.f32 %v4351_v53, %v4303_v35 }
 0x77d   :  { %4931 = vmatpush.bf16.msra.mxu3 %v11377_v20  ;;  %v4219_v50 = vpop.f32.mrf.mxu0 }
 0x77e   :  { %v4220_v40 = vadd.f32 %v4219_v50, %v11356_v8  ;;  %v4268_v16 = vpop.f32.mrf.mxu1  ;;  %4507 = vmatmul.bf16.gmra.mxu2 %v10344_v6 }
 0x780   :  { %v4269_v24 = vadd.f32 %v4268_v16, %v4220_v40  ;;  %4414 = vmatmul.bf16.gmra.mxu0 %v10236_v45  ;;  %v11381_v16 = vld [vmem:[#allocation216_spill] sm:$0xff] }
 0x781   :  { %4932 = vmatpush.bf16.msra.mxu3 %v11378_v52  ;;  %4463 = vmatmul.bf16.gmra.mxu1 %v10255_v39  ;;  %v4312_v34 = vpop.f32.mrf.mxu2 }
 0x782   :  { %v4313_v43 = vadd.f32 %v4312_v34, %v4264_v3 }
 0x783   :  { %v4353_v35 = vpop.f32.mrf.mxu3 }
 0x784   :  { %v4354_v44 = vadd.f32 %v4353_v35, %v4305_v55  ;;  %v11382_v35 = vld [vmem:[#allocation220_spill] sm:$0xff] }
 0x785   :  { %4933 = vmatpush.bf16.msra.mxu3 %v11379_v54  ;;  %v4221_v25 = vpop.f32.mrf.mxu0 }
 0x786   :  { %v4979_v36 = vmax.f32 %v4352_v47, %v4354_v44  ;;  %v4222_v21 = vadd.f32 %v4221_v25, %v11356_v8  ;;  %v4270_v7 = vpop.f32.mrf.mxu1 }
 0x788   :  { %4551 = vmatmul.bf16.gmra.mxu3 %v10354_v18  ;;  %v4271_v38 = vadd.f32 %v4270_v7, %v4222_v21 }
 0x789   :  { %4934 = vmatpush.bf16.msra.mxu3 %v11380_v5  ;;  %v4314_v53 = vpop.f32.mrf.mxu2 }
 0x78a   :  { %v4315_v20 = vadd.f32 %v4314_v53, %v4266_v23 }
 0x78b   :  { %v4356_v50 = vpop.f32.mrf.mxu3 }
 0x78c   :  { %v4357_v40 = vadd.f32 %v4356_v50, %v4308_v58 }
 0x78d   :  { %4935 = vmatpush.bf16.msra.mxu3 %v11381_v16  ;;  %v4224_v55 = vpop.f32.mrf.mxu0 }
 0x78e   :  { %v4980_v3 = vmax.f32 %v4979_v36, %v4357_v40  ;;  %v4225_v52 = vadd.f32 %v4224_v55, %v11356_v8  ;;  %v4273_v47 = vpop.f32.mrf.mxu1  ;;  %4512 = vmatmul.bf16.gmra.mxu2 %v10360_v63 }
 0x790   :  { %v4274_v34 = vadd.f32 %v4273_v47, %v4225_v52  ;;  %4419 = vmatmul.bf16.gmra.mxu0 %v10248_v27 }
 0x791   :  { %4936 = vmatpush.bf16.msra.mxu3 %v11382_v35  ;;  %4468 = vmatmul.bf16.gmra.mxu1 %v10267_v28  ;;  %v4317_v44 = vpop.f32.mrf.mxu2 }
 0x792   :  { %v4318_v23 = vadd.f32 %v4317_v44, %v4269_v24 }
 0x793   :  { %v4358_v54 = vpop.f32.mrf.mxu3 }
 0x794   :  { %v4359_v58 = vadd.f32 %v4358_v54, %v4310_v37 }
 0x795   :  { %4937 = vmatpush.bf16.msra.mxu3 %v9889_v13  ;;  %v4226_v25 = vpop.f32.mrf.mxu0 }
 0x796   :  { %v4981_v36 = vmax.f32 %v4980_v3, %v4359_v58  ;;  %v4227_v21 = vadd.f32 %v4226_v25, %v11356_v8  ;;  %v4275_v7 = vpop.f32.mrf.mxu1 }
 0x798   :  { %4556 = vmatmul.bf16.gmra.mxu3 %v10370_v22  ;;  %v4276_v5 = vadd.f32 %v4275_v7, %v4227_v21 }
 0x799   :  { %v4319_v53 = vpop.f32.mrf.mxu2 }
 0x79a   :  { %v4320_v50 = vadd.f32 %v4319_v53, %v4271_v38 }
 0x79b   :  { %v4361_v40 = vpop.f32.mrf.mxu3 }
 0x79c   :  { %v4362_v16 = vadd.f32 %v4361_v40, %v4313_v43 }
 0x79d   :  { %v4229_v52 = vpop.f32.mrf.mxu0 }
 0x79e   :  { %v4982_v55 = vmax.f32 %v4981_v36, %v4362_v16  ;;  %v4230_v24 = vadd.f32 %v4229_v52, %v11356_v8  ;;  %v4278_v47 = vpop.f32.mrf.mxu1  ;;  %4517 = vmatmul.bf16.gmra.mxu2 %v10375_v59 }
 0x7a0   :  { %v4279_v13 = vadd.f32 %v4278_v47, %v4230_v24  ;;  %4424 = vmatmul.bf16.gmra.mxu0 %v10260_v49 }
 0x7a1   :  { %4473 = vmatmul.bf16.gmra.mxu1 %v10279_v48  ;;  %v4322_v37 = vpop.f32.mrf.mxu2 }
 0x7a2   :  { %v4323_v3 = vadd.f32 %v4322_v37, %v4274_v34 }
 0x7a3   :  { %v4363_v35 = vpop.f32.mrf.mxu3 }
 0x7a4   :  { %v4364_v44 = vadd.f32 %v4363_v35, %v4315_v20 }
 0x7a5   :  { %v4231_v38 = vpop.f32.mrf.mxu0 }
 0x7a6   :  { %v4983_v54 = vmax.f32 %v4982_v55, %v4364_v44  ;;  %v4232_v43 = vadd.f32 %v4231_v38, %v11356_v8  ;;  %v4280_v58 = vpop.f32.mrf.mxu1 }
 0x7a8   :  { %4561 = vmatmul.bf16.gmra.mxu3 %v10382_v46  ;;  %v4281_v36 = vadd.f32 %v4280_v58, %v4232_v43 }
 0x7a9   :  { %v4324_v25 = vpop.f32.mrf.mxu2 }
 0x7aa   :  { %v4325_v21 = vadd.f32 %v4324_v25, %v4276_v5 }
 0x7ab   :  { %v4366_v7 = vpop.f32.mrf.mxu3 }
 0x7ac   :  { %v4367_v53 = vadd.f32 %v4366_v7, %v4318_v23 }
 0x7ad   :  { %v4234_v16 = vpop.f32.mrf.mxu0 }
 0x7ae   :  { %v4984_v40 = vmax.f32 %v4983_v54, %v4367_v53  ;;  %v4235_v52 = vadd.f32 %v4234_v16, %v11356_v8  ;;  %v4283_v24 = vpop.f32.mrf.mxu1  ;;  %4522 = vmatmul.bf16.gmra.mxu2 %v10387_v41 }
 0x7b0   :  { %v4284_v20 = vadd.f32 %v4283_v24, %v4235_v52  ;;  %4429 = vmatmul.bf16.gmra.mxu0 %v10272_v4 }
 0x7b1   :  { %4478 = vmatmul.bf16.gmra.mxu1 %v10293_v1  ;;  %v4327_v34 = vpop.f32.mrf.mxu2 }
 0x7b2   :  { %v4328_v55 = vadd.f32 %v4327_v34, %v4279_v13 }
 0x7b3   :  { %v4368_v47 = vpop.f32.mrf.mxu3 }
 0x7b4   :  { %v4369_v37 = vadd.f32 %v4368_v47, %v4320_v50 }
 0x7b5   :  { %v4236_v5 = vpop.f32.mrf.mxu0 }
 0x7b6   :  { %v4985_v35 = vmax.f32 %v4984_v40, %v4369_v37  ;;  %v4237_v23 = vadd.f32 %v4236_v5, %v11356_v8  ;;  %v4285_v44 = vpop.f32.mrf.mxu1 }
 0x7b8   :  { %4566 = vmatmul.bf16.gmra.mxu3 %v10394_v30  ;;  %v4286_v54 = vadd.f32 %v4285_v44, %v4237_v23 }
 0x7b9   :  { %v4329_v38 = vpop.f32.mrf.mxu2 }
 0x7ba   :  { %v4330_v43 = vadd.f32 %v4329_v38, %v4281_v36 }
 0x7bb   :  { %v4371_v58 = vpop.f32.mrf.mxu3 }
 0x7bc   :  { %v4372_v25 = vadd.f32 %v4371_v58, %v4323_v3 }
 0x7bd   :  { %v4239_v53 = vpop.f32.mrf.mxu0 }
 0x7be   :  { %v4986_v7 = vmax.f32 %v4985_v35, %v4372_v25  ;;  %v4240_v16 = vadd.f32 %v4239_v53, %v11356_v8  ;;  %v4288_v52 = vpop.f32.mrf.mxu1  ;;  %4527 = vmatmul.bf16.gmra.mxu2 %v10399_v60 }
 0x7c0   :  { %v4289_v50 = vadd.f32 %v4288_v52, %v4240_v16  ;;  %4434 = vmatmul.bf16.gmra.mxu0 %v10284_v11 }
 0x7c1   :  { %4483 = vmatmul.bf16.gmra.mxu1 %v10315_v19  ;;  %v4332_v13 = vpop.f32.mrf.mxu2 }
 0x7c2   :  { %v4333_v40 = vadd.f32 %v4332_v13, %v4284_v20 }
 0x7c3   :  { %v4373_v24 = vpop.f32.mrf.mxu3 }
 0x7c4   :  { %v4374_v34 = vadd.f32 %v4373_v24, %v4325_v21 }
 0x7c5   :  { %v4241_v36 = vpop.f32.mrf.mxu0 }
 0x7c6   :  { %v4987_v47 = vmax.f32 %v4986_v7, %v4374_v34  ;;  %v4242_v3 = vadd.f32 %v4241_v36, %v11356_v8  ;;  %v4290_v37 = vpop.f32.mrf.mxu1 }
 0x7c8   :  { %4571 = vmatmul.bf16.gmra.mxu3 %v10406_v29  ;;  %v4291_v35 = vadd.f32 %v4290_v37, %v4242_v3 }
 0x7c9   :  { %v4334_v5 = vpop.f32.mrf.mxu2 }
 0x7ca   :  { %v4335_v23 = vadd.f32 %v4334_v5, %v4286_v54 }
 0x7cb   :  { %v4376_v44 = vpop.f32.mrf.mxu3 }
 0x7cc   :  { %v4377_v38 = vadd.f32 %v4376_v44, %v4328_v55 }
 0x7cd   :  { %v4400_v25 = vpop.f32.mrf.mxu0 }
 0x7ce   :  { %v4988_v58 = vmax.f32 %v4987_v47, %v4377_v38  ;;  %v4401_v53 = vadd.f32 %v4400_v25, %v9747_v10  ;;  %v4449_v16 = vpop.f32.mrf.mxu1  ;;  %4532 = vmatmul.bf16.gmra.mxu2 %v10411_v33 }
 0x7d0   :  { %v4450_v21 = vadd.f32 %v4449_v16, %v4401_v53  ;;  %4595 = vmatmul.bf16.vlgmr.msrb.gmra.mxu0 %v10175_v51 }
 0x7d1   :  { %4644 = vmatmul.bf16.vlgmr.msrb.gmra.mxu1 %v10213_v2  ;;  %v4337_v8 = vpop.f32.mrf.mxu2 }
 0x7d2   :  { %v4338_v20 = vadd.f32 %v4337_v8, %v4289_v50 }
 0x7d3   :  { %v4378_v7 = vpop.f32.mrf.mxu3 }
 0x7d4   :  { %v4379_v52 = vadd.f32 %v4378_v7, %v4330_v43 }
 0x7d5   :  { %v4402_v54 = vpop.f32.mrf.mxu0 }
 0x7d6   :  { %v4989_v13 = vmax.f32 %v4988_v58, %v4379_v52  ;;  %v4403_v55 = vadd.f32 %v4402_v54, %v9747_v10  ;;  %v4451_v24 = vpop.f32.mrf.mxu1 }
 0x7d8   :  { %4576 = vmatmul.bf16.gmra.mxu3 %v10420_v61  ;;  %v4452_v34 = vadd.f32 %v4451_v24, %v4403_v55 }
 0x7d9   :  { %v4339_v47 = vpop.f32.mrf.mxu2 }
 0x7da   :  { %v4340_v36 = vadd.f32 %v4339_v47, %v4291_v35  ;;  %v11383_v47 = vld [vmem:[#allocation202_spill] sm:$0xff] }
 0x7db   :  { %v4381_v3 = vpop.f32.mrf.mxu3 }
 0x7dc   :  { %v4382_v37 = vadd.f32 %v4381_v3, %v4333_v40  ;;  %v3558_v3 = vrot.slane %v11383_v47, 4 }
 0x7dd   :  { %v4405_v44 = vpop.f32.mrf.mxu0 }
 0x7de   :  { %v4990_v5 = vmax.f32 %v4989_v13, %v4382_v37  ;;  %v4406_v38 = vadd.f32 %v4405_v44, %v9747_v10  ;;  %v4454_v25 = vpop.f32.mrf.mxu1  ;;  %4693 = vmatmul.bf16.vlgmr.msrb.gmra.mxu2 %v10302_v56 }
 0x7e0   :  { %v4455_v43 = vadd.f32 %v4454_v25, %v4406_v38  ;;  %4600 = vmatmul.bf16.gmra.mxu0 %v10200_v12 }
 0x7e1   :  { %4649 = vmatmul.bf16.gmra.mxu1 %v10231_v9  ;;  %v4498_v50 = vpop.f32.mrf.mxu2 }
 0x7e2   :  { %v4499_v53 = vadd.f32 %v4498_v50, %v4450_v21 }
 0x7e3   :  { %v4383_v58 = vpop.f32.mrf.mxu3 }
 0x7e4   :  { %v4384_v16 = vadd.f32 %v4383_v58, %v4335_v23 }
 0x7e5   :  { %v4407_v35 = vpop.f32.mrf.mxu0 }
 0x7e6   :  { %v4991_v8 = vmax.f32 %v4990_v5, %v4384_v16  ;;  %v4408_v40 = vadd.f32 %v4407_v35, %v9747_v10  ;;  %v4456_v7 = vpop.f32.mrf.mxu1  ;;  %v3559_v5 = vmax.f32 %v11383_v47, %v3558_v3 }
 0x7e8   :  { %4581 = vmatmul.bf16.gmra.mxu3 %v10440_v14  ;;  %v4457_v52 = vadd.f32 %v4456_v7, %v4408_v40  ;;  %v3560_v58 = vrot.slane %v3559_v5, 2 }
 0x7e9   :  { %v4500_v13 = vpop.f32.mrf.mxu2 }
 0x7ea   :  { %v4501_v55 = vadd.f32 %v4500_v13, %v4452_v34 }
 0x7eb   :  { %v4386_v54 = vpop.f32.mrf.mxu3 }
 0x7ec   :  { %v4387_v24 = vadd.f32 %v4386_v54, %v4338_v20  ;;  %v3561_v54 = vmax.f32 %v3559_v5, %v3560_v58 }
 0x7ed   :  { %v4410_v44 = vpop.f32.mrf.mxu0 }
 0x7ee   :  { %v4992_v37 = vmax.f32 %v4991_v8, %v4387_v24  ;;  %v4411_v38 = vadd.f32 %v4410_v44, %v9747_v10  ;;  %v4459_v21 = vpop.f32.mrf.mxu1  ;;  %4698 = vmatmul.bf16.gmra.mxu2 %v10325_v0  ;;  %v3562_v15 = vrot.slane %v3561_v54, 1 }
 0x7f0   :  { %v4460_v23 = vadd.f32 %v4459_v21, %v4411_v38  ;;  %4605 = vmatmul.bf16.gmra.mxu0 %v10222_v17  ;;  %v3563_v5 = vmax.f32 %v3561_v54, %v3562_v15 }
 0x7f1   :  { %4654 = vmatmul.bf16.gmra.mxu1 %v10243_v42  ;;  %v4503_v25 = vpop.f32.mrf.mxu2 }
 0x7f2   :  { %v4504_v34 = vadd.f32 %v4503_v25, %v4455_v43 }
 0x7f3   :  { %v4388_v50 = vpop.f32.mrf.mxu3 }
 0x7f4   :  { %v4389_v20 = vadd.f32 %v4388_v50, %v4340_v36 }
 0x7f5   :  { %v4412_v8 = vpop.f32.mrf.mxu0 }
 0x7f6   :  { %v4993_v16 = vmax.f32 %v4992_v37, %v4389_v20  ;;  %v4413_v35 = vadd.f32 %v4412_v8, %v9747_v10  ;;  %v4461_v40 = vpop.f32.mrf.mxu1 }
 0x7f8   :  { %v4994_v7 = vrot.slane %v4993_v16, 4  ;;  %4742 = vmatmul.bf16.vlgmr.msrb.gmra.mxu3 %v10336_v26  ;;  %v4462_v13 = vadd.f32 %v4461_v40, %v4413_v35 }
 0x7f9   :  { %v4505_v44 = vpop.f32.mrf.mxu2 }
 0x7fa   :  { %v4995_v24 = vmax.f32 %v4993_v16, %v4994_v7  ;;  %v4506_v47 = vadd.f32 %v4505_v44, %v4457_v52 }
 0x7fb   :  { %v4547_v3 = vpop.f32.mrf.mxu3 }
 0x7fc   :  { %v4996_v38 = vrot.slane %v4995_v24, 2  ;;  %v4548_v21 = vadd.f32 %v4547_v3, %v4499_v53 }
 0x7fd   :  { %v4415_v36 = vpop.f32.mrf.mxu0 }
 0x7fe   :  { %v4997_v43 = vmax.f32 %v4995_v24, %v4996_v38  ;;  %v4416_v37 = vadd.f32 %v4415_v36, %v9747_v10  ;;  %v4464_v25 = vpop.f32.mrf.mxu1  ;;  %4703 = vmatmul.bf16.gmra.mxu2 %v10344_v6 }
 0x800   :  { %v4998_v50 = vrot.slane %v4997_v43, 1  ;;  %v4465_v20 = vadd.f32 %v4464_v25, %v4416_v37  ;;  %4610 = vmatmul.bf16.gmra.mxu0 %v10236_v45 }
 0x801   :  { %4659 = vmatmul.bf16.gmra.mxu1 %v10255_v39  ;;  %v4508_v52 = vpop.f32.mrf.mxu2 }
 0x802   :  { %v4999_v58 = vmax.f32 %v4997_v43, %v4998_v50  ;;  %v4509_v16 = vadd.f32 %v4508_v52, %v4460_v23 }
 0x803   :  { %v4549_v53 = vpop.f32.mrf.mxu3 }
 0x804   :  { %v10525_v8 = vsel %vm5063_vm3, %v3563_v5, %v4999_v58  ;;  %v4550_v35 = vadd.f32 %v4549_v53, %v4501_v55 }
 0x805   :  { %v4417_v7 = vpop.f32.mrf.mxu0 }
 0x806   :  { %v5000_v40 = vmax.f32 %v4548_v21, %v4550_v35  ;;  %v4418_v24 = vadd.f32 %v4417_v7, %v9747_v10  ;;  %v4466_v44 = vpop.f32.mrf.mxu1 }
 0x808   :  { %4747 = vmatmul.bf16.gmra.mxu3 %v10354_v18  ;;  %v4467_v3 = vadd.f32 %v4466_v44, %v4418_v24 }
 0x809   :  { %v4510_v38 = vpop.f32.mrf.mxu2 }
 0x80a   :  { %v4511_v15 = vadd.f32 %v4510_v38, %v4462_v13 }
 0x80b   :  { %v4552_v54 = vpop.f32.mrf.mxu3 }
 0x80c   :  { %v4553_v43 = vadd.f32 %v4552_v54, %v4504_v34 }
 0x80d   :  { %v4420_v37 = vpop.f32.mrf.mxu0 }
 0x80e   :  { %v5001_v36 = vmax.f32 %v5000_v40, %v4553_v43  ;;  %v4421_v23 = vadd.f32 %v4420_v37, %v9747_v10  ;;  %v4469_v25 = vpop.f32.mrf.mxu1  ;;  %4708 = vmatmul.bf16.gmra.mxu2 %v10360_v63 }
 0x810   :  { %v4470_v55 = vadd.f32 %v4469_v25, %v4421_v23  ;;  %4615 = vmatmul.bf16.gmra.mxu0 %v10248_v27 }
 0x811   :  { %4664 = vmatmul.bf16.gmra.mxu1 %v10267_v28  ;;  %v4513_v21 = vpop.f32.mrf.mxu2 }
 0x812   :  { %v4514_v50 = vadd.f32 %v4513_v21, %v4465_v20 }
 0x813   :  { %v4554_v5 = vpop.f32.mrf.mxu3 }
 0x814   :  { %v4555_v58 = vadd.f32 %v4554_v5, %v4506_v47 }
 0x815   :  { %v4422_v13 = vpop.f32.mrf.mxu0 }
 0x816   :  { %v5002_v52 = vmax.f32 %v5001_v36, %v4555_v58  ;;  %v4423_v34 = vadd.f32 %v4422_v13, %v9747_v10  ;;  %v4471_v53 = vpop.f32.mrf.mxu1 }
 0x818   :  { %4752 = vmatmul.bf16.gmra.mxu3 %v10370_v22  ;;  %v4472_v35 = vadd.f32 %v4471_v53, %v4423_v34 }
 0x819   :  { %v4515_v40 = vpop.f32.mrf.mxu2 }
 0x81a   :  { %v4516_v7 = vadd.f32 %v4515_v40, %v4467_v3 }
 0x81b   :  { %v4557_v24 = vpop.f32.mrf.mxu3 }
 0x81c   :  { %v4558_v44 = vadd.f32 %v4557_v24, %v4509_v16 }
 0x81d   :  { %v4425_v54 = vpop.f32.mrf.mxu0 }
 0x81e   :  { %v5003_v38 = vmax.f32 %v5002_v52, %v4558_v44  ;;  %v4426_v43 = vadd.f32 %v4425_v54, %v9747_v10  ;;  %v4474_v37 = vpop.f32.mrf.mxu1  ;;  %4713 = vmatmul.bf16.gmra.mxu2 %v10375_v59 }
 0x820   :  { %v4475_v47 = vadd.f32 %v4474_v37, %v4426_v43  ;;  %4620 = vmatmul.bf16.gmra.mxu0 %v10260_v49 }
 0x821   :  { %4669 = vmatmul.bf16.gmra.mxu1 %v10279_v48  ;;  %v4518_v20 = vpop.f32.mrf.mxu2 }
 0x822   :  { %v4519_v36 = vadd.f32 %v4518_v20, %v4470_v55 }
 0x823   :  { %v4559_v23 = vpop.f32.mrf.mxu3 }
 0x824   :  { %v4560_v25 = vadd.f32 %v4559_v23, %v4511_v15 }
 0x825   :  { %v4427_v3 = vpop.f32.mrf.mxu0 }
 0x826   :  { %v5004_v21 = vmax.f32 %v5003_v38, %v4560_v25  ;;  %v4428_v16 = vadd.f32 %v4427_v3, %v9747_v10  ;;  %v4476_v5 = vpop.f32.mrf.mxu1 }
 0x828   :  { %4757 = vmatmul.bf16.gmra.mxu3 %v10382_v46  ;;  %v4477_v58 = vadd.f32 %v4476_v5, %v4428_v16 }
 0x829   :  { %v4520_v52 = vpop.f32.mrf.mxu2 }
 0x82a   :  { %v4521_v13 = vadd.f32 %v4520_v52, %v4472_v35 }
 0x82b   :  { %v4562_v34 = vpop.f32.mrf.mxu3 }
 0x82c   :  { %v4563_v53 = vadd.f32 %v4562_v34, %v4514_v50 }
 0x82d   :  { %v4430_v24 = vpop.f32.mrf.mxu0 }
 0x82e   :  { %v5005_v40 = vmax.f32 %v5004_v21, %v4563_v53  ;;  %v4431_v44 = vadd.f32 %v4430_v24, %v9747_v10  ;;  %v4479_v54 = vpop.f32.mrf.mxu1  ;;  %4718 = vmatmul.bf16.gmra.mxu2 %v10387_v41 }
 0x830   :  { %v4480_v15 = vadd.f32 %v4479_v54, %v4431_v44  ;;  %4625 = vmatmul.bf16.gmra.mxu0 %v10272_v4 }
 0x831   :  { %4674 = vmatmul.bf16.gmra.mxu1 %v10293_v1  ;;  %v4523_v55 = vpop.f32.mrf.mxu2 }
 0x832   :  { %v4524_v38 = vadd.f32 %v4523_v55, %v4475_v47 }
 0x833   :  { %v4564_v43 = vpop.f32.mrf.mxu3 }
 0x834   :  { %v4565_v37 = vadd.f32 %v4564_v43, %v4516_v7 }
 0x835   :  { %v4432_v35 = vpop.f32.mrf.mxu0 }
 0x836   :  { %v5006_v20 = vmax.f32 %v5005_v40, %v4565_v37  ;;  %v4433_v50 = vadd.f32 %v4432_v35, %v9747_v10  ;;  %v4481_v23 = vpop.f32.mrf.mxu1 }
 0x838   :  { %4762 = vmatmul.bf16.gmra.mxu3 %v10394_v30  ;;  %v4482_v25 = vadd.f32 %v4481_v23, %v4433_v50 }
 0x839   :  { %v4525_v21 = vpop.f32.mrf.mxu2 }
 0x83a   :  { %v4526_v3 = vadd.f32 %v4525_v21, %v4477_v58 }
 0x83b   :  { %v4567_v16 = vpop.f32.mrf.mxu3 }
 0x83c   :  { %v4568_v5 = vadd.f32 %v4567_v16, %v4519_v36 }
 0x83d   :  { %v4435_v34 = vpop.f32.mrf.mxu0 }
 0x83e   :  { %v5007_v52 = vmax.f32 %v5006_v20, %v4568_v5  ;;  %v4436_v53 = vadd.f32 %v4435_v34, %v9747_v10  ;;  %v4484_v24 = vpop.f32.mrf.mxu1  ;;  %4723 = vmatmul.bf16.gmra.mxu2 %v10399_v60 }
 0x840   :  { %v4485_v7 = vadd.f32 %v4484_v24, %v4436_v53  ;;  %4630 = vmatmul.bf16.gmra.mxu0 %v10284_v11 }
 0x841   :  { %4679 = vmatmul.bf16.gmra.mxu1 %v10315_v19  ;;  %v4528_v47 = vpop.f32.mrf.mxu2 }
 0x842   :  { %v4529_v40 = vadd.f32 %v4528_v47, %v4480_v15 }
 0x843   :  { %v4569_v44 = vpop.f32.mrf.mxu3 }
 0x844   :  { %v4570_v54 = vadd.f32 %v4569_v44, %v4521_v13 }
 0x845   :  { %v4437_v58 = vpop.f32.mrf.mxu0 }
 0x846   :  { %v5008_v55 = vmax.f32 %v5007_v52, %v4570_v54  ;;  %v4438_v36 = vadd.f32 %v4437_v58, %v9747_v10  ;;  %v4486_v43 = vpop.f32.mrf.mxu1 }
 0x848   :  { %4767 = vmatmul.bf16.gmra.mxu3 %v10406_v29  ;;  %v4487_v37 = vadd.f32 %v4486_v43, %v4438_v36 }
 0x849   :  { %v4530_v20 = vpop.f32.mrf.mxu2 }
 0x84a   :  { %v4531_v35 = vadd.f32 %v4530_v20, %v4482_v25 }
 0x84b   :  { %v4572_v50 = vpop.f32.mrf.mxu3 }
 0x84c   :  { %v4573_v23 = vadd.f32 %v4572_v50, %v4524_v38 }
 0x84d   :  { %v4596_v16 = vpop.f32.mrf.mxu0 }
 0x84e   :  { %v5009_v21 = vmax.f32 %v5008_v55, %v4573_v23  ;;  %v4597_v5 = vadd.f32 %v4596_v16, %v9919_v62  ;;  %v4645_v34 = vpop.f32.mrf.mxu1  ;;  %4728 = vmatmul.bf16.gmra.mxu2 %v10411_v33 }
 0x850   :  { %v4646_v13 = vadd.f32 %v4645_v34, %v4597_v5  ;;  %4791 = vmatmul.bf16.vlgmr.msra.gmra.mxu0 %v10175_v51 }
 0x851   :  { %4840 = vmatmul.bf16.vlgmr.msra.gmra.mxu1 %v10213_v2  ;;  %v4533_v10 = vpop.f32.mrf.mxu2 }
 0x852   :  { %v4534_v15 = vadd.f32 %v4533_v10, %v4485_v7 }
 0x853   :  { %v4574_v52 = vpop.f32.mrf.mxu3 }
 0x854   :  { %v4575_v53 = vadd.f32 %v4574_v52, %v4526_v3 }
 0x855   :  { %v4598_v25 = vpop.f32.mrf.mxu0 }
 0x856   :  { %v5010_v24 = vmax.f32 %v5009_v21, %v4575_v53  ;;  %v4599_v38 = vadd.f32 %v4598_v25, %v9919_v62  ;;  %v4647_v47 = vpop.f32.mrf.mxu1 }
 0x858   :  { %4772 = vmatmul.bf16.gmra.mxu3 %v10420_v61  ;;  %v4648_v44 = vadd.f32 %v4647_v47, %v4599_v38 }
 0x859   :  { %v4535_v54 = vpop.f32.mrf.mxu2 }
 0x85a   :  { %v4536_v55 = vadd.f32 %v4535_v54, %v4487_v37 }
 0x85b   :  { %v4577_v58 = vpop.f32.mrf.mxu3 }
 0x85c   :  { %v4578_v36 = vadd.f32 %v4577_v58, %v4529_v40 }
 0x85d   :  { %v4601_v51 = vpop.f32.mrf.mxu0 }
 0x85e   :  { %v5011_v43 = vmax.f32 %v5010_v24, %v4578_v36  ;;  %v4602_v2 = vadd.f32 %v4601_v51, %v9919_v62  ;;  %v4650_v20 = vpop.f32.mrf.mxu1  ;;  %4889 = vmatmul.bf16.vlgmr.msra.gmra.mxu2 %v10302_v56 }
 0x860   :  { %v4651_v3 = vadd.f32 %v4650_v20, %v4602_v2  ;;  %4796 = vmatmul.bf16.gmra.mxu0 %v10200_v12  ;;  %v3579_v12 = vrot.slane %v9953_v57, 4 }
 0x861   :  { %4845 = vmatmul.bf16.gmra.mxu1 %v10231_v9  ;;  %v4694_v7 = vpop.f32.mrf.mxu2 }
 0x862   :  { %v4695_v23 = vadd.f32 %v4694_v7, %v4646_v13  ;;  %v3580_v38 = vmax.f32 %v9953_v57, %v3579_v12 }
 0x863   :  { %v4579_v50 = vpop.f32.mrf.mxu3 }
 0x864   :  { %v4580_v21 = vadd.f32 %v4579_v50, %v4531_v35  ;;  %v3581_v58 = vrot.slane %v3580_v38, 2 }
 0x865   :  { %v4603_v37 = vpop.f32.mrf.mxu0 }
 0x866   :  { %v5012_v16 = vmax.f32 %v5011_v43, %v4580_v21  ;;  %v4604_v40 = vadd.f32 %v4603_v37, %v9919_v62  ;;  %v4652_v5 = vpop.f32.mrf.mxu1  ;;  %v3582_v7 = vmax.f32 %v3580_v38, %v3581_v58 }
 0x868   :  { %4777 = vmatmul.bf16.gmra.mxu3 %v10440_v14  ;;  %v4653_v34 = vadd.f32 %v4652_v5, %v4604_v40  ;;  %v3583_v37 = vrot.slane %v3582_v7, 1 }
 0x869   :  { %v4696_v10 = vpop.f32.mrf.mxu2 }
 0x86a   :  { %v4697_v56 = vadd.f32 %v4696_v10, %v4648_v44 }
 0x86b   :  { %v4582_v52 = vpop.f32.mrf.mxu3 }
 0x86c   :  { %v4583_v53 = vadd.f32 %v4582_v52, %v4534_v15 }
 0x86d   :  { %v4606_v9 = vpop.f32.mrf.mxu0 }
 0x86e   :  { %v5013_v24 = vmax.f32 %v5012_v16, %v4583_v53  ;;  %v4607_v25 = vadd.f32 %v4606_v9, %v9919_v62  ;;  %v4655_v13 = vpop.f32.mrf.mxu1  ;;  %4894 = vmatmul.bf16.gmra.mxu2 %v10325_v0 }
 0x870   :  { %v4656_v35 = vadd.f32 %v4655_v13, %v4607_v25  ;;  %4801 = vmatmul.bf16.gmra.mxu0 %v10222_v17 }
 0x871   :  { %4850 = vmatmul.bf16.gmra.mxu1 %v10243_v42  ;;  %v4699_v47 = vpop.f32.mrf.mxu2 }
 0x872   :  { %v4700_v44 = vadd.f32 %v4699_v47, %v4651_v3 }
 0x873   :  { %v4584_v54 = vpop.f32.mrf.mxu3 }
 0x874   :  { %v4585_v15 = vadd.f32 %v4584_v54, %v4536_v55 }
 0x875   :  { %v4608_v43 = vpop.f32.mrf.mxu0 }
 0x876   :  { %v5014_v36 = vmax.f32 %v5013_v24, %v4585_v15  ;;  %v4609_v51 = vadd.f32 %v4608_v43, %v9919_v62  ;;  %v4657_v2 = vpop.f32.mrf.mxu1 }
 0x878   :  { %v5015_v20 = vrot.slane %v5014_v36, 4  ;;  %4938 = vmatmul.bf16.vlgmr.msra.gmra.mxu3 %v10336_v26  ;;  %v4658_v0 = vadd.f32 %v4657_v2, %v4609_v51  ;;  %v3584_v26 = vmax.f32 %v3582_v7, %v3583_v37 }
 0x879   :  { %v4701_v50 = vpop.f32.mrf.mxu2 }
 0x87a   :  { %v5016_v17 = vmax.f32 %v5014_v36, %v5015_v20  ;;  %v4702_v57 = vadd.f32 %v4701_v50, %v4653_v34 }
 0x87b   :  { %v4743_v21 = vpop.f32.mrf.mxu3 }
 0x87c   :  { %v5017_v42 = vrot.slane %v5016_v17, 2  ;;  %v4744_v16 = vadd.f32 %v4743_v21, %v4695_v23 }
 0x87d   :  { %v4611_v55 = vpop.f32.mrf.mxu0 }
 0x87e   :  { %v5018_v3 = vmax.f32 %v5016_v17, %v5017_v42  ;;  %v4612_v40 = vadd.f32 %v4611_v55, %v9919_v62  ;;  %v4660_v5 = vpop.f32.mrf.mxu1  ;;  %4899 = vmatmul.bf16.gmra.mxu2 %v10344_v6 }
 0x880   :  { %v5019_v10 = vrot.slane %v5018_v3, 1  ;;  %v4661_v52 = vadd.f32 %v4660_v5, %v4612_v40  ;;  %4806 = vmatmul.bf16.gmra.mxu0 %v10236_v45 }
 0x881   :  { %4855 = vmatmul.bf16.gmra.mxu1 %v10255_v39  ;;  %v4704_v34 = vpop.f32.mrf.mxu2 }
 0x882   :  { %v5020_v53 = vmax.f32 %v5018_v3, %v5019_v10  ;;  %v4705_v12 = vadd.f32 %v4704_v34, %v4656_v35 }
 0x883   :  { %v4745_v24 = vpop.f32.mrf.mxu3 }
 0x884   :  { %v10578_v23 = vsel %vm5063_vm3, %v3584_v26, %v5020_v53  ;;  %v4746_v9 = vadd.f32 %v4745_v24, %v4697_v56 }
 0x885   :  { %v4613_v13 = vpop.f32.mrf.mxu0 }
 0x886   :  { %v5021_v25 = vmax.f32 %v4744_v16, %v4746_v9  ;;  %v4614_v38 = vadd.f32 %v4613_v13, %v9919_v62  ;;  %v4662_v6 = vpop.f32.mrf.mxu1 }
 0x888   :  { %4943 = vmatmul.bf16.gmra.mxu3 %v10354_v18  ;;  %v4663_v47 = vadd.f32 %v4662_v6, %v4614_v38 }
 0x889   :  { %v4706_v45 = vpop.f32.mrf.mxu2 }
 0x88a   :  { %v4707_v54 = vadd.f32 %v4706_v45, %v4658_v0 }
 0x88b   :  { %v4748_v15 = vpop.f32.mrf.mxu3 }
 0x88c   :  { %v4749_v58 = vadd.f32 %v4748_v15, %v4700_v44 }
 0x88d   :  { %v4616_v36 = vpop.f32.mrf.mxu0 }
 0x88e   :  { %v5022_v39 = vmax.f32 %v5021_v25, %v4749_v58  ;;  %v4617_v35 = vadd.f32 %v4616_v36, %v9919_v62  ;;  %v4665_v43 = vpop.f32.mrf.mxu1  ;;  %4904 = vmatmul.bf16.gmra.mxu2 %v10360_v63 }
 0x890   :  { %v4666_v56 = vadd.f32 %v4665_v43, %v4617_v35  ;;  %4811 = vmatmul.bf16.gmra.mxu0 %v10248_v27 }
 0x891   :  { %4860 = vmatmul.bf16.gmra.mxu1 %v10267_v28  ;;  %v4709_v51 = vpop.f32.mrf.mxu2 }
 0x892   :  { %v4710_v2 = vadd.f32 %v4709_v51, %v4661_v52 }
 0x893   :  { %v4750_v18 = vpop.f32.mrf.mxu3 }
 0x894   :  { %v4751_v20 = vadd.f32 %v4750_v18, %v4702_v57 }
 0x895   :  { %v4618_v0 = vpop.f32.mrf.mxu0 }
 0x896   :  { %v5023_v7 = vmax.f32 %v5022_v39, %v4751_v20  ;;  %v4619_v44 = vadd.f32 %v4618_v0, %v9919_v62  ;;  %v4667_v17 = vpop.f32.mrf.mxu1 }
 0x898   :  { %4948 = vmatmul.bf16.gmra.mxu3 %v10370_v22  ;;  %v4668_v50 = vadd.f32 %v4667_v17, %v4619_v44 }
 0x899   :  { %v4711_v21 = vpop.f32.mrf.mxu2 }
 0x89a   :  { %v4712_v42 = vadd.f32 %v4711_v21, %v4663_v47 }
 0x89b   :  { %v4753_v63 = vpop.f32.mrf.mxu3 }
 0x89c   :  { %v4754_v16 = vadd.f32 %v4753_v63, %v4705_v12 }
 0x89d   :  { %v4621_v27 = vpop.f32.mrf.mxu0 }
 0x89e   :  { %v5024_v37 = vmax.f32 %v5023_v7, %v4754_v16  ;;  %v4622_v28 = vadd.f32 %v4621_v27, %v9919_v62  ;;  %v4670_v3 = vpop.f32.mrf.mxu1  ;;  %4909 = vmatmul.bf16.gmra.mxu2 %v10375_v59 }
 0x8a0   :  { %v4671_v57 = vadd.f32 %v4670_v3, %v4622_v28  ;;  %4816 = vmatmul.bf16.gmra.mxu0 %v10260_v49 }
 0x8a1   :  { %4865 = vmatmul.bf16.gmra.mxu1 %v10279_v48  ;;  %v4714_v55 = vpop.f32.mrf.mxu2 }
 0x8a2   :  { %v4715_v40 = vadd.f32 %v4714_v55, %v4666_v56 }
 0x8a3   :  { %v4755_v22 = vpop.f32.mrf.mxu3 }
 0x8a4   :  { %v4756_v5 = vadd.f32 %v4755_v22, %v4707_v54 }
 0x8a5   :  { %v4623_v52 = vpop.f32.mrf.mxu0 }
 0x8a6   :  { %v5025_v10 = vmax.f32 %v5024_v37, %v4756_v5  ;;  %v4624_v26 = vadd.f32 %v4623_v52, %v9919_v62  ;;  %v4672_v53 = vpop.f32.mrf.mxu1 }
 0x8a8   :  { %4953 = vmatmul.bf16.gmra.mxu3 %v10382_v46  ;;  %v4673_v34 = vadd.f32 %v4672_v53, %v4624_v26 }
 0x8a9   :  { %v4716_v12 = vpop.f32.mrf.mxu2 }
 0x8aa   :  { %v4717_v24 = vadd.f32 %v4716_v12, %v4668_v50 }
 0x8ab   :  { %v4758_v59 = vpop.f32.mrf.mxu3 }
 0x8ac   :  { %v4759_v9 = vadd.f32 %v4758_v59, %v4710_v2 }
 0x8ad   :  { %v4626_v49 = vpop.f32.mrf.mxu0 }
 0x8ae   :  { %v5026_v25 = vmax.f32 %v5025_v10, %v4759_v9  ;;  %v4627_v48 = vadd.f32 %v4626_v49, %v9919_v62  ;;  %v4675_v13 = vpop.f32.mrf.mxu1  ;;  %4914 = vmatmul.bf16.gmra.mxu2 %v10387_v41 }
 0x8b0   :  { %v4676_v38 = vadd.f32 %v4675_v13, %v4627_v48  ;;  %4821 = vmatmul.bf16.gmra.mxu0 %v10272_v4 }
 0x8b1   :  { %4870 = vmatmul.bf16.gmra.mxu1 %v10293_v1  ;;  %v4719_v6 = vpop.f32.mrf.mxu2 }
 0x8b2   :  { %v4720_v47 = vadd.f32 %v4719_v6, %v4671_v57 }
 0x8b3   :  { %v4760_v46 = vpop.f32.mrf.mxu3 }
 0x8b4   :  { %v4761_v45 = vadd.f32 %v4760_v46, %v4712_v42 }
 0x8b5   :  { %v4628_v15 = vpop.f32.mrf.mxu0 }
 0x8b6   :  { %v5027_v54 = vmax.f32 %v5026_v25, %v4761_v45  ;;  %v4629_v58 = vadd.f32 %v4628_v15, %v9919_v62  ;;  %v4677_v39 = vpop.f32.mrf.mxu1 }
 0x8b8   :  { %4958 = vmatmul.bf16.gmra.mxu3 %v10394_v30  ;;  %v4678_v36 = vadd.f32 %v4677_v39, %v4629_v58 }
 0x8b9   :  { %v4721_v35 = vpop.f32.mrf.mxu2 }
 0x8ba   :  { %v4722_v43 = vadd.f32 %v4721_v35, %v4673_v34 }
 0x8bb   :  { %v4763_v41 = vpop.f32.mrf.mxu3 }
 0x8bc   :  { %v4764_v56 = vadd.f32 %v4763_v41, %v4715_v40 }
 0x8bd   :  { %v4631_v4 = vpop.f32.mrf.mxu0 }
 0x8be   :  { %v5028_v51 = vmax.f32 %v5027_v54, %v4764_v56  ;;  %v4632_v1 = vadd.f32 %v4631_v4, %v9919_v62  ;;  %v4680_v2 = vpop.f32.mrf.mxu1  ;;  %4919 = vmatmul.bf16.gmra.mxu2 %v10399_v60 }
 0x8c0   :  { %v4681_v18 = vadd.f32 %v4680_v2, %v4632_v1  ;;  %4826 = vmatmul.bf16.gmra.mxu0 %v10284_v11 }
 0x8c1   :  { %4875 = vmatmul.bf16.gmra.mxu1 %v10315_v19  ;;  %v4724_v20 = vpop.f32.mrf.mxu2 }
 0x8c2   :  { %v4725_v7 = vadd.f32 %v4724_v20, %v4676_v38 }
 0x8c3   :  { %v4765_v30 = vpop.f32.mrf.mxu3 }
 0x8c4   :  { %v4766_v0 = vadd.f32 %v4765_v30, %v4717_v24 }
 0x8c5   :  { %v4633_v17 = vpop.f32.mrf.mxu0 }
 0x8c6   :  { %v5029_v44 = vmax.f32 %v5028_v51, %v4766_v0  ;;  %v4634_v50 = vadd.f32 %v4633_v17, %v9919_v62  ;;  %v4682_v21 = vpop.f32.mrf.mxu1 }
 0x8c8   :  { %4963 = vmatmul.bf16.gmra.mxu3 %v10406_v29  ;;  %v4683_v42 = vadd.f32 %v4682_v21, %v4634_v50 }
 0x8c9   :  { %v4726_v63 = vpop.f32.mrf.mxu2 }
 0x8ca   :  { %v4727_v16 = vadd.f32 %v4726_v63, %v4678_v36  ;;  %v3600_v36 = vrot.slane %v10054_v32, 4 }
 0x8cb   :  { %v4768_v60 = vpop.f32.mrf.mxu3 }
 0x8cc   :  { %v4769_v37 = vadd.f32 %v4768_v60, %v4720_v47  ;;  %v3601_v4 = vmax.f32 %v10054_v32, %v3600_v36 }
 0x8cd   :  { %v4792_v11 = vpop.f32.mrf.mxu0 }
 0x8ce   :  { %v5030_v27 = vmax.f32 %v5029_v44, %v4769_v37  ;;  %v4793_v19 = vadd.f32 %v4792_v11, %v10019_v31  ;;  %v4841_v28 = vpop.f32.mrf.mxu1  ;;  %4924 = vmatmul.bf16.gmra.mxu2 %v10411_v33 }
 0x8d0   :  { %v4842_v3 = vadd.f32 %v4841_v28, %v4793_v19 }
 0x8d1   :  { %v4729_v57 = vpop.f32.mrf.mxu2 }
 0x8d2   :  { %v4730_v55 = vadd.f32 %v4729_v57, %v4681_v18 }
 0x8d3   :  { %v4770_v40 = vpop.f32.mrf.mxu3 }
 0x8d4   :  { %v4771_v62 = vadd.f32 %v4770_v40, %v4722_v43 }
 0x8d5   :  { %v4794_v5 = vpop.f32.mrf.mxu0 }
 0x8d6   :  { %v5031_v22 = vmax.f32 %v5030_v27, %v4771_v62  ;;  %v4795_v29 = vadd.f32 %v4794_v5, %v10019_v31  ;;  %v4843_v10 = vpop.f32.mrf.mxu1 }
 0x8d8   :  { %4968 = vmatmul.bf16.gmra.mxu3 %v10420_v61  ;;  %v4844_v52 = vadd.f32 %v4843_v10, %v4795_v29 }
 0x8d9   :  { %v4731_v26 = vpop.f32.mrf.mxu2 }
 0x8da   :  { %v4732_v53 = vadd.f32 %v4731_v26, %v4683_v42 }
 0x8db   :  { %v4773_v34 = vpop.f32.mrf.mxu3 }
 0x8dc   :  { %v4774_v12 = vadd.f32 %v4773_v34, %v4725_v7 }
 0x8dd   :  { %v4797_v59 = vpop.f32.mrf.mxu0 }
 0x8de   :  { %v5032_v24 = vmax.f32 %v5031_v22, %v4774_v12  ;;  %v4798_v33 = vadd.f32 %v4797_v59, %v10019_v31  ;;  %v4846_v9 = vpop.f32.mrf.mxu1 }
 0x8e0   :  { %v4847_v25 = vadd.f32 %v4846_v9, %v4798_v33 }
 0x8e1   :  { %v4890_v49 = vpop.f32.mrf.mxu2 }
 0x8e2   :  { %v4891_v13 = vadd.f32 %v4890_v49, %v4842_v3 }
 0x8e3   :  { %v4775_v48 = vpop.f32.mrf.mxu3 }
 0x8e4   :  { %v4776_v38 = vadd.f32 %v4775_v48, %v4727_v16 }
 0x8e5   :  { %v4799_v47 = vpop.f32.mrf.mxu0 }
 0x8e6   :  { %v5033_v6 = vmax.f32 %v5032_v24, %v4776_v38  ;;  %v4800_v46 = vadd.f32 %v4799_v47, %v10019_v31  ;;  %v4848_v61 = vpop.f32.mrf.mxu1 }
 0x8e8   :  { %4973 = vmatmul.bf16.gmra.mxu3 %v10440_v14  ;;  %v4849_v45 = vadd.f32 %v4848_v61, %v4800_v46  ;;  %v3602_v14 = vrot.slane %v3601_v4, 2 }
 0x8e9   :  { %v4892_v54 = vpop.f32.mrf.mxu2 }
 0x8ea   :  { %v4893_v58 = vadd.f32 %v4892_v54, %v4844_v52  ;;  %v3603_v0 = vmax.f32 %v3601_v4, %v3602_v14 }
 0x8eb   :  { %v4778_v15 = vpop.f32.mrf.mxu3 }
 0x8ec   :  { %v4779_v39 = vadd.f32 %v4778_v15, %v4730_v55  ;;  %v3604_v16 = vrot.slane %v3603_v0, 1 }
 0x8ed   :  { %v4802_v43 = vpop.f32.mrf.mxu0 }
 0x8ee   :  { %v5034_v35 = vmax.f32 %v5033_v6, %v4779_v39  ;;  %v4803_v41 = vadd.f32 %v4802_v43, %v10019_v31  ;;  %v4851_v56 = vpop.f32.mrf.mxu1  ;;  %v3605_v27 = vmax.f32 %v3603_v0, %v3604_v16 }
 0x8f0   :  { %v4852_v51 = vadd.f32 %v4851_v56, %v4803_v41 }
 0x8f1   :  { %v4895_v1 = vpop.f32.mrf.mxu2 }
 0x8f2   :  { %v4896_v18 = vadd.f32 %v4895_v1, %v4847_v25 }
 0x8f3   :  { %v4780_v2 = vpop.f32.mrf.mxu3 }
 0x8f4   :  { %v4781_v20 = vadd.f32 %v4780_v2, %v4732_v53 }
 0x8f5   :  { %v4804_v55 = vpop.f32.mrf.mxu0 }
 0x8f6   :  { %v5035_v7 = vmax.f32 %v5034_v35, %v4781_v20  ;;  %v4853_v62 = vpop.f32.mrf.mxu1 }
 0x8f8   :  { %v5036_v30 = vrot.slane %v5035_v7, 4 }
 0x8f9   :  { %v4897_v17 = vpop.f32.mrf.mxu2 }
 0x8fa   :  { %v5037_v44 = vmax.f32 %v5035_v7, %v5036_v30  ;;  %v4898_v50 = vadd.f32 %v4897_v17, %v4849_v45  ;;  %v4805_v7 = vadd.f32 %v4804_v55, %v10019_v31 }
 0x8fb   :  { %v4939_v21 = vpop.f32.mrf.mxu3 }
 0x8fc   :  { %v5038_v42 = vrot.slane %v5037_v44, 2  ;;  %v4940_v63 = vadd.f32 %v4939_v21, %v4891_v13  ;;  %v4854_v0 = vadd.f32 %v4853_v62, %v4805_v7 }
 0x8fd   :  { %v4807_v52 = vpop.f32.mrf.mxu0 }
 0x8fe   :  { %v5039_v60 = vmax.f32 %v5037_v44, %v5038_v42  ;;  %v4856_v53 = vpop.f32.mrf.mxu1  ;;  %v4808_v30 = vadd.f32 %v4807_v52, %v10019_v31 }
 0x900   :  { %v5040_v37 = vrot.slane %v5039_v60, 1  ;;  %v4857_v42 = vadd.f32 %v4856_v53, %v4808_v30 }
 0x901   :  { %v4900_v32 = vpop.f32.mrf.mxu2 }
 0x902   :  { %v5041_v11 = vmax.f32 %v5039_v60, %v5040_v37  ;;  %v4901_v19 = vadd.f32 %v4900_v32, %v4852_v51 }
 0x903   :  { %v4941_v28 = vpop.f32.mrf.mxu3 }
 0x904   :  { %v10617_v3 = vsel %vm5063_vm3, %v3605_v27, %v5041_v11  ;;  %v4942_v57 = vadd.f32 %v4941_v28, %v4893_v58 }
 0x905   :  { %v4809_v59 = vpop.f32.mrf.mxu0 }
 0x906   :  { %v5042_v40 = vmax.f32 %v4940_v63, %v4942_v57  ;;  %v4858_v25 = vpop.f32.mrf.mxu1  ;;  %v4810_v44 = vadd.f32 %v4809_v59, %v10019_v31 }
 0x908   :  { %v4859_v60 = vadd.f32 %v4858_v25, %v4810_v44 }
 0x909   :  { %v4902_v22 = vpop.f32.mrf.mxu2 }
 0x90a   :  { %v4903_v63 = vadd.f32 %v4902_v22, %v4854_v0 }
 0x90b   :  { %v4944_v5 = vpop.f32.mrf.mxu3 }
 0x90c   :  { %v4945_v29 = vadd.f32 %v4944_v5, %v4896_v18 }
 0x90d   :  { %v4812_v13 = vpop.f32.mrf.mxu0 }
 0x90e   :  { %v5043_v10 = vmax.f32 %v5042_v40, %v4945_v29  ;;  %v4861_v6 = vpop.f32.mrf.mxu1  ;;  %v4813_v16 = vadd.f32 %v4812_v13, %v10019_v31 }
 0x910   :  { %v4862_v28 = vadd.f32 %v4861_v6, %v4813_v16 }
 0x911   :  { %v4905_v12 = vpop.f32.mrf.mxu2 }
 0x912   :  { %v4906_v37 = vadd.f32 %v4905_v12, %v4857_v42 }
 0x913   :  { %v4946_v26 = vpop.f32.mrf.mxu3 }
 0x914   :  { %v4947_v34 = vadd.f32 %v4946_v26, %v4898_v50 }
 0x915   :  { %v4814_v61 = vpop.f32.mrf.mxu0 }
 0x916   :  { %v5044_v24 = vmax.f32 %v5043_v10, %v4947_v34  ;;  %v4863_v45 = vpop.f32.mrf.mxu1  ;;  %v4815_v27 = vadd.f32 %v4814_v61, %v10019_v31 }
 0x918   :  { %v4864_v62 = vadd.f32 %v4863_v45, %v4815_v27 }
 0x919   :  { %v4907_v48 = vpop.f32.mrf.mxu2 }
 0x91a   :  { %v4908_v57 = vadd.f32 %v4907_v48, %v4859_v60 }
 0x91b   :  { %v4949_v33 = vpop.f32.mrf.mxu3 }
 0x91c   :  { %v4950_v9 = vadd.f32 %v4949_v33, %v4901_v19 }
 0x91d   :  { %v4817_v58 = vpop.f32.mrf.mxu0 }
 0x91e   :  { %v5045_v49 = vmax.f32 %v5044_v24, %v4950_v9  ;;  %v4866_v36 = vpop.f32.mrf.mxu1  ;;  %v4818_v32 = vadd.f32 %v4817_v58, %v10019_v31 }
 0x920   :  { %v4867_v22 = vadd.f32 %v4866_v36, %v4818_v32 }
 0x921   :  { %v4910_v47 = vpop.f32.mrf.mxu2 }
 0x922   :  { %v4911_v5 = vadd.f32 %v4910_v47, %v4862_v28 }
 0x923   :  { %v4951_v38 = vpop.f32.mrf.mxu3 }
 0x924   :  { %v4952_v11 = vadd.f32 %v4951_v38, %v4903_v63 }
 0x925   :  { %v4819_v43 = vpop.f32.mrf.mxu0 }
 0x926   :  { %v4868_v56 = vpop.f32.mrf.mxu1  ;;  %v4820_v40 = vadd.f32 %v4819_v43, %v10019_v31  ;;  %v5046_v29 = vmax.f32 %v5045_v49, %v4952_v11 }
 0x928   :  { %v4869_v24 = vadd.f32 %v4868_v56, %v4820_v40 }
 0x929   :  { %v4912_v54 = vpop.f32.mrf.mxu2 }
 0x92a   :  { %v4913_v26 = vadd.f32 %v4912_v54, %v4864_v62 }
 0x92b   :  { %v4954_v46 = vpop.f32.mrf.mxu3 }
 0x92c   :  { %v4955_v55 = vadd.f32 %v4954_v46, %v4906_v37 }
 0x92d   :  { %v4822_v4 = vpop.f32.mrf.mxu0 }
 0x92e   :  { %v4871_v2 = vpop.f32.mrf.mxu1  ;;  %v5047_v53 = vmax.f32 %v5046_v29, %v4955_v55  ;;  %v4823_v34 = vadd.f32 %v4822_v4, %v10019_v31 }
 0x930   :  { %v4872_v6 = vadd.f32 %v4871_v2, %v4823_v34 }
 0x931   :  { %v4915_v35 = vpop.f32.mrf.mxu2 }
 0x932   :  { %v4916_v9 = vadd.f32 %v4915_v35, %v4867_v22 }
 0x933   :  { %v4956_v15 = vpop.f32.mrf.mxu3 }
 0x934   :  { %v4957_v10 = vadd.f32 %v4956_v15, %v4908_v57 }
 0x935   :  { %v4824_v14 = vpop.f32.mrf.mxu0 }
 0x936   :  { %v4873_v17 = vpop.f32.mrf.mxu1  ;;  %v5048_v25 = vmax.f32 %v5047_v53, %v4957_v10  ;;  %v4825_v48 = vadd.f32 %v4824_v14, %v10019_v31  ;;  %v11384_v14 = vld [vmem:[#allocation38_spill] sm:$0xff] }
 0x938   :  { %v4874_v45 = vadd.f32 %v4873_v17, %v4825_v48 }
 0x939   :  { %v4917_v51 = vpop.f32.mrf.mxu2 }
 0x93a   :  { %v4918_v49 = vadd.f32 %v4917_v51, %v4869_v24 }
 0x93b   :  { %v4959_v39 = vpop.f32.mrf.mxu3 }
 0x93c   :  { %v4960_v12 = vadd.f32 %v4959_v39, %v4911_v5 }
 0x93d   :  { %v4827_v19 = vpop.f32.mrf.mxu0 }
 0x93e   :  { %v4876_v59 = vpop.f32.mrf.mxu1  ;;  %v4828_v38 = vadd.f32 %v4827_v19, %v10019_v31  ;;  %v5049_v47 = vmax.f32 %v5048_v25, %v4960_v12 }
 0x940   :  { %v4877_v39 = vadd.f32 %v4876_v59, %v4828_v38 }
 0x941   :  { %v4920_v18 = vpop.f32.mrf.mxu2 }
 0x942   :  { %v4921_v54 = vadd.f32 %v4920_v18, %v4872_v6 }
 0x943   :  { %v4961_v41 = vpop.f32.mrf.mxu3 }
 0x944   :  { %v4962_v13 = vadd.f32 %v4961_v41, %v4913_v26  ;;  %v3621_v41 = vrot.slane %v11384_v14, 4 }
 0x945   :  { %v4829_v61 = vpop.f32.mrf.mxu0 }
 0x946   :  { %v5050_v15 = vmax.f32 %v5049_v47, %v4962_v13  ;;  %v4830_v43 = vadd.f32 %v4829_v61, %v10019_v31  ;;  %v4878_v51 = vpop.f32.mrf.mxu1  ;;  %v3622_v18 = vmax.f32 %v11384_v14, %v3621_v41 }
 0x949   :  { %v4922_v50 = vpop.f32.mrf.mxu2 }
 0x94a   :  { %v4923_v35 = vadd.f32 %v4922_v50, %v4874_v45  ;;  %v3623_v50 = vrot.slane %v3622_v18, 2 }
 0x94b   :  { %v4964_v1 = vpop.f32.mrf.mxu3 }
 0x94c   :  { %v4965_v46 = vadd.f32 %v4964_v1, %v4916_v9  ;;  %v4879_v1 = vadd.f32 %v4878_v51, %v4830_v43  ;;  %v3624_v37 = vmax.f32 %v3622_v18, %v3623_v50 }
 0x94e   :  { %v5051_v56 = vmax.f32 %v5050_v15, %v4965_v46  ;;  %v3625_v32 = vrot.slane %v3624_v37, 1 }
 0x950   :  { %v3626_v57 = vmax.f32 %v3624_v37, %v3625_v32 }
 0x951   :  { %v4925_v33 = vpop.f32.mrf.mxu2 }
 0x952   :  { %v4926_v7 = vadd.f32 %v4925_v33, %v4877_v39 }
 0x953   :  { %v4966_v20 = vpop.f32.mrf.mxu3 }
 0x954   :  { %v4967_v58 = vadd.f32 %v4966_v20, %v4918_v49 }
 0x956   :  { %v5052_v30 = vmax.f32 %v5051_v56, %v4967_v58 }
 0x959   :  { %v4927_v0 = vpop.f32.mrf.mxu2 }
 0x95a   :  { %v4928_v20 = vadd.f32 %v4927_v0, %v4879_v1 }
 0x95b   :  { %v4969_v21 = vpop.f32.mrf.mxu3 }
 0x95c   :  { %v4970_v4 = vadd.f32 %v4969_v21, %v4921_v54 }
 0x95e   :  { %v5053_v44 = vmax.f32 %v5052_v30, %v4970_v4 }
 0x963   :  { %v4971_v52 = vpop.f32.mrf.mxu3 }
 0x964   :  { %v4972_v2 = vadd.f32 %v4971_v52, %v4923_v35 }
 0x966   :  { %v5054_v42 = vmax.f32 %v5053_v44, %v4972_v2 }
 0x96b   :  { %v4974_v36 = vpop.f32.mrf.mxu3 }
 0x96c   :  { %v4975_v17 = vadd.f32 %v4974_v36, %v4926_v7 }
 0x96e   :  { %v5055_v16 = vmax.f32 %v5054_v42, %v4975_v17 }
 0x973   :  { %v4976_v63 = vpop.f32.mrf.mxu3 }
 0x974   :  { %v4977_v31 = vadd.f32 %v4976_v63, %v4928_v20 }
 0x976   :  { %v5056_v60 = vmax.f32 %v5055_v16, %v4977_v31 }
 0x978   :  { %v5057_v21 = vrot.slane %v5056_v60, 4 }
 0x97a   :  { %v5058_v27 = vmax.f32 %v5056_v60, %v5057_v21 }
 0x97c   :  { %v5059_v11 = vrot.slane %v5058_v27, 2 }
 0x97e   :  { %v5060_v19 = vmax.f32 %v5058_v27, %v5059_v11 }
 0x980   :  { %v5061_v28 = vrot.slane %v5060_v19, 1 }
 0x982   :  { %v5062_v55 = vmax.f32 %v5060_v19, %v5061_v28 }
 0x984   :  { %v10633_v40 = vsel %vm5063_vm3, %v3626_v57, %v5062_v55 }
 0x985   :  { %8566 = dma.done.wait [#allocation3 + $0x2], 16384 }
 0x986   :  { %8567 = vsyncadd [#allocation3 + $0x2], 4294950912  ;;  %v7484_v62 = vld [vmem:[#allocation2 + $0x6e0] sm:$0xf]  ;;  %v8271_v5 = vld [vmem:[#allocation2 + $0x6ec] sm:$0xf0] }
 0x987   :  { %v7612_v29 = vld [vmem:[#allocation2 + $0x7e0] sm:$0xf]  ;;  %v7485_v10 = vor.u32 %v8271_v5, %v7484_v62  ;;  %v8303_v22 = vld [vmem:[#allocation2 + $0x7ec] sm:$0xf0]  ;;  %s8577_s12 = smov 96   ;;  %vm6394_vm4 = vcmask 261120  }
 0x988   :  { %v7740_v52 = vld [vmem:[#allocation2 + $0x8e0] sm:$0xf]  ;;  %v8335_v26 = vld [vmem:[#allocation2 + $0x8ec] sm:$0xf0]  ;;  %v7613_v53 = vor.u32 %v8303_v22, %v7612_v29  ;;  %vm6397_vm5 = vcmask 785408  }
 0x989   :  { %v7741_v34 = vor.u32 %v8335_v26, %v7740_v52  ;;  %v7868_v12 = vld [vmem:[#allocation2 + $0x9e0] sm:$0xf]  ;;  %v8367_v24 = vld [vmem:[#allocation2 + $0x9ec] sm:$0xf0]  ;;  %5853 = vmatpush.bf16.msrb.mxu0 %v7485_v10 }
 0x98a   :  { %v7468_v59 = vld [vmem:[#allocation2 + $0x6c0] sm:$0xf]  ;;  %v7869_v33 = vor.u32 %v8367_v24, %v7868_v12  ;;  %v8267_v9 = vld [vmem:[#allocation2 + $0x6cc] sm:$0xf0]  ;;  %5866 = vmatpush.bf16.msrb.mxu1 %v7613_v53 }
 0x98b   :  { %v7596_v25 = vld [vmem:[#allocation2 + $0x7c0] sm:$0xf]  ;;  %v8299_v48 = vld [vmem:[#allocation2 + $0x7cc] sm:$0xf0]  ;;  %5879 = vmatpush.bf16.msrb.mxu2 %v7741_v34  ;;  %v7469_v13 = vor.u32 %v8267_v9, %v7468_v59 }
 0x98c   :  { %v7597_v38 = vor.u32 %v8299_v48, %v7596_v25  ;;  %v7724_v6 = vld [vmem:[#allocation2 + $0x8c0] sm:$0xf]  ;;  %v8331_v49 = vld [vmem:[#allocation2 + $0x8cc] sm:$0xf0]  ;;  %5892 = vmatpush.bf16.msrb.mxu3 %v7869_v33 }
 0x98d   :  { %v7852_v47 = vld [vmem:[#allocation2 + $0x9c0] sm:$0xf]  ;;  %v7725_v46 = vor.u32 %v8331_v49, %v7724_v6  ;;  %v8363_v61 = vld [vmem:[#allocation2 + $0x9cc] sm:$0xf0]  ;;  %5854 = vmatpush.bf16.msrb.mxu0 %v7469_v13 }
 0x98e   :  { %v7452_v45 = vld [vmem:[#allocation2 + $0x6a0] sm:$0xf]  ;;  %v8263_v54 = vld [vmem:[#allocation2 + $0x6ac] sm:$0xf0]  ;;  %v7853_v15 = vor.u32 %v8363_v61, %v7852_v47  ;;  %5867 = vmatpush.bf16.msrb.mxu1 %v7597_v38 }
 0x98f   :  { %v7580_v58 = vld [vmem:[#allocation2 + $0x7a0] sm:$0xf]  ;;  %v8295_v39 = vld [vmem:[#allocation2 + $0x7ac] sm:$0xf0]  ;;  %v7453_v43 = vor.u32 %v8263_v54, %v7452_v45  ;;  %5880 = vmatpush.bf16.msrb.mxu2 %v7725_v46 }
 0x990   :  { %v7708_v36 = vld [vmem:[#allocation2 + $0x8a0] sm:$0xf]  ;;  %v8327_v35 = vld [vmem:[#allocation2 + $0x8ac] sm:$0xf0]  ;;  %v7581_v14 = vor.u32 %v8295_v39, %v7580_v58  ;;  %5893 = vmatpush.bf16.msrb.mxu3 %v7853_v15 }
 0x991   :  { %v7836_v56 = vld [vmem:[#allocation2 + $0x9a0] sm:$0xf]  ;;  %v8359_v4 = vld [vmem:[#allocation2 + $0x9ac] sm:$0xf0]  ;;  %v7709_v41 = vor.u32 %v8327_v35, %v7708_v36  ;;  %5855 = vmatpush.bf16.msrb.mxu0 %v7453_v43 }
 0x992   :  { %v7436_v7 = vld [vmem:[#allocation2 + $0x680] sm:$0xf]  ;;  %v8259_v30 = vld [vmem:[#allocation2 + $0x68c] sm:$0xf0]  ;;  %v7837_v51 = vor.u32 %v8359_v4, %v7836_v56  ;;  %5868 = vmatpush.bf16.msrb.mxu1 %v7581_v14  ;;  %v8269_v4 = vld [vmem:[#allocation2 + $0x6e4] sm:$0xf] }
 0x993   :  { %v7564_v2 = vld [vmem:[#allocation2 + $0x780] sm:$0xf]  ;;  %v8291_v0 = vld [vmem:[#allocation2 + $0x78c] sm:$0xf0]  ;;  %v7437_v20 = vor.u32 %v8259_v30, %v7436_v7  ;;  %5881 = vmatpush.bf16.msrb.mxu2 %v7709_v41  ;;  %v7486_v14 = vld [vmem:[#allocation2 + $0x6f0] sm:$0xf0] }
 0x994   :  { %v7692_v1 = vld [vmem:[#allocation2 + $0x880] sm:$0xf]  ;;  %v8323_v44 = vld [vmem:[#allocation2 + $0x88c] sm:$0xf0]  ;;  %v7565_v42 = vor.u32 %v8291_v0, %v7564_v2  ;;  %5894 = vmatpush.bf16.msrb.mxu3 %v7837_v51  ;;  %v8301_v41 = vld [vmem:[#allocation2 + $0x7e4] sm:$0xf] }
 0x995   :  { %v7820_v17 = vld [vmem:[#allocation2 + $0x980] sm:$0xf]  ;;  %v8355_v18 = vld [vmem:[#allocation2 + $0x98c] sm:$0xf0]  ;;  %v7693_v63 = vor.u32 %v8323_v44, %v7692_v1  ;;  %5856 = vmatpush.bf16.msrb.mxu0 %v7437_v20  ;;  %v7614_v30 = vld [vmem:[#allocation2 + $0x7f0] sm:$0xf0]  ;;  %v7489_v20 = vor.u32 %v8269_v4, %v7486_v14 }
 0x996   :  { %v7420_v16 = vld [vmem:[#allocation2 + $0x660] sm:$0xf]  ;;  %v8255_v31 = vld [vmem:[#allocation2 + $0x66c] sm:$0xf0]  ;;  %v7821_v60 = vor.u32 %v8355_v18, %v7820_v17  ;;  %5869 = vmatpush.bf16.msrb.mxu1 %v7565_v42  ;;  %v8333_v2 = vld [vmem:[#allocation2 + $0x8e4] sm:$0xf]  ;;  %v7617_v42 = vor.u32 %v8301_v41, %v7614_v30 }
 0x997   :  { %v7548_v50 = vld [vmem:[#allocation2 + $0x760] sm:$0xf]  ;;  %v8287_v21 = vld [vmem:[#allocation2 + $0x76c] sm:$0xf0]  ;;  %v7421_v19 = vor.u32 %v8255_v31, %v7420_v16  ;;  %5882 = vmatpush.bf16.msrb.mxu2 %v7693_v63  ;;  %v7742_v51 = vld [vmem:[#allocation2 + $0x8f0] sm:$0xf0] }
 0x998   :  { %v7676_v37 = vld [vmem:[#allocation2 + $0x860] sm:$0xf]  ;;  %v8319_v27 = vld [vmem:[#allocation2 + $0x86c] sm:$0xf0]  ;;  %v7549_v28 = vor.u32 %v8287_v21, %v7548_v50  ;;  %5895 = vmatpush.bf16.msrb.mxu3 %v7821_v60  ;;  %v8365_v44 = vld [vmem:[#allocation2 + $0x9e4] sm:$0xf]  ;;  %v7745_v63 = vor.u32 %v8333_v2, %v7742_v51 }
 0x999   :  { %v7804_v11 = vld [vmem:[#allocation2 + $0x960] sm:$0xf]  ;;  %v8351_v32 = vld [vmem:[#allocation2 + $0x96c] sm:$0xf0]  ;;  %v7677_v57 = vor.u32 %v8319_v27, %v7676_v37  ;;  %5857 = vmatpush.bf16.msrb.mxu0 %v7421_v19  ;;  %v7870_v17 = vld [vmem:[#allocation2 + $0x9f0] sm:$0xf0] }
 0x99a   :  { %v7404_v55 = vld [vmem:[#allocation2 + $0x640] sm:$0xf]  ;;  %v8251_v62 = vld [vmem:[#allocation2 + $0x64c] sm:$0xf0]  ;;  %v7805_v29 = vor.u32 %v8351_v32, %v7804_v11  ;;  %5870 = vmatpush.bf16.msrb.mxu1 %v7549_v28  ;;  %v8265_v16 = vld [vmem:[#allocation2 + $0x6c4] sm:$0xf]  ;;  %v7873_v60 = vor.u32 %v8365_v44, %v7870_v17  ;;  %v10637_v11 = vpack.c.bf16 %v10617_v3, %v10617_v3  ;;  %v10641_v28 = vpack.c.bf16 %v10525_v8, %v10525_v8 }
 0x99b   :  { %v7532_v5 = vld [vmem:[#allocation2 + $0x740] sm:$0xf]  ;;  %v8283_v10 = vld [vmem:[#allocation2 + $0x74c] sm:$0xf0]  ;;  %v7405_v34 = vor.u32 %v8251_v62, %v7404_v55  ;;  %5883 = vmatpush.bf16.msrb.mxu2 %v7677_v57  ;;  %v7470_v31 = vld [vmem:[#allocation2 + $0x6d0] sm:$0xf0]  ;;  %v10645_v57 = vpack.c.bf16 %v10633_v40, %v10633_v40  ;;  %v10649_v62 = vpack.c.bf16 %v10578_v23, %v10578_v23 }
 0x99c   :  { %v7660_v22 = vld [vmem:[#allocation2 + $0x840] sm:$0xf]  ;;  %v8315_v52 = vld [vmem:[#allocation2 + $0x84c] sm:$0xf0]  ;;  %v7533_v12 = vor.u32 %v8283_v10, %v7532_v5  ;;  %5896 = vmatpush.bf16.msrb.mxu3 %v7805_v29  ;;  %v8297_v50 = vld [vmem:[#allocation2 + $0x7c4] sm:$0xf]  ;;  %v7473_v55 = vor.u32 %v8265_v16, %v7470_v31 }
 0x99d   :  { %v7788_v26 = vld [vmem:[#allocation2 + $0x940] sm:$0xf]  ;;  %v8347_v53 = vld [vmem:[#allocation2 + $0x94c] sm:$0xf0]  ;;  %v7661_v24 = vor.u32 %v8315_v52, %v7660_v22  ;;  %5858 = vmatpush.bf16.msrb.mxu0 %v7405_v34  ;;  %v7598_v21 = vld [vmem:[#allocation2 + $0x7d0] sm:$0xf0] }
 0x99e   :  { %v7388_v59 = vld [vmem:[#allocation2 + $0x620] sm:$0xf]  ;;  %v8247_v33 = vld [vmem:[#allocation2 + $0x62c] sm:$0xf0]  ;;  %v7789_v25 = vor.u32 %v8347_v53, %v7788_v26  ;;  %5871 = vmatpush.bf16.msrb.mxu1 %v7533_v12  ;;  %v8329_v37 = vld [vmem:[#allocation2 + $0x8c4] sm:$0xf]  ;;  %v7601_v3 = vor.u32 %v8297_v50, %v7598_v21 }
 0x99f   :  { %v7516_v9 = vld [vmem:[#allocation2 + $0x720] sm:$0xf]  ;;  %v8279_v48 = vld [vmem:[#allocation2 + $0x72c] sm:$0xf0]  ;;  %v7389_v47 = vor.u32 %v8247_v33, %v7388_v59  ;;  %5884 = vmatpush.bf16.msrb.mxu2 %v7661_v24  ;;  %v7726_v27 = vld [vmem:[#allocation2 + $0x8d0] sm:$0xf0] }
 0x9a0   :  { %v7644_v13 = vld [vmem:[#allocation2 + $0x820] sm:$0xf]  ;;  %v8311_v38 = vld [vmem:[#allocation2 + $0x82c] sm:$0xf0]  ;;  %v7517_v45 = vor.u32 %v8279_v48, %v7516_v9  ;;  %5897 = vmatpush.bf16.msrb.mxu3 %v7789_v25  ;;  %v8361_v32 = vld [vmem:[#allocation2 + $0x9c4] sm:$0xf]  ;;  %v7729_v5 = vor.u32 %v8329_v37, %v7726_v27 }
 0x9a1   :  { %v7772_v6 = vld [vmem:[#allocation2 + $0x920] sm:$0xf]  ;;  %v8343_v49 = vld [vmem:[#allocation2 + $0x92c] sm:$0xf0]  ;;  %v7645_v54 = vor.u32 %v8311_v38, %v7644_v13  ;;  %5859 = vmatpush.bf16.msrb.mxu0 %v7389_v47  ;;  %v7854_v19 = vld [vmem:[#allocation2 + $0x9d0] sm:$0xf0] }
 0x9a2   :  { %v7372_v46 = vld [vmem:[#allocation2 + $0x600] sm:$0xf]  ;;  %v8243_v61 = vld [vmem:[#allocation2 + $0x60c] sm:$0xf0]  ;;  %v7773_v36 = vor.u32 %v8343_v49, %v7772_v6  ;;  %5872 = vmatpush.bf16.msrb.mxu1 %v7517_v45  ;;  %v8261_v29 = vld [vmem:[#allocation2 + $0x6a4] sm:$0xf]  ;;  %v7857_v8 = vor.u32 %v8361_v32, %v7854_v19 }
 0x9a3   :  { %v7500_v15 = vld [vmem:[#allocation2 + $0x700] sm:$0xf]  ;;  %v8275_v58 = vld [vmem:[#allocation2 + $0x70c] sm:$0xf0]  ;;  %v7373_v7 = vor.u32 %v8243_v61, %v7372_v46  ;;  %5885 = vmatpush.bf16.msrb.mxu2 %v7645_v54  ;;  %v7454_v10 = vld [vmem:[#allocation2 + $0x6b0] sm:$0xf0] }
 0x9a4   :  { %v7628_v39 = vld [vmem:[#allocation2 + $0x800] sm:$0xf]  ;;  %v8307_v43 = vld [vmem:[#allocation2 + $0x80c] sm:$0xf0]  ;;  %v7501_v0 = vor.u32 %v8275_v58, %v7500_v15  ;;  %5898 = vmatpush.bf16.msrb.mxu3 %v7773_v36  ;;  %v8293_v22 = vld [vmem:[#allocation2 + $0x7a4] sm:$0xf]  ;;  %v7457_v23 = vor.u32 %v8261_v29, %v7454_v10 }
 0x9a5   :  { %v7756_v35 = vld [vmem:[#allocation2 + $0x900] sm:$0xf]  ;;  %v8339_v56 = vld [vmem:[#allocation2 + $0x90c] sm:$0xf0]  ;;  %v7629_v1 = vor.u32 %v8307_v43, %v7628_v39  ;;  %5860 = vmatpush.bf16.msrb.mxu0 %v7373_v7  ;;  %v7582_v52 = vld [vmem:[#allocation2 + $0x7b0] sm:$0xf0] }
 0x9a6   :  { %v7757_v18 = vor.u32 %v8339_v56, %v7756_v35  ;;  %5873 = vmatpush.bf16.msrb.mxu1 %v7501_v0  ;;  %v8325_v26 = vld [vmem:[#allocation2 + $0x8a4] sm:$0xf]  ;;  %v7710_v40 = vld [vmem:[#allocation2 + $0x8b0] sm:$0xf0]  ;;  %v7585_v12 = vor.u32 %v8293_v22, %v7582_v52 }
 0x9a7   :  { %5886 = vmatpush.bf16.msrb.mxu2 %v7629_v1  ;;  %v8357_v53 = vld [vmem:[#allocation2 + $0x9a4] sm:$0xf]  ;;  %v7838_v34 = vld [vmem:[#allocation2 + $0x9b0] sm:$0xf0]  ;;  %v7713_v24 = vor.u32 %v8325_v26, %v7710_v40 }
 0x9a8   :  { %5899 = vmatpush.bf16.msrb.mxu3 %v7757_v18  ;;  %5861 = vmatmul.bf16.vlgmr.msrb.gmra.mxu0 %v10641_v28  ;;  %v8257_v59 = vld [vmem:[#allocation2 + $0x684] sm:$0xf]  ;;  %v7438_v33 = vld [vmem:[#allocation2 + $0x690] sm:$0xf0]  ;;  %v7841_v25 = vor.u32 %v8357_v53, %v7838_v34 }
 0x9a9   :  { %5905 = vmatpush.bf16.msra.mxu0 %v7489_v20  ;;  %5874 = vmatmul.bf16.vlgmr.msrb.gmra.mxu1 %v10649_v62  ;;  %v8289_v9 = vld [vmem:[#allocation2 + $0x784] sm:$0xf]  ;;  %v7566_v48 = vld [vmem:[#allocation2 + $0x790] sm:$0xf0]  ;;  %v7441_v47 = vor.u32 %v8257_v59, %v7438_v33  ;;  %v8304_v33 = vld [vmem:[#allocation2 + $0x7f4] sm:$0xf0] }
 0x9aa   :  { %5918 = vmatpush.bf16.msra.mxu1 %v7617_v42  ;;  %5887 = vmatmul.bf16.vlgmr.msrb.gmra.mxu2 %v10637_v11  ;;  %v8321_v13 = vld [vmem:[#allocation2 + $0x884] sm:$0xf]  ;;  %v7694_v38 = vld [vmem:[#allocation2 + $0x890] sm:$0xf0]  ;;  %v7569_v46 = vor.u32 %v8289_v9, %v7566_v48  ;;  %v7748_v9 = vld [vmem:[#allocation2 + $0x8e8] sm:$0xf] }
 0x9ab   :  { %5931 = vmatpush.bf16.msra.mxu2 %v7745_v63  ;;  %5900 = vmatmul.bf16.vlgmr.msrb.gmra.mxu3 %v10645_v57  ;;  %v8353_v6 = vld [vmem:[#allocation2 + $0x984] sm:$0xf]  ;;  %v7822_v49 = vld [vmem:[#allocation2 + $0x990] sm:$0xf0]  ;;  %v7697_v61 = vor.u32 %v8321_v13, %v7694_v38  ;;  %v7876_v38 = vld [vmem:[#allocation2 + $0x9e8] sm:$0xf] }
 0x9ac   :  { %5944 = vmatpush.bf16.msra.mxu3 %v7873_v60  ;;  %v8253_v45 = vld [vmem:[#allocation2 + $0x664] sm:$0xf]  ;;  %v7422_v54 = vld [vmem:[#allocation2 + $0x670] sm:$0xf0]  ;;  %v7825_v58 = vor.u32 %v8353_v6, %v7822_v49  ;;  %v8368_v6 = vld [vmem:[#allocation2 + $0x9f4] sm:$0xf0] }
 0x9ad   :  { %5906 = vmatpush.bf16.msra.mxu0 %v7473_v55  ;;  %v8285_v15 = vld [vmem:[#allocation2 + $0x764] sm:$0xf]  ;;  %v7550_v39 = vld [vmem:[#allocation2 + $0x770] sm:$0xf0]  ;;  %v7425_v4 = vor.u32 %v8253_v45, %v7422_v54  ;;  %v7476_v45 = vld [vmem:[#allocation2 + $0x6c8] sm:$0xf] }
 0x9ae   :  { %5919 = vmatpush.bf16.msra.mxu1 %v7601_v3  ;;  %v8317_v36 = vld [vmem:[#allocation2 + $0x864] sm:$0xf]  ;;  %v7678_v43 = vld [vmem:[#allocation2 + $0x870] sm:$0xf0]  ;;  %v7553_v14 = vor.u32 %v8285_v15, %v7550_v39  ;;  %v8268_v54 = vld [vmem:[#allocation2 + $0x6d4] sm:$0xf0] }
 0x9af   :  { %5932 = vmatpush.bf16.msra.mxu2 %v7729_v5  ;;  %v8349_v35 = vld [vmem:[#allocation2 + $0x964] sm:$0xf]  ;;  %v7806_v56 = vld [vmem:[#allocation2 + $0x970] sm:$0xf0]  ;;  %v7681_v41 = vor.u32 %v8317_v36, %v7678_v43  ;;  %v7604_v15 = vld [vmem:[#allocation2 + $0x7c8] sm:$0xf] }
 0x9b0   :  { %5945 = vmatpush.bf16.msra.mxu3 %v7857_v8  ;;  %v8249_v7 = vld [vmem:[#allocation2 + $0x644] sm:$0xf]  ;;  %v7406_v30 = vld [vmem:[#allocation2 + $0x650] sm:$0xf0]  ;;  %v7809_v51 = vor.u32 %v8349_v35, %v7806_v56  ;;  %v8300_v39 = vld [vmem:[#allocation2 + $0x7d4] sm:$0xf0] }
 0x9b1   :  { %5907 = vmatpush.bf16.msra.mxu0 %v7457_v23  ;;  %v8281_v2 = vld [vmem:[#allocation2 + $0x744] sm:$0xf]  ;;  %v7534_v0 = vld [vmem:[#allocation2 + $0x750] sm:$0xf0]  ;;  %v7409_v20 = vor.u32 %v8249_v7, %v7406_v30  ;;  %v7492_v23 = vld [vmem:[#allocation2 + $0x6e8] sm:$0xf] }
 0x9b2   :  { %5920 = vmatpush.bf16.msra.mxu1 %v7585_v12  ;;  %v8313_v1 = vld [vmem:[#allocation2 + $0x844] sm:$0xf]  ;;  %v7662_v44 = vld [vmem:[#allocation2 + $0x850] sm:$0xf0]  ;;  %v7537_v42 = vor.u32 %v8281_v2, %v7534_v0  ;;  %v8272_v12 = vld [vmem:[#allocation2 + $0x6f4] sm:$0xf0] }
 0x9b3   :  { %5933 = vmatpush.bf16.msra.mxu2 %v7713_v24  ;;  %v8345_v17 = vld [vmem:[#allocation2 + $0x944] sm:$0xf]  ;;  %v7790_v18 = vld [vmem:[#allocation2 + $0x950] sm:$0xf0]  ;;  %v7665_v63 = vor.u32 %v8313_v1, %v7662_v44  ;;  %v7620_v24 = vld [vmem:[#allocation2 + $0x7e8] sm:$0xf] }
 0x9b4   :  { %5946 = vmatpush.bf16.msra.mxu3 %v7841_v25  ;;  %v8245_v16 = vld [vmem:[#allocation2 + $0x624] sm:$0xf]  ;;  %v7390_v31 = vld [vmem:[#allocation2 + $0x630] sm:$0xf0]  ;;  %v7793_v60 = vor.u32 %v8345_v17, %v7790_v18  ;;  %v8336_v25 = vld [vmem:[#allocation2 + $0x8f4] sm:$0xf0] }
 0x9b5   :  { %5908 = vmatpush.bf16.msra.mxu0 %v7441_v47  ;;  %v8277_v50 = vld [vmem:[#allocation2 + $0x724] sm:$0xf]  ;;  %v7518_v21 = vld [vmem:[#allocation2 + $0x730] sm:$0xf0]  ;;  %v7393_v55 = vor.u32 %v8245_v16, %v7390_v31  ;;  %v7493_v47 = vor.u32 %v8272_v12, %v7492_v23  ;;  %v7732_v36 = vld [vmem:[#allocation2 + $0x8c8] sm:$0xf] }
 0x9b6   :  { %5921 = vmatpush.bf16.msra.mxu1 %v7569_v46  ;;  %v8309_v37 = vld [vmem:[#allocation2 + $0x824] sm:$0xf]  ;;  %v7646_v27 = vld [vmem:[#allocation2 + $0x830] sm:$0xf0]  ;;  %v7521_v29 = vor.u32 %v8277_v50, %v7518_v21  ;;  %v7621_v46 = vor.u32 %v8304_v33, %v7620_v24  ;;  %v8332_v43 = vld [vmem:[#allocation2 + $0x8d4] sm:$0xf0] }
 0x9b7   :  { %5934 = vmatpush.bf16.msra.mxu2 %v7697_v61  ;;  %v8341_v32 = vld [vmem:[#allocation2 + $0x924] sm:$0xf]  ;;  %v7774_v19 = vld [vmem:[#allocation2 + $0x930] sm:$0xf0]  ;;  %v7649_v10 = vor.u32 %v8309_v37, %v7646_v27  ;;  %v7749_v61 = vor.u32 %v8336_v25, %v7748_v9  ;;  %v7860_v35 = vld [vmem:[#allocation2 + $0x9c8] sm:$0xf] }
 0x9b8   :  { %5947 = vmatpush.bf16.msra.mxu3 %v7825_v58  ;;  %v8241_v3 = vld [vmem:[#allocation2 + $0x604] sm:$0xf]  ;;  %v7374_v5 = vld [vmem:[#allocation2 + $0x610] sm:$0xf0]  ;;  %v7777_v26 = vor.u32 %v8341_v32, %v7774_v19  ;;  %v7877_v58 = vor.u32 %v8368_v6, %v7876_v38  ;;  %v8364_v56 = vld [vmem:[#allocation2 + $0x9d4] sm:$0xf0] }
 0x9b9   :  { %5909 = vmatpush.bf16.msra.mxu0 %v7425_v4  ;;  %v8273_v22 = vld [vmem:[#allocation2 + $0x704] sm:$0xf]  ;;  %v7502_v8 = vld [vmem:[#allocation2 + $0x710] sm:$0xf0]  ;;  %v7377_v59 = vor.u32 %v8241_v3, %v7374_v5  ;;  %v7477_v4 = vor.u32 %v8268_v54, %v7476_v45  ;;  %v7460_v7 = vld [vmem:[#allocation2 + $0x6a8] sm:$0xf] }
 0x9ba   :  { %5922 = vmatpush.bf16.msra.mxu1 %v7553_v14  ;;  %v8305_v52 = vld [vmem:[#allocation2 + $0x804] sm:$0xf]  ;;  %v7630_v40 = vld [vmem:[#allocation2 + $0x810] sm:$0xf0]  ;;  %v7505_v48 = vor.u32 %v8273_v22, %v7502_v8  ;;  %v7605_v14 = vor.u32 %v8300_v39, %v7604_v15  ;;  %v8264_v30 = vld [vmem:[#allocation2 + $0x6b4] sm:$0xf0] }
 0x9bb   :  { %5935 = vmatpush.bf16.msra.mxu2 %v7681_v41  ;;  %v8337_v53 = vld [vmem:[#allocation2 + $0x904] sm:$0xf]  ;;  %v7758_v34 = vld [vmem:[#allocation2 + $0x910] sm:$0xf0]  ;;  %v7633_v13 = vor.u32 %v8305_v52, %v7630_v40  ;;  %v7733_v41 = vor.u32 %v8332_v43, %v7732_v36  ;;  %v7588_v2 = vld [vmem:[#allocation2 + $0x7a8] sm:$0xf] }
 0x9bc   :  { %5948 = vmatpush.bf16.msra.mxu3 %v7809_v51  ;;  %v7761_v49 = vor.u32 %v8337_v53, %v7758_v34  ;;  %v7861_v51 = vor.u32 %v8364_v56, %v7860_v35  ;;  %v8296_v0 = vld [vmem:[#allocation2 + $0x7b4] sm:$0xf0]  ;;  %v7716_v1 = vld [vmem:[#allocation2 + $0x8a8] sm:$0xf] }
 0x9bd   :  { %5910 = vmatpush.bf16.msra.mxu0 %v7409_v20  ;;  %v8328_v44 = vld [vmem:[#allocation2 + $0x8b4] sm:$0xf0]  ;;  %v7844_v17 = vld [vmem:[#allocation2 + $0x9a8] sm:$0xf]  ;;  %v7461_v20 = vor.u32 %v8264_v30, %v7460_v7 }
 0x9be   :  { %5923 = vmatpush.bf16.msra.mxu1 %v7537_v42  ;;  %v8360_v18 = vld [vmem:[#allocation2 + $0x9b4] sm:$0xf0]  ;;  %v7589_v42 = vor.u32 %v8296_v0, %v7588_v2  ;;  %v7444_v16 = vld [vmem:[#allocation2 + $0x688] sm:$0xf] }
 0x9bf   :  { %5936 = vmatpush.bf16.msra.mxu2 %v7665_v63  ;;  %v7717_v63 = vor.u32 %v8328_v44, %v7716_v1  ;;  %v8260_v31 = vld [vmem:[#allocation2 + $0x694] sm:$0xf0]  ;;  %v7572_v50 = vld [vmem:[#allocation2 + $0x788] sm:$0xf] }
 0x9c0   :  { %5949 = vmatpush.bf16.msra.mxu3 %v7793_v60  ;;  %v7845_v60 = vor.u32 %v8360_v18, %v7844_v17  ;;  %v8292_v21 = vld [vmem:[#allocation2 + $0x794] sm:$0xf0]  ;;  %v7700_v37 = vld [vmem:[#allocation2 + $0x888] sm:$0xf] }
 0x9c1   :  { %5911 = vmatpush.bf16.msra.mxu0 %v7393_v55  ;;  %v8324_v27 = vld [vmem:[#allocation2 + $0x894] sm:$0xf0]  ;;  %v7828_v32 = vld [vmem:[#allocation2 + $0x988] sm:$0xf]  ;;  %v7445_v55 = vor.u32 %v8260_v31, %v7444_v16  ;;  %v7573_v3 = vor.u32 %v8292_v21, %v7572_v50  ;;  %v7622_v31 = vld [vmem:[#allocation2 + $0x7f8] sm:$0xf0] }
 0x9c2   :  { %5924 = vmatpush.bf16.msra.mxu1 %v7521_v29  ;;  %v8356_v19 = vld [vmem:[#allocation2 + $0x994] sm:$0xf0]  ;;  %v7701_v5 = vor.u32 %v8324_v27, %v7700_v37  ;;  %v7428_v29 = vld [vmem:[#allocation2 + $0x668] sm:$0xf]  ;;  %v8334_v50 = vld [vmem:[#allocation2 + $0x8ec] sm:$0xf] }
 0x9c3   :  { %5937 = vmatpush.bf16.msra.mxu2 %v7649_v10  ;;  %v8256_v10 = vld [vmem:[#allocation2 + $0x674] sm:$0xf0]  ;;  %v7556_v22 = vld [vmem:[#allocation2 + $0x768] sm:$0xf]  ;;  %v7829_v8 = vor.u32 %v8356_v19, %v7828_v32  ;;  %v8366_v27 = vld [vmem:[#allocation2 + $0x9ec] sm:$0xf] }
 0x9c4   :  { %5950 = vmatpush.bf16.msra.mxu3 %v7777_v26  ;;  %v8288_v52 = vld [vmem:[#allocation2 + $0x774] sm:$0xf0]  ;;  %v7684_v26 = vld [vmem:[#allocation2 + $0x868] sm:$0xf]  ;;  %v7429_v23 = vor.u32 %v8256_v10, %v7428_v29  ;;  %v7878_v32 = vld [vmem:[#allocation2 + $0x9f8] sm:$0xf0] }
 0x9c5   :  { %5912 = vmatpush.bf16.msra.mxu0 %v7377_v59  ;;  %v8320_v40 = vld [vmem:[#allocation2 + $0x874] sm:$0xf0]  ;;  %v7812_v53 = vld [vmem:[#allocation2 + $0x968] sm:$0xf]  ;;  %v7557_v12 = vor.u32 %v8288_v52, %v7556_v22  ;;  %v8266_v29 = vld [vmem:[#allocation2 + $0x6cc] sm:$0xf] }
 0x9c6   :  { %5925 = vmatpush.bf16.msra.mxu1 %v7505_v48  ;;  %v8352_v34 = vld [vmem:[#allocation2 + $0x974] sm:$0xf0]  ;;  %v7685_v24 = vor.u32 %v8320_v40, %v7684_v26  ;;  %v7412_v59 = vld [vmem:[#allocation2 + $0x648] sm:$0xf]  ;;  %v7478_v10 = vld [vmem:[#allocation2 + $0x6d8] sm:$0xf0] }
 0x9c7   :  { %5938 = vmatpush.bf16.msra.mxu2 %v7633_v13  ;;  %v8252_v33 = vld [vmem:[#allocation2 + $0x654] sm:$0xf0]  ;;  %v7540_v9 = vld [vmem:[#allocation2 + $0x748] sm:$0xf]  ;;  %v7813_v25 = vor.u32 %v8352_v34, %v7812_v53  ;;  %v8298_v22 = vld [vmem:[#allocation2 + $0x7cc] sm:$0xf] }
 0x9c8   :  { %5951 = vmatpush.bf16.msra.mxu3 %v7761_v49  ;;  %5913 = vmatmul.bf16.vlgmr.msra.gmra.mxu0 %v10641_v28  ;;  %v8284_v48 = vld [vmem:[#allocation2 + $0x754] sm:$0xf0]  ;;  %v7668_v13 = vld [vmem:[#allocation2 + $0x848] sm:$0xf]  ;;  %v7606_v52 = vld [vmem:[#allocation2 + $0x7d8] sm:$0xf0] }
 0x9c9   :  { %5957 = vmatpush.bf16.msrb.mxu0 %v7493_v47  ;;  %5926 = vmatmul.bf16.vlgmr.msra.gmra.mxu1 %v10649_v62  ;;  %v8316_v38 = vld [vmem:[#allocation2 + $0x854] sm:$0xf0]  ;;  %v7796_v6 = vld [vmem:[#allocation2 + $0x948] sm:$0xf]  ;;  %v7413_v47 = vor.u32 %v8252_v33, %v7412_v59  ;;  %v8330_v26 = vld [vmem:[#allocation2 + $0x8cc] sm:$0xf] }
 0x9ca   :  { %5970 = vmatpush.bf16.msrb.mxu1 %v7621_v46  ;;  %5939 = vmatmul.bf16.vlgmr.msra.gmra.mxu2 %v10637_v11  ;;  %v8348_v49 = vld [vmem:[#allocation2 + $0x954] sm:$0xf0]  ;;  %v7541_v46 = vor.u32 %v8284_v48, %v7540_v9  ;;  %v7396_v45 = vld [vmem:[#allocation2 + $0x628] sm:$0xf]  ;;  %v7734_v40 = vld [vmem:[#allocation2 + $0x8d8] sm:$0xf0] }
 0x9cb   :  { %5983 = vmatpush.bf16.msrb.mxu2 %v7749_v61  ;;  %5952 = vmatmul.bf16.vlgmr.msra.gmra.mxu3 %v10645_v57  ;;  %v7669_v61 = vor.u32 %v8316_v38, %v7668_v13  ;;  %v8248_v54 = vld [vmem:[#allocation2 + $0x634] sm:$0xf0]  ;;  %v7524_v15 = vld [vmem:[#allocation2 + $0x728] sm:$0xf]  ;;  %v8362_v53 = vld [vmem:[#allocation2 + $0x9cc] sm:$0xf] }
 0x9cc   :  { %5996 = vmatpush.bf16.msrb.mxu3 %v7877_v58  ;;  %v7797_v58 = vor.u32 %v8348_v49, %v7796_v6  ;;  %v8280_v39 = vld [vmem:[#allocation2 + $0x734] sm:$0xf0]  ;;  %v7652_v36 = vld [vmem:[#allocation2 + $0x828] sm:$0xf]  ;;  %v7862_v34 = vld [vmem:[#allocation2 + $0x9d8] sm:$0xf0] }
 0x9cd   :  { %5958 = vmatpush.bf16.msrb.mxu0 %v7477_v4  ;;  %v8312_v43 = vld [vmem:[#allocation2 + $0x834] sm:$0xf0]  ;;  %v7780_v35 = vld [vmem:[#allocation2 + $0x928] sm:$0xf]  ;;  %v7397_v4 = vor.u32 %v8248_v54, %v7396_v45  ;;  %v7525_v7 = vor.u32 %v8280_v39, %v7524_v15  ;;  %v8262_v59 = vld [vmem:[#allocation2 + $0x6ac] sm:$0xf] }
 0x9ce   :  { %5971 = vmatpush.bf16.msrb.mxu1 %v7605_v14  ;;  %v8344_v56 = vld [vmem:[#allocation2 + $0x934] sm:$0xf0]  ;;  %v7380_v14 = vld [vmem:[#allocation2 + $0x608] sm:$0xf]  ;;  %v7653_v30 = vor.u32 %v8312_v43, %v7652_v36  ;;  %v7462_v33 = vld [vmem:[#allocation2 + $0x6b8] sm:$0xf0] }
 0x9cf   :  { %5984 = vmatpush.bf16.msrb.mxu2 %v7733_v41  ;;  %v8244_v41 = vld [vmem:[#allocation2 + $0x614] sm:$0xf0]  ;;  %v7508_v2 = vld [vmem:[#allocation2 + $0x708] sm:$0xf]  ;;  %v7781_v1 = vor.u32 %v8344_v56, %v7780_v35  ;;  %v8294_v9 = vld [vmem:[#allocation2 + $0x7ac] sm:$0xf] }
 0x9d0   :  { %5997 = vmatpush.bf16.msrb.mxu3 %v7861_v51  ;;  %v8276_v51 = vld [vmem:[#allocation2 + $0x714] sm:$0xf0]  ;;  %v7636_v0 = vld [vmem:[#allocation2 + $0x808] sm:$0xf]  ;;  %v7381_v16 = vor.u32 %v8244_v41, %v7380_v14  ;;  %v7590_v48 = vld [vmem:[#allocation2 + $0x7b8] sm:$0xf0] }
 0x9d1   :  { %5959 = vmatpush.bf16.msrb.mxu0 %v7461_v20  ;;  %v8308_v44 = vld [vmem:[#allocation2 + $0x814] sm:$0xf0]  ;;  %v7764_v17 = vld [vmem:[#allocation2 + $0x908] sm:$0xf]  ;;  %v8270_v20 = vld [vmem:[#allocation2 + $0x6ec] sm:$0xf]  ;;  %v7509_v21 = vor.u32 %v8276_v51, %v7508_v2 }
 0x9d2   :  { %5972 = vmatpush.bf16.msrb.mxu1 %v7589_v42  ;;  %v8340_v18 = vld [vmem:[#allocation2 + $0x914] sm:$0xf0]  ;;  %v7494_v42 = vld [vmem:[#allocation2 + $0x6f8] sm:$0xf0]  ;;  %v7637_v37 = vor.u32 %v8308_v44, %v7636_v0  ;;  %v8326_v13 = vld [vmem:[#allocation2 + $0x8ac] sm:$0xf] }
 0x9d3   :  { %5985 = vmatpush.bf16.msrb.mxu2 %v7717_v63  ;;  %v8302_v63 = vld [vmem:[#allocation2 + $0x7ec] sm:$0xf]  ;;  %v7765_v19 = vor.u32 %v8340_v18, %v7764_v17  ;;  %v7718_v38 = vld [vmem:[#allocation2 + $0x8b8] sm:$0xf0] }
 0x9d4   :  { %5998 = vmatpush.bf16.msrb.mxu3 %v7845_v60  ;;  %v7750_v60 = vld [vmem:[#allocation2 + $0x8f8] sm:$0xf0]  ;;  %v8358_v6 = vld [vmem:[#allocation2 + $0x9ac] sm:$0xf] }
 0x9d5   :  { %5960 = vmatpush.bf16.msrb.mxu0 %v7445_v55  ;;  %v7497_v55 = vor.u32 %v8270_v20, %v7494_v42  ;;  %v7846_v49 = vld [vmem:[#allocation2 + $0x9b8] sm:$0xf0]  ;;  %v8258_v45 = vld [vmem:[#allocation2 + $0x68c] sm:$0xf] }
 0x9d6   :  { %5973 = vmatpush.bf16.msrb.mxu1 %v7573_v3  ;;  %v7625_v3 = vor.u32 %v8302_v63, %v7622_v31  ;;  %v7446_v54 = vld [vmem:[#allocation2 + $0x698] sm:$0xf0]  ;;  %v8290_v15 = vld [vmem:[#allocation2 + $0x78c] sm:$0xf] }
 0x9d7   :  { %5986 = vmatpush.bf16.msrb.mxu2 %v7701_v5  ;;  %v7753_v5 = vor.u32 %v8334_v50, %v7750_v60  ;;  %v7574_v39 = vld [vmem:[#allocation2 + $0x798] sm:$0xf0]  ;;  %v8322_v36 = vld [vmem:[#allocation2 + $0x88c] sm:$0xf] }
 0x9d8   :  { %5999 = vmatpush.bf16.msrb.mxu3 %v7829_v8  ;;  %v7881_v8 = vor.u32 %v8366_v27, %v7878_v32  ;;  %v7702_v43 = vld [vmem:[#allocation2 + $0x898] sm:$0xf0]  ;;  %v8354_v35 = vld [vmem:[#allocation2 + $0x98c] sm:$0xf]  ;;  %v7577_v14 = vor.u32 %v8290_v15, %v7574_v39 }
 0x9d9   :  { %5961 = vmatpush.bf16.msrb.mxu0 %v7429_v23  ;;  %v7481_v23 = vor.u32 %v8266_v29, %v7478_v10  ;;  %v7830_v56 = vld [vmem:[#allocation2 + $0x998] sm:$0xf0]  ;;  %v7705_v41 = vor.u32 %v8322_v36, %v7702_v43  ;;  %v8286_v2 = vld [vmem:[#allocation2 + $0x76c] sm:$0xf]  ;;  %v8373_v36 = vld [vmem:[%s10775_s2 + $0x20] sm:$0xff] }
 0x9da   :  { %5974 = vmatpush.bf16.msrb.mxu1 %v7557_v12  ;;  %v7609_v12 = vor.u32 %v8298_v22, %v7606_v52  ;;  %v7833_v51 = vor.u32 %v8354_v35, %v7830_v56  ;;  %v7558_v0 = vld [vmem:[#allocation2 + $0x778] sm:$0xf0]  ;;  %v8350_v17 = vld [vmem:[#allocation2 + $0x96c] sm:$0xf]  ;;  %v8381_v43 = vld [vmem:[%s10775_s2 + $0x60] sm:$0xff] }
 0x9db   :  { %5987 = vmatpush.bf16.msrb.mxu2 %v7685_v24  ;;  %v7737_v24 = vor.u32 %v8330_v26, %v7734_v40  ;;  %v7686_v44 = vld [vmem:[#allocation2 + $0x878] sm:$0xf0]  ;;  %v7561_v42 = vor.u32 %v8286_v2, %v7558_v0  ;;  %v8282_v50 = vld [vmem:[#allocation2 + $0x74c] sm:$0xf] }
 0x9dc   :  { %6000 = vmatpush.bf16.msrb.mxu3 %v7813_v25  ;;  %v7865_v25 = vor.u32 %v8362_v53, %v7862_v34  ;;  %v7814_v18 = vld [vmem:[#allocation2 + $0x978] sm:$0xf0]  ;;  %v8346_v32 = vld [vmem:[#allocation2 + $0x94c] sm:$0xf] }
 0x9dd   :  { %5962 = vmatpush.bf16.msrb.mxu0 %v7413_v47  ;;  %v7465_v47 = vor.u32 %v8262_v59, %v7462_v33  ;;  %v7414_v31 = vld [vmem:[#allocation2 + $0x658] sm:$0xf0]  ;;  %v7817_v60 = vor.u32 %v8350_v17, %v7814_v18  ;;  %v8246_v29 = vld [vmem:[#allocation2 + $0x62c] sm:$0xf] }
 0x9de   :  { %5975 = vmatpush.bf16.msrb.mxu1 %v7541_v46  ;;  %v7593_v46 = vor.u32 %v8294_v9, %v7590_v48  ;;  %v7670_v27 = vld [vmem:[#allocation2 + $0x858] sm:$0xf0]  ;;  %v8278_v22 = vld [vmem:[#allocation2 + $0x72c] sm:$0xf] }
 0x9df   :  { %5988 = vmatpush.bf16.msrb.mxu2 %v7669_v61  ;;  %v7721_v61 = vor.u32 %v8326_v13, %v7718_v38  ;;  %v7398_v10 = vld [vmem:[#allocation2 + $0x638] sm:$0xf0]  ;;  %v8310_v26 = vld [vmem:[#allocation2 + $0x82c] sm:$0xf] }
 0x9e0   :  { %6001 = vmatpush.bf16.msrb.mxu3 %v7797_v58  ;;  %v7849_v58 = vor.u32 %v8358_v6, %v7846_v49  ;;  %v7526_v52 = vld [vmem:[#allocation2 + $0x738] sm:$0xf0]  ;;  %v8342_v53 = vld [vmem:[#allocation2 + $0x92c] sm:$0xf] }
 0x9e1   :  { %5963 = vmatpush.bf16.msrb.mxu0 %v7397_v4  ;;  %v7449_v4 = vor.u32 %v8258_v45, %v7446_v54  ;;  %v7654_v40 = vld [vmem:[#allocation2 + $0x838] sm:$0xf0]  ;;  %v8242_v59 = vld [vmem:[#allocation2 + $0x60c] sm:$0xf] }
 0x9e2   :  { %5976 = vmatpush.bf16.msrb.mxu1 %v7525_v7  ;;  %v8254_v7 = vld [vmem:[#allocation2 + $0x66c] sm:$0xf]  ;;  %v7782_v34 = vld [vmem:[#allocation2 + $0x938] sm:$0xf0] }
 0x9e3   :  { %5989 = vmatpush.bf16.msrb.mxu2 %v7653_v30  ;;  %v7430_v30 = vld [vmem:[#allocation2 + $0x678] sm:$0xf0]  ;;  %v8274_v9 = vld [vmem:[#allocation2 + $0x70c] sm:$0xf] }
 0x9e4   :  { %6002 = vmatpush.bf16.msrb.mxu3 %v7781_v1  ;;  %v8318_v1 = vld [vmem:[#allocation2 + $0x86c] sm:$0xf]  ;;  %v7433_v20 = vor.u32 %v8254_v7, %v7430_v30  ;;  %v7382_v33 = vld [vmem:[#allocation2 + $0x618] sm:$0xf0] }
 0x9e5   :  { %5964 = vmatpush.bf16.msrb.mxu0 %v7381_v16  ;;  %v7689_v63 = vor.u32 %v8318_v1, %v7686_v44  ;;  %v8250_v16 = vld [vmem:[#allocation2 + $0x64c] sm:$0xf]  ;;  %v7510_v48 = vld [vmem:[#allocation2 + $0x718] sm:$0xf0] }
 0x9e6   :  { %5977 = vmatpush.bf16.msrb.mxu1 %v7509_v21  ;;  %v7542_v21 = vld [vmem:[#allocation2 + $0x758] sm:$0xf0]  ;;  %v8306_v13 = vld [vmem:[#allocation2 + $0x80c] sm:$0xf] }
 0x9e7   :  { %5990 = vmatpush.bf16.msrb.mxu2 %v7637_v37  ;;  %v8314_v37 = vld [vmem:[#allocation2 + $0x84c] sm:$0xf]  ;;  %v7638_v38 = vld [vmem:[#allocation2 + $0x818] sm:$0xf0] }
 0x9e8   :  { %6003 = vmatpush.bf16.msrb.mxu3 %v7765_v19  ;;  %5965 = vmatmul.bf16.vlgmr.msrb.gmra.mxu0 %v10641_v28  ;;  %v7798_v19 = vld [vmem:[#allocation2 + $0x958] sm:$0xf0]  ;;  %v8338_v6 = vld [vmem:[#allocation2 + $0x90c] sm:$0xf] }
 0x9e9   :  { %6009 = vmatpush.bf16.msra.mxu0 %v7497_v55  ;;  %5978 = vmatmul.bf16.vlgmr.msrb.gmra.mxu1 %v10649_v62  ;;  %v7417_v55 = vor.u32 %v8250_v16, %v7414_v31  ;;  %v7766_v49 = vld [vmem:[#allocation2 + $0x918] sm:$0xf0]  ;;  %v8374_v39 = vld [vmem:[%s10775_s2 + $0x28] sm:$0xff]  ;;  %v8377_v31 = vld [vmem:[%s10775_s2 + $0x40] sm:$0xff] }
 0x9ea   :  { %6022 = vmatpush.bf16.msra.mxu1 %v7625_v3  ;;  %5991 = vmatmul.bf16.vlgmr.msrb.gmra.mxu2 %v10637_v11  ;;  %v7545_v3 = vor.u32 %v8282_v50, %v7542_v21  ;;  %v7769_v45 = vor.u32 %v8338_v6, %v7766_v49  ;;  %v8376_v54 = vld [vmem:[%s10775_s2 + $0x38] sm:$0xff]  ;;  %v8370_v35 = vld [vmem:[%s10775_s2 + $0x8] sm:$0xff]  ;;  %v8391_v21 = vld [vmem:[%s10775_s2 + $0xb0] sm:$0xff] }
 0x9eb   :  { %6035 = vmatpush.bf16.msra.mxu2 %v7753_v5  ;;  %6004 = vmatmul.bf16.vlgmr.msrb.gmra.mxu3 %v10645_v57  ;;  %v7673_v5 = vor.u32 %v8314_v37, %v7670_v27  ;;  %v8384_v15 = vld [vmem:[%s10775_s2 + $0x78] sm:$0xff]  ;;  %v8378_v18 = vld [vmem:[%s10775_s2 + $0x48] sm:$0xff]  ;;  %v8397_v6 = vld [vmem:[%s10775_s2 + $0xe0] sm:$0xff] }
 0x9ec   :  { %6048 = vmatpush.bf16.msra.mxu3 %v7881_v8  ;;  %v7801_v8 = vor.u32 %v8346_v32, %v7798_v19  ;;  %v8380_v56 = vld [vmem:[%s10775_s2 + $0x58] sm:$0xff]  ;;  %v8390_v32 = vld [vmem:[%s10775_s2 + $0xa8] sm:$0xff]  ;;  %v8389_v19 = vld [vmem:[%s10775_s2 + $0xa0] sm:$0xff] }
 0x9ed   :  { %6010 = vmatpush.bf16.msra.mxu0 %v7481_v23  ;;  %v7401_v23 = vor.u32 %v8246_v29, %v7398_v10  ;;  %v8392_v50 = vld [vmem:[%s10775_s2 + $0xb8] sm:$0xff] }
 0x9ee   :  { %6023 = vmatpush.bf16.msra.mxu1 %v7609_v12  ;;  %v7529_v12 = vor.u32 %v8278_v22, %v7526_v52  ;;  %v8387_v22 = vld [vmem:[%s10775_s2 + $0x90] sm:$0xff]  ;;  %v8396_v49 = vld [vmem:[%s10775_s2 + $0xd8] sm:$0xff] }
 0x9ef   :  { %6036 = vmatpush.bf16.msra.mxu2 %v7737_v24  ;;  %v7657_v24 = vor.u32 %v8310_v26, %v7654_v40  ;;  %v8386_v26 = vld [vmem:[%s10775_s2 + $0x88] sm:$0xff] }
 0x9f0   :  { %6049 = vmatpush.bf16.msra.mxu3 %v7865_v25  ;;  %v7785_v25 = vor.u32 %v8342_v53, %v7782_v34 }
 0x9f1   :  { %6011 = vmatpush.bf16.msra.mxu0 %v7465_v47  ;;  %v7385_v47 = vor.u32 %v8242_v59, %v7382_v33  ;;  %v8400_v33 = vld [vmem:[%s10775_s2 + $0xf8] sm:$0xff] }
 0x9f2   :  { %6024 = vmatpush.bf16.msra.mxu1 %v7593_v46  ;;  %v7513_v46 = vor.u32 %v8274_v9, %v7510_v48 }
 0x9f3   :  { %6037 = vmatpush.bf16.msra.mxu2 %v7721_v61  ;;  %v7641_v61 = vor.u32 %v8306_v13, %v7638_v38  ;;  %v8398_v38 = vld [vmem:[%s10775_s2 + $0xe8] sm:$0xff] }
 0x9f4   :  { %6050 = vmatpush.bf16.msra.mxu3 %v7849_v58  ;;  %v8375_v58 = vld [vmem:[%s10775_s2 + $0x30] sm:$0xff] }
 0x9f5   :  { %6012 = vmatpush.bf16.msra.mxu0 %v7449_v4  ;;  %v10703_v4 = vld [vmem:[#allocation6 + $0x4] ss:$8 sm:$0xf] }
 0x9f6   :  { %6025 = vmatpush.bf16.msra.mxu1 %v7577_v14  ;;  %v5205_v14 = vperm.slane %v10703_v4, 0 }
 0x9f7   :  { %6038 = vmatpush.bf16.msra.mxu2 %v7705_v41  ;;  %v8369_v41 = vld [vmem:[%s10775_s2] sm:$0xff] }
 0x9f8   :  { %6051 = vmatpush.bf16.msra.mxu3 %v7833_v51  ;;  %v8379_v51 = vld [vmem:[%s10775_s2 + $0x50] sm:$0xff] }
 0x9f9   :  { %6013 = vmatpush.bf16.msra.mxu0 %v7433_v20 }
 0x9fa   :  { %6026 = vmatpush.bf16.msra.mxu1 %v7561_v42 }
 0x9fb   :  { %6039 = vmatpush.bf16.msra.mxu2 %v7689_v63 }
 0x9fc   :  { %6052 = vmatpush.bf16.msra.mxu3 %v7817_v60 }
 0x9fd   :  { %6014 = vmatpush.bf16.msra.mxu0 %v7417_v55  ;;  %v8388_v55 = vld [vmem:[%s10775_s2 + $0x98] sm:$0xff] }
 0x9fe   :  { %6027 = vmatpush.bf16.msra.mxu1 %v7545_v3  ;;  %v5206_v3 = vperm.slane %v10703_v4, 1 }
 0x9ff   :  { %6040 = vmatpush.bf16.msra.mxu2 %v7673_v5 }
 0xa00   :  { %6053 = vmatpush.bf16.msra.mxu3 %v7801_v8 }
 0xa01   :  { %6015 = vmatpush.bf16.msra.mxu0 %v7401_v23 }
 0xa02   :  { %6028 = vmatpush.bf16.msra.mxu1 %v7529_v12 }
 0xa03   :  { %6041 = vmatpush.bf16.msra.mxu2 %v7657_v24  ;;  %v8385_v24 = vld [vmem:[%s10775_s2 + $0x80] sm:$0xff] }
 0xa04   :  { %6054 = vmatpush.bf16.msra.mxu3 %v7785_v25  ;;  %v8399_v25 = vld [vmem:[%s10775_s2 + $0xf0] sm:$0xff] }
 0xa05   :  { %6016 = vmatpush.bf16.msra.mxu0 %v7385_v47  ;;  %v5207_v47 = vperm.slane %v10703_v4, 2 }
 0xa06   :  { %6029 = vmatpush.bf16.msra.mxu1 %v7513_v46  ;;  %v8395_v46 = vld [vmem:[%s10775_s2 + $0xd0] sm:$0xff] }
 0xa07   :  { %6042 = vmatpush.bf16.msra.mxu2 %v7641_v61 }
 0xa08   :  { %6055 = vmatpush.bf16.msra.mxu3 %v7769_v45  ;;  %6017 = vmatmul.bf16.vlgmr.msra.gmra.mxu0 %v10641_v28  ;;  %v8383_v28 = vld [vmem:[%s10775_s2 + $0x70] sm:$0xff] }
 0xa09   :  { %6326 = vmatpush.bf16.msrb.mxu0 %v8376_v54  ;;  %6030 = vmatmul.bf16.vlgmr.msra.gmra.mxu1 %v10649_v62  ;;  %v8371_v62 = vld [vmem:[%s10775_s2 + $0x10] sm:$0xff] }
 0xa0a   :  { %6339 = vmatpush.bf16.msrb.mxu1 %v8384_v15  ;;  %6043 = vmatmul.bf16.vlgmr.msra.gmra.mxu2 %v10637_v11  ;;  %v8372_v11 = vld [vmem:[%s10775_s2 + $0x18] sm:$0xff] }
 0xa0b   :  { %6056 = vmatmul.bf16.vlgmr.msra.gmra.mxu3 %v10645_v57  ;;  %v8382_v57 = vld [vmem:[%s10775_s2 + $0x68] sm:$0xff]  ;;  %6352 = vmatpush.bf16.msrb.mxu2 %v8392_v50 }
 0xa0c   :  { %6365 = vmatpush.bf16.msrb.mxu3 %v8400_v33 }
 0xa0d   :  { %6327 = vmatpush.bf16.msrb.mxu0 %v8375_v58  ;;  %v8394_v58 = vld [vmem:[%s10775_s2 + $0xc8] sm:$0xff] }
 0xa0e   :  { %6340 = vmatpush.bf16.msrb.mxu1 %v8383_v28 }
 0xa0f   :  { %6353 = vmatpush.bf16.msrb.mxu2 %v8391_v21 }
 0xa10   :  { %6366 = vmatpush.bf16.msrb.mxu3 %v8399_v25 }
 0xa11   :  { %6328 = vmatpush.bf16.msrb.mxu0 %v8374_v39 }
 0xa12   :  { %6341 = vmatpush.bf16.msrb.mxu1 %v8382_v57 }
 0xa13   :  { %6354 = vmatpush.bf16.msrb.mxu2 %v8390_v32 }
 0xa14   :  { %6367 = vmatpush.bf16.msrb.mxu3 %v8398_v38 }
 0xa15   :  { %6329 = vmatpush.bf16.msrb.mxu0 %v8373_v36 }
 0xa16   :  { %6342 = vmatpush.bf16.msrb.mxu1 %v8381_v43 }
 0xa17   :  { %6355 = vmatpush.bf16.msrb.mxu2 %v8389_v19  ;;  %v6133_v19 = vld [vmem:[#allocation6 + $0x5] ss:$0 sm:$0xff] }
 0xa18   :  { %6368 = vmatpush.bf16.msrb.mxu3 %v8397_v6 }
 0xa19   :  { %6330 = vmatpush.bf16.msrb.mxu0 %v8372_v11 }
 0xa1a   :  { %6343 = vmatpush.bf16.msrb.mxu1 %v8380_v56 }
 0xa1b   :  { %6356 = vmatpush.bf16.msrb.mxu2 %v8388_v55 }
 0xa1c   :  { %6369 = vmatpush.bf16.msrb.mxu3 %v8396_v49 }
 0xa1d   :  { %6331 = vmatpush.bf16.msrb.mxu0 %v8371_v62  ;;  %v8393_v62 = vld [vmem:[%s10775_s2 + $0xc0] sm:$0xff]  ;;  %s8576_s2 = smov 32  }
 0xa1e   :  { %6344 = vmatpush.bf16.msrb.mxu1 %v8379_v51 }
 0xa1f   :  { %6357 = vmatpush.bf16.msrb.mxu2 %v8387_v22 }
 0xa20   :  { %6370 = vmatpush.bf16.msrb.mxu3 %v8395_v46 }
 0xa21   :  { %6332 = vmatpush.bf16.msrb.mxu0 %v8370_v35 }
 0xa22   :  { %6345 = vmatpush.bf16.msrb.mxu1 %v8378_v18 }
 0xa23   :  { %6358 = vmatpush.bf16.msrb.mxu2 %v8386_v26  ;;  %v6380_v26 = vld [vmem:[#allocation8] sm:$0x3] }
 0xa24   :  { %6371 = vmatpush.bf16.msrb.mxu3 %v8394_v58 }
 0xa25   :  { %v5862_v7 = vpop.f32.mrf.mxu0  ;;  %6333 = vmatpush.bf16.msrb.mxu0 %v8369_v41 }
 0xa26   :  { %v5863_v30 = vadd.f32 %v5862_v7, %v5205_v14  ;;  %v5875_v2 = vpop.f32.mrf.mxu1  ;;  %6346 = vmatpush.bf16.msrb.mxu1 %v8377_v31  ;;  %v5208_v7 = vperm.slane %v10703_v4, 3 }
 0xa27   :  { %6359 = vmatpush.bf16.msrb.mxu2 %v8385_v24 }
 0xa28   :  { %v5876_v0 = vadd.f32 %v5875_v2, %v5863_v30  ;;  %6372 = vmatpush.bf16.msrb.mxu3 %v8393_v62 }
 0xa2d   :  { %v5888_v1 = vpop.f32.mrf.mxu2  ;;  %v5864_v42 = vpop.f32.mrf.mxu0 }
 0xa2e   :  { %v5889_v44 = vadd.f32 %v5888_v1, %v5876_v0  ;;  %v5901_v17 = vpop.f32.mrf.mxu3  ;;  %v5877_v63 = vpop.f32.mrf.mxu1 }
 0xa30   :  { %v5902_v20 = vadd.f32 %v5901_v17, %v5889_v44 }
 0xa32   :  { %v6061_v16 = vmax.f32 %v5902_v20, 0.0 }
 0xa34   :  { %v6065_v60 = vpack.c.bf16 %v6061_v16, %v6061_v16 }
 0xa35   :  { %v5890_v37 = vpop.f32.mrf.mxu2 }
 0xa36   :  { %v5903_v27 = vpop.f32.mrf.mxu3  ;;  %6334 = vmatmul.bf16.vlgmr.msrb.gmra.mxu0 %v6065_v60 }
 0xa45   :  { %v5914_v5 = vpop.f32.mrf.mxu0 }
 0xa46   :  { %v5915_v29 = vadd.f32 %v5914_v5, %v5206_v3  ;;  %v5927_v10 = vpop.f32.mrf.mxu1 }
 0xa48   :  { %v5928_v8 = vadd.f32 %v5927_v10, %v5915_v29 }
 0xa4d   :  { %v5940_v52 = vpop.f32.mrf.mxu2  ;;  %v5916_v23 = vpop.f32.mrf.mxu0 }
 0xa4e   :  { %v5941_v40 = vadd.f32 %v5940_v52, %v5928_v8  ;;  %v5953_v53 = vpop.f32.mrf.mxu3  ;;  %v5929_v12 = vpop.f32.mrf.mxu1 }
 0xa50   :  { %v5954_v34 = vadd.f32 %v5953_v53, %v5941_v40 }
 0xa52   :  { %v6062_v59 = vmax.f32 %v5954_v34, 0.0 }
 0xa54   :  { %v6066_v9 = vpack.c.bf16 %v6062_v59, %v6062_v59 }
 0xa55   :  { %v5942_v48 = vpop.f32.mrf.mxu2 }
 0xa56   :  { %6347 = vmatmul.bf16.vlgmr.msrb.gmra.mxu1 %v6066_v9  ;;  %v5955_v13 = vpop.f32.mrf.mxu3 }
 0xa65   :  { %v5966_v61 = vpop.f32.mrf.mxu0 }
 0xa66   :  { %v5967_v45 = vadd.f32 %v5966_v61, %v5207_v47  ;;  %v5979_v54 = vpop.f32.mrf.mxu1 }
 0xa68   :  { %v5980_v15 = vadd.f32 %v5979_v54, %v5967_v45 }
 0xa6d   :  { %v5992_v39 = vpop.f32.mrf.mxu2  ;;  %v5968_v57 = vpop.f32.mrf.mxu0 }
 0xa6e   :  { %v5993_v36 = vadd.f32 %v5992_v39, %v5980_v15  ;;  %v6005_v28 = vpop.f32.mrf.mxu3  ;;  %v5981_v43 = vpop.f32.mrf.mxu1 }
 0xa70   :  { %v6006_v11 = vadd.f32 %v6005_v28, %v5993_v36 }
 0xa72   :  { %v6063_v35 = vmax.f32 %v6006_v11, 0.0 }
 0xa74   :  { %v6067_v56 = vpack.c.bf16 %v6063_v35, %v6063_v35 }
 0xa75   :  { %v5994_v14 = vpop.f32.mrf.mxu2 }
 0xa76   :  { %6360 = vmatmul.bf16.vlgmr.msrb.gmra.mxu2 %v6067_v56  ;;  %v6007_v41 = vpop.f32.mrf.mxu3 }
 0xa85   :  { %v6018_v30 = vpop.f32.mrf.mxu0 }
 0xa86   :  { %v6019_v2 = vadd.f32 %v6018_v30, %v5208_v7  ;;  %v6031_v51 = vpop.f32.mrf.mxu1 }
 0xa88   :  { %v6032_v0 = vadd.f32 %v6031_v51, %v6019_v2 }
 0xa8d   :  { %v6044_v1 = vpop.f32.mrf.mxu2  ;;  %v6020_v18 = vpop.f32.mrf.mxu0 }
 0xa8e   :  { %v6045_v44 = vadd.f32 %v6044_v1, %v6032_v0  ;;  %v6057_v17 = vpop.f32.mrf.mxu3  ;;  %v6033_v20 = vpop.f32.mrf.mxu1 }
 0xa90   :  { %v6058_v42 = vadd.f32 %v6057_v17, %v6045_v44 }
 0xa92   :  { %v6064_v63 = vmax.f32 %v6058_v42, 0.0 }
 0xa94   :  { %v6068_v16 = vpack.c.bf16 %v6064_v63, %v6064_v63 }
 0xa95   :  { %v6046_v31 = vpop.f32.mrf.mxu2 }
 0xa96   :  { %v6059_v50 = vpop.f32.mrf.mxu3  ;;  %6373 = vmatmul.bf16.vlgmr.msrb.gmra.mxu3 %v6068_v16 }
 0xab3   :  { %v6335_v60 = vpop.f32.mrf.mxu0 }
 0xab4   :  { %v6336_v55 = vadd.f32 %v6335_v60, %v6133_v19 }
 0xabb   :  { %v6337_v21 = vpop.f32.mrf.mxu0 }
 0xad3   :  { %v6348_v37 = vpop.f32.mrf.mxu1 }
 0xad4   :  { %v6349_v3 = vadd.f32 %v6348_v37, %v6336_v55 }
 0xadb   :  { %v6350_v27 = vpop.f32.mrf.mxu1 }
 0xaf9   :  { %v6361_v4 = vpop.f32.mrf.mxu2 }
 0xafa   :  { %v6362_v5 = vadd.f32 %v6361_v4, %v6349_v3 }
 0xb01   :  { %v6363_v32 = vpop.f32.mrf.mxu2 }
 0xb19   :  { %v6374_v29 = vpop.f32.mrf.mxu3 }
 0xb1a   :  { %v6375_v10 = vadd.f32 %v6374_v29, %v6362_v5 }
 0xb1c   :  { %v6378_v22 = vmul.f32 1.442695, %v6375_v10 }
 0xb1e   :  { %8412 = vpow2.f32 %v6378_v22 }
 0xb21   :  { %v6376_v8 = vpop.f32.mrf.mxu3 }
 0xb24   :  { %v8413_v52 = vpop.eup %8412 }
 0xb25   :  { %6391 = vrot.lane.b32.xlu1 %v8413_v52, %s8576_s2  ;;  %6382 = vrot.lane.b32.xlu0 %v8413_v52, %s8577_s12 }
 0xb2d   :  { %6388 = vrot.lane.b32.xlu0 %v6375_v10, %s8576_s2 }
 0xb97   :  { %v6383_v40 = vpop.permute.xlu0 %6382  ;;  %v6392_v12 = vpop.permute.xlu1 %6391 }
 0xb98   :  { %v6385_v53 = vmul.f32 %v6383_v40, %v6380_v26 }
 0xb9a   :  { %v6386_v34 = vadd.f32 %v6385_v53, %v6375_v10 }
 0xb9f   :  { %v6389_v23 = vpop.permute.xlu0 %6388 }
 0xba0   :  { %v6395_v24 = vsel %vm6394_vm4, %v6386_v34, %v6389_v23 }
 0xba1   :  { %v6396_v59 = vsel %vm446_vm2, %v6395_v24, %v6392_v12 }
 0xba2   :  { %v6398_v33 = vsel %vm6397_vm5, %v6396_v59, 0.0 }
 0xba3   :  { %6399 = vst [vmem:[%s10779_s6] sm:$0x3] %v6398_v33 }
 0xba4   :  { %6404 = vsyncpa [#allocation5], 1 }
 0xba5   :  { %6405 = vsyncpa [#allocation7], 1 }
 0xba6   :  { %6406 = vsyncmov [#allocation3] }
 0xba9   :  { %s6407_s4 = vpop.sfrf %6406 }
 0xbaa   :  { %p8010_p0 = scmp.ne.s32.totalorder %s6407_s4, 0 }
 0xbac   :  { %6411 = shalt.err (%p8010_p0)  }
 0xbad   :  { %6413 = vsyncmov [#allocation3 + $0x1] }
 0xbb0   :  { %s6414_s14 = vpop.sfrf %6413 }
 0xbb1   :  { %p8011_p1 = scmp.ne.s32.totalorder %s6414_s14, 0 }
 0xbb3   :  { %6418 = shalt.err (%p8011_p1)  }
 0xbb4   :  { %6420 = vsyncmov [#allocation3 + $0x2] }
 0xbb7   :  { %s6421_s15 = vpop.sfrf %6420 }
 0xbb8   :  { %p8012_p2 = scmp.ne.s32.totalorder %s6421_s15, 0 }
 0xbba   :  { %6425 = shalt.err (%p8012_p2)  }

</bundles_post_ra>
